<compile_context>
chip_gen: v7x
topology: tpu7x:2x2x1
jax: 0.10.0
libtpu: 0.0.40
codegen_flags: <defaults>
</compile_context>

<pallas_src>
import functools

import jax
import jax.numpy as jnp
from jax.experimental import pallas as pl
from jax.experimental.pallas import tpu as pltpu

BN_EPS = 1e-5
CPAD = 128          # lane-dense channel padding
STEM_CH = 16
STEM_K = 32         # 3*3*3 = 27 padded to a sublane-aligned 32

# Per stage: list of blocks, each (cin, cout, stride, expand_ratio)
STAGES = [
    [(16, 24, 2, 4)],
    [(24, 32, 1, 4), (32, 32, 1, 4)],   # second block has residual (s=1, cin==cout)
    [(32, 48, 2, 4)],
]
BLOCK_IDX = [1, 2]  # stages at which features are collected (like blocks_idx)


# --------------------------------------------------------------------------
# Pallas kernels
# --------------------------------------------------------------------------
def _apply_act(y, act):
    if act == "silu":
        return y * jax.nn.sigmoid(y)
    if act == "sigmoid":
        return jax.nn.sigmoid(y)
    return y


def _gemm_kernel(x_ref, w_ref, s_ref, b_ref, o_ref, *, act):
    # y = act((x @ w) * scale + bias), f32 accumulation, bf16 store.
    y = jnp.dot(x_ref[...], w_ref[...], preferred_element_type=jnp.float32)
    y = y * s_ref[...] + b_ref[...]
    o_ref[...] = _apply_act(y, act).astype(o_ref.dtype)


def _dw_kernel(ph_ref, w_ref, s_ref, b_ref, o_ref, p_ref, *, stride, Ho, Wo, Hp2):
    # Depthwise 3x3 + BN + SiLU, taps formed in-kernel from one padded image
    # block (stride 1) or its 4-phase decomposition (stride 2).
    # Also emits the SE global average pool (mean over Ho*Wo) as a second output.
    acc = None
    for dy in range(3):
        for dx in range(3):
            if stride == 1:
                pidx, qy, qx = 0, dy, dx
            else:
                pidx, qy, qx = (dy % 2) * 2 + (dx % 2), dy // 2, dx // 2
            r0 = pidx * Hp2 + qy
            tap = ph_ref[0, r0:r0 + Ho, qx:qx + Wo, :]          # (Ho, Wo, C) bf16
            wk = w_ref[dy * 3 + dx][None]                       # (1, 1, C) f32
            term = tap.astype(jnp.float32) * wk
            acc = term if acc is None else acc + term
    y = acc * s_ref[...][None] + b_ref[...][None]
    y = y * jax.nn.sigmoid(y)                                   # SiLU in f32
    o_ref[0] = y.astype(o_ref.dtype)
    p_ref[...] = jnp.mean(y, axis=(0, 1), keepdims=True).astype(p_ref.dtype)


def _se_kernel(p_ref, w1_ref, b1_ref, w2_ref, b2_ref, o_ref):
    # Fused SE: gate = sigmoid(silu(pooled @ w1 + b1) @ w2 + b2)
    h = jnp.dot(p_ref[...], w1_ref[...], preferred_element_type=jnp.float32)
    h = h + b1_ref[...]
    h = h * jax.nn.sigmoid(h)
    g = jnp.dot(h, w2_ref[...], preferred_element_type=jnp.float32)
    g = g + b2_ref[...]
    o_ref[...] = jax.nn.sigmoid(g).astype(o_ref.dtype)


def _proj_kernel(x_ref, g_ref, w_ref, s_ref, b_ref, *rest, has_res):
    # Projection pw-conv with the SE gate applied in-kernel (per-row broadcast)
    # + folded BN (+ residual).
    if has_res:
        r_ref, o_ref = rest
    else:
        (o_ref,) = rest
    xg = x_ref[0].astype(jnp.float32) * g_ref[0]                # (tm, C)
    y = jnp.dot(xg.astype(jnp.bfloat16), w_ref[...],
                preferred_element_type=jnp.float32)
    y = y * s_ref[...] + b_ref[...]
    if has_res:
        y = y + r_ref[0].astype(jnp.float32)
    o_ref[0] = y.astype(o_ref.dtype)


# --------------------------------------------------------------------------
# Pallas wrappers
# --------------------------------------------------------------------------
def _pick_tile(m, cap=512):
    for t in (cap, 256, 128, 64, 32, 16, 8):
        if t <= m and m % t == 0:
            return t
    return m


def pw_conv_bn_act(x, w, scale, bias, act):
    """y = act((x @ w) * scale + bias). x:(M,K) bf16, w:(K,N) bf16 -> (M,N) bf16."""
    M, K = x.shape
    N = w.shape[1]
    tm = _pick_tile(M)
    grid = (M // tm,)
    return pl.pallas_call(
        functools.partial(_gemm_kernel, act=act),
        grid=grid,
        in_specs=[pl.BlockSpec((tm, K), lambda i: (i, 0)),
                  pl.BlockSpec((K, N), lambda i: (0, 0)),
                  pl.BlockSpec((1, N), lambda i: (0, 0)),
                  pl.BlockSpec((1, N), lambda i: (0, 0))],
        out_specs=pl.BlockSpec((tm, N), lambda i: (i, 0)),
        out_shape=jax.ShapeDtypeStruct((M, N), jnp.bfloat16),
        compiler_params=pltpu.CompilerParams(dimension_semantics=("parallel",)),
    )(x, w, scale, bias)


def dwconv_bn_silu_pool(h_flat, B, H, W, dw_w, dw_scale, dw_bias, stride):
    """Depthwise 3x3 (pad=1) + BN + SiLU + fused global average pool.

    Returns (act (B,Ho,Wo,C) bf16, pooled (B,1,C) f32, Ho, Wo)."""
    C = CPAD
    x = h_flat.reshape(B, H, W, C)
    xp = jnp.pad(x, ((0, 0), (1, 1), (1, 1), (0, 0)))
    Ho = (H + 2 - 3) // stride + 1
    Wo = (W + 2 - 3) // stride + 1
    if stride == 1:
        P, Hp2, Wp2 = 1, H + 2, W + 2
        phases = xp                                             # (B, Hp, Wp, C)
    else:
        Hp, Wp = H + 2, W + 2
        Hpe, Wpe = Hp + (Hp % 2), Wp + (Wp % 2)
        xp = jnp.pad(xp, ((0, 0), (0, Hpe - Hp), (0, Wpe - Wp), (0, 0)))
        P, Hp2, Wp2 = 4, Hpe // 2, Wpe // 2
        phases = jnp.concatenate(                               # (B, 4*Hp2, Wp2, C)
            [xp[:, ry::2, rx::2, :] for ry in range(2) for rx in range(2)],
            axis=1)
    kernel = functools.partial(_dw_kernel, stride=stride, Ho=Ho, Wo=Wo, Hp2=Hp2)
    out, pooled = pl.pallas_call(
        kernel,
        grid=(B,),
        in_specs=[
            pl.BlockSpec((1, P * Hp2, Wp2, C), lambda b: (b, 0, 0, 0)),
            pl.BlockSpec((9, 1, C), lambda b: (0, 0, 0)),
            pl.BlockSpec((1, C), lambda b: (0, 0)),
            pl.BlockSpec((1, C), lambda b: (0, 0)),
        ],
        out_specs=(
            pl.BlockSpec((1, Ho, Wo, C), lambda b: (b, 0, 0, 0)),
            pl.BlockSpec((1, 1, C), lambda b: (b, 0, 0)),
        ),
        out_shape=(
            jax.ShapeDtypeStruct((B, Ho, Wo, C), jnp.bfloat16),
            jax.ShapeDtypeStruct((B, 1, C), jnp.float32),
        ),
        compiler_params=pltpu.CompilerParams(dimension_semantics=("parallel",)),
    )(phases, dw_w, dw_scale, dw_bias)
    return out, pooled, Ho, Wo


def se_gate(pooled, w1, b1, w2, b2):
    """pooled:(B,C) f32 -> gate (B,C) f32 in a single fused kernel."""
    B, C = pooled.shape
    full2 = lambda shape: pl.BlockSpec(shape, lambda i: (0, 0))
    return pl.pallas_call(
        _se_kernel,
        grid=(1,),
        in_specs=[full2((B, C)), full2((C, C)), full2((1, C)),
                  full2((C, C)), full2((1, C))],
        out_specs=full2((B, C)),
        out_shape=jax.ShapeDtypeStruct((B, C), jnp.float32),
    )(pooled, w1, b1, w2, b2)


def proj_conv_gated(h_img, gate, w, scale, bias, residual=None):
    """out = ((h * gate) @ w) * scale + bias (+ residual).  Gate broadcast in-kernel."""
    B, Ho, Wo, C = h_img.shape
    HW = Ho * Wo
    N = w.shape[1]
    x = h_img.reshape(B, HW, C)
    g = gate.reshape(B, 1, C)
    tm = _pick_tile(HW)
    grid = (B, HW // tm)
    x_spec = pl.BlockSpec((1, tm, C), lambda b, m: (b, m, 0))
    g_spec = pl.BlockSpec((1, 1, C), lambda b, m: (b, 0, 0))
    w_spec = pl.BlockSpec((C, N), lambda b, m: (0, 0))
    v_spec = pl.BlockSpec((1, N), lambda b, m: (0, 0))
    o_spec = pl.BlockSpec((1, tm, N), lambda b, m: (b, m, 0))
    out_shape = jax.ShapeDtypeStruct((B, HW, N), jnp.bfloat16)
    cp = pltpu.CompilerParams(dimension_semantics=("parallel", "parallel"))
    if residual is None:
        out = pl.pallas_call(
            functools.partial(_proj_kernel, has_res=False),
            grid=grid,
            in_specs=[x_spec, g_spec, w_spec, v_spec, v_spec],
            out_specs=o_spec, out_shape=out_shape, compiler_params=cp,
        )(x, g, w, scale, bias)
    else:
        r = residual.reshape(B, HW, N)
        out = pl.pallas_call(
            functools.partial(_proj_kernel, has_res=True),
            grid=grid,
            in_specs=[x_spec, g_spec, w_spec, v_spec, v_spec, o_spec],
            out_specs=o_spec, out_shape=out_shape, compiler_params=cp,
        )(x, g, w, scale, bias, r)
    return out.reshape(B * HW, N)


# --------------------------------------------------------------------------
# Glue: stem im2col, MBConv, parameter init
# --------------------------------------------------------------------------
def im2col_3x3(x_img, stride):
    """3x3 pad=1 im2col for the 3-channel stem (tiny; done in XLA)."""
    B, H, W, C = x_img.shape
    Ho = (H + 2 - 3) // stride + 1
    Wo = (W + 2 - 3) // stride + 1
    xp = jnp.pad(x_img, ((0, 0), (1, 1), (1, 1), (0, 0)))
    cols = []
    for dy in range(3):
        for dx in range(3):
            t = xp[:, dy:dy + (Ho - 1) * stride + 1:stride,
                      dx:dx + (Wo - 1) * stride + 1:stride, :]
            cols.append(t)
    col = jnp.concatenate(cols, axis=-1)               # (B, Ho, Wo, 9*C)
    return col.reshape(B * Ho * Wo, 9 * C), Ho, Wo


def stem_forward(x_nchw, sp):
    x = jnp.transpose(x_nchw, (0, 2, 3, 1)).astype(jnp.float32)    # NHWC
    col, H, W = im2col_3x3(x, stride=2)                            # (M, 27)
    col = jnp.pad(col, ((0, 0), (0, STEM_K - col.shape[1]))).astype(jnp.bfloat16)
    h = pw_conv_bn_act(col, sp["w"], sp["scale"], sp["bias"], "silu")
    return h, H, W


def mbconv_block(x_flat, B, H, W, p, cfg):
    cin, cout, stride, expand = cfg
    # expansion pointwise conv + BN + SiLU
    h = pw_conv_bn_act(x_flat, p["exp_w"], p["exp_scale"], p["exp_bias"], "silu")
    # depthwise 3x3 + BN + SiLU, fused SE average pool
    h_img, pooled, Ho, Wo = dwconv_bn_silu_pool(
        h, B, H, W, p["dw_w"], p["dw_scale"], p["dw_bias"], stride)
    # squeeze-excite gate (fused FC1/SiLU/FC2/sigmoid)
    gate = se_gate(pooled.reshape(B, CPAD),
                   p["se_w1"], p["se_b1"], p["se_w2"], p["se_b2"])
    # projection pointwise conv + BN, gate applied in-kernel (+ residual)
    residual = x_flat if (stride == 1 and cin == cout) else None
    out = proj_conv_gated(h_img, gate, p["proj_w"], p["proj_scale"],
                          p["proj_bias"], residual)
    return out, Ho, Wo


def _bn_fold(key, c):
    kg, kb, km, kv = jax.random.split(key, 4)
    gamma = 1.0 + 0.1 * jax.random.normal(kg, (c,))
    beta = 0.1 * jax.random.normal(kb, (c,))
    mean = 0.1 * jax.random.normal(km, (c,))
    var = 1.0 + 0.1 * jax.random.uniform(kv, (c,))
    scale = gamma / jnp.sqrt(var + BN_EPS)
    bias = beta - mean * scale
    s = jnp.zeros((1, CPAD), jnp.float32).at[0, :c].set(scale.astype(jnp.float32))
    b = jnp.zeros((1, CPAD), jnp.float32).at[0, :c].set(bias.astype(jnp.float32))
    return s, b


def _conv_w(key, shape, fan_in):
    return (jax.random.normal(key, shape) / jnp.sqrt(float(fan_in))).astype(jnp.float32)


def _pad_mat(w, rows, cols, dtype):
    out = jnp.zeros((rows, cols), dtype)
    return out.at[:w.shape[0], :w.shape[1]].set(w.astype(dtype))


def init_mbconv(key, cin, cout, expand):
    cmid = cin * expand
    cse = max(1, cin // 4)
    ks = jax.random.split(key, 10)
    p = {}
    p["exp_w"] = _pad_mat(_conv_w(ks[0], (cin, cmid), cin), CPAD, CPAD, jnp.bfloat16)
    p["exp_scale"], p["exp_bias"] = _bn_fold(ks[1], cmid)
    dw = _conv_w(ks[2], (3, 3, cmid), 9)
    p["dw_w"] = (jnp.zeros((3, 3, CPAD), jnp.float32)
                 .at[:, :, :cmid].set(dw)).reshape(9, 1, CPAD)
    p["dw_scale"], p["dw_bias"] = _bn_fold(ks[3], cmid)
    p["se_w1"] = _pad_mat(_conv_w(ks[4], (cmid, cse), cmid), CPAD, CPAD, jnp.float32)
    p["se_b1"] = jnp.zeros((1, CPAD), jnp.float32).at[0, :cse].set(
        (0.01 * jax.random.normal(ks[5], (cse,))).astype(jnp.float32))
    p["se_w2"] = _pad_mat(_conv_w(ks[6], (cse, cmid), cse), CPAD, CPAD, jnp.float32)
    p["se_b2"] = jnp.zeros((1, CPAD), jnp.float32).at[0, :cmid].set(
        (0.01 * jax.random.normal(ks[7], (cmid,))).astype(jnp.float32))
    p["proj_w"] = _pad_mat(_conv_w(ks[8], (cmid, cout), cmid), CPAD, CPAD, jnp.bfloat16)
    p["proj_scale"], p["proj_bias"] = _bn_fold(ks[9], cout)
    return p


def init_params(key):
    # TODO(synk): pretrained timm weights cannot be loaded here; random folded-BN params.
    n_blocks = sum(len(s) for s in STAGES)
    keys = jax.random.split(key, 2 + n_blocks)
    stem_w = _pad_mat(_conv_w(keys[0], (27, STEM_CH), 27), STEM_K, CPAD, jnp.bfloat16)
    stem_scale, stem_bias = _bn_fold(keys[1], STEM_CH)
    params = {"stem": {"w": stem_w, "scale": stem_scale, "bias": stem_bias},
              "blocks": []}
    i = 2
    for stage in STAGES:
        sp = []
        for (cin, cout, stride, expand) in stage:
            sp.append(init_mbconv(keys[i], cin, cout, expand))
            i += 1
        params["blocks"].append(sp)
    return params


def efficientnet_features(x_nchw, params):
    """Equivalent of EfficientNet.forward: returns list of NCHW feature maps."""
    B = x_nchw.shape[0]
    h, H, W = stem_forward(x_nchw, params["stem"])                 # (B*H*W, CPAD)
    features = []
    for si, (stage_cfg, stage_p) in enumerate(zip(STAGES, params["blocks"])):
        for cfg, p in zip(stage_cfg, stage_p):
            h, H, W = mbconv_block(h, B, H, W, p, cfg)
        if si in BLOCK_IDX:
            cout = stage_cfg[-1][1]
            feat = h.reshape(B, H, W, CPAD)[..., :cout]            # drop lane padding
            features.append(jnp.transpose(feat, (0, 3, 1, 2)).astype(jnp.float32))
    return features


if __name__ == "__main__":
    key = jax.random.PRNGKey(0)
    kx, kp = jax.random.split(key)
    x = jax.random.normal(kx, (2, 3, 32, 32), dtype=jnp.float32)   # NCHW input
    params = init_params(kp)

    feats = jax.jit(lambda inp: efficientnet_features(inp, params))(x)
    feats = jax.block_until_ready(feats)

    assert feats[0].shape == (2, 32, 8, 8), feats[0].shape
    assert feats[1].shape == (2, 48, 4, 4), feats[1].shape
    assert all(bool(jnp.all(jnp.isfinite(f))) for f in feats)
    print("KERNEL_OK")
</pallas_src>

<mosaic_0001>
module attributes {stable_mosaic.version = 11 : i64} {
  func.func @_gemm_kernel(%arg0: i32, %arg1: memref<512x32xbf16, #tpu.memory_space<vmem>>, %arg2: memref<32x128xbf16, #tpu.memory_space<vmem>>, %arg3: memref<1x128xf32, #tpu.memory_space<vmem>>, %arg4: memref<1x128xf32, #tpu.memory_space<vmem>>, %arg5: memref<512x128xbf16, #tpu.memory_space<vmem>>) attributes {dimension_semantics = [#tpu.dimension_semantics<parallel>], iteration_bounds = array<i64: 1>, scalar_prefetch = 0 : i64, scratch_operands = 0 : i64, tpu.core_type = #tpu.core_type<tc>, window_params = [{transform_indices = @transform_0, window_bounds = array<i64: 512, 32>}, {pipeline_mode = #tpu.pipeline_mode<synchronous>, transform_indices = @transform_1, window_bounds = array<i64: 32, 128>}, {pipeline_mode = #tpu.pipeline_mode<synchronous>, transform_indices = @transform_2, window_bounds = array<i64: 1, 128>}, {pipeline_mode = #tpu.pipeline_mode<synchronous>, transform_indices = @transform_3, window_bounds = array<i64: 1, 128>}, {transform_indices = @transform_4, window_bounds = array<i64: 512, 128>}]} {
    %c0 = arith.constant 0 : index
    %c0_0 = arith.constant 0 : index
    %0 = vector.load %arg1[%c0, %c0_0] : memref<512x32xbf16, #tpu.memory_space<vmem>>, vector<512x32xbf16>
    %c0_1 = arith.constant 0 : index
    %c0_2 = arith.constant 0 : index
    %1 = vector.load %arg2[%c0_1, %c0_2] : memref<32x128xbf16, #tpu.memory_space<vmem>>, vector<32x128xbf16>
    %cst = arith.constant dense<0.000000e+00> : vector<512x128xf32>
    %2 = tpu.matmul %0, %1, %cst {dimension_numbers = #tpu.dot_dimension_numbers<[1], [0], [0], [1], [0, 0, 1, 1], [], []>} : vector<512x32xbf16>, vector<32x128xbf16>, vector<512x128xf32> -> vector<512x128xf32>
    %c0_3 = arith.constant 0 : index
    %c0_4 = arith.constant 0 : index
    %3 = vector.load %arg3[%c0_3, %c0_4] : memref<1x128xf32, #tpu.memory_space<vmem>>, vector<1x128xf32>
    %4 = vector.broadcast %3 : vector<1x128xf32> to vector<512x128xf32>
    %5 = arith.mulf %2, %4 : vector<512x128xf32>
    %c0_5 = arith.constant 0 : index
    %c0_6 = arith.constant 0 : index
    %6 = vector.load %arg4[%c0_5, %c0_6] : memref<1x128xf32, #tpu.memory_space<vmem>>, vector<1x128xf32>
    %7 = vector.broadcast %6 : vector<1x128xf32> to vector<512x128xf32>
    %8 = arith.addf %5, %7 : vector<512x128xf32>
    %9 = arith.negf %8 : vector<512x128xf32>
    %10 = math.exp %9 : vector<512x128xf32>
    %cst_7 = arith.constant 1.000000e+00 : f32
    %11 = vector.broadcast %cst_7 : f32 to vector<512x128xf32>
    %12 = arith.addf %11, %10 : vector<512x128xf32>
    %13 = arith.divf %11, %12 : vector<512x128xf32>
    %14 = arith.mulf %8, %13 : vector<512x128xf32>
    %15 = arith.truncf %14 : vector<512x128xf32> to vector<512x128xbf16>
    %c0_8 = arith.constant 0 : index
    %c0_9 = arith.constant 0 : index
    %16 = vector.load %arg5[%c0_8, %c0_9] : memref<512x128xbf16, #tpu.memory_space<vmem>>, vector<512x128xbf16>
    tpu.vector_store %arg5[%c0_8, %c0_9], %15 {strides = array<i32>} : memref<512x128xbf16, #tpu.memory_space<vmem>>, vector<512x128xbf16>,
    return
  }
  func.func @transform_0(%arg0: i32) -> (i32, i32) {
    %c0_i32 = arith.constant 0 : i32
    %c0_i32_0 = arith.constant 0 : i32
    return %arg0, %c0_i32 : i32, i32
  }
  func.func @transform_1(%arg0: i32) -> (i32, i32) {
    %c0_i32 = arith.constant 0 : i32
    %c0_i32_0 = arith.constant 0 : i32
    %c0_i32_1 = arith.constant 0 : i32
    return %c0_i32, %c0_i32_0 : i32, i32
  }
  func.func @transform_2(%arg0: i32) -> (i32, i32) {
    %c0_i32 = arith.constant 0 : i32
    %c0_i32_0 = arith.constant 0 : i32
    %c0_i32_1 = arith.constant 0 : i32
    return %c0_i32, %c0_i32_0 : i32, i32
  }
  func.func @transform_3(%arg0: i32) -> (i32, i32) {
    %c0_i32 = arith.constant 0 : i32
    %c0_i32_0 = arith.constant 0 : i32
    %c0_i32_1 = arith.constant 0 : i32
    return %c0_i32, %c0_i32_0 : i32, i32
  }
  func.func @transform_4(%arg0: i32) -> (i32, i32) {
    %c0_i32 = arith.constant 0 : i32
    %c0_i32_0 = arith.constant 0 : i32
    return %arg0, %c0_i32 : i32, i32
  }
}

module attributes {stable_mosaic.version = 11 : i64} {
  func.func @_gemm_kernel(%arg0: i32, %arg1: memref<512x128xbf16, #tpu.memory_space<vmem>>, %arg2: memref<128x128xbf16, #tpu.memory_space<vmem>>, %arg3: memref<1x128xf32, #tpu.memory_space<vmem>>, %arg4: memref<1x128xf32, #tpu.memory_space<vmem>>, %arg5: memref<512x128xbf16, #tpu.memory_space<vmem>>) attributes {dimension_semantics = [#tpu.dimension_semantics<parallel>], iteration_bounds = array<i64: 1>, scalar_prefetch = 0 : i64, scratch_operands = 0 : i64, tpu.core_type = #tpu.core_type<tc>, window_params = [{transform_indices = @transform_0, window_bounds = array<i64: 512, 128>}, {pipeline_mode = #tpu.pipeline_mode<synchronous>, transform_indices = @transform_1, window_bounds = array<i64: 128, 128>}, {pipeline_mode = #tpu.pipeline_mode<synchronous>, transform_indices = @transform_2, window_bounds = array<i64: 1, 128>}, {pipeline_mode = #tpu.pipeline_mode<synchronous>, transform_indices = @transform_3, window_bounds = array<i64: 1, 128>}, {transform_indices = @transform_4, window_bounds = array<i64: 512, 128>}]} {
    %c0 = arith.constant 0 : index
    %c0_0 = arith.constant 0 : index
    %0 = vector.load %arg1[%c0, %c0_0] : memref<512x128xbf16, #tpu.memory_space<vmem>>, vector<512x128xbf16>
    %c0_1 = arith.constant 0 : index
    %c0_2 = arith.constant 0 : index
    %1 = vector.load %arg2[%c0_1, %c0_2] : memref<128x128xbf16, #tpu.memory_space<vmem>>, vector<128x128xbf16>
    %cst = arith.constant dense<0.000000e+00> : vector<512x128xf32>
    %2 = tpu.matmul %0, %1, %cst {dimension_numbers = #tpu.dot_dimension_numbers<[1], [0], [0], [1], [0, 0, 1, 1], [], []>} : vector<512x128xbf16>, vector<128x128xbf16>, vector<512x128xf32> -> vector<512x128xf32>
    %c0_3 = arith.constant 0 : index
    %c0_4 = arith.constant 0 : index
    %3 = vector.load %arg3[%c0_3, %c0_4] : memref<1x128xf32, #tpu.memory_space<vmem>>, vector<1x128xf32>
    %4 = vector.broadcast %3 : vector<1x128xf32> to vector<512x128xf32>
    %5 = arith.mulf %2, %4 : vector<512x128xf32>
    %c0_5 = arith.constant 0 : index
    %c0_6 = arith.constant 0 : index
    %6 = vector.load %arg4[%c0_5, %c0_6] : memref<1x128xf32, #tpu.memory_space<vmem>>, vector<1x128xf32>
    %7 = vector.broadcast %6 : vector<1x128xf32> to vector<512x128xf32>
    %8 = arith.addf %5, %7 : vector<512x128xf32>
    %9 = arith.negf %8 : vector<512x128xf32>
    %10 = math.exp %9 : vector<512x128xf32>
    %cst_7 = arith.constant 1.000000e+00 : f32
    %11 = vector.broadcast %cst_7 : f32 to vector<512x128xf32>
    %12 = arith.addf %11, %10 : vector<512x128xf32>
    %13 = arith.divf %11, %12 : vector<512x128xf32>
    %14 = arith.mulf %8, %13 : vector<512x128xf32>
    %15 = arith.truncf %14 : vector<512x128xf32> to vector<512x128xbf16>
    %c0_8 = arith.constant 0 : index
    %c0_9 = arith.constant 0 : index
    %16 = vector.load %arg5[%c0_8, %c0_9] : memref<512x128xbf16, #tpu.memory_space<vmem>>, vector<512x128xbf16>
    tpu.vector_store %arg5[%c0_8, %c0_9], %15 {strides = array<i32>} : memref<512x128xbf16, #tpu.memory_space<vmem>>, vector<512x128xbf16>,
    return
  }
  func.func @transform_0(%arg0: i32) -> (i32, i32) {
    %c0_i32 = arith.constant 0 : i32
    %c0_i32_0 = arith.constant 0 : i32
    return %arg0, %c0_i32 : i32, i32
  }
  func.func @transform_1(%arg0: i32) -> (i32, i32) {
    %c0_i32 = arith.constant 0 : i32
    %c0_i32_0 = arith.constant 0 : i32
    %c0_i32_1 = arith.constant 0 : i32
    return %c0_i32, %c0_i32_0 : i32, i32
  }
  func.func @transform_2(%arg0: i32) -> (i32, i32) {
    %c0_i32 = arith.constant 0 : i32
    %c0_i32_0 = arith.constant 0 : i32
    %c0_i32_1 = arith.constant 0 : i32
    return %c0_i32, %c0_i32_0 : i32, i32
  }
  func.func @transform_3(%arg0: i32) -> (i32, i32) {
    %c0_i32 = arith.constant 0 : i32
    %c0_i32_0 = arith.constant 0 : i32
    %c0_i32_1 = arith.constant 0 : i32
    return %c0_i32, %c0_i32_0 : i32, i32
  }
  func.func @transform_4(%arg0: i32) -> (i32, i32) {
    %c0_i32 = arith.constant 0 : i32
    %c0_i32_0 = arith.constant 0 : i32
    return %arg0, %c0_i32 : i32, i32
  }
}

module attributes {stable_mosaic.version = 11 : i64} {
  func.func @_dw_kernel(%arg0: i32, %arg1: memref<1x36x9x128xbf16, #tpu.memory_space<vmem>>, %arg2: memref<9x1x128xf32, #tpu.memory_space<vmem>>, %arg3: memref<1x128xf32, #tpu.memory_space<vmem>>, %arg4: memref<1x128xf32, #tpu.memory_space<vmem>>, %arg5: memref<1x8x8x128xbf16, #tpu.memory_space<vmem>>, %arg6: memref<1x1x128xf32, #tpu.memory_space<vmem>>) attributes {dimension_semantics = [#tpu.dimension_semantics<parallel>], iteration_bounds = array<i64: 2>, scalar_prefetch = 0 : i64, scratch_operands = 0 : i64, tpu.core_type = #tpu.core_type<tc>, window_params = [{transform_indices = @transform_0, window_bounds = array<i64: 1, 36, 9, 128>}, {pipeline_mode = #tpu.pipeline_mode<synchronous>, transform_indices = @transform_1, window_bounds = array<i64: 9, 1, 128>}, {pipeline_mode = #tpu.pipeline_mode<synchronous>, transform_indices = @transform_2, window_bounds = array<i64: 1, 128>}, {pipeline_mode = #tpu.pipeline_mode<synchronous>, transform_indices = @transform_3, window_bounds = array<i64: 1, 128>}, {transform_indices = @transform_4, window_bounds = array<i64: 1, 8, 8, 128>}, {transform_indices = @transform_5, window_bounds = array<i64: 1, 1, 128>}]} {
    %c0 = arith.constant 0 : index
    %c0_0 = arith.constant 0 : index
    %c0_1 = arith.constant 0 : index
    %c0_2 = arith.constant 0 : index
    %0 = vector.load %arg1[%c0, %c0_0, %c0_1, %c0_2] : memref<1x36x9x128xbf16, #tpu.memory_space<vmem>>, vector<1x8x8x128xbf16>
    %1 = vector.shape_cast %0 : vector<1x8x8x128xbf16> to vector<8x8x128xbf16>
    %c0_3 = arith.constant 0 : index
    %c0_4 = arith.constant 0 : index
    %c0_5 = arith.constant 0 : index
    %2 = vector.load %arg2[%c0_3, %c0_4, %c0_5] : memref<9x1x128xf32, #tpu.memory_space<vmem>>, vector<1x1x128xf32>
    %3 = vector.shape_cast %2 : vector<1x1x128xf32> to vector<1x128xf32>
    %4 = vector.shape_cast %3 : vector<1x128xf32> to vector<1x1x128xf32>
    %5 = arith.extf %1 : vector<8x8x128xbf16> to vector<8x8x128xf32>
    %6 = vector.broadcast %4 : vector<1x1x128xf32> to vector<8x8x128xf32>
    %7 = arith.mulf %5, %6 : vector<8x8x128xf32>
    %c0_6 = arith.constant 0 : index
    %c9 = arith.constant 9 : index
    %c0_7 = arith.constant 0 : index
    %c0_8 = arith.constant 0 : index
    %8 = vector.load %arg1[%c0_6, %c9, %c0_7, %c0_8] : memref<1x36x9x128xbf16, #tpu.memory_space<vmem>>, vector<1x8x8x128xbf16>
    %9 = vector.shape_cast %8 : vector<1x8x8x128xbf16> to vector<8x8x128xbf16>
    %c1 = arith.constant 1 : index
    %c0_9 = arith.constant 0 : index
    %c0_10 = arith.constant 0 : index
    %10 = vector.load %arg2[%c1, %c0_9, %c0_10] : memref<9x1x128xf32, #tpu.memory_space<vmem>>, vector<1x1x128xf32>
    %11 = vector.shape_cast %10 : vector<1x1x128xf32> to vector<1x128xf32>
    %12 = vector.shape_cast %11 : vector<1x128xf32> to vector<1x1x128xf32>
    %13 = arith.extf %9 : vector<8x8x128xbf16> to vector<8x8x128xf32>
    %14 = vector.broadcast %12 : vector<1x1x128xf32> to vector<8x8x128xf32>
    %15 = arith.mulf %13, %14 : vector<8x8x128xf32>
    %16 = arith.addf %7, %15 : vector<8x8x128xf32>
    %c0_11 = arith.constant 0 : index
    %c0_12 = arith.constant 0 : index
    %c1_13 = arith.constant 1 : index
    %c0_14 = arith.constant 0 : index
    %17 = vector.load %arg1[%c0_11, %c0_12, %c1_13, %c0_14] : memref<1x36x9x128xbf16, #tpu.memory_space<vmem>>, vector<1x8x8x128xbf16>
    %18 = vector.shape_cast %17 : vector<1x8x8x128xbf16> to vector<8x8x128xbf16>
    %c2 = arith.constant 2 : index
    %c0_15 = arith.constant 0 : index
    %c0_16 = arith.constant 0 : index
    %19 = vector.load %arg2[%c2, %c0_15, %c0_16] : memref<9x1x128xf32, #tpu.memory_space<vmem>>, vector<1x1x128xf32>
    %20 = vector.shape_cast %19 : vector<1x1x128xf32> to vector<1x128xf32>
    %21 = vector.shape_cast %20 : vector<1x128xf32> to vector<1x1x128xf32>
    %22 = arith.extf %18 : vector<8x8x128xbf16> to vector<8x8x128xf32>
    %23 = vector.broadcast %21 : vector<1x1x128xf32> to vector<8x8x128xf32>
    %24 = arith.mulf %22, %23 : vector<8x8x128xf32>
    %25 = arith.addf %16, %24 : vector<8x8x128xf32>
    %c0_17 = arith.constant 0 : index
    %c18 = arith.constant 18 : index
    %c0_18 = arith.constant 0 : index
    %c0_19 = arith.constant 0 : index
    %26 = vector.load %arg1[%c0_17, %c18, %c0_18, %c0_19] : memref<1x36x9x128xbf16, #tpu.memory_space<vmem>>, vector<1x8x8x128xbf16>
    %27 = vector.shape_cast %26 : vector<1x8x8x128xbf16> to vector<8x8x128xbf16>
    %c3 = arith.constant 3 : index
    %c0_20 = arith.constant 0 : index
    %c0_21 = arith.constant 0 : index
    %28 = vector.load %arg2[%c3, %c0_20, %c0_21] : memref<9x1x128xf32, #tpu.memory_space<vmem>>, vector<1x1x128xf32>
    %29 = vector.shape_cast %28 : vector<1x1x128xf32> to vector<1x128xf32>
    %30 = vector.shape_cast %29 : vector<1x128xf32> to vector<1x1x128xf32>
    %31 = arith.extf %27 : vector<8x8x128xbf16> to vector<8x8x128xf32>
    %32 = vector.broadcast %30 : vector<1x1x128xf32> to vector<8x8x128xf32>
    %33 = arith.mulf %31, %32 : vector<8x8x128xf32>
    %34 = arith.addf %25, %33 : vector<8x8x128xf32>
    %c0_22 = arith.constant 0 : index
    %c27 = arith.constant 27 : index
    %c0_23 = arith.constant 0 : index
    %c0_24 = arith.constant 0 : index
    %35 = vector.load %arg1[%c0_22, %c27, %c0_23, %c0_24] : memref<1x36x9x128xbf16, #tpu.memory_space<vmem>>, vector<1x8x8x128xbf16>
    %36 = vector.shape_cast %35 : vector<1x8x8x128xbf16> to vector<8x8x128xbf16>
    %c4 = arith.constant 4 : index
    %c0_25 = arith.constant 0 : index
    %c0_26 = arith.constant 0 : index
    %37 = vector.load %arg2[%c4, %c0_25, %c0_26] : memref<9x1x128xf32, #tpu.memory_space<vmem>>, vector<1x1x128xf32>
    %38 = vector.shape_cast %37 : vector<1x1x128xf32> to vector<1x128xf32>
    %39 = vector.shape_cast %38 : vector<1x128xf32> to vector<1x1x128xf32>
    %40 = arith.extf %36 : vector<8x8x128xbf16> to vector<8x8x128xf32>
    %41 = vector.broadcast %39 : vector<1x1x128xf32> to vector<8x8x128xf32>
    %42 = arith.mulf %40, %41 : vector<8x8x128xf32>
    %43 = arith.addf %34, %42 : vector<8x8x128xf32>
    %c0_27 = arith.constant 0 : index
    %c18_28 = arith.constant 18 : index
    %c1_29 = arith.constant 1 : index
    %c0_30 = arith.constant 0 : index
    %44 = vector.load %arg1[%c0_27, %c18_28, %c1_29, %c0_30] : memref<1x36x9x128xbf16, #tpu.memory_space<vmem>>, vector<1x8x8x128xbf16>
    %45 = vector.shape_cast %44 : vector<1x8x8x128xbf16> to vector<8x8x128xbf16>
    %c5 = arith.constant 5 : index
    %c0_31 = arith.constant 0 : index
    %c0_32 = arith.constant 0 : index
    %46 = vector.load %arg2[%c5, %c0_31, %c0_32] : memref<9x1x128xf32, #tpu.memory_space<vmem>>, vector<1x1x128xf32>
    %47 = vector.shape_cast %46 : vector<1x1x128xf32> to vector<1x128xf32>
    %48 = vector.shape_cast %47 : vector<1x128xf32> to vector<1x1x128xf32>
    %49 = arith.extf %45 : vector<8x8x128xbf16> to vector<8x8x128xf32>
    %50 = vector.broadcast %48 : vector<1x1x128xf32> to vector<8x8x128xf32>
    %51 = arith.mulf %49, %50 : vector<8x8x128xf32>
    %52 = arith.addf %43, %51 : vector<8x8x128xf32>
    %c0_33 = arith.constant 0 : index
    %c1_34 = arith.constant 1 : index
    %c0_35 = arith.constant 0 : index
    %c0_36 = arith.constant 0 : index
    %53 = vector.load %arg1[%c0_33, %c1_34, %c0_35, %c0_36] : memref<1x36x9x128xbf16, #tpu.memory_space<vmem>>, vector<1x8x8x128xbf16>
    %54 = vector.shape_cast %53 : vector<1x8x8x128xbf16> to vector<8x8x128xbf16>
    %c6 = arith.constant 6 : index
    %c0_37 = arith.constant 0 : index
    %c0_38 = arith.constant 0 : index
    %55 = vector.load %arg2[%c6, %c0_37, %c0_38] : memref<9x1x128xf32, #tpu.memory_space<vmem>>, vector<1x1x128xf32>
    %56 = vector.shape_cast %55 : vector<1x1x128xf32> to vector<1x128xf32>
    %57 = vector.shape_cast %56 : vector<1x128xf32> to vector<1x1x128xf32>
    %58 = arith.extf %54 : vector<8x8x128xbf16> to vector<8x8x128xf32>
    %59 = vector.broadcast %57 : vector<1x1x128xf32> to vector<8x8x128xf32>
    %60 = arith.mulf %58, %59 : vector<8x8x128xf32>
    %61 = arith.addf %52, %60 : vector<8x8x128xf32>
    %c0_39 = arith.constant 0 : index
    %c10 = arith.constant 10 : index
    %c0_40 = arith.constant 0 : index
    %c0_41 = arith.constant 0 : index
    %62 = vector.load %arg1[%c0_39, %c10, %c0_40, %c0_41] : memref<1x36x9x128xbf16, #tpu.memory_space<vmem>>, vector<1x8x8x128xbf16>
    %63 = vector.shape_cast %62 : vector<1x8x8x128xbf16> to vector<8x8x128xbf16>
    %c7 = arith.constant 7 : index
    %c0_42 = arith.constant 0 : index
    %c0_43 = arith.constant 0 : index
    %64 = vector.load %arg2[%c7, %c0_42, %c0_43] : memref<9x1x128xf32, #tpu.memory_space<vmem>>, vector<1x1x128xf32>
    %65 = vector.shape_cast %64 : vector<1x1x128xf32> to vector<1x128xf32>
    %66 = vector.shape_cast %65 : vector<1x128xf32> to vector<1x1x128xf32>
    %67 = arith.extf %63 : vector<8x8x128xbf16> to vector<8x8x128xf32>
    %68 = vector.broadcast %66 : vector<1x1x128xf32> to vector<8x8x128xf32>
    %69 = arith.mulf %67, %68 : vector<8x8x128xf32>
    %70 = arith.addf %61, %69 : vector<8x8x128xf32>
    %c0_44 = arith.constant 0 : index
    %c1_45 = arith.constant 1 : index
    %c1_46 = arith.constant 1 : index
    %c0_47 = arith.constant 0 : index
    %71 = vector.load %arg1[%c0_44, %c1_45, %c1_46, %c0_47] : memref<1x36x9x128xbf16, #tpu.memory_space<vmem>>, vector<1x8x8x128xbf16>
    %72 = vector.shape_cast %71 : vector<1x8x8x128xbf16> to vector<8x8x128xbf16>
    %c8 = arith.constant 8 : index
    %c0_48 = arith.constant 0 : index
    %c0_49 = arith.constant 0 : index
    %73 = vector.load %arg2[%c8, %c0_48, %c0_49] : memref<9x1x128xf32, #tpu.memory_space<vmem>>, vector<1x1x128xf32>
    %74 = vector.shape_cast %73 : vector<1x1x128xf32> to vector<1x128xf32>
    %75 = vector.shape_cast %74 : vector<1x128xf32> to vector<1x1x128xf32>
    %76 = arith.extf %72 : vector<8x8x128xbf16> to vector<8x8x128xf32>
    %77 = vector.broadcast %75 : vector<1x1x128xf32> to vector<8x8x128xf32>
    %78 = arith.mulf %76, %77 : vector<8x8x128xf32>
    %79 = arith.addf %70, %78 : vector<8x8x128xf32>
    %c0_50 = arith.constant 0 : index
    %c0_51 = arith.constant 0 : index
    %80 = vector.load %arg3[%c0_50, %c0_51] : memref<1x128xf32, #tpu.memory_space<vmem>>, vector<1x128xf32>
    %81 = vector.shape_cast %80 : vector<1x128xf32> to vector<1x1x128xf32>
    %82 = vector.broadcast %81 : vector<1x1x128xf32> to vector<8x8x128xf32>
    %83 = arith.mulf %79, %82 : vector<8x8x128xf32>
    %c0_52 = arith.constant 0 : index
    %c0_53 = arith.constant 0 : index
    %84 = vector.load %arg4[%c0_52, %c0_53] : memref<1x128xf32, #tpu.memory_space<vmem>>, vector<1x128xf32>
    %85 = vector.shape_cast %84 : vector<1x128xf32> to vector<1x1x128xf32>
    %86 = vector.broadcast %85 : vector<1x1x128xf32> to vector<8x8x128xf32>
    %87 = arith.addf %83, %86 : vector<8x8x128xf32>
    %88 = arith.negf %87 : vector<8x8x128xf32>
    %89 = math.exp %88 : vector<8x8x128xf32>
    %cst = arith.constant 1.000000e+00 : f32
    %90 = vector.broadcast %cst : f32 to vector<8x8x128xf32>
    %91 = arith.addf %90, %89 : vector<8x8x128xf32>
    %92 = arith.divf %90, %91 : vector<8x8x128xf32>
    %93 = arith.mulf %87, %92 : vector<8x8x128xf32>
    %94 = arith.truncf %93 : vector<8x8x128xf32> to vector<8x8x128xbf16>
    %c0_54 = arith.constant 0 : index
    %c0_55 = arith.constant 0 : index
    %c0_56 = arith.constant 0 : index
    %c0_57 = arith.constant 0 : index
    %95 = vector.load %arg5[%c0_54, %c0_55, %c0_56, %c0_57] : memref<1x8x8x128xbf16, #tpu.memory_space<vmem>>, vector<1x8x8x128xbf16>
    %96 = vector.shape_cast %95 : vector<1x8x8x128xbf16> to vector<8x8x128xbf16>
    %97 = vector.shape_cast %94 : vector<8x8x128xbf16> to vector<1x8x8x128xbf16>
    tpu.vector_store %arg5[%c0_54, %c0_55, %c0_56, %c0_57], %97 {strides = array<i32>} : memref<1x8x8x128xbf16, #tpu.memory_space<vmem>>, vector<1x8x8x128xbf16>,
    %cst_58 = arith.constant dense<0.000000e+00> : vector<128xf32>
    %98 = vector.multi_reduction <add>, %93, %cst_58 [0, 1] : vector<8x8x128xf32> to vector<128xf32>
    %99 = vector.shape_cast %98 : vector<128xf32> to vector<1x1x128xf32>
    %cst_59 = arith.constant 6.400000e+01 : f32
    %100 = vector.broadcast %cst_59 : f32 to vector<1x1x128xf32>
    %101 = arith.divf %99, %100 : vector<1x1x128xf32>
    %c0_60 = arith.constant 0 : index
    %c0_61 = arith.constant 0 : index
    %c0_62 = arith.constant 0 : index
    %102 = vector.load %arg6[%c0_60, %c0_61, %c0_62] : memref<1x1x128xf32, #tpu.memory_space<vmem>>, vector<1x1x128xf32>
    tpu.vector_store %arg6[%c0_60, %c0_61, %c0_62], %101 {strides = array<i32>} : memref<1x1x128xf32, #tpu.memory_space<vmem>>, vector<1x1x128xf32>,
    return
  }
  func.func @transform_0(%arg0: i32) -> (i32, i32, i32, i32) {
    %c0_i32 = arith.constant 0 : i32
    %c0_i32_0 = arith.constant 0 : i32
    %c0_i32_1 = arith.constant 0 : i32
    %c0_i32_2 = arith.constant 0 : i32
    return %arg0, %c0_i32, %c0_i32_0, %c0_i32_1 : i32, i32, i32, i32
  }
  func.func @transform_1(%arg0: i32) -> (i32, i32, i32) {
    %c0_i32 = arith.constant 0 : i32
    %c0_i32_0 = arith.constant 0 : i32
    %c0_i32_1 = arith.constant 0 : i32
    %c0_i32_2 = arith.constant 0 : i32
    return %c0_i32, %c0_i32_0, %c0_i32_1 : i32, i32, i32
  }
  func.func @transform_2(%arg0: i32) -> (i32, i32) {
    %c0_i32 = arith.constant 0 : i32
    %c0_i32_0 = arith.constant 0 : i32
    %c0_i32_1 = arith.constant 0 : i32
    return %c0_i32, %c0_i32_0 : i32, i32
  }
  func.func @transform_3(%arg0: i32) -> (i32, i32) {
    %c0_i32 = arith.constant 0 : i32
    %c0_i32_0 = arith.constant 0 : i32
    %c0_i32_1 = arith.constant 0 : i32
    return %c0_i32, %c0_i32_0 : i32, i32
  }
  func.func @transform_4(%arg0: i32) -> (i32, i32, i32, i32) {
    %c0_i32 = arith.constant 0 : i32
    %c0_i32_0 = arith.constant 0 : i32
    %c0_i32_1 = arith.constant 0 : i32
    %c0_i32_2 = arith.constant 0 : i32
    return %arg0, %c0_i32, %c0_i32_0, %c0_i32_1 : i32, i32, i32, i32
  }
  func.func @transform_5(%arg0: i32) -> (i32, i32, i32) {
    %c0_i32 = arith.constant 0 : i32
    %c0_i32_0 = arith.constant 0 : i32
    %c0_i32_1 = arith.constant 0 : i32
    return %arg0, %c0_i32, %c0_i32_0 : i32, i32, i32
  }
}

module attributes {stable_mosaic.version = 11 : i64} {
  func.func @_proj_kernel(%arg0: i32, %arg1: i32, %arg2: memref<1x64x128xbf16, #tpu.memory_space<vmem>>, %arg3: memref<1x1x128xf32, #tpu.memory_space<vmem>>, %arg4: memref<128x128xbf16, #tpu.memory_space<vmem>>, %arg5: memref<1x128xf32, #tpu.memory_space<vmem>>, %arg6: memref<1x128xf32, #tpu.memory_space<vmem>>, %arg7: memref<1x64x128xbf16, #tpu.memory_space<vmem>>) attributes {dimension_semantics = [#tpu.dimension_semantics<parallel>, #tpu.dimension_semantics<parallel>], iteration_bounds = array<i64: 2, 1>, scalar_prefetch = 0 : i64, scratch_operands = 0 : i64, tpu.core_type = #tpu.core_type<tc>, window_params = [{transform_indices = @transform_0, window_bounds = array<i64: 1, 64, 128>}, {transform_indices = @transform_1, window_bounds = array<i64: 1, 1, 128>}, {pipeline_mode = #tpu.pipeline_mode<synchronous>, transform_indices = @transform_2, window_bounds = array<i64: 128, 128>}, {pipeline_mode = #tpu.pipeline_mode<synchronous>, transform_indices = @transform_3, window_bounds = array<i64: 1, 128>}, {pipeline_mode = #tpu.pipeline_mode<synchronous>, transform_indices = @transform_4, window_bounds = array<i64: 1, 128>}, {transform_indices = @transform_5, window_bounds = array<i64: 1, 64, 128>}]} {
    %c0 = arith.constant 0 : index
    %c0_0 = arith.constant 0 : index
    %c0_1 = arith.constant 0 : index
    %0 = vector.load %arg2[%c0, %c0_0, %c0_1] : memref<1x64x128xbf16, #tpu.memory_space<vmem>>, vector<1x64x128xbf16>
    %1 = vector.shape_cast %0 : vector<1x64x128xbf16> to vector<64x128xbf16>
    %2 = arith.extf %1 : vector<64x128xbf16> to vector<64x128xf32>
    %c0_2 = arith.constant 0 : index
    %c0_3 = arith.constant 0 : index
    %c0_4 = arith.constant 0 : index
    %3 = vector.load %arg3[%c0_2, %c0_3, %c0_4] : memref<1x1x128xf32, #tpu.memory_space<vmem>>, vector<1x1x128xf32>
    %4 = vector.shape_cast %3 : vector<1x1x128xf32> to vector<1x128xf32>
    %5 = vector.broadcast %4 : vector<1x128xf32> to vector<64x128xf32>
    %6 = arith.mulf %2, %5 : vector<64x128xf32>
    %7 = arith.truncf %6 : vector<64x128xf32> to vector<64x128xbf16>
    %c0_5 = arith.constant 0 : index
    %c0_6 = arith.constant 0 : index
    %8 = vector.load %arg4[%c0_5, %c0_6] : memref<128x128xbf16, #tpu.memory_space<vmem>>, vector<128x128xbf16>
    %cst = arith.constant dense<0.000000e+00> : vector<64x128xf32>
    %9 = tpu.matmul %7, %8, %cst {dimension_numbers = #tpu.dot_dimension_numbers<[1], [0], [0], [1], [0, 0, 1, 1], [], []>} : vector<64x128xbf16>, vector<128x128xbf16>, vector<64x128xf32> -> vector<64x128xf32>
    %c0_7 = arith.constant 0 : index
    %c0_8 = arith.constant 0 : index
    %10 = vector.load %arg5[%c0_7, %c0_8] : memref<1x128xf32, #tpu.memory_space<vmem>>, vector<1x128xf32>
    %11 = vector.broadcast %10 : vector<1x128xf32> to vector<64x128xf32>
    %12 = arith.mulf %9, %11 : vector<64x128xf32>
    %c0_9 = arith.constant 0 : index
    %c0_10 = arith.constant 0 : index
    %13 = vector.load %arg6[%c0_9, %c0_10] : memref<1x128xf32, #tpu.memory_space<vmem>>, vector<1x128xf32>
    %14 = vector.broadcast %13 : vector<1x128xf32> to vector<64x128xf32>
    %15 = arith.addf %12, %14 : vector<64x128xf32>
    %16 = arith.truncf %15 : vector<64x128xf32> to vector<64x128xbf16>
    %c0_11 = arith.constant 0 : index
    %c0_12 = arith.constant 0 : index
    %c0_13 = arith.constant 0 : index
    %17 = vector.load %arg7[%c0_11, %c0_12, %c0_13] : memref<1x64x128xbf16, #tpu.memory_space<vmem>>, vector<1x64x128xbf16>
    %18 = vector.shape_cast %17 : vector<1x64x128xbf16> to vector<64x128xbf16>
    %19 = vector.shape_cast %16 : vector<64x128xbf16> to vector<1x64x128xbf16>
    tpu.vector_store %arg7[%c0_11, %c0_12, %c0_13], %19 {strides = array<i32>} : memref<1x64x128xbf16, #tpu.memory_space<vmem>>, vector<1x64x128xbf16>,
    return
  }
  func.func @transform_0(%arg0: i32, %arg1: i32) -> (i32, i32, i32) {
    %c0_i32 = arith.constant 0 : i32
    %c0_i32_0 = arith.constant 0 : i32
    return %arg0, %arg1, %c0_i32 : i32, i32, i32
  }
  func.func @transform_1(%arg0: i32, %arg1: i32) -> (i32, i32, i32) {
    %c0_i32 = arith.constant 0 : i32
    %c0_i32_0 = arith.constant 0 : i32
    %c0_i32_1 = arith.constant 0 : i32
    return %arg0, %c0_i32, %c0_i32_0 : i32, i32, i32
  }
  func.func @transform_2(%arg0: i32, %arg1: i32) -> (i32, i32) {
    %c0_i32 = arith.constant 0 : i32
    %c0_i32_0 = arith.constant 0 : i32
    %c0_i32_1 = arith.constant 0 : i32
    return %c0_i32, %c0_i32_0 : i32, i32
  }
  func.func @transform_3(%arg0: i32, %arg1: i32) -> (i32, i32) {
    %c0_i32 = arith.constant 0 : i32
    %c0_i32_0 = arith.constant 0 : i32
    %c0_i32_1 = arith.constant 0 : i32
    return %c0_i32, %c0_i32_0 : i32, i32
  }
  func.func @transform_4(%arg0: i32, %arg1: i32) -> (i32, i32) {
    %c0_i32 = arith.constant 0 : i32
    %c0_i32_0 = arith.constant 0 : i32
    %c0_i32_1 = arith.constant 0 : i32
    return %c0_i32, %c0_i32_0 : i32, i32
  }
  func.func @transform_5(%arg0: i32, %arg1: i32) -> (i32, i32, i32) {
    %c0_i32 = arith.constant 0 : i32
    %c0_i32_0 = arith.constant 0 : i32
    return %arg0, %arg1, %c0_i32 : i32, i32, i32
  }
}

module attributes {stable_mosaic.version = 11 : i64} {
  func.func @_gemm_kernel(%arg0: i32, %arg1: memref<128x128xbf16, #tpu.memory_space<vmem>>, %arg2: memref<128x128xbf16, #tpu.memory_space<vmem>>, %arg3: memref<1x128xf32, #tpu.memory_space<vmem>>, %arg4: memref<1x128xf32, #tpu.memory_space<vmem>>, %arg5: memref<128x128xbf16, #tpu.memory_space<vmem>>) attributes {dimension_semantics = [#tpu.dimension_semantics<parallel>], iteration_bounds = array<i64: 1>, scalar_prefetch = 0 : i64, scratch_operands = 0 : i64, tpu.core_type = #tpu.core_type<tc>, window_params = [{transform_indices = @transform_0, window_bounds = array<i64: 128, 128>}, {pipeline_mode = #tpu.pipeline_mode<synchronous>, transform_indices = @transform_1, window_bounds = array<i64: 128, 128>}, {pipeline_mode = #tpu.pipeline_mode<synchronous>, transform_indices = @transform_2, window_bounds = array<i64: 1, 128>}, {pipeline_mode = #tpu.pipeline_mode<synchronous>, transform_indices = @transform_3, window_bounds = array<i64: 1, 128>}, {transform_indices = @transform_4, window_bounds = array<i64: 128, 128>}]} {
    %c0 = arith.constant 0 : index
    %c0_0 = arith.constant 0 : index
    %0 = vector.load %arg1[%c0, %c0_0] : memref<128x128xbf16, #tpu.memory_space<vmem>>, vector<128x128xbf16>
    %c0_1 = arith.constant 0 : index
    %c0_2 = arith.constant 0 : index
    %1 = vector.load %arg2[%c0_1, %c0_2] : memref<128x128xbf16, #tpu.memory_space<vmem>>, vector<128x128xbf16>
    %cst = arith.constant dense<0.000000e+00> : vector<128x128xf32>
    %2 = tpu.matmul %0, %1, %cst {dimension_numbers = #tpu.dot_dimension_numbers<[1], [0], [0], [1], [0, 0, 1, 1], [], []>} : vector<128x128xbf16>, vector<128x128xbf16>, vector<128x128xf32> -> vector<128x128xf32>
    %c0_3 = arith.constant 0 : index
    %c0_4 = arith.constant 0 : index
    %3 = vector.load %arg3[%c0_3, %c0_4] : memref<1x128xf32, #tpu.memory_space<vmem>>, vector<1x128xf32>
    %4 = vector.broadcast %3 : vector<1x128xf32> to vector<128x128xf32>
    %5 = arith.mulf %2, %4 : vector<128x128xf32>
    %c0_5 = arith.constant 0 : index
    %c0_6 = arith.constant 0 : index
    %6 = vector.load %arg4[%c0_5, %c0_6] : memref<1x128xf32, #tpu.memory_space<vmem>>, vector<1x128xf32>
    %7 = vector.broadcast %6 : vector<1x128xf32> to vector<128x128xf32>
    %8 = arith.addf %5, %7 : vector<128x128xf32>
    %9 = arith.negf %8 : vector<128x128xf32>
    %10 = math.exp %9 : vector<128x128xf32>
    %cst_7 = arith.constant 1.000000e+00 : f32
    %11 = vector.broadcast %cst_7 : f32 to vector<128x128xf32>
    %12 = arith.addf %11, %10 : vector<128x128xf32>
    %13 = arith.divf %11, %12 : vector<128x128xf32>
    %14 = arith.mulf %8, %13 : vector<128x128xf32>
    %15 = arith.truncf %14 : vector<128x128xf32> to vector<128x128xbf16>
    %c0_8 = arith.constant 0 : index
    %c0_9 = arith.constant 0 : index
    %16 = vector.load %arg5[%c0_8, %c0_9] : memref<128x128xbf16, #tpu.memory_space<vmem>>, vector<128x128xbf16>
    tpu.vector_store %arg5[%c0_8, %c0_9], %15 {strides = array<i32>} : memref<128x128xbf16, #tpu.memory_space<vmem>>, vector<128x128xbf16>,
    return
  }
  func.func @transform_0(%arg0: i32) -> (i32, i32) {
    %c0_i32 = arith.constant 0 : i32
    %c0_i32_0 = arith.constant 0 : i32
    return %arg0, %c0_i32 : i32, i32
  }
  func.func @transform_1(%arg0: i32) -> (i32, i32) {
    %c0_i32 = arith.constant 0 : i32
    %c0_i32_0 = arith.constant 0 : i32
    %c0_i32_1 = arith.constant 0 : i32
    return %c0_i32, %c0_i32_0 : i32, i32
  }
  func.func @transform_2(%arg0: i32) -> (i32, i32) {
    %c0_i32 = arith.constant 0 : i32
    %c0_i32_0 = arith.constant 0 : i32
    %c0_i32_1 = arith.constant 0 : i32
    return %c0_i32, %c0_i32_0 : i32, i32
  }
  func.func @transform_3(%arg0: i32) -> (i32, i32) {
    %c0_i32 = arith.constant 0 : i32
    %c0_i32_0 = arith.constant 0 : i32
    %c0_i32_1 = arith.constant 0 : i32
    return %c0_i32, %c0_i32_0 : i32, i32
  }
  func.func @transform_4(%arg0: i32) -> (i32, i32) {
    %c0_i32 = arith.constant 0 : i32
    %c0_i32_0 = arith.constant 0 : i32
    return %arg0, %c0_i32 : i32, i32
  }
}

module attributes {stable_mosaic.version = 11 : i64} {
  func.func @_se_kernel(%arg0: i32, %arg1: memref<2x128xf32, #tpu.memory_space<vmem>>, %arg2: memref<128x128xf32, #tpu.memory_space<vmem>>, %arg3: memref<1x128xf32, #tpu.memory_space<vmem>>, %arg4: memref<128x128xf32, #tpu.memory_space<vmem>>, %arg5: memref<1x128xf32, #tpu.memory_space<vmem>>, %arg6: memref<2x128xf32, #tpu.memory_space<vmem>>) attributes {dimension_semantics = [#tpu.dimension_semantics<arbitrary>], iteration_bounds = array<i64: 1>, scalar_prefetch = 0 : i64, scratch_operands = 0 : i64, tpu.core_type = #tpu.core_type<tc>, window_params = [{pipeline_mode = #tpu.pipeline_mode<synchronous>, transform_indices = @transform_0, window_bounds = array<i64: 2, 128>}, {pipeline_mode = #tpu.pipeline_mode<synchronous>, transform_indices = @transform_1, window_bounds = array<i64: 128, 128>}, {pipeline_mode = #tpu.pipeline_mode<synchronous>, transform_indices = @transform_2, window_bounds = array<i64: 1, 128>}, {pipeline_mode = #tpu.pipeline_mode<synchronous>, transform_indices = @transform_3, window_bounds = array<i64: 128, 128>}, {pipeline_mode = #tpu.pipeline_mode<synchronous>, transform_indices = @transform_4, window_bounds = array<i64: 1, 128>}, {pipeline_mode = #tpu.pipeline_mode<synchronous>, transform_indices = @transform_5, window_bounds = array<i64: 2, 128>}]} {
    %c0 = arith.constant 0 : index
    %c0_0 = arith.constant 0 : index
    %0 = vector.load %arg1[%c0, %c0_0] : memref<2x128xf32, #tpu.memory_space<vmem>>, vector<2x128xf32>
    %c0_1 = arith.constant 0 : index
    %c0_2 = arith.constant 0 : index
    %1 = vector.load %arg2[%c0_1, %c0_2] : memref<128x128xf32, #tpu.memory_space<vmem>>, vector<128x128xf32>
    %cst = arith.constant dense<0.000000e+00> : vector<2x128xf32>
    %2 = tpu.matmul %0, %1, %cst {dimension_numbers = #tpu.dot_dimension_numbers<[1], [0], [0], [1], [0, 0, 1, 1], [], []>} : vector<2x128xf32>, vector<128x128xf32>, vector<2x128xf32> -> vector<2x128xf32>
    %c0_3 = arith.constant 0 : index
    %c0_4 = arith.constant 0 : index
    %3 = vector.load %arg3[%c0_3, %c0_4] : memref<1x128xf32, #tpu.memory_space<vmem>>, vector<1x128xf32>
    %4 = vector.broadcast %3 : vector<1x128xf32> to vector<2x128xf32>
    %5 = arith.addf %2, %4 : vector<2x128xf32>
    %6 = arith.negf %5 : vector<2x128xf32>
    %7 = math.exp %6 : vector<2x128xf32>
    %cst_5 = arith.constant 1.000000e+00 : f32
    %8 = vector.broadcast %cst_5 : f32 to vector<2x128xf32>
    %9 = arith.addf %8, %7 : vector<2x128xf32>
    %10 = arith.divf %8, %9 : vector<2x128xf32>
    %11 = arith.mulf %5, %10 : vector<2x128xf32>
    %c0_6 = arith.constant 0 : index
    %c0_7 = arith.constant 0 : index
    %12 = vector.load %arg4[%c0_6, %c0_7] : memref<128x128xf32, #tpu.memory_space<vmem>>, vector<128x128xf32>
    %cst_8 = arith.constant dense<0.000000e+00> : vector<2x128xf32>
    %13 = tpu.matmul %11, %12, %cst_8 {dimension_numbers = #tpu.dot_dimension_numbers<[1], [0], [0], [1], [0, 0, 1, 1], [], []>} : vector<2x128xf32>, vector<128x128xf32>, vector<2x128xf32> -> vector<2x128xf32>
    %c0_9 = arith.constant 0 : index
    %c0_10 = arith.constant 0 : index
    %14 = vector.load %arg5[%c0_9, %c0_10] : memref<1x128xf32, #tpu.memory_space<vmem>>, vector<1x128xf32>
    %15 = vector.broadcast %14 : vector<1x128xf32> to vector<2x128xf32>
    %16 = arith.addf %13, %15 : vector<2x128xf32>
    %17 = arith.negf %16 : vector<2x128xf32>
    %18 = math.exp %17 : vector<2x128xf32>
    %cst_11 = arith.constant 1.000000e+00 : f32
    %19 = vector.broadcast %cst_11 : f32 to vector<2x128xf32>
    %20 = arith.addf %19, %18 : vector<2x128xf32>
    %21 = arith.divf %19, %20 : vector<2x128xf32>
    %c0_12 = arith.constant 0 : index
    %c0_13 = arith.constant 0 : index
    %22 = vector.load %arg6[%c0_12, %c0_13] : memref<2x128xf32, #tpu.memory_space<vmem>>, vector<2x128xf32>
    tpu.vector_store %arg6[%c0_12, %c0_13], %21 {strides = array<i32>} : memref<2x128xf32, #tpu.memory_space<vmem>>, vector<2x128xf32>,
    return
  }
  func.func @transform_0(%arg0: i32) -> (i32, i32) {
    %c0_i32 = arith.constant 0 : i32
    %c0_i32_0 = arith.constant 0 : i32
    %c0_i32_1 = arith.constant 0 : i32
    return %c0_i32, %c0_i32_0 : i32, i32
  }
  func.func @transform_1(%arg0: i32) -> (i32, i32) {
    %c0_i32 = arith.constant 0 : i32
    %c0_i32_0 = arith.constant 0 : i32
    %c0_i32_1 = arith.constant 0 : i32
    return %c0_i32, %c0_i32_0 : i32, i32
  }
  func.func @transform_2(%arg0: i32) -> (i32, i32) {
    %c0_i32 = arith.constant 0 : i32
    %c0_i32_0 = arith.constant 0 : i32
    %c0_i32_1 = arith.constant 0 : i32
    return %c0_i32, %c0_i32_0 : i32, i32
  }
  func.func @transform_3(%arg0: i32) -> (i32, i32) {
    %c0_i32 = arith.constant 0 : i32
    %c0_i32_0 = arith.constant 0 : i32
    %c0_i32_1 = arith.constant 0 : i32
    return %c0_i32, %c0_i32_0 : i32, i32
  }
  func.func @transform_4(%arg0: i32) -> (i32, i32) {
    %c0_i32 = arith.constant 0 : i32
    %c0_i32_0 = arith.constant 0 : i32
    %c0_i32_1 = arith.constant 0 : i32
    return %c0_i32, %c0_i32_0 : i32, i32
  }
  func.func @transform_5(%arg0: i32) -> (i32, i32) {
    %c0_i32 = arith.constant 0 : i32
    %c0_i32_0 = arith.constant 0 : i32
    %c0_i32_1 = arith.constant 0 : i32
    return %c0_i32, %c0_i32_0 : i32, i32
  }
}

module attributes {stable_mosaic.version = 11 : i64} {
  func.func @_proj_kernel(%arg0: i32, %arg1: i32, %arg2: memref<1x64x128xbf16, #tpu.memory_space<vmem>>, %arg3: memref<1x1x128xf32, #tpu.memory_space<vmem>>, %arg4: memref<128x128xbf16, #tpu.memory_space<vmem>>, %arg5: memref<1x128xf32, #tpu.memory_space<vmem>>, %arg6: memref<1x128xf32, #tpu.memory_space<vmem>>, %arg7: memref<1x64x128xbf16, #tpu.memory_space<vmem>>, %arg8: memref<1x64x128xbf16, #tpu.memory_space<vmem>>) attributes {dimension_semantics = [#tpu.dimension_semantics<parallel>, #tpu.dimension_semantics<parallel>], iteration_bounds = array<i64: 2, 1>, scalar_prefetch = 0 : i64, scratch_operands = 0 : i64, tpu.core_type = #tpu.core_type<tc>, window_params = [{transform_indices = @transform_0, window_bounds = array<i64: 1, 64, 128>}, {transform_indices = @transform_1, window_bounds = array<i64: 1, 1, 128>}, {pipeline_mode = #tpu.pipeline_mode<synchronous>, transform_indices = @transform_2, window_bounds = array<i64: 128, 128>}, {pipeline_mode = #tpu.pipeline_mode<synchronous>, transform_indices = @transform_3, window_bounds = array<i64: 1, 128>}, {pipeline_mode = #tpu.pipeline_mode<synchronous>, transform_indices = @transform_4, window_bounds = array<i64: 1, 128>}, {transform_indices = @transform_5, window_bounds = array<i64: 1, 64, 128>}, {transform_indices = @transform_6, window_bounds = array<i64: 1, 64, 128>}]} {
    %c0 = arith.constant 0 : index
    %c0_0 = arith.constant 0 : index
    %c0_1 = arith.constant 0 : index
    %0 = vector.load %arg2[%c0, %c0_0, %c0_1] : memref<1x64x128xbf16, #tpu.memory_space<vmem>>, vector<1x64x128xbf16>
    %1 = vector.shape_cast %0 : vector<1x64x128xbf16> to vector<64x128xbf16>
    %2 = arith.extf %1 : vector<64x128xbf16> to vector<64x128xf32>
    %c0_2 = arith.constant 0 : index
    %c0_3 = arith.constant 0 : index
    %c0_4 = arith.constant 0 : index
    %3 = vector.load %arg3[%c0_2, %c0_3, %c0_4] : memref<1x1x128xf32, #tpu.memory_space<vmem>>, vector<1x1x128xf32>
    %4 = vector.shape_cast %3 : vector<1x1x128xf32> to vector<1x128xf32>
    %5 = vector.broadcast %4 : vector<1x128xf32> to vector<64x128xf32>
    %6 = arith.mulf %2, %5 : vector<64x128xf32>
    %7 = arith.truncf %6 : vector<64x128xf32> to vector<64x128xbf16>
    %c0_5 = arith.constant 0 : index
    %c0_6 = arith.constant 0 : index
    %8 = vector.load %arg4[%c0_5, %c0_6] : memref<128x128xbf16, #tpu.memory_space<vmem>>, vector<128x128xbf16>
    %cst = arith.constant dense<0.000000e+00> : vector<64x128xf32>
    %9 = tpu.matmul %7, %8, %cst {dimension_numbers = #tpu.dot_dimension_numbers<[1], [0], [0], [1], [0, 0, 1, 1], [], []>} : vector<64x128xbf16>, vector<128x128xbf16>, vector<64x128xf32> -> vector<64x128xf32>
    %c0_7 = arith.constant 0 : index
    %c0_8 = arith.constant 0 : index
    %10 = vector.load %arg5[%c0_7, %c0_8] : memref<1x128xf32, #tpu.memory_space<vmem>>, vector<1x128xf32>
    %11 = vector.broadcast %10 : vector<1x128xf32> to vector<64x128xf32>
    %12 = arith.mulf %9, %11 : vector<64x128xf32>
    %c0_9 = arith.constant 0 : index
    %c0_10 = arith.constant 0 : index
    %13 = vector.load %arg6[%c0_9, %c0_10] : memref<1x128xf32, #tpu.memory_space<vmem>>, vector<1x128xf32>
    %14 = vector.broadcast %13 : vector<1x128xf32> to vector<64x128xf32>
    %15 = arith.addf %12, %14 : vector<64x128xf32>
    %c0_11 = arith.constant 0 : index
    %c0_12 = arith.constant 0 : index
    %c0_13 = arith.constant 0 : index
    %16 = vector.load %arg7[%c0_11, %c0_12, %c0_13] : memref<1x64x128xbf16, #tpu.memory_space<vmem>>, vector<1x64x128xbf16>
    %17 = vector.shape_cast %16 : vector<1x64x128xbf16> to vector<64x128xbf16>
    %18 = arith.extf %17 : vector<64x128xbf16> to vector<64x128xf32>
    %19 = arith.addf %15, %18 : vector<64x128xf32>
    %20 = arith.truncf %19 : vector<64x128xf32> to vector<64x128xbf16>
    %c0_14 = arith.constant 0 : index
    %c0_15 = arith.constant 0 : index
    %c0_16 = arith.constant 0 : index
    %21 = vector.load %arg8[%c0_14, %c0_15, %c0_16] : memref<1x64x128xbf16, #tpu.memory_space<vmem>>, vector<1x64x128xbf16>
    %22 = vector.shape_cast %21 : vector<1x64x128xbf16> to vector<64x128xbf16>
    %23 = vector.shape_cast %20 : vector<64x128xbf16> to vector<1x64x128xbf16>
    tpu.vector_store %arg8[%c0_14, %c0_15, %c0_16], %23 {strides = array<i32>} : memref<1x64x128xbf16, #tpu.memory_space<vmem>>, vector<1x64x128xbf16>,
    return
  }
  func.func @transform_0(%arg0: i32, %arg1: i32) -> (i32, i32, i32) {
    %c0_i32 = arith.constant 0 : i32
    %c0_i32_0 = arith.constant 0 : i32
    return %arg0, %arg1, %c0_i32 : i32, i32, i32
  }
  func.func @transform_1(%arg0: i32, %arg1: i32) -> (i32, i32, i32) {
    %c0_i32 = arith.constant 0 : i32
    %c0_i32_0 = arith.constant 0 : i32
    %c0_i32_1 = arith.constant 0 : i32
    return %arg0, %c0_i32, %c0_i32_0 : i32, i32, i32
  }
  func.func @transform_2(%arg0: i32, %arg1: i32) -> (i32, i32) {
    %c0_i32 = arith.constant 0 : i32
    %c0_i32_0 = arith.constant 0 : i32
    %c0_i32_1 = arith.constant 0 : i32
    return %c0_i32, %c0_i32_0 : i32, i32
  }
  func.func @transform_3(%arg0: i32, %arg1: i32) -> (i32, i32) {
    %c0_i32 = arith.constant 0 : i32
    %c0_i32_0 = arith.constant 0 : i32
    %c0_i32_1 = arith.constant 0 : i32
    return %c0_i32, %c0_i32_0 : i32, i32
  }
  func.func @transform_4(%arg0: i32, %arg1: i32) -> (i32, i32) {
    %c0_i32 = arith.constant 0 : i32
    %c0_i32_0 = arith.constant 0 : i32
    %c0_i32_1 = arith.constant 0 : i32
    return %c0_i32, %c0_i32_0 : i32, i32
  }
  func.func @transform_5(%arg0: i32, %arg1: i32) -> (i32, i32, i32) {
    %c0_i32 = arith.constant 0 : i32
    %c0_i32_0 = arith.constant 0 : i32
    return %arg0, %arg1, %c0_i32 : i32, i32, i32
  }
  func.func @transform_6(%arg0: i32, %arg1: i32) -> (i32, i32, i32) {
    %c0_i32 = arith.constant 0 : i32
    %c0_i32_0 = arith.constant 0 : i32
    return %arg0, %arg1, %c0_i32 : i32, i32, i32
  }
}

module attributes {stable_mosaic.version = 11 : i64} {
  func.func @_dw_kernel(%arg0: i32, %arg1: memref<1x10x10x128xbf16, #tpu.memory_space<vmem>>, %arg2: memref<9x1x128xf32, #tpu.memory_space<vmem>>, %arg3: memref<1x128xf32, #tpu.memory_space<vmem>>, %arg4: memref<1x128xf32, #tpu.memory_space<vmem>>, %arg5: memref<1x8x8x128xbf16, #tpu.memory_space<vmem>>, %arg6: memref<1x1x128xf32, #tpu.memory_space<vmem>>) attributes {dimension_semantics = [#tpu.dimension_semantics<parallel>], iteration_bounds = array<i64: 2>, scalar_prefetch = 0 : i64, scratch_operands = 0 : i64, tpu.core_type = #tpu.core_type<tc>, window_params = [{transform_indices = @transform_0, window_bounds = array<i64: 1, 10, 10, 128>}, {pipeline_mode = #tpu.pipeline_mode<synchronous>, transform_indices = @transform_1, window_bounds = array<i64: 9, 1, 128>}, {pipeline_mode = #tpu.pipeline_mode<synchronous>, transform_indices = @transform_2, window_bounds = array<i64: 1, 128>}, {pipeline_mode = #tpu.pipeline_mode<synchronous>, transform_indices = @transform_3, window_bounds = array<i64: 1, 128>}, {transform_indices = @transform_4, window_bounds = array<i64: 1, 8, 8, 128>}, {transform_indices = @transform_5, window_bounds = array<i64: 1, 1, 128>}]} {
    %c0 = arith.constant 0 : index
    %c0_0 = arith.constant 0 : index
    %c0_1 = arith.constant 0 : index
    %c0_2 = arith.constant 0 : index
    %0 = vector.load %arg1[%c0, %c0_0, %c0_1, %c0_2] : memref<1x10x10x128xbf16, #tpu.memory_space<vmem>>, vector<1x8x8x128xbf16>
    %1 = vector.shape_cast %0 : vector<1x8x8x128xbf16> to vector<8x8x128xbf16>
    %c0_3 = arith.constant 0 : index
    %c0_4 = arith.constant 0 : index
    %c0_5 = arith.constant 0 : index
    %2 = vector.load %arg2[%c0_3, %c0_4, %c0_5] : memref<9x1x128xf32, #tpu.memory_space<vmem>>, vector<1x1x128xf32>
    %3 = vector.shape_cast %2 : vector<1x1x128xf32> to vector<1x128xf32>
    %4 = vector.shape_cast %3 : vector<1x128xf32> to vector<1x1x128xf32>
    %5 = arith.extf %1 : vector<8x8x128xbf16> to vector<8x8x128xf32>
    %6 = vector.broadcast %4 : vector<1x1x128xf32> to vector<8x8x128xf32>
    %7 = arith.mulf %5, %6 : vector<8x8x128xf32>
    %c0_6 = arith.constant 0 : index
    %c0_7 = arith.constant 0 : index
    %c1 = arith.constant 1 : index
    %c0_8 = arith.constant 0 : index
    %8 = vector.load %arg1[%c0_6, %c0_7, %c1, %c0_8] : memref<1x10x10x128xbf16, #tpu.memory_space<vmem>>, vector<1x8x8x128xbf16>
    %9 = vector.shape_cast %8 : vector<1x8x8x128xbf16> to vector<8x8x128xbf16>
    %c1_9 = arith.constant 1 : index
    %c0_10 = arith.constant 0 : index
    %c0_11 = arith.constant 0 : index
    %10 = vector.load %arg2[%c1_9, %c0_10, %c0_11] : memref<9x1x128xf32, #tpu.memory_space<vmem>>, vector<1x1x128xf32>
    %11 = vector.shape_cast %10 : vector<1x1x128xf32> to vector<1x128xf32>
    %12 = vector.shape_cast %11 : vector<1x128xf32> to vector<1x1x128xf32>
    %13 = arith.extf %9 : vector<8x8x128xbf16> to vector<8x8x128xf32>
    %14 = vector.broadcast %12 : vector<1x1x128xf32> to vector<8x8x128xf32>
    %15 = arith.mulf %13, %14 : vector<8x8x128xf32>
    %16 = arith.addf %7, %15 : vector<8x8x128xf32>
    %c0_12 = arith.constant 0 : index
    %c0_13 = arith.constant 0 : index
    %c2 = arith.constant 2 : index
    %c0_14 = arith.constant 0 : index
    %17 = vector.load %arg1[%c0_12, %c0_13, %c2, %c0_14] : memref<1x10x10x128xbf16, #tpu.memory_space<vmem>>, vector<1x8x8x128xbf16>
    %18 = vector.shape_cast %17 : vector<1x8x8x128xbf16> to vector<8x8x128xbf16>
    %c2_15 = arith.constant 2 : index
    %c0_16 = arith.constant 0 : index
    %c0_17 = arith.constant 0 : index
    %19 = vector.load %arg2[%c2_15, %c0_16, %c0_17] : memref<9x1x128xf32, #tpu.memory_space<vmem>>, vector<1x1x128xf32>
    %20 = vector.shape_cast %19 : vector<1x1x128xf32> to vector<1x128xf32>
    %21 = vector.shape_cast %20 : vector<1x128xf32> to vector<1x1x128xf32>
    %22 = arith.extf %18 : vector<8x8x128xbf16> to vector<8x8x128xf32>
    %23 = vector.broadcast %21 : vector<1x1x128xf32> to vector<8x8x128xf32>
    %24 = arith.mulf %22, %23 : vector<8x8x128xf32>
    %25 = arith.addf %16, %24 : vector<8x8x128xf32>
    %c0_18 = arith.constant 0 : index
    %c1_19 = arith.constant 1 : index
    %c0_20 = arith.constant 0 : index
    %c0_21 = arith.constant 0 : index
    %26 = vector.load %arg1[%c0_18, %c1_19, %c0_20, %c0_21] : memref<1x10x10x128xbf16, #tpu.memory_space<vmem>>, vector<1x8x8x128xbf16>
    %27 = vector.shape_cast %26 : vector<1x8x8x128xbf16> to vector<8x8x128xbf16>
    %c3 = arith.constant 3 : index
    %c0_22 = arith.constant 0 : index
    %c0_23 = arith.constant 0 : index
    %28 = vector.load %arg2[%c3, %c0_22, %c0_23] : memref<9x1x128xf32, #tpu.memory_space<vmem>>, vector<1x1x128xf32>
    %29 = vector.shape_cast %28 : vector<1x1x128xf32> to vector<1x128xf32>
    %30 = vector.shape_cast %29 : vector<1x128xf32> to vector<1x1x128xf32>
    %31 = arith.extf %27 : vector<8x8x128xbf16> to vector<8x8x128xf32>
    %32 = vector.broadcast %30 : vector<1x1x128xf32> to vector<8x8x128xf32>
    %33 = arith.mulf %31, %32 : vector<8x8x128xf32>
    %34 = arith.addf %25, %33 : vector<8x8x128xf32>
    %c0_24 = arith.constant 0 : index
    %c1_25 = arith.constant 1 : index
    %c1_26 = arith.constant 1 : index
    %c0_27 = arith.constant 0 : index
    %35 = vector.load %arg1[%c0_24, %c1_25, %c1_26, %c0_27] : memref<1x10x10x128xbf16, #tpu.memory_space<vmem>>, vector<1x8x8x128xbf16>
    %36 = vector.shape_cast %35 : vector<1x8x8x128xbf16> to vector<8x8x128xbf16>
    %c4 = arith.constant 4 : index
    %c0_28 = arith.constant 0 : index
    %c0_29 = arith.constant 0 : index
    %37 = vector.load %arg2[%c4, %c0_28, %c0_29] : memref<9x1x128xf32, #tpu.memory_space<vmem>>, vector<1x1x128xf32>
    %38 = vector.shape_cast %37 : vector<1x1x128xf32> to vector<1x128xf32>
    %39 = vector.shape_cast %38 : vector<1x128xf32> to vector<1x1x128xf32>
    %40 = arith.extf %36 : vector<8x8x128xbf16> to vector<8x8x128xf32>
    %41 = vector.broadcast %39 : vector<1x1x128xf32> to vector<8x8x128xf32>
    %42 = arith.mulf %40, %41 : vector<8x8x128xf32>
    %43 = arith.addf %34, %42 : vector<8x8x128xf32>
    %c0_30 = arith.constant 0 : index
    %c1_31 = arith.constant 1 : index
    %c2_32 = arith.constant 2 : index
    %c0_33 = arith.constant 0 : index
    %44 = vector.load %arg1[%c0_30, %c1_31, %c2_32, %c0_33] : memref<1x10x10x128xbf16, #tpu.memory_space<vmem>>, vector<1x8x8x128xbf16>
    %45 = vector.shape_cast %44 : vector<1x8x8x128xbf16> to vector<8x8x128xbf16>
    %c5 = arith.constant 5 : index
    %c0_34 = arith.constant 0 : index
    %c0_35 = arith.constant 0 : index
    %46 = vector.load %arg2[%c5, %c0_34, %c0_35] : memref<9x1x128xf32, #tpu.memory_space<vmem>>, vector<1x1x128xf32>
    %47 = vector.shape_cast %46 : vector<1x1x128xf32> to vector<1x128xf32>
    %48 = vector.shape_cast %47 : vector<1x128xf32> to vector<1x1x128xf32>
    %49 = arith.extf %45 : vector<8x8x128xbf16> to vector<8x8x128xf32>
    %50 = vector.broadcast %48 : vector<1x1x128xf32> to vector<8x8x128xf32>
    %51 = arith.mulf %49, %50 : vector<8x8x128xf32>
    %52 = arith.addf %43, %51 : vector<8x8x128xf32>
    %c0_36 = arith.constant 0 : index
    %c2_37 = arith.constant 2 : index
    %c0_38 = arith.constant 0 : index
    %c0_39 = arith.constant 0 : index
    %53 = vector.load %arg1[%c0_36, %c2_37, %c0_38, %c0_39] : memref<1x10x10x128xbf16, #tpu.memory_space<vmem>>, vector<1x8x8x128xbf16>
    %54 = vector.shape_cast %53 : vector<1x8x8x128xbf16> to vector<8x8x128xbf16>
    %c6 = arith.constant 6 : index
    %c0_40 = arith.constant 0 : index
    %c0_41 = arith.constant 0 : index
    %55 = vector.load %arg2[%c6, %c0_40, %c0_41] : memref<9x1x128xf32, #tpu.memory_space<vmem>>, vector<1x1x128xf32>
    %56 = vector.shape_cast %55 : vector<1x1x128xf32> to vector<1x128xf32>
    %57 = vector.shape_cast %56 : vector<1x128xf32> to vector<1x1x128xf32>
    %58 = arith.extf %54 : vector<8x8x128xbf16> to vector<8x8x128xf32>
    %59 = vector.broadcast %57 : vector<1x1x128xf32> to vector<8x8x128xf32>
    %60 = arith.mulf %58, %59 : vector<8x8x128xf32>
    %61 = arith.addf %52, %60 : vector<8x8x128xf32>
    %c0_42 = arith.constant 0 : index
    %c2_43 = arith.constant 2 : index
    %c1_44 = arith.constant 1 : index
    %c0_45 = arith.constant 0 : index
    %62 = vector.load %arg1[%c0_42, %c2_43, %c1_44, %c0_45] : memref<1x10x10x128xbf16, #tpu.memory_space<vmem>>, vector<1x8x8x128xbf16>
    %63 = vector.shape_cast %62 : vector<1x8x8x128xbf16> to vector<8x8x128xbf16>
    %c7 = arith.constant 7 : index
    %c0_46 = arith.constant 0 : index
    %c0_47 = arith.constant 0 : index
    %64 = vector.load %arg2[%c7, %c0_46, %c0_47] : memref<9x1x128xf32, #tpu.memory_space<vmem>>, vector<1x1x128xf32>
    %65 = vector.shape_cast %64 : vector<1x1x128xf32> to vector<1x128xf32>
    %66 = vector.shape_cast %65 : vector<1x128xf32> to vector<1x1x128xf32>
    %67 = arith.extf %63 : vector<8x8x128xbf16> to vector<8x8x128xf32>
    %68 = vector.broadcast %66 : vector<1x1x128xf32> to vector<8x8x128xf32>
    %69 = arith.mulf %67, %68 : vector<8x8x128xf32>
    %70 = arith.addf %61, %69 : vector<8x8x128xf32>
    %c0_48 = arith.constant 0 : index
    %c2_49 = arith.constant 2 : index
    %c2_50 = arith.constant 2 : index
    %c0_51 = arith.constant 0 : index
    %71 = vector.load %arg1[%c0_48, %c2_49, %c2_50, %c0_51] : memref<1x10x10x128xbf16, #tpu.memory_space<vmem>>, vector<1x8x8x128xbf16>
    %72 = vector.shape_cast %71 : vector<1x8x8x128xbf16> to vector<8x8x128xbf16>
    %c8 = arith.constant 8 : index
    %c0_52 = arith.constant 0 : index
    %c0_53 = arith.constant 0 : index
    %73 = vector.load %arg2[%c8, %c0_52, %c0_53] : memref<9x1x128xf32, #tpu.memory_space<vmem>>, vector<1x1x128xf32>
    %74 = vector.shape_cast %73 : vector<1x1x128xf32> to vector<1x128xf32>
    %75 = vector.shape_cast %74 : vector<1x128xf32> to vector<1x1x128xf32>
    %76 = arith.extf %72 : vector<8x8x128xbf16> to vector<8x8x128xf32>
    %77 = vector.broadcast %75 : vector<1x1x128xf32> to vector<8x8x128xf32>
    %78 = arith.mulf %76, %77 : vector<8x8x128xf32>
    %79 = arith.addf %70, %78 : vector<8x8x128xf32>
    %c0_54 = arith.constant 0 : index
    %c0_55 = arith.constant 0 : index
    %80 = vector.load %arg3[%c0_54, %c0_55] : memref<1x128xf32, #tpu.memory_space<vmem>>, vector<1x128xf32>
    %81 = vector.shape_cast %80 : vector<1x128xf32> to vector<1x1x128xf32>
    %82 = vector.broadcast %81 : vector<1x1x128xf32> to vector<8x8x128xf32>
    %83 = arith.mulf %79, %82 : vector<8x8x128xf32>
    %c0_56 = arith.constant 0 : index
    %c0_57 = arith.constant 0 : index
    %84 = vector.load %arg4[%c0_56, %c0_57] : memref<1x128xf32, #tpu.memory_space<vmem>>, vector<1x128xf32>
    %85 = vector.shape_cast %84 : vector<1x128xf32> to vector<1x1x128xf32>
    %86 = vector.broadcast %85 : vector<1x1x128xf32> to vector<8x8x128xf32>
    %87 = arith.addf %83, %86 : vector<8x8x128xf32>
    %88 = arith.negf %87 : vector<8x8x128xf32>
    %89 = math.exp %88 : vector<8x8x128xf32>
    %cst = arith.constant 1.000000e+00 : f32
    %90 = vector.broadcast %cst : f32 to vector<8x8x128xf32>
    %91 = arith.addf %90, %89 : vector<8x8x128xf32>
    %92 = arith.divf %90, %91 : vector<8x8x128xf32>
    %93 = arith.mulf %87, %92 : vector<8x8x128xf32>
    %94 = arith.truncf %93 : vector<8x8x128xf32> to vector<8x8x128xbf16>
    %c0_58 = arith.constant 0 : index
    %c0_59 = arith.constant 0 : index
    %c0_60 = arith.constant 0 : index
    %c0_61 = arith.constant 0 : index
    %95 = vector.load %arg5[%c0_58, %c0_59, %c0_60, %c0_61] : memref<1x8x8x128xbf16, #tpu.memory_space<vmem>>, vector<1x8x8x128xbf16>
    %96 = vector.shape_cast %95 : vector<1x8x8x128xbf16> to vector<8x8x128xbf16>
    %97 = vector.shape_cast %94 : vector<8x8x128xbf16> to vector<1x8x8x128xbf16>
    tpu.vector_store %arg5[%c0_58, %c0_59, %c0_60, %c0_61], %97 {strides = array<i32>} : memref<1x8x8x128xbf16, #tpu.memory_space<vmem>>, vector<1x8x8x128xbf16>,
    %cst_62 = arith.constant dense<0.000000e+00> : vector<128xf32>
    %98 = vector.multi_reduction <add>, %93, %cst_62 [0, 1] : vector<8x8x128xf32> to vector<128xf32>
    %99 = vector.shape_cast %98 : vector<128xf32> to vector<1x1x128xf32>
    %cst_63 = arith.constant 6.400000e+01 : f32
    %100 = vector.broadcast %cst_63 : f32 to vector<1x1x128xf32>
    %101 = arith.divf %99, %100 : vector<1x1x128xf32>
    %c0_64 = arith.constant 0 : index
    %c0_65 = arith.constant 0 : index
    %c0_66 = arith.constant 0 : index
    %102 = vector.load %arg6[%c0_64, %c0_65, %c0_66] : memref<1x1x128xf32, #tpu.memory_space<vmem>>, vector<1x1x128xf32>
    tpu.vector_store %arg6[%c0_64, %c0_65, %c0_66], %101 {strides = array<i32>} : memref<1x1x128xf32, #tpu.memory_space<vmem>>, vector<1x1x128xf32>,
    return
  }
  func.func @transform_0(%arg0: i32) -> (i32, i32, i32, i32) {
    %c0_i32 = arith.constant 0 : i32
    %c0_i32_0 = arith.constant 0 : i32
    %c0_i32_1 = arith.constant 0 : i32
    %c0_i32_2 = arith.constant 0 : i32
    return %arg0, %c0_i32, %c0_i32_0, %c0_i32_1 : i32, i32, i32, i32
  }
  func.func @transform_1(%arg0: i32) -> (i32, i32, i32) {
    %c0_i32 = arith.constant 0 : i32
    %c0_i32_0 = arith.constant 0 : i32
    %c0_i32_1 = arith.constant 0 : i32
    %c0_i32_2 = arith.constant 0 : i32
    return %c0_i32, %c0_i32_0, %c0_i32_1 : i32, i32, i32
  }
  func.func @transform_2(%arg0: i32) -> (i32, i32) {
    %c0_i32 = arith.constant 0 : i32
    %c0_i32_0 = arith.constant 0 : i32
    %c0_i32_1 = arith.constant 0 : i32
    return %c0_i32, %c0_i32_0 : i32, i32
  }
  func.func @transform_3(%arg0: i32) -> (i32, i32) {
    %c0_i32 = arith.constant 0 : i32
    %c0_i32_0 = arith.constant 0 : i32
    %c0_i32_1 = arith.constant 0 : i32
    return %c0_i32, %c0_i32_0 : i32, i32
  }
  func.func @transform_4(%arg0: i32) -> (i32, i32, i32, i32) {
    %c0_i32 = arith.constant 0 : i32
    %c0_i32_0 = arith.constant 0 : i32
    %c0_i32_1 = arith.constant 0 : i32
    %c0_i32_2 = arith.constant 0 : i32
    return %arg0, %c0_i32, %c0_i32_0, %c0_i32_1 : i32, i32, i32, i32
  }
  func.func @transform_5(%arg0: i32) -> (i32, i32, i32) {
    %c0_i32 = arith.constant 0 : i32
    %c0_i32_0 = arith.constant 0 : i32
    %c0_i32_1 = arith.constant 0 : i32
    return %arg0, %c0_i32, %c0_i32_0 : i32, i32, i32
  }
}

module attributes {stable_mosaic.version = 11 : i64} {
  func.func @_dw_kernel(%arg0: i32, %arg1: memref<1x20x5x128xbf16, #tpu.memory_space<vmem>>, %arg2: memref<9x1x128xf32, #tpu.memory_space<vmem>>, %arg3: memref<1x128xf32, #tpu.memory_space<vmem>>, %arg4: memref<1x128xf32, #tpu.memory_space<vmem>>, %arg5: memref<1x4x4x128xbf16, #tpu.memory_space<vmem>>, %arg6: memref<1x1x128xf32, #tpu.memory_space<vmem>>) attributes {dimension_semantics = [#tpu.dimension_semantics<parallel>], iteration_bounds = array<i64: 2>, scalar_prefetch = 0 : i64, scratch_operands = 0 : i64, tpu.core_type = #tpu.core_type<tc>, window_params = [{transform_indices = @transform_0, window_bounds = array<i64: 1, 20, 5, 128>}, {pipeline_mode = #tpu.pipeline_mode<synchronous>, transform_indices = @transform_1, window_bounds = array<i64: 9, 1, 128>}, {pipeline_mode = #tpu.pipeline_mode<synchronous>, transform_indices = @transform_2, window_bounds = array<i64: 1, 128>}, {pipeline_mode = #tpu.pipeline_mode<synchronous>, transform_indices = @transform_3, window_bounds = array<i64: 1, 128>}, {transform_indices = @transform_4, window_bounds = array<i64: 1, 4, 4, 128>}, {transform_indices = @transform_5, window_bounds = array<i64: 1, 1, 128>}]} {
    %c0 = arith.constant 0 : index
    %c0_0 = arith.constant 0 : index
    %c0_1 = arith.constant 0 : index
    %c0_2 = arith.constant 0 : index
    %0 = vector.load %arg1[%c0, %c0_0, %c0_1, %c0_2] : memref<1x20x5x128xbf16, #tpu.memory_space<vmem>>, vector<1x4x4x128xbf16>
    %1 = vector.shape_cast %0 : vector<1x4x4x128xbf16> to vector<4x4x128xbf16>
    %c0_3 = arith.constant 0 : index
    %c0_4 = arith.constant 0 : index
    %c0_5 = arith.constant 0 : index
    %2 = vector.load %arg2[%c0_3, %c0_4, %c0_5] : memref<9x1x128xf32, #tpu.memory_space<vmem>>, vector<1x1x128xf32>
    %3 = vector.shape_cast %2 : vector<1x1x128xf32> to vector<1x128xf32>
    %4 = vector.shape_cast %3 : vector<1x128xf32> to vector<1x1x128xf32>
    %5 = arith.extf %1 : vector<4x4x128xbf16> to vector<4x4x128xf32>
    %6 = vector.broadcast %4 : vector<1x1x128xf32> to vector<4x4x128xf32>
    %7 = arith.mulf %5, %6 : vector<4x4x128xf32>
    %c0_6 = arith.constant 0 : index
    %c5 = arith.constant 5 : index
    %c0_7 = arith.constant 0 : index
    %c0_8 = arith.constant 0 : index
    %8 = vector.load %arg1[%c0_6, %c5, %c0_7, %c0_8] : memref<1x20x5x128xbf16, #tpu.memory_space<vmem>>, vector<1x4x4x128xbf16>
    %9 = vector.shape_cast %8 : vector<1x4x4x128xbf16> to vector<4x4x128xbf16>
    %c1 = arith.constant 1 : index
    %c0_9 = arith.constant 0 : index
    %c0_10 = arith.constant 0 : index
    %10 = vector.load %arg2[%c1, %c0_9, %c0_10] : memref<9x1x128xf32, #tpu.memory_space<vmem>>, vector<1x1x128xf32>
    %11 = vector.shape_cast %10 : vector<1x1x128xf32> to vector<1x128xf32>
    %12 = vector.shape_cast %11 : vector<1x128xf32> to vector<1x1x128xf32>
    %13 = arith.extf %9 : vector<4x4x128xbf16> to vector<4x4x128xf32>
    %14 = vector.broadcast %12 : vector<1x1x128xf32> to vector<4x4x128xf32>
    %15 = arith.mulf %13, %14 : vector<4x4x128xf32>
    %16 = arith.addf %7, %15 : vector<4x4x128xf32>
    %c0_11 = arith.constant 0 : index
    %c0_12 = arith.constant 0 : index
    %c1_13 = arith.constant 1 : index
    %c0_14 = arith.constant 0 : index
    %17 = vector.load %arg1[%c0_11, %c0_12, %c1_13, %c0_14] : memref<1x20x5x128xbf16, #tpu.memory_space<vmem>>, vector<1x4x4x128xbf16>
    %18 = vector.shape_cast %17 : vector<1x4x4x128xbf16> to vector<4x4x128xbf16>
    %c2 = arith.constant 2 : index
    %c0_15 = arith.constant 0 : index
    %c0_16 = arith.constant 0 : index
    %19 = vector.load %arg2[%c2, %c0_15, %c0_16] : memref<9x1x128xf32, #tpu.memory_space<vmem>>, vector<1x1x128xf32>
    %20 = vector.shape_cast %19 : vector<1x1x128xf32> to vector<1x128xf32>
    %21 = vector.shape_cast %20 : vector<1x128xf32> to vector<1x1x128xf32>
    %22 = arith.extf %18 : vector<4x4x128xbf16> to vector<4x4x128xf32>
    %23 = vector.broadcast %21 : vector<1x1x128xf32> to vector<4x4x128xf32>
    %24 = arith.mulf %22, %23 : vector<4x4x128xf32>
    %25 = arith.addf %16, %24 : vector<4x4x128xf32>
    %c0_17 = arith.constant 0 : index
    %c10 = arith.constant 10 : index
    %c0_18 = arith.constant 0 : index
    %c0_19 = arith.constant 0 : index
    %26 = vector.load %arg1[%c0_17, %c10, %c0_18, %c0_19] : memref<1x20x5x128xbf16, #tpu.memory_space<vmem>>, vector<1x4x4x128xbf16>
    %27 = vector.shape_cast %26 : vector<1x4x4x128xbf16> to vector<4x4x128xbf16>
    %c3 = arith.constant 3 : index
    %c0_20 = arith.constant 0 : index
    %c0_21 = arith.constant 0 : index
    %28 = vector.load %arg2[%c3, %c0_20, %c0_21] : memref<9x1x128xf32, #tpu.memory_space<vmem>>, vector<1x1x128xf32>
    %29 = vector.shape_cast %28 : vector<1x1x128xf32> to vector<1x128xf32>
    %30 = vector.shape_cast %29 : vector<1x128xf32> to vector<1x1x128xf32>
    %31 = arith.extf %27 : vector<4x4x128xbf16> to vector<4x4x128xf32>
    %32 = vector.broadcast %30 : vector<1x1x128xf32> to vector<4x4x128xf32>
    %33 = arith.mulf %31, %32 : vector<4x4x128xf32>
    %34 = arith.addf %25, %33 : vector<4x4x128xf32>
    %c0_22 = arith.constant 0 : index
    %c15 = arith.constant 15 : index
    %c0_23 = arith.constant 0 : index
    %c0_24 = arith.constant 0 : index
    %35 = vector.load %arg1[%c0_22, %c15, %c0_23, %c0_24] : memref<1x20x5x128xbf16, #tpu.memory_space<vmem>>, vector<1x4x4x128xbf16>
    %36 = vector.shape_cast %35 : vector<1x4x4x128xbf16> to vector<4x4x128xbf16>
    %c4 = arith.constant 4 : index
    %c0_25 = arith.constant 0 : index
    %c0_26 = arith.constant 0 : index
    %37 = vector.load %arg2[%c4, %c0_25, %c0_26] : memref<9x1x128xf32, #tpu.memory_space<vmem>>, vector<1x1x128xf32>
    %38 = vector.shape_cast %37 : vector<1x1x128xf32> to vector<1x128xf32>
    %39 = vector.shape_cast %38 : vector<1x128xf32> to vector<1x1x128xf32>
    %40 = arith.extf %36 : vector<4x4x128xbf16> to vector<4x4x128xf32>
    %41 = vector.broadcast %39 : vector<1x1x128xf32> to vector<4x4x128xf32>
    %42 = arith.mulf %40, %41 : vector<4x4x128xf32>
    %43 = arith.addf %34, %42 : vector<4x4x128xf32>
    %c0_27 = arith.constant 0 : index
    %c10_28 = arith.constant 10 : index
    %c1_29 = arith.constant 1 : index
    %c0_30 = arith.constant 0 : index
    %44 = vector.load %arg1[%c0_27, %c10_28, %c1_29, %c0_30] : memref<1x20x5x128xbf16, #tpu.memory_space<vmem>>, vector<1x4x4x128xbf16>
    %45 = vector.shape_cast %44 : vector<1x4x4x128xbf16> to vector<4x4x128xbf16>
    %c5_31 = arith.constant 5 : index
    %c0_32 = arith.constant 0 : index
    %c0_33 = arith.constant 0 : index
    %46 = vector.load %arg2[%c5_31, %c0_32, %c0_33] : memref<9x1x128xf32, #tpu.memory_space<vmem>>, vector<1x1x128xf32>
    %47 = vector.shape_cast %46 : vector<1x1x128xf32> to vector<1x128xf32>
    %48 = vector.shape_cast %47 : vector<1x128xf32> to vector<1x1x128xf32>
    %49 = arith.extf %45 : vector<4x4x128xbf16> to vector<4x4x128xf32>
    %50 = vector.broadcast %48 : vector<1x1x128xf32> to vector<4x4x128xf32>
    %51 = arith.mulf %49, %50 : vector<4x4x128xf32>
    %52 = arith.addf %43, %51 : vector<4x4x128xf32>
    %c0_34 = arith.constant 0 : index
    %c1_35 = arith.constant 1 : index
    %c0_36 = arith.constant 0 : index
    %c0_37 = arith.constant 0 : index
    %53 = vector.load %arg1[%c0_34, %c1_35, %c0_36, %c0_37] : memref<1x20x5x128xbf16, #tpu.memory_space<vmem>>, vector<1x4x4x128xbf16>
    %54 = vector.shape_cast %53 : vector<1x4x4x128xbf16> to vector<4x4x128xbf16>
    %c6 = arith.constant 6 : index
    %c0_38 = arith.constant 0 : index
    %c0_39 = arith.constant 0 : index
    %55 = vector.load %arg2[%c6, %c0_38, %c0_39] : memref<9x1x128xf32, #tpu.memory_space<vmem>>, vector<1x1x128xf32>
    %56 = vector.shape_cast %55 : vector<1x1x128xf32> to vector<1x128xf32>
    %57 = vector.shape_cast %56 : vector<1x128xf32> to vector<1x1x128xf32>
    %58 = arith.extf %54 : vector<4x4x128xbf16> to vector<4x4x128xf32>
    %59 = vector.broadcast %57 : vector<1x1x128xf32> to vector<4x4x128xf32>
    %60 = arith.mulf %58, %59 : vector<4x4x128xf32>
    %61 = arith.addf %52, %60 : vector<4x4x128xf32>
    %c0_40 = arith.constant 0 : index
    %c6_41 = arith.constant 6 : index
    %c0_42 = arith.constant 0 : index
    %c0_43 = arith.constant 0 : index
    %62 = vector.load %arg1[%c0_40, %c6_41, %c0_42, %c0_43] : memref<1x20x5x128xbf16, #tpu.memory_space<vmem>>, vector<1x4x4x128xbf16>
    %63 = vector.shape_cast %62 : vector<1x4x4x128xbf16> to vector<4x4x128xbf16>
    %c7 = arith.constant 7 : index
    %c0_44 = arith.constant 0 : index
    %c0_45 = arith.constant 0 : index
    %64 = vector.load %arg2[%c7, %c0_44, %c0_45] : memref<9x1x128xf32, #tpu.memory_space<vmem>>, vector<1x1x128xf32>
    %65 = vector.shape_cast %64 : vector<1x1x128xf32> to vector<1x128xf32>
    %66 = vector.shape_cast %65 : vector<1x128xf32> to vector<1x1x128xf32>
    %67 = arith.extf %63 : vector<4x4x128xbf16> to vector<4x4x128xf32>
    %68 = vector.broadcast %66 : vector<1x1x128xf32> to vector<4x4x128xf32>
    %69 = arith.mulf %67, %68 : vector<4x4x128xf32>
    %70 = arith.addf %61, %69 : vector<4x4x128xf32>
    %c0_46 = arith.constant 0 : index
    %c1_47 = arith.constant 1 : index
    %c1_48 = arith.constant 1 : index
    %c0_49 = arith.constant 0 : index
    %71 = vector.load %arg1[%c0_46, %c1_47, %c1_48, %c0_49] : memref<1x20x5x128xbf16, #tpu.memory_space<vmem>>, vector<1x4x4x128xbf16>
    %72 = vector.shape_cast %71 : vector<1x4x4x128xbf16> to vector<4x4x128xbf16>
    %c8 = arith.constant 8 : index
    %c0_50 = arith.constant 0 : index
    %c0_51 = arith.constant 0 : index
    %73 = vector.load %arg2[%c8, %c0_50, %c0_51] : memref<9x1x128xf32, #tpu.memory_space<vmem>>, vector<1x1x128xf32>
    %74 = vector.shape_cast %73 : vector<1x1x128xf32> to vector<1x128xf32>
    %75 = vector.shape_cast %74 : vector<1x128xf32> to vector<1x1x128xf32>
    %76 = arith.extf %72 : vector<4x4x128xbf16> to vector<4x4x128xf32>
    %77 = vector.broadcast %75 : vector<1x1x128xf32> to vector<4x4x128xf32>
    %78 = arith.mulf %76, %77 : vector<4x4x128xf32>
    %79 = arith.addf %70, %78 : vector<4x4x128xf32>
    %c0_52 = arith.constant 0 : index
    %c0_53 = arith.constant 0 : index
    %80 = vector.load %arg3[%c0_52, %c0_53] : memref<1x128xf32, #tpu.memory_space<vmem>>, vector<1x128xf32>
    %81 = vector.shape_cast %80 : vector<1x128xf32> to vector<1x1x128xf32>
    %82 = vector.broadcast %81 : vector<1x1x128xf32> to vector<4x4x128xf32>
    %83 = arith.mulf %79, %82 : vector<4x4x128xf32>
    %c0_54 = arith.constant 0 : index
    %c0_55 = arith.constant 0 : index
    %84 = vector.load %arg4[%c0_54, %c0_55] : memref<1x128xf32, #tpu.memory_space<vmem>>, vector<1x128xf32>
    %85 = vector.shape_cast %84 : vector<1x128xf32> to vector<1x1x128xf32>
    %86 = vector.broadcast %85 : vector<1x1x128xf32> to vector<4x4x128xf32>
    %87 = arith.addf %83, %86 : vector<4x4x128xf32>
    %88 = arith.negf %87 : vector<4x4x128xf32>
    %89 = math.exp %88 : vector<4x4x128xf32>
    %cst = arith.constant 1.000000e+00 : f32
    %90 = vector.broadcast %cst : f32 to vector<4x4x128xf32>
    %91 = arith.addf %90, %89 : vector<4x4x128xf32>
    %92 = arith.divf %90, %91 : vector<4x4x128xf32>
    %93 = arith.mulf %87, %92 : vector<4x4x128xf32>
    %94 = arith.truncf %93 : vector<4x4x128xf32> to vector<4x4x128xbf16>
    %c0_56 = arith.constant 0 : index
    %c0_57 = arith.constant 0 : index
    %c0_58 = arith.constant 0 : index
    %c0_59 = arith.constant 0 : index
    %95 = vector.load %arg5[%c0_56, %c0_57, %c0_58, %c0_59] : memref<1x4x4x128xbf16, #tpu.memory_space<vmem>>, vector<1x4x4x128xbf16>
    %96 = vector.shape_cast %95 : vector<1x4x4x128xbf16> to vector<4x4x128xbf16>
    %97 = vector.shape_cast %94 : vector<4x4x128xbf16> to vector<1x4x4x128xbf16>
    tpu.vector_store %arg5[%c0_56, %c0_57, %c0_58, %c0_59], %97 {strides = array<i32>} : memref<1x4x4x128xbf16, #tpu.memory_space<vmem>>, vector<1x4x4x128xbf16>,
    %cst_60 = arith.constant dense<0.000000e+00> : vector<128xf32>
    %98 = vector.multi_reduction <add>, %93, %cst_60 [0, 1] : vector<4x4x128xf32> to vector<128xf32>
    %99 = vector.shape_cast %98 : vector<128xf32> to vector<1x1x128xf32>
    %cst_61 = arith.constant 1.600000e+01 : f32
    %100 = vector.broadcast %cst_61 : f32 to vector<1x1x128xf32>
    %101 = arith.divf %99, %100 : vector<1x1x128xf32>
    %c0_62 = arith.constant 0 : index
    %c0_63 = arith.constant 0 : index
    %c0_64 = arith.constant 0 : index
    %102 = vector.load %arg6[%c0_62, %c0_63, %c0_64] : memref<1x1x128xf32, #tpu.memory_space<vmem>>, vector<1x1x128xf32>
    tpu.vector_store %arg6[%c0_62, %c0_63, %c0_64], %101 {strides = array<i32>} : memref<1x1x128xf32, #tpu.memory_space<vmem>>, vector<1x1x128xf32>,
    return
  }
  func.func @transform_0(%arg0: i32) -> (i32, i32, i32, i32) {
    %c0_i32 = arith.constant 0 : i32
    %c0_i32_0 = arith.constant 0 : i32
    %c0_i32_1 = arith.constant 0 : i32
    %c0_i32_2 = arith.constant 0 : i32
    return %arg0, %c0_i32, %c0_i32_0, %c0_i32_1 : i32, i32, i32, i32
  }
  func.func @transform_1(%arg0: i32) -> (i32, i32, i32) {
    %c0_i32 = arith.constant 0 : i32
    %c0_i32_0 = arith.constant 0 : i32
    %c0_i32_1 = arith.constant 0 : i32
    %c0_i32_2 = arith.constant 0 : i32
    return %c0_i32, %c0_i32_0, %c0_i32_1 : i32, i32, i32
  }
  func.func @transform_2(%arg0: i32) -> (i32, i32) {
    %c0_i32 = arith.constant 0 : i32
    %c0_i32_0 = arith.constant 0 : i32
    %c0_i32_1 = arith.constant 0 : i32
    return %c0_i32, %c0_i32_0 : i32, i32
  }
  func.func @transform_3(%arg0: i32) -> (i32, i32) {
    %c0_i32 = arith.constant 0 : i32
    %c0_i32_0 = arith.constant 0 : i32
    %c0_i32_1 = arith.constant 0 : i32
    return %c0_i32, %c0_i32_0 : i32, i32
  }
  func.func @transform_4(%arg0: i32) -> (i32, i32, i32, i32) {
    %c0_i32 = arith.constant 0 : i32
    %c0_i32_0 = arith.constant 0 : i32
    %c0_i32_1 = arith.constant 0 : i32
    %c0_i32_2 = arith.constant 0 : i32
    return %arg0, %c0_i32, %c0_i32_0, %c0_i32_1 : i32, i32, i32, i32
  }
  func.func @transform_5(%arg0: i32) -> (i32, i32, i32) {
    %c0_i32 = arith.constant 0 : i32
    %c0_i32_0 = arith.constant 0 : i32
    %c0_i32_1 = arith.constant 0 : i32
    return %arg0, %c0_i32, %c0_i32_0 : i32, i32, i32
  }
}

module attributes {stable_mosaic.version = 11 : i64} {
  func.func @_proj_kernel(%arg0: i32, %arg1: i32, %arg2: memref<1x16x128xbf16, #tpu.memory_space<vmem>>, %arg3: memref<1x1x128xf32, #tpu.memory_space<vmem>>, %arg4: memref<128x128xbf16, #tpu.memory_space<vmem>>, %arg5: memref<1x128xf32, #tpu.memory_space<vmem>>, %arg6: memref<1x128xf32, #tpu.memory_space<vmem>>, %arg7: memref<1x16x128xbf16, #tpu.memory_space<vmem>>) attributes {dimension_semantics = [#tpu.dimension_semantics<parallel>, #tpu.dimension_semantics<parallel>], iteration_bounds = array<i64: 2, 1>, scalar_prefetch = 0 : i64, scratch_operands = 0 : i64, tpu.core_type = #tpu.core_type<tc>, window_params = [{transform_indices = @transform_0, window_bounds = array<i64: 1, 16, 128>}, {transform_indices = @transform_1, window_bounds = array<i64: 1, 1, 128>}, {pipeline_mode = #tpu.pipeline_mode<synchronous>, transform_indices = @transform_2, window_bounds = array<i64: 128, 128>}, {pipeline_mode = #tpu.pipeline_mode<synchronous>, transform_indices = @transform_3, window_bounds = array<i64: 1, 128>}, {pipeline_mode = #tpu.pipeline_mode<synchronous>, transform_indices = @transform_4, window_bounds = array<i64: 1, 128>}, {transform_indices = @transform_5, window_bounds = array<i64: 1, 16, 128>}]} {
    %c0 = arith.constant 0 : index
    %c0_0 = arith.constant 0 : index
    %c0_1 = arith.constant 0 : index
    %0 = vector.load %arg2[%c0, %c0_0, %c0_1] : memref<1x16x128xbf16, #tpu.memory_space<vmem>>, vector<1x16x128xbf16>
    %1 = vector.shape_cast %0 : vector<1x16x128xbf16> to vector<16x128xbf16>
    %2 = arith.extf %1 : vector<16x128xbf16> to vector<16x128xf32>
    %c0_2 = arith.constant 0 : index
    %c0_3 = arith.constant 0 : index
    %c0_4 = arith.constant 0 : index
    %3 = vector.load %arg3[%c0_2, %c0_3, %c0_4] : memref<1x1x128xf32, #tpu.memory_space<vmem>>, vector<1x1x128xf32>
    %4 = vector.shape_cast %3 : vector<1x1x128xf32> to vector<1x128xf32>
    %5 = vector.broadcast %4 : vector<1x128xf32> to vector<16x128xf32>
    %6 = arith.mulf %2, %5 : vector<16x128xf32>
    %7 = arith.truncf %6 : vector<16x128xf32> to vector<16x128xbf16>
    %c0_5 = arith.constant 0 : index
    %c0_6 = arith.constant 0 : index
    %8 = vector.load %arg4[%c0_5, %c0_6] : memref<128x128xbf16, #tpu.memory_space<vmem>>, vector<128x128xbf16>
    %cst = arith.constant dense<0.000000e+00> : vector<16x128xf32>
    %9 = tpu.matmul %7, %8, %cst {dimension_numbers = #tpu.dot_dimension_numbers<[1], [0], [0], [1], [0, 0, 1, 1], [], []>} : vector<16x128xbf16>, vector<128x128xbf16>, vector<16x128xf32> -> vector<16x128xf32>
    %c0_7 = arith.constant 0 : index
    %c0_8 = arith.constant 0 : index
    %10 = vector.load %arg5[%c0_7, %c0_8] : memref<1x128xf32, #tpu.memory_space<vmem>>, vector<1x128xf32>
    %11 = vector.broadcast %10 : vector<1x128xf32> to vector<16x128xf32>
    %12 = arith.mulf %9, %11 : vector<16x128xf32>
    %c0_9 = arith.constant 0 : index
    %c0_10 = arith.constant 0 : index
    %13 = vector.load %arg6[%c0_9, %c0_10] : memref<1x128xf32, #tpu.memory_space<vmem>>, vector<1x128xf32>
    %14 = vector.broadcast %13 : vector<1x128xf32> to vector<16x128xf32>
    %15 = arith.addf %12, %14 : vector<16x128xf32>
    %16 = arith.truncf %15 : vector<16x128xf32> to vector<16x128xbf16>
    %c0_11 = arith.constant 0 : index
    %c0_12 = arith.constant 0 : index
    %c0_13 = arith.constant 0 : index
    %17 = vector.load %arg7[%c0_11, %c0_12, %c0_13] : memref<1x16x128xbf16, #tpu.memory_space<vmem>>, vector<1x16x128xbf16>
    %18 = vector.shape_cast %17 : vector<1x16x128xbf16> to vector<16x128xbf16>
    %19 = vector.shape_cast %16 : vector<16x128xbf16> to vector<1x16x128xbf16>
    tpu.vector_store %arg7[%c0_11, %c0_12, %c0_13], %19 {strides = array<i32>} : memref<1x16x128xbf16, #tpu.memory_space<vmem>>, vector<1x16x128xbf16>,
    return
  }
  func.func @transform_0(%arg0: i32, %arg1: i32) -> (i32, i32, i32) {
    %c0_i32 = arith.constant 0 : i32
    %c0_i32_0 = arith.constant 0 : i32
    return %arg0, %arg1, %c0_i32 : i32, i32, i32
  }
  func.func @transform_1(%arg0: i32, %arg1: i32) -> (i32, i32, i32) {
    %c0_i32 = arith.constant 0 : i32
    %c0_i32_0 = arith.constant 0 : i32
    %c0_i32_1 = arith.constant 0 : i32
    return %arg0, %c0_i32, %c0_i32_0 : i32, i32, i32
  }
  func.func @transform_2(%arg0: i32, %arg1: i32) -> (i32, i32) {
    %c0_i32 = arith.constant 0 : i32
    %c0_i32_0 = arith.constant 0 : i32
    %c0_i32_1 = arith.constant 0 : i32
    return %c0_i32, %c0_i32_0 : i32, i32
  }
  func.func @transform_3(%arg0: i32, %arg1: i32) -> (i32, i32) {
    %c0_i32 = arith.constant 0 : i32
    %c0_i32_0 = arith.constant 0 : i32
    %c0_i32_1 = arith.constant 0 : i32
    return %c0_i32, %c0_i32_0 : i32, i32
  }
  func.func @transform_4(%arg0: i32, %arg1: i32) -> (i32, i32) {
    %c0_i32 = arith.constant 0 : i32
    %c0_i32_0 = arith.constant 0 : i32
    %c0_i32_1 = arith.constant 0 : i32
    return %c0_i32, %c0_i32_0 : i32, i32
  }
  func.func @transform_5(%arg0: i32, %arg1: i32) -> (i32, i32, i32) {
    %c0_i32 = arith.constant 0 : i32
    %c0_i32_0 = arith.constant 0 : i32
    return %arg0, %arg1, %c0_i32 : i32, i32, i32
  }
}

</mosaic_0001>

<bundles_post_ra>
// kernel: _lambda_.17
= control target key start
LH: loop header
LB: loop body
LE: loop exit
PB: predicated region body
PF: predicated region fallthrough
CT: control target
= control target key end

     0   :  { %vm258_vm0 = vcmask 261120   ;;  %s3189_s1 = inlined_call_operand.vmem [shape: bf16[32,128], index: 1, kind: input, shape index: {}]   ;;  %s3190_s0 = inlined_call_operand.vmem [shape: bf16[512,32], index: 0, kind: input, shape index: {}]   ;;  %s3191_s2 = inlined_call_operand.vmem [shape: f32[1,128], index: 2, kind: input, shape index: {}]   ;;  %s3192_s3 = inlined_call_operand.vmem [shape: f32[1,128], index: 3, kind: input, shape index: {}]   ;;  %s3193_s4 = inlined_call_operand.vmem [shape: bf16[512,128], index: 4, kind: output, shape index: {}]  }
   0x1   :  { %v2115_v0 = vld [vmem:[%s3189_s1] sm:$0xff]   ;;  %v2116_v1 = vld [vmem:[%s3189_s1 + $0x8] sm:$0xff]   ;;  %v2121_v6 = vld [vmem:[%s3190_s0 + $0x10] sm:$0xff]  }
   0x2   :  { %2043 = vmatprep.subr.bf16.mxu0 %v2115_v0  ;;  %2111 = vmatprep.subr.bf16.mxu1 %v2115_v0  ;;  %v2117_v2 = vld [vmem:[%s3190_s0] sm:$0xff]   ;;  %v2119_v4 = vld [vmem:[%s3190_s0 + $0x8] sm:$0xff]   ;;  %v2122_v7 = vld [vmem:[%s3190_s0 + $0x90] sm:$0xff]  }
   0x3   :  { %2044 = vmatpush3.bf16.msra.mxu0 %v2115_v0  ;;  %2113 = vmatpush3.bf16.msra.mxu1 %v2115_v0  ;;  %v2118_v3 = vld [vmem:[%s3190_s0 + $0x80] sm:$0xff]   ;;  %v2120_v5 = vld [vmem:[%s3190_s0 + $0x88] sm:$0xff]   ;;  %v2123_v8 = vld [vmem:[%s3190_s0 + $0x18] sm:$0xff]  }
   0x4   :  { %2045 = vmatprep.subr.bf16.mxu0 %v2116_v1  ;;  %2112 = vmatprep.subr.bf16.mxu1 %v2116_v1  ;;  %v2124_v9 = vld [vmem:[%s3190_s0 + $0x98] sm:$0xff]   ;;  %v2125_v10 = vld [vmem:[%s3190_s0 + $0x20] sm:$0xff]   ;;  %v2127_v12 = vld [vmem:[%s3190_s0 + $0x28] sm:$0xff]  }
   0x5   :  { %2047 = vmatprep.mubr.msk.bf16.mxu0 %vm258_vm0, %v2117_v2  ;;  %2079 = vmatprep.mubr.msk.bf16.mxu1 %vm258_vm0, %v2118_v3  ;;  %v2126_v11 = vld [vmem:[%s3190_s0 + $0xa0] sm:$0xff]   ;;  %v2128_v13 = vld [vmem:[%s3190_s0 + $0xa8] sm:$0xff]   ;;  %v2129_v14 = vld [vmem:[%s3190_s0 + $0x30] sm:$0xff]  }
   0x6   :  { %v2130_v15 = vld [vmem:[%s3190_s0 + $0xb0] sm:$0xff]   ;;  %v2131_v16 = vld [vmem:[%s3190_s0 + $0x38] sm:$0xff]   ;;  %v2133_v18 = vld [vmem:[%s3190_s0 + $0x40] sm:$0xff]  }
   0x7   :  { %2046 = vmatpush3.bf16.msra.mxu0 %v2116_v1  ;;  %2114 = vmatpush3.bf16.msra.mxu1 %v2116_v1  ;;  %v2132_v17 = vld [vmem:[%s3190_s0 + $0xb8] sm:$0xff]   ;;  %v2134_v19 = vld [vmem:[%s3190_s0 + $0xc0] sm:$0xff]   ;;  %v2135_v20 = vld [vmem:[%s3190_s0 + $0x48] sm:$0xff]  }
   0x8   :  { %v2136_v21 = vld [vmem:[%s3190_s0 + $0xc8] sm:$0xff]   ;;  %v2137_v22 = vld [vmem:[%s3190_s0 + $0x50] sm:$0xff]   ;;  %v2139_v24 = vld [vmem:[%s3190_s0 + $0x58] sm:$0xff]  }
   0x9   :  { %v2138_v23 = vld [vmem:[%s3190_s0 + $0xd0] sm:$0xff]   ;;  %v2140_v25 = vld [vmem:[%s3190_s0 + $0xd8] sm:$0xff]   ;;  %v2141_v26 = vld [vmem:[%s3190_s0 + $0x60] sm:$0xff]  }
   0xa   :  { %2048 = vmatmul.mubr.msk.bf16.vlgmr.msra.gmra.mrb[0].mxu0 %vm258_vm0, %v2119_v4  ;;  %2080 = vmatmul.mubr.msk.bf16.vlgmr.msra.gmra.mrb[0].mxu1 %vm258_vm0, %v2120_v5  ;;  %v2142_v27 = vld [vmem:[%s3190_s0 + $0xe0] sm:$0xff]   ;;  %v2143_v28 = vld [vmem:[%s3190_s0 + $0x68] sm:$0xff]   ;;  %v2145_v30 = vld [vmem:[%s3190_s0 + $0x70] sm:$0xff]  }
   0xb   :  { %2051 = vmatprep.mubr.msk.bf16.mxu0 %vm258_vm0, %v2121_v6  ;;  %2083 = vmatprep.mubr.msk.bf16.mxu1 %vm258_vm0, %v2122_v7  ;;  %v2144_v29 = vld [vmem:[%s3190_s0 + $0xe8] sm:$0xff]   ;;  %v2146_v31 = vld [vmem:[%s3190_s0 + $0xf0] sm:$0xff]   ;;  %v2147_v32 = vld [vmem:[%s3190_s0 + $0x78] sm:$0xff]  }
   0xc   :  { %v2148_v33 = vld [vmem:[%s3190_s0 + $0xf8] sm:$0xff]   ;;  %v2569_v34 = vld [vmem:[%s3191_s2] ss:$0 sm:$0xff] }
   0xd   :  { %v2574_v36 = vld [vmem:[%s3192_s3] ss:$0 sm:$0xff] }
  0x12   :  { %2052 = vmatmul.mubr.msk.bf16.gmra.mrb[4].mxu0 %vm258_vm0, %v2123_v8  ;;  %2084 = vmatmul.mubr.msk.bf16.gmra.mrb[4].mxu1 %vm258_vm0, %v2124_v9 }
  0x13   :  { %2055 = vmatprep.mubr.msk.bf16.mxu0 %vm258_vm0, %v2125_v10  ;;  %2087 = vmatprep.mubr.msk.bf16.mxu1 %vm258_vm0, %v2126_v11 }
  0x1a   :  { %2056 = vmatmul.mubr.msk.bf16.gmra.mrb[8].mxu0 %vm258_vm0, %v2127_v12  ;;  %2088 = vmatmul.mubr.msk.bf16.gmra.mrb[8].mxu1 %vm258_vm0, %v2128_v13 }
  0x1b   :  { %2059 = vmatprep.mubr.msk.bf16.mxu0 %vm258_vm0, %v2129_v14  ;;  %2091 = vmatprep.mubr.msk.bf16.mxu1 %vm258_vm0, %v2130_v15 }
  0x22   :  { %2060 = vmatmul.mubr.msk.bf16.gmra.mrb[12].mxu0 %vm258_vm0, %v2131_v16  ;;  %2092 = vmatmul.mubr.msk.bf16.gmra.mrb[12].mxu1 %vm258_vm0, %v2132_v17 }
  0x23   :  { %2063 = vmatprep.mubr.msk.bf16.mxu0 %vm258_vm0, %v2133_v18  ;;  %2095 = vmatprep.mubr.msk.bf16.mxu1 %vm258_vm0, %v2134_v19 }
  0x2a   :  { %2064 = vmatmul.mubr.msk.bf16.gmra.mrb[16].mxu0 %vm258_vm0, %v2135_v20  ;;  %2096 = vmatmul.mubr.msk.bf16.gmra.mrb[16].mxu1 %vm258_vm0, %v2136_v21 }
  0x2b   :  { %2067 = vmatprep.mubr.msk.bf16.mxu0 %vm258_vm0, %v2137_v22  ;;  %2099 = vmatprep.mubr.msk.bf16.mxu1 %vm258_vm0, %v2138_v23 }
  0x32   :  { %2068 = vmatmul.mubr.msk.bf16.gmra.mrb[20].mxu0 %vm258_vm0, %v2139_v24  ;;  %2100 = vmatmul.mubr.msk.bf16.gmra.mrb[20].mxu1 %vm258_vm0, %v2140_v25 }
  0x33   :  { %2071 = vmatprep.mubr.msk.bf16.mxu0 %vm258_vm0, %v2141_v26  ;;  %2103 = vmatprep.mubr.msk.bf16.mxu1 %vm258_vm0, %v2142_v27 }
  0x3a   :  { %2072 = vmatmul.mubr.msk.bf16.gmra.mrb[24].mxu0 %vm258_vm0, %v2143_v28  ;;  %2104 = vmatmul.mubr.msk.bf16.gmra.mrb[24].mxu1 %vm258_vm0, %v2144_v29 }
  0x3b   :  { %2075 = vmatprep.mubr.msk.bf16.mxu0 %vm258_vm0, %v2145_v30  ;;  %2107 = vmatprep.mubr.msk.bf16.mxu1 %vm258_vm0, %v2146_v31 }
  0x42   :  { %2076 = vmatmul.mubr.msk.bf16.gmra.mrb[28].mxu0 %vm258_vm0, %v2147_v32  ;;  %2108 = vmatmul.mubr.msk.bf16.gmra.mrb[28].mxu1 %vm258_vm0, %v2148_v33 }
  0xdd   :  { %v2049_v35 = vpop.f32.mrb[0].mxu0  ;;  %v2081_v37 = vpop.f32.mrb[0].mxu1 }
  0xde   :  { %v653_v38 = vmul.f32 %v2049_v35, %v2569_v34  ;;  %v685_v39 = vmul.f32 %v2081_v37, %v2569_v34  ;;  %v389_v40 = vpop.f32.mrb[1].mxu0  ;;  %v517_v41 = vpop.f32.mrb[1].mxu1 }
  0xdf   :  { %v651_v42 = vmul.f32 %v2569_v34, %v389_v40  ;;  %v683_v43 = vmul.f32 %v2569_v34, %v517_v41  ;;  %v2050_v44 = vpop.f32.mrb[2].mxu0  ;;  %v2082_v45 = vpop.f32.mrb[2].mxu1 }
  0xe0   :  { %v2581_v46 = vadd.f32 %v2574_v36, %v653_v38  ;;  %v2584_v47 = vadd.f32 %v2574_v36, %v685_v39  ;;  %v654_v48 = vmul.f32 %v2050_v44, %v2569_v34  ;;  %v686_v49 = vmul.f32 %v2082_v45, %v2569_v34  ;;  %v392_v50 = vpop.f32.mrb[3].mxu0  ;;  %v520_v51 = vpop.f32.mrb[3].mxu1 }
  0xe1   :  { %v2589_v52 = vadd.f32 %v2574_v36, %v651_v42  ;;  %v2592_v53 = vadd.f32 %v2574_v36, %v683_v43  ;;  %v652_v54 = vmul.f32 %v2569_v34, %v392_v50  ;;  %v684_v55 = vmul.f32 %v2569_v34, %v520_v51 }
  0xe2   :  { %v1628_v56 = vmul.f32 -1.442695, %v2581_v46  ;;  %v1660_v57 = vmul.f32 -1.442695, %v2584_v47  ;;  %v2599_v58 = vadd.f32 %v2574_v36, %v654_v48  ;;  %v2602_v59 = vadd.f32 %v2574_v36, %v686_v49 }
  0xe3   :  { %v1626_v60 = vmul.f32 -1.442695, %v2589_v52  ;;  %v1658_v61 = vmul.f32 -1.442695, %v2592_v53  ;;  %v2607_v62 = vadd.f32 %v2574_v36, %v652_v54  ;;  %v2610_v63 = vadd.f32 %v2574_v36, %v684_v55 }
  0xe4   :  { %2149 = vpow2.f32 %v1628_v56  ;;  %v1629_v0 = vmul.f32 -1.442695, %v2599_v58  ;;  %v1661_v1 = vmul.f32 -1.442695, %v2602_v59 }
  0xe5   :  { %2151 = vpow2.f32 %v1660_v57  ;;  %v2053_v2 = vpop.f32.mrb[4].mxu0  ;;  %v2085_v3 = vpop.f32.mrb[4].mxu1  ;;  %v1627_v4 = vmul.f32 -1.442695, %v2607_v62  ;;  %v1659_v9 = vmul.f32 -1.442695, %v2610_v63 }
  0xe6   :  { %2153 = vpow2.f32 %v1626_v60  ;;  %v657_v5 = vmul.f32 %v2053_v2, %v2569_v34  ;;  %v689_v6 = vmul.f32 %v2085_v3, %v2569_v34  ;;  %v405_v7 = vpop.f32.mrb[5].mxu0  ;;  %v533_v8 = vpop.f32.mrb[5].mxu1 }
  0xe7   :  { %2155 = vpow2.f32 %v1658_v61  ;;  %v655_v10 = vmul.f32 %v2569_v34, %v405_v7  ;;  %v687_v11 = vmul.f32 %v2569_v34, %v533_v8  ;;  %v2054_v12 = vpop.f32.mrb[6].mxu0  ;;  %v2086_v13 = vpop.f32.mrb[6].mxu1 }
  0xe8   :  { %2157 = vpow2.f32 %v1629_v0  ;;  %v2621_v14 = vadd.f32 %v2574_v36, %v657_v5  ;;  %v2624_v15 = vadd.f32 %v2574_v36, %v689_v6  ;;  %v658_v16 = vmul.f32 %v2054_v12, %v2569_v34  ;;  %v408_v17 = vpop.f32.mrb[7].mxu0  ;;  %v536_v18 = vpop.f32.mrb[7].mxu1 }
  0xe9   :  { %2159 = vpow2.f32 %v1661_v1  ;;  %v2628_v19 = vadd.f32 %v2574_v36, %v655_v10  ;;  %v2631_v20 = vadd.f32 %v2574_v36, %v687_v11  ;;  %v690_v21 = vmul.f32 %v2086_v13, %v2569_v34 }
  0xea   :  { %2161 = vpow2.f32 %v1627_v4  ;;  %v1632_v22 = vmul.f32 -1.442695, %v2621_v14  ;;  %v1664_v23 = vmul.f32 -1.442695, %v2624_v15  ;;  %v2637_v24 = vadd.f32 %v2574_v36, %v658_v16 }
  0xeb   :  { %2163 = vpow2.f32 %v1659_v9  ;;  %v1630_v25 = vmul.f32 -1.442695, %v2628_v19  ;;  %v1662_v26 = vmul.f32 -1.442695, %v2631_v20  ;;  %v656_v28 = vmul.f32 %v2569_v34, %v408_v17 }
  0xec   :  { %2165 = vpow2.f32 %v1632_v22  ;;  %v1633_v27 = vmul.f32 -1.442695, %v2637_v24  ;;  %v2644_v32 = vadd.f32 %v2574_v36, %v690_v21  ;;  %v688_v39 = vmul.f32 %v2569_v34, %v536_v18 }
  0xed   :  { %2167 = vpow2.f32 %v1664_v23  ;;  %v2057_v29 = vpop.f32.mrb[8].mxu0  ;;  %v2089_v30 = vpop.f32.mrb[8].mxu1  ;;  %v2648_v49 = vadd.f32 %v2574_v36, %v656_v28 }
  0xee   :  { %v2150_v31 = vpop.eup %2149  ;;  %2169 = vpow2.f32 %v1630_v25  ;;  %v421_v33 = vpop.f32.mrb[9].mxu0  ;;  %v2651_v55 = vmul.f32 -1.442695, %v2644_v32  ;;  %v2654_v60 = vadd.f32 %v2574_v36, %v688_v39  ;;  %v661_v61 = vmul.f32 %v2057_v29, %v2569_v34 }
  0xef   :  { %v549_v35 = vpop.f32.mrb[9].mxu1  ;;  %v2152_v37 = vpop.eup %2151  ;;  %v980_v38 = vadd.f32 1.0, %v2150_v31  ;;  %2171 = vpow2.f32 %v1662_v26  ;;  %v693_v2 = vmul.f32 %v2089_v30, %v2569_v34  ;;  %v659_v3 = vmul.f32 %v2569_v34, %v421_v33 }
  0xf0   :  { %v2058_v40 = vpop.f32.mrb[10].mxu0  ;;  %v2090_v41 = vpop.f32.mrb[10].mxu1  ;;  %v1012_v43 = vadd.f32 1.0, %v2152_v37  ;;  %2173 = vpow2.f32 %v1633_v27  ;;  %v1631_v6 = vmul.f32 -1.442695, %v2648_v49  ;;  %v691_v7 = vmul.f32 %v2569_v34, %v549_v35 }
  0xf1   :  { %v2154_v42 = vpop.eup %2153  ;;  %v424_v44 = vpop.f32.mrb[11].mxu0  ;;  %2175 = vrcp.f32 %v980_v38  ;;  %v662_v12 = vmul.f32 %v2058_v40, %v2569_v34  ;;  %v694_v13 = vmul.f32 %v2090_v41, %v2569_v34  ;;  %v2666_v22 = vadd.f32 %v2574_v36, %v661_v61 }
  0xf2   :  { %v2156_v45 = vpop.eup %2155  ;;  %v978_v48 = vadd.f32 1.0, %v2154_v42  ;;  %v552_v50 = vpop.f32.mrb[11].mxu1  ;;  %2177 = vrcp.f32 %v1012_v43  ;;  %v660_v23 = vmul.f32 %v2569_v34, %v424_v44  ;;  %v2674_v29 = vadd.f32 %v2574_v36, %v693_v2 }
  0xf3   :  { %v2158_v51 = vpop.eup %2157  ;;  %v1010_v54 = vadd.f32 1.0, %v2156_v45  ;;  %v2677_v30 = vadd.f32 %v2574_v36, %v659_v3  ;;  %v1663_v38 = vmul.f32 -1.442695, %v2654_v60  ;;  %v2685_v39 = vadd.f32 %v2574_v36, %v691_v7 }
  0xf4   :  { %v2160_v56 = vpop.eup %2159  ;;  %2179 = vrcp.f32 %v978_v48  ;;  %v981_v57 = vadd.f32 1.0, %v2158_v51  ;;  %v2688_v42 = vadd.f32 %v2574_v36, %v662_v12  ;;  %v2691_v43 = vadd.f32 %v2574_v36, %v694_v13 }
  0xf5   :  { %v2162_v0 = vpop.eup %2161  ;;  %2181 = vrcp.f32 %v1010_v54  ;;  %v1013_v1 = vadd.f32 1.0, %v2160_v56  ;;  %v2061_v8 = vpop.f32.mrb[12].mxu0  ;;  %v2694_v48 = vadd.f32 %v2574_v36, %v660_v23  ;;  %v692_v51 = vmul.f32 %v2569_v34, %v552_v50 }
  0xf6   :  { %v2164_v4 = vpop.eup %2163  ;;  %2183 = vrcp.f32 %v981_v57  ;;  %v979_v5 = vadd.f32 1.0, %v2162_v0  ;;  %v2093_v9 = vpop.f32.mrb[12].mxu1  ;;  %v1636_v56 = vmul.f32 -1.442695, %v2666_v22  ;;  %v1668_v57 = vmul.f32 -1.442695, %v2674_v29 }
  0xf7   :  { %v2166_v10 = vpop.eup %2165  ;;  %2185 = vrcp.f32 %v1013_v1  ;;  %v1011_v11 = vadd.f32 1.0, %v2164_v4  ;;  %v437_v16 = vpop.f32.mrb[13].mxu0  ;;  %v1634_v61 = vmul.f32 -1.442695, %v2677_v30  ;;  %v1666_v1 = vmul.f32 -1.442695, %v2685_v39 }
  0xf8   :  { %v2663_v17 = vpop.f32.mrb[13].mxu1  ;;  %v2168_v18 = vpop.eup %2167  ;;  %2187 = vrcp.f32 %v979_v5  ;;  %v984_v21 = vadd.f32 1.0, %v2166_v10  ;;  %v665_v2 = vmul.f32 %v2061_v8, %v2569_v34  ;;  %v697_v3 = vmul.f32 %v2093_v9, %v2569_v34 }
  0xf9   :  { %v2669_v25 = vpop.f32.mrb[14].mxu0  ;;  %v2671_v26 = vpop.f32.mrb[14].mxu1  ;;  %2189 = vrcp.f32 %v1011_v11  ;;  %v1016_v28 = vadd.f32 1.0, %v2168_v18  ;;  %v1637_v7 = vmul.f32 -1.442695, %v2688_v42  ;;  %v2717_v18 = vadd.f32 %v2574_v36, %v692_v51 }
  0xfa   :  { %v2170_v27 = vpop.eup %2169  ;;  %v2679_v31 = vpop.f32.mrb[15].mxu0  ;;  %2191 = vrcp.f32 %v984_v21  ;;  %v1669_v10 = vmul.f32 -1.442695, %v2691_v43  ;;  %v1635_v9 = vmul.f32 -1.442695, %v2694_v48 }
  0xfb   :  { %v2681_v33 = vpop.f32.mrb[15].mxu1  ;;  %v2172_v35 = vpop.eup %2171  ;;  %v982_v37 = vadd.f32 1.0, %v2170_v27  ;;  %2193 = vrcp.f32 %v1016_v28 }
  0xfc   :  { %v2174_v40 = vpop.eup %2173  ;;  %v1014_v41 = vadd.f32 1.0, %v2172_v35  ;;  %v663_v35 = vmul.f32 %v2569_v34, %v437_v16 }
  0xfd   :  { %v2176_v44 = vpop.eup %2175  ;;  %2195 = vrcp.f32 %v982_v37  ;;  %v985_v45 = vadd.f32 1.0, %v2174_v40  ;;  %v2703_v4 = vpop.f32.mrb[16].mxu0 }
  0xfe   :  { %v2178_v54 = vpop.eup %2177  ;;  %2197 = vrcp.f32 %v1014_v41  ;;  %v2705_v5 = vpop.f32.mrb[16].mxu1  ;;  %v1172_v8 = vmul.f32 %v2176_v44, %v2581_v46  ;;  %v2732_v41 = vadd.f32 %v2574_v36, %v665_v2  ;;  %v2735_v44 = vadd.f32 %v2574_v36, %v697_v3 }
  0xff   :  { %v2180_v0 = vpop.eup %2179  ;;  %2199 = vrcp.f32 %v985_v45  ;;  %v2710_v11 = vpop.f32.mrb[17].mxu0  ;;  %v1204_v27 = vmul.f32 %v2178_v54, %v2584_v47 }
 0x100   :  { %v2182_v50 = vpop.eup %2181  ;;  %2201 = vpow2.f32 %v2651_v55  ;;  %v2712_v12 = vpop.f32.mrb[17].mxu1 }
 0x101   :  { %v2184_v13 = vpop.eup %2183  ;;  %2203 = vpow2.f32 %v1631_v6  ;;  %v2719_v21 = vpop.f32.mrb[18].mxu0  ;;  %v1202_v51 = vmul.f32 %v2182_v50, %v2592_v53  ;;  %v1640_v53 = vmul.f32 -1.442695, %v2732_v41 }
 0x102   :  { %v2721_v55 = vpop.f32.mrb[18].mxu1  ;;  %v2186_v23 = vpop.eup %2185  ;;  %v1173_v28 = vmul.f32 %v2184_v13, %v2599_v58  ;;  %2205 = vpow2.f32 %v1663_v38  ;;  %v1170_v58 = vmul.f32 %v2180_v0, %v2589_v52  ;;  %v1667_v52 = vmul.f32 -1.442695, %v2717_v18 }
 0x103   :  { %v2726_v37 = vpop.f32.mrb[19].mxu0  ;;  %v2728_v46 = vpop.f32.mrb[19].mxu1  ;;  %v1205_v40 = vmul.f32 %v2186_v23, %v2602_v59  ;;  %2207 = vpow2.f32 %v1636_v56 }
 0x104   :  { %v2188_v6 = vpop.eup %2187  ;;  %v1826_v38 = vpack.c.bf16 %v1173_v28, %v1172_v8  ;;  %2209 = vpow2.f32 %v1668_v57  ;;  %v666_v8 = vmul.f32 %v2669_v25, %v2569_v34 }
 0x105   :  { %v2190_v47 = vpop.eup %2189  ;;  %v1171_v16 = vmul.f32 %v2188_v6, %v2607_v62  ;;  %v1906_v54 = vpack.c.bf16 %v1205_v40, %v1204_v27  ;;  %2211 = vpow2.f32 %v1634_v61  ;;  %v2751_v57 = vpop.f32.mrb[20].mxu0  ;;  %v698_v40 = vmul.f32 %v2671_v26, %v2569_v34 }
 0x106   :  { %v2192_v45 = vpop.eup %2191  ;;  %v1203_v59 = vmul.f32 %v2190_v47, %v2610_v63  ;;  %1978 = vst [vmem:[%s3193_s4 + $0x8] sm:$0xff] %v1826_v38   ;;  %2213 = vpow2.f32 %v1666_v1  ;;  %v695_v63 = vmul.f32 %v2569_v34, %v2663_v17  ;;  %v2753_v61 = vpop.f32.mrb[20].mxu1  ;;  %v1672_v1 = vmul.f32 -1.442695, %v2735_v44 }
 0x107   :  { %v2194_v56 = vpop.eup %2193  ;;  %v1821_v2 = vpack.c.bf16 %v1171_v16, %v1170_v58  ;;  %1994 = vst [vmem:[%s3193_s4 + $0x88] sm:$0xff] %v1906_v54   ;;  %2215 = vpow2.f32 %v1637_v7  ;;  %v2761_v50 = vpop.f32.mrb[21].mxu0  ;;  %v2769_v17 = vadd.f32 %v2574_v36, %v663_v35  ;;  %v1176_v28 = vmul.f32 %v2192_v45, %v2621_v14 }
 0x108   :  { %v2196_v0 = vpop.eup %2195  ;;  %v1901_v62 = vpack.c.bf16 %v1203_v59, %v1202_v51  ;;  %2217 = vpow2.f32 %v1669_v10  ;;  %v2763_v7 = vpop.f32.mrb[21].mxu1  ;;  %v2786_v25 = vadd.f32 %v2574_v36, %v695_v63  ;;  %v2789_v45 = vadd.f32 %v2574_v36, %v666_v8 }
 0x109   :  { %v2755_v3 = vpop.eup %2197  ;;  %1822 = vst [vmem:[%s3193_s4] sm:$0xff] %v1821_v2   ;;  %2219 = vpow2.f32 %v1635_v9  ;;  %v2773_v23 = vpop.f32.mrb[22].mxu0  ;;  %v2795_v59 = vmul.f32 -1.442695, %v2769_v17  ;;  %v2798_v2 = vadd.f32 %v2574_v36, %v698_v40  ;;  %v664_v63 = vmul.f32 %v2569_v34, %v2679_v31 }
 0x10a   :  { %v2200_v13 = vpop.eup %2199  ;;  %1993 = vst [vmem:[%s3193_s4 + $0x80] sm:$0xff] %v1901_v62   ;;  %v2775_v10 = vpop.f32.mrb[22].mxu1  ;;  %2221 = vpow2.f32 %v1667_v52  ;;  %v2819_v31 = vmul.f32 %v2196_v0, %v2628_v19 }
 0x10b   :  { %v2202_v27 = vpop.eup %2201  ;;  %v1177_v6 = vmul.f32 %v2200_v13, %v2637_v24  ;;  %v2781_v9 = vpop.f32.mrb[23].mxu0  ;;  %2223 = vpow2.f32 %v1640_v53  ;;  %v2801_v53 = vmul.f32 -1.442695, %v2786_v25 }
 0x10c   :  { %v2783_v35 = vpop.f32.mrb[23].mxu1  ;;  %v2204_v47 = vpop.eup %2203  ;;  %v1017_v58 = vadd.f32 1.0, %v2202_v27  ;;  %2225 = vpow2.f32 %v1672_v1  ;;  %v2810_v27 = vmul.f32 %v2194_v56, %v2624_v15 }
 0x10d   :  { %v2206_v38 = vpop.eup %2205  ;;  %v1836_v16 = vpack.c.bf16 %v1177_v6, %v1176_v28  ;;  %v983_v51 = vadd.f32 1.0, %v2204_v47  ;;  %v2805_v1 = vpop.f32.mrb[24].mxu0  ;;  %v696_v6 = vmul.f32 %v2569_v34, %v2681_v33 }
 0x10e   :  { %v2208_v14 = vpop.eup %2207  ;;  %2227 = vrcp.f32 %v1017_v58  ;;  %v1015_v24 = vadd.f32 1.0, %v2206_v38  ;;  %v2807_v13 = vpop.f32.mrb[24].mxu1 }
 0x10f   :  { %v2210_v26 = vpop.eup %2209  ;;  %1980 = vst [vmem:[%s3193_s4 + $0x18] sm:$0xff] %v1836_v16   ;;  %2229 = vrcp.f32 %v983_v51  ;;  %v988_v54 = vadd.f32 1.0, %v2208_v14  ;;  %v2814_v40 = vpop.f32.mrb[25].mxu0  ;;  %v2822_v16 = vmul.f32 -1.442695, %v2789_v45 }
 0x110   :  { %v2212_v52 = vpop.eup %2211  ;;  %2231 = vrcp.f32 %v1015_v24  ;;  %v1020_v62 = vadd.f32 1.0, %v2210_v26  ;;  %v2816_v47 = vpop.f32.mrb[25].mxu1  ;;  %v2829_v14 = vmul.f32 -1.442695, %v2798_v2  ;;  %v669_v24 = vmul.f32 %v2703_v4, %v2569_v34 }
 0x111   :  { %v2214_v8 = vpop.eup %2213  ;;  %2233 = vrcp.f32 %v988_v54  ;;  %v986_v28 = vadd.f32 1.0, %v2212_v52  ;;  %v2824_v15 = vpop.f32.mrb[26].mxu0  ;;  %v2839_v54 = vmul.f32 %v2755_v3, %v2631_v20  ;;  %v701_v4 = vmul.f32 %v2705_v5, %v2569_v34 }
 0x112   :  { %v2216_v58 = vpop.eup %2215  ;;  %2235 = vrcp.f32 %v1020_v62  ;;  %v1018_v38 = vadd.f32 1.0, %v2214_v8  ;;  %v2826_v56 = vpop.f32.mrb[26].mxu1  ;;  %v2842_v62 = vadd.f32 %v2574_v36, %v664_v63  ;;  %v667_v20 = vmul.f32 %v2569_v34, %v2710_v11 }
 0x113   :  { %v2218_v51 = vpop.eup %2217  ;;  %2237 = vrcp.f32 %v986_v28  ;;  %v989_v33 = vadd.f32 1.0, %v2216_v58  ;;  %v2833_v19 = vpop.f32.mrb[27].mxu0  ;;  %v2845_v58 = vadd.f32 %v2574_v36, %v696_v6  ;;  %v699_v3 = vmul.f32 %v2569_v34, %v2712_v12 }
 0x114   :  { %3195 = vst [vmem:[#allocation2_spill] sm:$0xff] %v2833_v19  ;;  %v2835_v0 = vpop.f32.mrb[27].mxu1  ;;  %v2220_v26 = vpop.eup %2219  ;;  %2239 = vrcp.f32 %v1018_v38  ;;  %v1021_v52 = vadd.f32 1.0, %v2218_v51  ;;  %v2854_v51 = vadd.f32 %v2574_v36, %v669_v24  ;;  %v670_v6 = vmul.f32 %v2719_v21, %v2569_v34 }
 0x115   :  { %3196 = vst [vmem:[#allocation3_spill] sm:$0xff] %v2835_v0  ;;  %v2222_v8 = vpop.eup %2221  ;;  %2241 = vrcp.f32 %v989_v33  ;;  %v987_v28 = vadd.f32 1.0, %v2220_v26  ;;  %v1639_v26 = vmul.f32 -1.442695, %v2842_v62  ;;  %v702_v11 = vmul.f32 %v2721_v55, %v2569_v34  ;;  %v2863_v12 = vpop.f32.mrb[28].mxu1 }
 0x116   :  { %v2224_v0 = vpop.eup %2223  ;;  %2243 = vrcp.f32 %v1021_v52  ;;  %v1019_v19 = vadd.f32 1.0, %v2222_v8  ;;  %v2861_v52 = vpop.f32.mrb[28].mxu0  ;;  %3197 = vst [vmem:[#allocation4_spill] sm:$0xff] %v2863_v12  ;;  %v2867_v24 = vadd.f32 %v2574_v36, %v701_v4  ;;  %v668_v21 = vmul.f32 %v2569_v34, %v2726_v37 }
 0x117   :  { %v2226_v63 = vpop.eup %2225  ;;  %2245 = vrcp.f32 %v987_v28  ;;  %v992_v38 = vadd.f32 1.0, %v2224_v0  ;;  %v2873_v28 = vpop.f32.mrb[29].mxu1  ;;  %v2877_v12 = vadd.f32 %v2574_v36, %v667_v20 }
 0x118   :  { %v2228_v33 = vpop.eup %2227  ;;  %2247 = vrcp.f32 %v1019_v19  ;;  %v1024_v5 = vadd.f32 1.0, %v2226_v63  ;;  %v2871_v19 = vpop.f32.mrb[29].mxu0 }
 0x119   :  { %v2230_v8 = vpop.eup %2229  ;;  %v1209_v0 = vmul.f32 %v2228_v33, %v2644_v32  ;;  %2249 = vrcp.f32 %v992_v38  ;;  %3198 = vst [vmem:[#allocation5_spill] sm:$0xff] %v2871_v19  ;;  %v2880_v32 = vadd.f32 %v2574_v36, %v699_v3  ;;  %v2882_v38 = vpop.f32.mrb[30].mxu0 }
 0x11a   :  { %v2232_v63 = vpop.eup %2231  ;;  %v1175_v55 = vmul.f32 %v2230_v8, %v2648_v49  ;;  %2251 = vrcp.f32 %v1024_v5  ;;  %3200 = vst [vmem:[#allocation7_spill] sm:$0xff] %v2882_v38  ;;  %v2884_v4 = vpop.f32.mrb[30].mxu1  ;;  %v2890_v49 = vadd.f32 %v2574_v36, %v670_v6  ;;  %v1644_v6 = vmul.f32 -1.442695, %v2854_v51 }
 0x11b   :  { %3199 = vst [vmem:[#allocation6_spill] sm:$0xff] %v2880_v32  ;;  %3201 = vst [vmem:[#allocation8_spill] sm:$0xff] %v2884_v4  ;;  %v2234_v33 = vpop.eup %2233  ;;  %v1916_v37 = vpack.c.bf16 %v1209_v0, %v2810_v27  ;;  %v1207_v19 = vmul.f32 %v2232_v63, %v2654_v60  ;;  %2253 = vpow2.f32 %v2795_v59  ;;  %v2892_v5 = vpop.f32.mrb[31].mxu0  ;;  %v1671_v4 = vmul.f32 -1.442695, %v2845_v58 }
 0x11c   :  { %3202 = vst [vmem:[#allocation9_spill] sm:$0xff] %v2892_v5  ;;  %v2894_v20 = vpop.f32.mrb[31].mxu1  ;;  %v2236_v3 = vpop.eup %2235  ;;  %v1831_v8 = vpack.c.bf16 %v1175_v55, %v2819_v31  ;;  %2255 = vpow2.f32 %v2801_v53  ;;  %v2900_v27 = vadd.f32 %v2574_v36, %v702_v11  ;;  %v2909_v31 = vadd.f32 %v2574_v36, %v668_v21 }
 0x11d   :  { %3203 = vst [vmem:[#allocation10_spill] sm:$0xff] %v2894_v20  ;;  %v2238_v60 = vpop.eup %2237  ;;  %1996 = vst [vmem:[%s3193_s4 + $0x98] sm:$0xff] %v1916_v37   ;;  %v1911_v59 = vpack.c.bf16 %v1207_v19, %v2839_v54  ;;  %2257 = vpow2.f32 %v2822_v16  ;;  %v1676_v11 = vmul.f32 -1.442695, %v2867_v24  ;;  %v1642_v16 = vmul.f32 -1.442695, %v2877_v12 }
 0x11e   :  { %v2240_v53 = vpop.eup %2239  ;;  %1979 = vst [vmem:[%s3193_s4 + $0x10] sm:$0xff] %v1831_v8   ;;  %2259 = vpow2.f32 %v2829_v14  ;;  %v1674_v54 = vmul.f32 -1.442695, %v2880_v32  ;;  %v1645_v21 = vmul.f32 -1.442695, %v2890_v49  ;;  %v1180_v63 = vmul.f32 %v2234_v33, %v2666_v22 }
 0x11f   :  { %v2242_v0 = vpop.eup %2241  ;;  %1995 = vst [vmem:[%s3193_s4 + $0x90] sm:$0xff] %v1911_v59   ;;  %2261 = vpow2.f32 %v1639_v26  ;;  %v1677_v14 = vmul.f32 -1.442695, %v2900_v27  ;;  %v1212_v8 = vmul.f32 %v2236_v3, %v2674_v29  ;;  %v1643_v26 = vmul.f32 -1.442695, %v2909_v31 }
 0x120   :  { %v2244_v19 = vpop.eup %2243  ;;  %v1181_v55 = vmul.f32 %v2242_v0, %v2688_v42  ;;  %2263 = vpow2.f32 %v1671_v4  ;;  %v1178_v32 = vmul.f32 %v2238_v60, %v2677_v30  ;;  %v1210_v42 = vmul.f32 %v2240_v53, %v2685_v39 }
 0x121   :  { %v2246_v37 = vpop.eup %2245  ;;  %v1213_v59 = vmul.f32 %v2244_v19, %v2691_v43  ;;  %2265 = vpow2.f32 %v1644_v6  ;;  %v700_v30 = vmul.f32 %v2569_v34, %v2728_v46  ;;  %v705_v46 = vmul.f32 %v2753_v61, %v2569_v34 }
 0x122   :  { %v2248_v20 = vpop.eup %2247  ;;  %v1846_v5 = vpack.c.bf16 %v1181_v55, %v1180_v63  ;;  %v1179_v38 = vmul.f32 %v2246_v37, %v2694_v48  ;;  %2267 = vpow2.f32 %v1676_v11  ;;  %v673_v48 = vmul.f32 %v2751_v57, %v2569_v34 }
 0x123   :  { %v2930_v22 = vpop.eup %2249  ;;  %v1926_v4 = vpack.c.bf16 %v1213_v59, %v1212_v8  ;;  %v1211_v33 = vmul.f32 %v2248_v20, %v2717_v18  ;;  %2269 = vpow2.f32 %v1642_v16  ;;  %v671_v57 = vmul.f32 %v2569_v34, %v2761_v50 }
 0x124   :  { %v2934_v29 = vpop.eup %2251  ;;  %1982 = vst [vmem:[%s3193_s4 + $0x28] sm:$0xff] %v1846_v5   ;;  %v1841_v43 = vpack.c.bf16 %v1179_v38, %v1178_v32  ;;  %2271 = vpow2.f32 %v1674_v54  ;;  %v2957_v6 = vadd.f32 %v2574_v36, %v700_v30  ;;  %v2960_v53 = vadd.f32 %v2574_v36, %v673_v48 }
 0x125   :  { %v2254_v3 = vpop.eup %2253  ;;  %1998 = vst [vmem:[%s3193_s4 + $0xa8] sm:$0xff] %v1926_v4   ;;  %v1921_v39 = vpack.c.bf16 %v1211_v33, %v1210_v42  ;;  %2273 = vpow2.f32 %v1645_v21  ;;  %v703_v50 = vmul.f32 %v2569_v34, %v2763_v7  ;;  %v2965_v54 = vadd.f32 %v2574_v36, %v705_v46 }
 0x126   :  { %v2256_v18 = vpop.eup %2255  ;;  %1981 = vst [vmem:[%s3193_s4 + $0x20] sm:$0xff] %v1841_v43   ;;  %v990_v32 = vadd.f32 1.0, %v2254_v3  ;;  %2275 = vpow2.f32 %v1677_v14  ;;  %v2968_v21 = vadd.f32 %v2574_v36, %v671_v57  ;;  %v674_v55 = vmul.f32 %v2773_v23, %v2569_v34 }
 0x127   :  { %v2258_v38 = vpop.eup %2257  ;;  %1997 = vst [vmem:[%s3193_s4 + $0xa0] sm:$0xff] %v1921_v39   ;;  %v1022_v5 = vadd.f32 1.0, %v2256_v18  ;;  %2277 = vpow2.f32 %v1643_v26  ;;  %v706_v14 = vmul.f32 %v2775_v10, %v2569_v34  ;;  %v1675_v8 = vmul.f32 -1.442695, %v2957_v6 }
 0x128   :  { %v2260_v20 = vpop.eup %2259  ;;  %2279 = vrcp.f32 %v990_v32  ;;  %v993_v60 = vadd.f32 1.0, %v2258_v38  ;;  %v1648_v59 = vmul.f32 -1.442695, %v2960_v53  ;;  %v2977_v4 = vadd.f32 %v2574_v36, %v703_v50 }
 0x129   :  { %v2262_v61 = vpop.eup %2261  ;;  %2281 = vrcp.f32 %v1022_v5  ;;  %v1025_v11 = vadd.f32 1.0, %v2260_v20  ;;  %v672_v33 = vmul.f32 %v2569_v34, %v2781_v9  ;;  %v1680_v10 = vmul.f32 -1.442695, %v2965_v54 }
 0x12a   :  { %v2264_v0 = vpop.eup %2263  ;;  %2283 = vrcp.f32 %v993_v60  ;;  %v991_v16 = vadd.f32 1.0, %v2262_v61  ;;  %v1646_v30 = vmul.f32 -1.442695, %v2968_v21  ;;  %v2984_v39 = vadd.f32 %v2574_v36, %v674_v55 }
 0x12b   :  { %v2266_v19 = vpop.eup %2265  ;;  %2285 = vrcp.f32 %v1025_v11  ;;  %v1023_v63 = vadd.f32 1.0, %v2264_v0  ;;  %v2987_v18 = vadd.f32 %v2574_v36, %v706_v14  ;;  %v704_v9 = vmul.f32 %v2569_v34, %v2783_v35 }
 0x12c   :  { %v2268_v37 = vpop.eup %2267  ;;  %2287 = vrcp.f32 %v991_v16  ;;  %v996_v7 = vadd.f32 1.0, %v2266_v19  ;;  %v677_v57 = vmul.f32 %v2805_v1, %v2569_v34  ;;  %v1678_v20 = vmul.f32 -1.442695, %v2977_v4 }
 0x12d   :  { %v2270_v26 = vpop.eup %2269  ;;  %2289 = vrcp.f32 %v1023_v63  ;;  %v1028_v42 = vadd.f32 1.0, %v2268_v37  ;;  %v2995_v60 = vadd.f32 %v2574_v36, %v672_v33  ;;  %v709_v50 = vmul.f32 %v2807_v13, %v2569_v34 }
 0x12e   :  { %v2272_v23 = vpop.eup %2271  ;;  %2291 = vrcp.f32 %v996_v7  ;;  %v994_v43 = vadd.f32 1.0, %v2270_v26  ;;  %v675_v35 = vmul.f32 %v2569_v34, %v2814_v40  ;;  %v1184_v1 = vmul.f32 %v2930_v22, %v2732_v41 }
 0x12f   :  { %v2274_v48 = vpop.eup %2273  ;;  %2293 = vrcp.f32 %v1028_v42  ;;  %v1026_v3 = vadd.f32 1.0, %v2272_v23  ;;  %v1649_v16 = vmul.f32 -1.442695, %v2984_v39  ;;  %v1681_v19 = vmul.f32 -1.442695, %v2987_v18 }
 0x130   :  { %v2276_v32 = vpop.eup %2275  ;;  %2295 = vrcp.f32 %v994_v43  ;;  %v997_v46 = vadd.f32 1.0, %v2274_v48  ;;  %v1216_v55 = vmul.f32 %v2934_v29, %v2735_v44  ;;  %v3008_v14 = vadd.f32 %v2574_v36, %v704_v9 }
 0x131   :  { %v2278_v38 = vpop.eup %2277  ;;  %2297 = vrcp.f32 %v1026_v3  ;;  %v1029_v5 = vadd.f32 1.0, %v2276_v32  ;;  %v3011_v13 = vadd.f32 %v2574_v36, %v677_v57  ;;  %v1647_v41 = vmul.f32 -1.442695, %v2995_v60 }
 0x132   :  { %v2280_v61 = vpop.eup %2279  ;;  %2299 = vrcp.f32 %v997_v46  ;;  %v995_v11 = vadd.f32 1.0, %v2278_v38  ;;  %v707_v22 = vmul.f32 %v2569_v34, %v2816_v47  ;;  %v3019_v44 = vadd.f32 %v2574_v36, %v709_v50 }
 0x133   :  { %v2282_v0 = vpop.eup %2281  ;;  %2301 = vrcp.f32 %v1029_v5  ;;  %v3022_v29 = vadd.f32 %v2574_v36, %v675_v35  ;;  %v1182_v33 = vmul.f32 %v2280_v61, %v2769_v17  ;;  %v1679_v17 = vmul.f32 -1.442695, %v3008_v14 }
 0x134   :  { %v2284_v63 = vpop.eup %2283  ;;  %2303 = vrcp.f32 %v995_v11  ;;  %v1214_v47 = vmul.f32 %v2282_v0, %v2786_v25  ;;  %v3033_v3 = vadd.f32 %v2574_v36, %v707_v22  ;;  %v678_v9 = vmul.f32 %v2824_v15, %v2569_v34 }
 0x135   :  { %v2286_v40 = vpop.eup %2285  ;;  %v1185_v37 = vmul.f32 %v2284_v63, %v2789_v45  ;;  %2305 = vpow2.f32 %v1675_v8  ;;  %v1650_v46 = vmul.f32 -1.442695, %v3022_v29  ;;  %v710_v57 = vmul.f32 %v2826_v56, %v2569_v34 }
 0x136   :  { %v2288_v7 = vpop.eup %2287  ;;  %v1217_v26 = vmul.f32 %v2286_v40, %v2798_v2  ;;  %2307 = vpow2.f32 %v1648_v59  ;;  %v1682_v61 = vmul.f32 -1.442695, %v3033_v3 }
 0x137   :  { %v2290_v42 = vpop.eup %2289  ;;  %v1856_v45 = vpack.c.bf16 %v1185_v37, %v1184_v1  ;;  %v1183_v8 = vmul.f32 %v2288_v7, %v2842_v62  ;;  %2309 = vpow2.f32 %v1680_v10  ;;  %v2405_v37 = vld [vmem:[%s3191_s2] ss:$0 sm:$0xff] }
 0x138   :  { %v2292_v23 = vpop.eup %2291  ;;  %v1936_v43 = vpack.c.bf16 %v1217_v26, %v1216_v55  ;;  %v1215_v2 = vmul.f32 %v2290_v42, %v2845_v58  ;;  %2311 = vpow2.f32 %v1646_v30  ;;  %v1652_v58 = vmul.f32 -1.442695, %v3011_v13 }
 0x139   :  { %v2294_v59 = vpop.eup %2293  ;;  %1984 = vst [vmem:[%s3193_s4 + $0x38] sm:$0xff] %v1856_v45   ;;  %v1851_v48 = vpack.c.bf16 %v1183_v8, %v1182_v33  ;;  %2313 = vpow2.f32 %v1678_v20  ;;  %v1684_v30 = vmul.f32 -1.442695, %v3019_v44  ;;  %v1188_v5 = vmul.f32 %v2292_v23, %v2854_v51 }
 0x13a   :  { %v2296_v62 = vpop.eup %2295  ;;  %2000 = vst [vmem:[%s3193_s4 + $0xb8] sm:$0xff] %v1936_v43   ;;  %v1931_v25 = vpack.c.bf16 %v1215_v2, %v1214_v47  ;;  %2315 = vpow2.f32 %v1649_v16  ;;  %v1220_v50 = vmul.f32 %v2294_v59, %v2867_v24  ;;  %v3205_v47 = vld [vmem:[#allocation3_spill] sm:$0xff]  ;;  %v681_v2 = vmul.f32 %v2405_v37, %v2861_v52 }
 0x13b   :  { %v3039_v10 = vpop.eup %2297  ;;  %1983 = vst [vmem:[%s3193_s4 + $0x30] sm:$0xff] %v1851_v48   ;;  %2317 = vpow2.f32 %v1681_v19  ;;  %v1186_v15 = vmul.f32 %v2296_v62, %v2877_v12  ;;  %v3067_v12 = vadd.f32 %v2574_v36, %v710_v57  ;;  %v708_v43 = vmul.f32 %v2405_v37, %v3205_v47 }
 0x13c   :  { %v2300_v32 = vpop.eup %2299  ;;  %1999 = vst [vmem:[%s3193_s4 + $0xb0] sm:$0xff] %v1931_v25   ;;  %2319 = vpow2.f32 %v1647_v41  ;;  %v3206_v25 = vld [vmem:[#allocation4_spill] sm:$0xff]  ;;  %v711_v57 = vmul.f32 %v2405_v37, %v2873_v28  ;;  %v3210_v28 = vld [vmem:[#allocation9_spill] sm:$0xff] }
 0x13d   :  { %v2302_v38 = vpop.eup %2301  ;;  %v1189_v20 = vmul.f32 %v2300_v32, %v2890_v49  ;;  %2321 = vpow2.f32 %v1679_v17  ;;  %v3061_v49 = vadd.f32 %v2574_v36, %v678_v9  ;;  %v3204_v36 = vld [vmem:[#allocation2_spill] sm:$0xff]  ;;  %v1685_v45 = vmul.f32 -1.442695, %v3067_v12 }
 0x13e   :  { %v2304_v11 = vpop.eup %2303  ;;  %v1221_v35 = vmul.f32 %v2302_v38, %v2900_v27  ;;  %2323 = vpow2.f32 %v1652_v58  ;;  %v676_v41 = vmul.f32 %v2405_v37, %v3204_v36  ;;  %v2406_v17 = vld [vmem:[%s3192_s3] ss:$0 sm:$0xff]  ;;  %v713_v58 = vmul.f32 %v2405_v37, %v3206_v25 }
 0x13f   :  { %v2306_v0 = vpop.eup %2305  ;;  %v1866_v1 = vpack.c.bf16 %v1189_v20, %v1188_v5  ;;  %v1187_v34 = vmul.f32 %v2304_v11, %v2909_v31  ;;  %2325 = vpow2.f32 %v1684_v30  ;;  %v1653_v33 = vmul.f32 -1.442695, %v3061_v49  ;;  %v3208_v5 = vld [vmem:[#allocation7_spill] sm:$0xff] }
 0x140   :  { %v2308_v56 = vpop.eup %2307  ;;  %v1946_v51 = vpack.c.bf16 %v1221_v35, %v1220_v50  ;;  %v1027_v16 = vadd.f32 1.0, %v2306_v0  ;;  %2327 = vpow2.f32 %v1650_v46  ;;  %v3086_v62 = vadd.f32 %v2406_v17, %v676_v41  ;;  %v3207_v46 = vld [vmem:[#allocation5_spill] sm:$0xff] }
 0x141   :  { %v2310_v19 = vpop.eup %2309  ;;  %1986 = vst [vmem:[%s3193_s4 + $0x48] sm:$0xff] %v1866_v1   ;;  %v1861_v24 = vpack.c.bf16 %v1187_v34, %v1186_v15  ;;  %v1000_v27 = vadd.f32 1.0, %v2308_v56  ;;  %2329 = vpow2.f32 %v1682_v61  ;;  %v679_v9 = vmul.f32 %v2405_v37, %v3207_v46  ;;  %v3209_v61 = vld [vmem:[#allocation8_spill] sm:$0xff] }
 0x142   :  { %v2312_v31 = vpop.eup %2311  ;;  %2002 = vst [vmem:[%s3193_s4 + $0xc8] sm:$0xff] %v1946_v51   ;;  %2331 = vrcp.f32 %v1027_v16  ;;  %v1032_v63 = vadd.f32 1.0, %v2310_v19  ;;  %v682_v20 = vmul.f32 %v2405_v37, %v3208_v5  ;;  %v714_v11 = vmul.f32 %v2405_v37, %v3209_v61 }
 0x143   :  { %v2314_v55 = vpop.eup %2313  ;;  %1985 = vst [vmem:[%s3193_s4 + $0x40] sm:$0xff] %v1861_v24   ;;  %2333 = vrcp.f32 %v1000_v27  ;;  %v998_v40 = vadd.f32 1.0, %v2312_v31  ;;  %v3093_v0 = vadd.f32 %v2406_v17, %v708_v43  ;;  %v3095_v15 = vadd.f32 %v2406_v17, %v681_v2  ;;  %v3211_v24 = vld [vmem:[#allocation6_spill] sm:$0xff] }
 0x144   :  { %v2316_v22 = vpop.eup %2315  ;;  %2335 = vrcp.f32 %v1032_v63  ;;  %v1030_v7 = vadd.f32 1.0, %v2314_v55  ;;  %v1651_v56 = vmul.f32 -1.442695, %v3086_v62  ;;  %v3098_v51 = vadd.f32 %v2406_v17, %v713_v58 }
 0x145   :  { %v2318_v26 = vpop.eup %2317  ;;  %2337 = vrcp.f32 %v998_v40  ;;  %v1001_v42 = vadd.f32 1.0, %v2316_v22  ;;  %v680_v16 = vmul.f32 %v2405_v37, %v3210_v28  ;;  %v1218_v27 = vmul.f32 %v3039_v10, %v3211_v24 }
 0x146   :  { %v2320_v8 = vpop.eup %2319  ;;  %2339 = vrcp.f32 %v1030_v7  ;;  %v1033_v23 = vadd.f32 1.0, %v2318_v26  ;;  %v3103_v31 = vadd.f32 %v2406_v17, %v679_v9  ;;  %v3105_v63 = vadd.f32 %v2406_v17, %v711_v57  ;;  %v3212_v26 = vld [vmem:[#allocation10_spill] sm:$0xff] }
 0x147   :  { %v2322_v59 = vpop.eup %2321  ;;  %2341 = vrcp.f32 %v1001_v42  ;;  %v999_v48 = vadd.f32 1.0, %v2320_v8  ;;  %v3108_v36 = vadd.f32 %v2406_v17, %v682_v20  ;;  %v3110_v41 = vadd.f32 %v2406_v17, %v714_v11 }
 0x148   :  { %v2324_v30 = vpop.eup %2323  ;;  %2343 = vrcp.f32 %v1033_v23  ;;  %v1031_v32 = vadd.f32 1.0, %v2322_v59  ;;  %v1683_v7 = vmul.f32 -1.442695, %v3093_v0  ;;  %v712_v42 = vmul.f32 %v2405_v37, %v3212_v26 }
 0x149   :  { %v2326_v38 = vpop.eup %2325  ;;  %2345 = vrcp.f32 %v999_v48  ;;  %v1004_v52 = vadd.f32 1.0, %v2324_v30  ;;  %v1656_v23 = vmul.f32 -1.442695, %v3095_v15  ;;  %v3115_v47 = vadd.f32 %v2406_v17, %v680_v16 }
 0x14a   :  { %v2328_v50 = vpop.eup %2327  ;;  %2347 = vrcp.f32 %v1031_v32  ;;  %v1036_v35 = vadd.f32 1.0, %v2326_v38  ;;  %v1654_v2 = vmul.f32 -1.442695, %v3103_v31  ;;  %v1686_v37 = vmul.f32 -1.442695, %v3105_v63 }
 0x14b   :  { %v2330_v1 = vpop.eup %2329  ;;  %v1002_v34 = vadd.f32 1.0, %v2328_v50  ;;  %2349 = vrcp.f32 %v1004_v52  ;;  %v1689_v48 = vmul.f32 -1.442695, %v3110_v41  ;;  %v3127_v30 = vadd.f32 %v2406_v17, %v712_v42 }
 0x14c   :  { %v2332_v19 = vpop.eup %2331  ;;  %2351 = vrcp.f32 %v1036_v35  ;;  %v1655_v57 = vmul.f32 -1.442695, %v3115_v47 }
 0x14d   :  { %v2334_v55 = vpop.eup %2333  ;;  %v1219_v40 = vmul.f32 %v2332_v19, %v2957_v6  ;;  %2353 = vrcp.f32 %v1002_v34  ;;  %v1688_v6 = vmul.f32 -1.442695, %v3098_v51 }
 0x14e   :  { %v2336_v22 = vpop.eup %2335  ;;  %2355 = vpow2.f32 %v1653_v33  ;;  %v1657_v33 = vmul.f32 -1.442695, %v3108_v36  ;;  %v1192_v58 = vmul.f32 %v2334_v55, %v2960_v53 }
 0x14f   :  { %v2338_v10 = vpop.eup %2337  ;;  %v1941_v8 = vpack.c.bf16 %v1219_v40, %v1218_v27  ;;  %2357 = vpow2.f32 %v1685_v45  ;;  %v1224_v46 = vmul.f32 %v2336_v22, %v2965_v54 }
 0x150   :  { %v2340_v43 = vpop.eup %2339  ;;  %2359 = vpow2.f32 %v1651_v56  ;;  %v1190_v52 = vmul.f32 %v2338_v10, %v2968_v21 }
 0x151   :  { %v2342_v59 = vpop.eup %2341  ;;  %2001 = vst [vmem:[%s3193_s4 + $0xc0] sm:$0xff] %v1941_v8   ;;  %2361 = vpow2.f32 %v1683_v7  ;;  %v1222_v53 = vmul.f32 %v2340_v43, %v2977_v4  ;;  %v1034_v4 = vadd.f32 1.0, %v2330_v1 }
 0x152   :  { %v2344_v25 = vpop.eup %2343  ;;  %v1193_v45 = vmul.f32 %v2342_v59, %v2984_v39  ;;  %2363 = vpow2.f32 %v1656_v23 }
 0x153   :  { %v2346_v32 = vpop.eup %2345  ;;  %v1225_v9 = vmul.f32 %v2344_v25, %v2987_v18  ;;  %2365 = vpow2.f32 %v1688_v6  ;;  %v1687_v18 = vmul.f32 -1.442695, %v3127_v30 }
 0x154   :  { %v2348_v38 = vpop.eup %2347  ;;  %v1876_v5 = vpack.c.bf16 %v1193_v45, %v1192_v58  ;;  %v1191_v20 = vmul.f32 %v2346_v32, %v2995_v60  ;;  %2367 = vpow2.f32 %v1654_v2 }
 0x155   :  { %v1956_v39 = vpack.c.bf16 %v1225_v9, %v1224_v46  ;;  %v1223_v17 = vmul.f32 %v2348_v38, %v3008_v14  ;;  %v2350_v61 = vpop.eup %2349  ;;  %2369 = vpow2.f32 %v1686_v37 }
 0x156   :  { %1988 = vst [vmem:[%s3193_s4 + $0x58] sm:$0xff] %v1876_v5   ;;  %v1871_v54 = vpack.c.bf16 %v1191_v20, %v1190_v52  ;;  %v2352_v21 = vpop.eup %2351  ;;  %2371 = vpow2.f32 %v1657_v33  ;;  %v1196_v25 = vmul.f32 %v2350_v61, %v3011_v13 }
 0x157   :  { %2004 = vst [vmem:[%s3193_s4 + $0xd8] sm:$0xff] %v1956_v39   ;;  %v1951_v60 = vpack.c.bf16 %v1223_v17, %v1222_v53  ;;  %v2354_v11 = vpop.eup %2353  ;;  %2373 = vpow2.f32 %v1689_v48  ;;  %v1228_v32 = vmul.f32 %v2352_v21, %v3019_v44 }
 0x158   :  { %1987 = vst [vmem:[%s3193_s4 + $0x50] sm:$0xff] %v1871_v54   ;;  %v2356_v14 = vpop.eup %2355  ;;  %2375 = vpow2.f32 %v1655_v57  ;;  %v1194_v57 = vmul.f32 %v2354_v11, %v3022_v29 }
 0x159   :  { %2003 = vst [vmem:[%s3193_s4 + $0xd0] sm:$0xff] %v1951_v60   ;;  %v2358_v50 = vpop.eup %2357  ;;  %v1005_v35 = vadd.f32 1.0, %v2356_v14  ;;  %2377 = vpow2.f32 %v1687_v18 }
 0x15a   :  { %v2360_v34 = vpop.eup %2359  ;;  %2379 = vrcp.f32 %v1034_v4  ;;  %v1037_v56 = vadd.f32 1.0, %v2358_v50 }
 0x15b   :  { %v2362_v1 = vpop.eup %2361  ;;  %2381 = vrcp.f32 %v1005_v35  ;;  %v1003_v28 = vadd.f32 1.0, %v2360_v34 }
 0x15c   :  { %v2364_v16 = vpop.eup %2363  ;;  %2383 = vrcp.f32 %v1037_v56  ;;  %v1035_v19 = vadd.f32 1.0, %v2362_v1 }
 0x15d   :  { %v2366_v24 = vpop.eup %2365  ;;  %2385 = vrcp.f32 %v1003_v28  ;;  %v1008_v27 = vadd.f32 1.0, %v2364_v16 }
 0x15e   :  { %v2368_v55 = vpop.eup %2367  ;;  %2387 = vrcp.f32 %v1035_v19  ;;  %v1040_v40 = vadd.f32 1.0, %v2366_v24 }
 0x15f   :  { %v2370_v22 = vpop.eup %2369  ;;  %2389 = vrcp.f32 %v1008_v27  ;;  %v1006_v7 = vadd.f32 1.0, %v2368_v55 }
 0x160   :  { %v2372_v26 = vpop.eup %2371  ;;  %2391 = vrcp.f32 %v1040_v40  ;;  %v1038_v42 = vadd.f32 1.0, %v2370_v22 }
 0x161   :  { %v2374_v10 = vpop.eup %2373  ;;  %2393 = vrcp.f32 %v1006_v7  ;;  %v1009_v8 = vadd.f32 1.0, %v2372_v26 }
 0x162   :  { %v2376_v23 = vpop.eup %2375  ;;  %2395 = vrcp.f32 %v1038_v42  ;;  %v1041_v43 = vadd.f32 1.0, %v2374_v10 }
 0x163   :  { %v2378_v6 = vpop.eup %2377  ;;  %2397 = vrcp.f32 %v1009_v8  ;;  %v1007_v2 = vadd.f32 1.0, %v2376_v23 }
 0x164   :  { %v2380_v59 = vpop.eup %2379  ;;  %2399 = vrcp.f32 %v1041_v43  ;;  %v1039_v37 = vadd.f32 1.0, %v2378_v6 }
 0x165   :  { %v2382_v33 = vpop.eup %2381  ;;  %2401 = vrcp.f32 %v1007_v2  ;;  %v1226_v20 = vmul.f32 %v2380_v59, %v3033_v3 }
 0x166   :  { %v2384_v48 = vpop.eup %2383  ;;  %v1197_v58 = vmul.f32 %v2382_v33, %v3061_v49  ;;  %2403 = vrcp.f32 %v1039_v37 }
 0x167   :  { %v2386_v45 = vpop.eup %2385  ;;  %v1229_v46 = vmul.f32 %v2384_v48, %v3067_v12 }
 0x168   :  { %v2388_v9 = vpop.eup %2387  ;;  %v1886_v38 = vpack.c.bf16 %v1197_v58, %v1196_v25  ;;  %v1195_v52 = vmul.f32 %v2386_v45, %v3086_v62 }
 0x169   :  { %v2390_v5 = vpop.eup %2389  ;;  %v1966_v53 = vpack.c.bf16 %v1229_v46, %v1228_v32  ;;  %v1227_v13 = vmul.f32 %v2388_v9, %v3093_v0 }
 0x16a   :  { %v2392_v39 = vpop.eup %2391  ;;  %1990 = vst [vmem:[%s3193_s4 + $0x68] sm:$0xff] %v1886_v38   ;;  %v1881_v44 = vpack.c.bf16 %v1195_v52, %v1194_v57  ;;  %v1200_v0 = vmul.f32 %v2390_v5, %v3095_v15 }
 0x16b   :  { %v2394_v49 = vpop.eup %2393  ;;  %2006 = vst [vmem:[%s3193_s4 + $0xe8] sm:$0xff] %v1966_v53   ;;  %v1961_v29 = vpack.c.bf16 %v1227_v13, %v1226_v20  ;;  %v1232_v54 = vmul.f32 %v2392_v39, %v3098_v51 }
 0x16c   :  { %v2396_v12 = vpop.eup %2395  ;;  %1989 = vst [vmem:[%s3193_s4 + $0x60] sm:$0xff] %v1881_v44   ;;  %v1198_v60 = vmul.f32 %v2394_v49, %v3103_v31 }
 0x16d   :  { %v2398_v3 = vpop.eup %2397  ;;  %2005 = vst [vmem:[%s3193_s4 + $0xe0] sm:$0xff] %v1961_v29   ;;  %v1230_v14 = vmul.f32 %v2396_v12, %v3105_v63 }
 0x16e   :  { %v2400_v62 = vpop.eup %2399  ;;  %v1201_v17 = vmul.f32 %v2398_v3, %v3108_v36 }
 0x16f   :  { %v2402_v61 = vpop.eup %2401  ;;  %v1233_v18 = vmul.f32 %v2400_v62, %v3110_v41 }
 0x170   :  { %v2404_v21 = vpop.eup %2403  ;;  %v1896_v4 = vpack.c.bf16 %v1201_v17, %v1200_v0  ;;  %v1199_v11 = vmul.f32 %v2402_v61, %v3115_v47 }
 0x171   :  { %v1976_v50 = vpack.c.bf16 %v1233_v18, %v1232_v54  ;;  %v1231_v35 = vmul.f32 %v2404_v21, %v3127_v30 }
 0x172   :  { %1992 = vst [vmem:[%s3193_s4 + $0x78] sm:$0xff] %v1896_v4   ;;  %v1891_v15 = vpack.c.bf16 %v1199_v11, %v1198_v60 }
 0x173   :  { %2008 = vst [vmem:[%s3193_s4 + $0xf8] sm:$0xff] %v1976_v50   ;;  %v1971_v51 = vpack.c.bf16 %v1231_v35, %v1230_v14 }
 0x174   :  { %1991 = vst [vmem:[%s3193_s4 + $0x70] sm:$0xff] %v1891_v15  }
 0x175   :  { %2007 = vst [vmem:[%s3193_s4 + $0xf0] sm:$0xff] %v1971_v51  }

// kernel: _lambda_.18
= control target key start
LH: loop header
LB: loop body
LE: loop exit
PB: predicated region body
PF: predicated region fallthrough
CT: control target
= control target key end

     0   :  { %s3168_s1 = inlined_call_operand.vmem [shape: bf16[128,128], index: 1, kind: input, shape index: {}]   ;;  %s3169_s0 = inlined_call_operand.vmem [shape: bf16[512,128], index: 0, kind: input, shape index: {}]   ;;  %s3170_s2 = inlined_call_operand.vmem [shape: f32[1,128], index: 2, kind: input, shape index: {}]   ;;  %s3171_s3 = inlined_call_operand.vmem [shape: f32[1,128], index: 3, kind: input, shape index: {}]   ;;  %s3172_s4 = inlined_call_operand.vmem [shape: bf16[512,128], index: 4, kind: output, shape index: {}]  }
   0x1   :  { %v2102_v0 = vld [vmem:[%s3168_s1] sm:$0xff]   ;;  %v2103_v1 = vld [vmem:[%s3168_s1 + $0x8] sm:$0xff]   ;;  %v2104_v2 = vld [vmem:[%s3168_s1 + $0x10] sm:$0xff]  }
   0x2   :  { %2006 = vmatprep.subr.bf16.mxu0 %v2102_v0  ;;  %2086 = vmatprep.subr.bf16.mxu1 %v2102_v0  ;;  %v2105_v3 = vld [vmem:[%s3168_s1 + $0x18] sm:$0xff]   ;;  %v2110_v4 = vld [vmem:[%s3169_s0] sm:$0xff]   ;;  %v2107_v7 = vld [vmem:[%s3168_s1 + $0x28] sm:$0xff]  }
   0x3   :  { %2007 = vmatpush3.bf16.msra.mxu0 %v2102_v0  ;;  %2094 = vmatpush3.bf16.msra.mxu1 %v2102_v0  ;;  %v2111_v5 = vld [vmem:[%s3169_s0 + $0x80] sm:$0xff]   ;;  %v2108_v8 = vld [vmem:[%s3168_s1 + $0x30] sm:$0xff]   ;;  %v2109_v9 = vld [vmem:[%s3168_s1 + $0x38] sm:$0xff]  }
   0x4   :  { %2008 = vmatprep.subr.bf16.mxu0 %v2103_v1  ;;  %2087 = vmatprep.subr.bf16.mxu1 %v2103_v1  ;;  %v2106_v6 = vld [vmem:[%s3168_s1 + $0x20] sm:$0xff]   ;;  %v2112_v10 = vld [vmem:[%s3169_s0 + $0x8] sm:$0xff]   ;;  %v2114_v12 = vld [vmem:[%s3169_s0 + $0x10] sm:$0xff]  }
   0x5   :  { %2022 = vmatprep.mubr.bf16.mxu0 %v2110_v4  ;;  %2054 = vmatprep.mubr.bf16.mxu1 %v2111_v5  ;;  %v2113_v11 = vld [vmem:[%s3169_s0 + $0x88] sm:$0xff]   ;;  %v2115_v13 = vld [vmem:[%s3169_s0 + $0x90] sm:$0xff]   ;;  %v2116_v14 = vld [vmem:[%s3169_s0 + $0x18] sm:$0xff]  }
   0x6   :  { %v2117_v15 = vld [vmem:[%s3169_s0 + $0x98] sm:$0xff]   ;;  %v2118_v16 = vld [vmem:[%s3169_s0 + $0x20] sm:$0xff]   ;;  %v2120_v18 = vld [vmem:[%s3169_s0 + $0x28] sm:$0xff]  }
   0x7   :  { %2009 = vmatpush3.bf16.msra.mxu0 %v2103_v1  ;;  %2095 = vmatpush3.bf16.msra.mxu1 %v2103_v1  ;;  %v2119_v17 = vld [vmem:[%s3169_s0 + $0xa0] sm:$0xff]   ;;  %v2121_v19 = vld [vmem:[%s3169_s0 + $0xa8] sm:$0xff]   ;;  %v2122_v20 = vld [vmem:[%s3169_s0 + $0x30] sm:$0xff]  }
   0x8   :  { %2010 = vmatprep.subr.bf16.mxu0 %v2104_v2  ;;  %2088 = vmatprep.subr.bf16.mxu1 %v2104_v2  ;;  %v2123_v21 = vld [vmem:[%s3169_s0 + $0xb0] sm:$0xff]   ;;  %v2124_v22 = vld [vmem:[%s3169_s0 + $0x38] sm:$0xff]   ;;  %v2126_v24 = vld [vmem:[%s3169_s0 + $0x40] sm:$0xff]  }
   0x9   :  { %v2125_v23 = vld [vmem:[%s3169_s0 + $0xb8] sm:$0xff]   ;;  %v2127_v25 = vld [vmem:[%s3169_s0 + $0xc0] sm:$0xff]   ;;  %v2128_v26 = vld [vmem:[%s3169_s0 + $0x48] sm:$0xff]  }
   0xa   :  { %v2129_v27 = vld [vmem:[%s3169_s0 + $0xc8] sm:$0xff]   ;;  %v2130_v28 = vld [vmem:[%s3169_s0 + $0x50] sm:$0xff]   ;;  %v2132_v30 = vld [vmem:[%s3169_s0 + $0x58] sm:$0xff]  }
   0xb   :  { %2011 = vmatpush3.bf16.msra.mxu0 %v2104_v2  ;;  %2096 = vmatpush3.bf16.msra.mxu1 %v2104_v2  ;;  %v2131_v29 = vld [vmem:[%s3169_s0 + $0xd0] sm:$0xff]   ;;  %v2133_v31 = vld [vmem:[%s3169_s0 + $0xd8] sm:$0xff]   ;;  %v2134_v32 = vld [vmem:[%s3169_s0 + $0x60] sm:$0xff]  }
   0xc   :  { %2012 = vmatprep.subr.bf16.mxu0 %v2105_v3  ;;  %2089 = vmatprep.subr.bf16.mxu1 %v2105_v3  ;;  %v2135_v33 = vld [vmem:[%s3169_s0 + $0xe0] sm:$0xff]   ;;  %v2136_v34 = vld [vmem:[%s3169_s0 + $0x68] sm:$0xff]   ;;  %v2138_v36 = vld [vmem:[%s3169_s0 + $0x70] sm:$0xff]  }
   0xd   :  { %v2137_v35 = vld [vmem:[%s3169_s0 + $0xe8] sm:$0xff]   ;;  %v2139_v37 = vld [vmem:[%s3169_s0 + $0xf0] sm:$0xff]   ;;  %v2140_v38 = vld [vmem:[%s3169_s0 + $0x78] sm:$0xff]  }
   0xe   :  { %v2141_v39 = vld [vmem:[%s3169_s0 + $0xf8] sm:$0xff]   ;;  %v2548_v40 = vld [vmem:[%s3170_s2] ss:$0 sm:$0xff] }
   0xf   :  { %2013 = vmatpush3.bf16.msra.mxu0 %v2105_v3  ;;  %2097 = vmatpush3.bf16.msra.mxu1 %v2105_v3  ;;  %v2553_v42 = vld [vmem:[%s3171_s3] ss:$0 sm:$0xff] }
  0x10   :  { %2014 = vmatprep.subr.bf16.mxu0 %v2106_v6  ;;  %2090 = vmatprep.subr.bf16.mxu1 %v2106_v6 }
  0x13   :  { %2015 = vmatpush3.bf16.msra.mxu0 %v2106_v6  ;;  %2098 = vmatpush3.bf16.msra.mxu1 %v2106_v6 }
  0x14   :  { %2016 = vmatprep.subr.bf16.mxu0 %v2107_v7  ;;  %2091 = vmatprep.subr.bf16.mxu1 %v2107_v7 }
  0x17   :  { %2017 = vmatpush3.bf16.msra.mxu0 %v2107_v7  ;;  %2099 = vmatpush3.bf16.msra.mxu1 %v2107_v7 }
  0x18   :  { %2018 = vmatprep.subr.bf16.mxu0 %v2108_v8  ;;  %2092 = vmatprep.subr.bf16.mxu1 %v2108_v8 }
  0x1b   :  { %2019 = vmatpush3.bf16.msra.mxu0 %v2108_v8  ;;  %2100 = vmatpush3.bf16.msra.mxu1 %v2108_v8 }
  0x1c   :  { %2020 = vmatprep.subr.bf16.mxu0 %v2109_v9  ;;  %2093 = vmatprep.subr.bf16.mxu1 %v2109_v9 }
  0x1f   :  { %2021 = vmatpush3.bf16.msra.mxu0 %v2109_v9  ;;  %2101 = vmatpush3.bf16.msra.mxu1 %v2109_v9 }
  0x22   :  { %2023 = vmatmul.mubr.bf16.vlgmr.msra.gmra.mrb[0].mxu0 %v2112_v10  ;;  %2055 = vmatmul.mubr.bf16.vlgmr.msra.gmra.mrb[0].mxu1 %v2113_v11 }
  0x23   :  { %2026 = vmatprep.mubr.bf16.mxu0 %v2114_v12  ;;  %2058 = vmatprep.mubr.bf16.mxu1 %v2115_v13 }
  0x2a   :  { %2027 = vmatmul.mubr.bf16.gmra.mrb[4].mxu0 %v2116_v14  ;;  %2059 = vmatmul.mubr.bf16.gmra.mrb[4].mxu1 %v2117_v15 }
  0x2b   :  { %2030 = vmatprep.mubr.bf16.mxu0 %v2118_v16  ;;  %2062 = vmatprep.mubr.bf16.mxu1 %v2119_v17 }
  0x32   :  { %2031 = vmatmul.mubr.bf16.gmra.mrb[8].mxu0 %v2120_v18  ;;  %2063 = vmatmul.mubr.bf16.gmra.mrb[8].mxu1 %v2121_v19 }
  0x33   :  { %2034 = vmatprep.mubr.bf16.mxu0 %v2122_v20  ;;  %2066 = vmatprep.mubr.bf16.mxu1 %v2123_v21 }
  0x3a   :  { %2035 = vmatmul.mubr.bf16.gmra.mrb[12].mxu0 %v2124_v22  ;;  %2067 = vmatmul.mubr.bf16.gmra.mrb[12].mxu1 %v2125_v23 }
  0x3b   :  { %2038 = vmatprep.mubr.bf16.mxu0 %v2126_v24  ;;  %2070 = vmatprep.mubr.bf16.mxu1 %v2127_v25 }
  0x42   :  { %2039 = vmatmul.mubr.bf16.gmra.mrb[16].mxu0 %v2128_v26  ;;  %2071 = vmatmul.mubr.bf16.gmra.mrb[16].mxu1 %v2129_v27 }
  0x43   :  { %2042 = vmatprep.mubr.bf16.mxu0 %v2130_v28  ;;  %2074 = vmatprep.mubr.bf16.mxu1 %v2131_v29 }
  0x4a   :  { %2043 = vmatmul.mubr.bf16.gmra.mrb[20].mxu0 %v2132_v30  ;;  %2075 = vmatmul.mubr.bf16.gmra.mrb[20].mxu1 %v2133_v31 }
  0x4b   :  { %2046 = vmatprep.mubr.bf16.mxu0 %v2134_v32  ;;  %2078 = vmatprep.mubr.bf16.mxu1 %v2135_v33 }
  0x52   :  { %2047 = vmatmul.mubr.bf16.gmra.mrb[24].mxu0 %v2136_v34  ;;  %2079 = vmatmul.mubr.bf16.gmra.mrb[24].mxu1 %v2137_v35 }
  0x53   :  { %2050 = vmatprep.mubr.bf16.mxu0 %v2138_v36  ;;  %2082 = vmatprep.mubr.bf16.mxu1 %v2139_v37 }
  0x5a   :  { %2051 = vmatmul.mubr.bf16.gmra.mrb[28].mxu0 %v2140_v38  ;;  %2083 = vmatmul.mubr.bf16.gmra.mrb[28].mxu1 %v2141_v39 }
  0xf5   :  { %v2024_v41 = vpop.f32.mrb[0].mxu0  ;;  %v2056_v43 = vpop.f32.mrb[0].mxu1 }
  0xf6   :  { %v636_v44 = vmul.f32 %v2024_v41, %v2548_v40  ;;  %v668_v45 = vmul.f32 %v2056_v43, %v2548_v40  ;;  %v372_v46 = vpop.f32.mrb[1].mxu0  ;;  %v500_v47 = vpop.f32.mrb[1].mxu1 }
  0xf7   :  { %v634_v48 = vmul.f32 %v2548_v40, %v372_v46  ;;  %v666_v49 = vmul.f32 %v2548_v40, %v500_v47  ;;  %v2025_v50 = vpop.f32.mrb[2].mxu0  ;;  %v2057_v51 = vpop.f32.mrb[2].mxu1 }
  0xf8   :  { %v2560_v52 = vadd.f32 %v2553_v42, %v636_v44  ;;  %v2563_v53 = vadd.f32 %v2553_v42, %v668_v45  ;;  %v637_v54 = vmul.f32 %v2025_v50, %v2548_v40  ;;  %v669_v55 = vmul.f32 %v2057_v51, %v2548_v40  ;;  %v375_v56 = vpop.f32.mrb[3].mxu0  ;;  %v503_v57 = vpop.f32.mrb[3].mxu1 }
  0xf9   :  { %v2568_v58 = vadd.f32 %v2553_v42, %v634_v48  ;;  %v2571_v59 = vadd.f32 %v2553_v42, %v666_v49  ;;  %v635_v60 = vmul.f32 %v2548_v40, %v375_v56  ;;  %v667_v61 = vmul.f32 %v2548_v40, %v503_v57 }
  0xfa   :  { %v1585_v62 = vmul.f32 -1.442695, %v2560_v52  ;;  %v1617_v63 = vmul.f32 -1.442695, %v2563_v53  ;;  %v2578_v0 = vadd.f32 %v2553_v42, %v637_v54  ;;  %v2581_v1 = vadd.f32 %v2553_v42, %v669_v55 }
  0xfb   :  { %v1583_v2 = vmul.f32 -1.442695, %v2568_v58  ;;  %v1615_v3 = vmul.f32 -1.442695, %v2571_v59  ;;  %v2586_v4 = vadd.f32 %v2553_v42, %v635_v60  ;;  %v2589_v5 = vadd.f32 %v2553_v42, %v667_v61 }
  0xfc   :  { %2142 = vpow2.f32 %v1585_v62  ;;  %v1586_v6 = vmul.f32 -1.442695, %v2578_v0  ;;  %v1618_v7 = vmul.f32 -1.442695, %v2581_v1 }
  0xfd   :  { %2144 = vpow2.f32 %v1617_v63  ;;  %v2028_v8 = vpop.f32.mrb[4].mxu0  ;;  %v2060_v9 = vpop.f32.mrb[4].mxu1  ;;  %v1584_v10 = vmul.f32 -1.442695, %v2586_v4  ;;  %v1616_v15 = vmul.f32 -1.442695, %v2589_v5 }
  0xfe   :  { %2146 = vpow2.f32 %v1583_v2  ;;  %v640_v11 = vmul.f32 %v2028_v8, %v2548_v40  ;;  %v672_v12 = vmul.f32 %v2060_v9, %v2548_v40  ;;  %v388_v13 = vpop.f32.mrb[5].mxu0  ;;  %v516_v14 = vpop.f32.mrb[5].mxu1 }
  0xff   :  { %2148 = vpow2.f32 %v1615_v3  ;;  %v638_v16 = vmul.f32 %v2548_v40, %v388_v13  ;;  %v670_v17 = vmul.f32 %v2548_v40, %v516_v14  ;;  %v2029_v18 = vpop.f32.mrb[6].mxu0  ;;  %v2061_v19 = vpop.f32.mrb[6].mxu1 }
 0x100   :  { %2150 = vpow2.f32 %v1586_v6  ;;  %v2600_v20 = vadd.f32 %v2553_v42, %v640_v11  ;;  %v2603_v21 = vadd.f32 %v2553_v42, %v672_v12  ;;  %v641_v22 = vmul.f32 %v2029_v18, %v2548_v40  ;;  %v391_v23 = vpop.f32.mrb[7].mxu0  ;;  %v519_v24 = vpop.f32.mrb[7].mxu1 }
 0x101   :  { %2152 = vpow2.f32 %v1618_v7  ;;  %v2607_v25 = vadd.f32 %v2553_v42, %v638_v16  ;;  %v2610_v26 = vadd.f32 %v2553_v42, %v670_v17  ;;  %v673_v27 = vmul.f32 %v2061_v19, %v2548_v40 }
 0x102   :  { %2154 = vpow2.f32 %v1584_v10  ;;  %v1589_v28 = vmul.f32 -1.442695, %v2600_v20  ;;  %v1621_v29 = vmul.f32 -1.442695, %v2603_v21  ;;  %v2616_v30 = vadd.f32 %v2553_v42, %v641_v22 }
 0x103   :  { %2156 = vpow2.f32 %v1616_v15  ;;  %v1587_v31 = vmul.f32 -1.442695, %v2607_v25  ;;  %v1619_v32 = vmul.f32 -1.442695, %v2610_v26  ;;  %v639_v34 = vmul.f32 %v2548_v40, %v391_v23 }
 0x104   :  { %2158 = vpow2.f32 %v1589_v28  ;;  %v1590_v33 = vmul.f32 -1.442695, %v2616_v30  ;;  %v2623_v38 = vadd.f32 %v2553_v42, %v673_v27  ;;  %v671_v45 = vmul.f32 %v2548_v40, %v519_v24 }
 0x105   :  { %2160 = vpow2.f32 %v1621_v29  ;;  %v2032_v35 = vpop.f32.mrb[8].mxu0  ;;  %v2064_v36 = vpop.f32.mrb[8].mxu1  ;;  %v2627_v55 = vadd.f32 %v2553_v42, %v639_v34 }
 0x106   :  { %v2143_v37 = vpop.eup %2142  ;;  %2162 = vpow2.f32 %v1587_v31  ;;  %v404_v39 = vpop.f32.mrb[9].mxu0  ;;  %v2630_v61 = vmul.f32 -1.442695, %v2623_v38  ;;  %v2633_v2 = vadd.f32 %v2553_v42, %v671_v45  ;;  %v644_v3 = vmul.f32 %v2032_v35, %v2548_v40 }
 0x107   :  { %v532_v41 = vpop.f32.mrb[9].mxu1  ;;  %v2145_v43 = vpop.eup %2144  ;;  %v963_v44 = vadd.f32 1.0, %v2143_v37  ;;  %2164 = vpow2.f32 %v1619_v32  ;;  %v676_v8 = vmul.f32 %v2064_v36, %v2548_v40  ;;  %v642_v9 = vmul.f32 %v2548_v40, %v404_v39 }
 0x108   :  { %v2033_v46 = vpop.f32.mrb[10].mxu0  ;;  %v2065_v47 = vpop.f32.mrb[10].mxu1  ;;  %v995_v49 = vadd.f32 1.0, %v2145_v43  ;;  %2166 = vpow2.f32 %v1590_v33  ;;  %v1588_v12 = vmul.f32 -1.442695, %v2627_v55  ;;  %v674_v13 = vmul.f32 %v2548_v40, %v532_v41 }
 0x109   :  { %v2147_v48 = vpop.eup %2146  ;;  %v407_v50 = vpop.f32.mrb[11].mxu0  ;;  %2168 = vrcp.f32 %v963_v44  ;;  %v645_v18 = vmul.f32 %v2033_v46, %v2548_v40  ;;  %v677_v19 = vmul.f32 %v2065_v47, %v2548_v40  ;;  %v2645_v28 = vadd.f32 %v2553_v42, %v644_v3 }
 0x10a   :  { %v2149_v51 = vpop.eup %2148  ;;  %v961_v54 = vadd.f32 1.0, %v2147_v48  ;;  %v535_v56 = vpop.f32.mrb[11].mxu1  ;;  %2170 = vrcp.f32 %v995_v49  ;;  %v643_v29 = vmul.f32 %v2548_v40, %v407_v50  ;;  %v2653_v35 = vadd.f32 %v2553_v42, %v676_v8 }
 0x10b   :  { %v2151_v57 = vpop.eup %2150  ;;  %v993_v60 = vadd.f32 1.0, %v2149_v51  ;;  %v2656_v36 = vadd.f32 %v2553_v42, %v642_v9  ;;  %v1620_v44 = vmul.f32 -1.442695, %v2633_v2  ;;  %v2664_v45 = vadd.f32 %v2553_v42, %v674_v13 }
 0x10c   :  { %v2153_v62 = vpop.eup %2152  ;;  %2172 = vrcp.f32 %v961_v54  ;;  %v964_v63 = vadd.f32 1.0, %v2151_v57  ;;  %v2667_v48 = vadd.f32 %v2553_v42, %v645_v18  ;;  %v2670_v49 = vadd.f32 %v2553_v42, %v677_v19 }
 0x10d   :  { %v2155_v6 = vpop.eup %2154  ;;  %2174 = vrcp.f32 %v993_v60  ;;  %v996_v7 = vadd.f32 1.0, %v2153_v62  ;;  %v2036_v14 = vpop.f32.mrb[12].mxu0  ;;  %v2673_v54 = vadd.f32 %v2553_v42, %v643_v29  ;;  %v675_v57 = vmul.f32 %v2548_v40, %v535_v56 }
 0x10e   :  { %v2157_v10 = vpop.eup %2156  ;;  %2176 = vrcp.f32 %v964_v63  ;;  %v962_v11 = vadd.f32 1.0, %v2155_v6  ;;  %v2068_v15 = vpop.f32.mrb[12].mxu1  ;;  %v1593_v62 = vmul.f32 -1.442695, %v2645_v28  ;;  %v1625_v63 = vmul.f32 -1.442695, %v2653_v35 }
 0x10f   :  { %v2159_v16 = vpop.eup %2158  ;;  %2178 = vrcp.f32 %v996_v7  ;;  %v994_v17 = vadd.f32 1.0, %v2157_v10  ;;  %v420_v22 = vpop.f32.mrb[13].mxu0  ;;  %v1591_v3 = vmul.f32 -1.442695, %v2656_v36  ;;  %v1623_v7 = vmul.f32 -1.442695, %v2664_v45 }
 0x110   :  { %v2642_v23 = vpop.f32.mrb[13].mxu1  ;;  %v2161_v24 = vpop.eup %2160  ;;  %2180 = vrcp.f32 %v962_v11  ;;  %v967_v27 = vadd.f32 1.0, %v2159_v16  ;;  %v648_v8 = vmul.f32 %v2036_v14, %v2548_v40  ;;  %v680_v9 = vmul.f32 %v2068_v15, %v2548_v40 }
 0x111   :  { %v2648_v31 = vpop.f32.mrb[14].mxu0  ;;  %v2650_v32 = vpop.f32.mrb[14].mxu1  ;;  %2182 = vrcp.f32 %v994_v17  ;;  %v999_v34 = vadd.f32 1.0, %v2161_v24  ;;  %v1594_v13 = vmul.f32 -1.442695, %v2667_v48  ;;  %v2696_v24 = vadd.f32 %v2553_v42, %v675_v57 }
 0x112   :  { %v2163_v33 = vpop.eup %2162  ;;  %v2658_v37 = vpop.f32.mrb[15].mxu0  ;;  %2184 = vrcp.f32 %v967_v27  ;;  %v1626_v16 = vmul.f32 -1.442695, %v2670_v49  ;;  %v1592_v15 = vmul.f32 -1.442695, %v2673_v54 }
 0x113   :  { %v2660_v39 = vpop.f32.mrb[15].mxu1  ;;  %v2165_v41 = vpop.eup %2164  ;;  %v965_v43 = vadd.f32 1.0, %v2163_v33  ;;  %2186 = vrcp.f32 %v999_v34 }
 0x114   :  { %v2167_v46 = vpop.eup %2166  ;;  %v997_v47 = vadd.f32 1.0, %v2165_v41  ;;  %v646_v41 = vmul.f32 %v2548_v40, %v420_v22 }
 0x115   :  { %v2169_v50 = vpop.eup %2168  ;;  %2188 = vrcp.f32 %v965_v43  ;;  %v968_v51 = vadd.f32 1.0, %v2167_v46  ;;  %v2682_v10 = vpop.f32.mrb[16].mxu0 }
 0x116   :  { %v2171_v60 = vpop.eup %2170  ;;  %2190 = vrcp.f32 %v997_v47  ;;  %v2684_v11 = vpop.f32.mrb[16].mxu1  ;;  %v1155_v14 = vmul.f32 %v2169_v50, %v2560_v52  ;;  %v2711_v47 = vadd.f32 %v2553_v42, %v648_v8  ;;  %v2714_v50 = vadd.f32 %v2553_v42, %v680_v9 }
 0x117   :  { %v2173_v6 = vpop.eup %2172  ;;  %2192 = vrcp.f32 %v968_v51  ;;  %v2689_v17 = vpop.f32.mrb[17].mxu0  ;;  %v1187_v33 = vmul.f32 %v2171_v60, %v2563_v53 }
 0x118   :  { %v2175_v56 = vpop.eup %2174  ;;  %2194 = vpow2.f32 %v2630_v61  ;;  %v2691_v18 = vpop.f32.mrb[17].mxu1 }
 0x119   :  { %v2177_v19 = vpop.eup %2176  ;;  %2196 = vpow2.f32 %v1588_v12  ;;  %v2698_v27 = vpop.f32.mrb[18].mxu0  ;;  %v1185_v57 = vmul.f32 %v2175_v56, %v2571_v59  ;;  %v1597_v59 = vmul.f32 -1.442695, %v2711_v47 }
 0x11a   :  { %v2700_v61 = vpop.f32.mrb[18].mxu1  ;;  %v2179_v29 = vpop.eup %2178  ;;  %v1156_v34 = vmul.f32 %v2177_v19, %v2578_v0  ;;  %2198 = vpow2.f32 %v1620_v44  ;;  %v1153_v0 = vmul.f32 %v2173_v6, %v2568_v58  ;;  %v1624_v58 = vmul.f32 -1.442695, %v2696_v24 }
 0x11b   :  { %v2705_v43 = vpop.f32.mrb[19].mxu0  ;;  %v2707_v52 = vpop.f32.mrb[19].mxu1  ;;  %v1188_v46 = vmul.f32 %v2179_v29, %v2581_v1  ;;  %2200 = vpow2.f32 %v1593_v62 }
 0x11c   :  { %v2181_v12 = vpop.eup %2180  ;;  %v1783_v44 = vpack.c.bf16 %v1156_v34, %v1155_v14  ;;  %2202 = vpow2.f32 %v1625_v63  ;;  %v649_v14 = vmul.f32 %v2648_v31, %v2548_v40 }
 0x11d   :  { %v2183_v53 = vpop.eup %2182  ;;  %v1154_v22 = vmul.f32 %v2181_v12, %v2586_v4  ;;  %v1863_v60 = vpack.c.bf16 %v1188_v46, %v1187_v33  ;;  %2204 = vpow2.f32 %v1591_v3  ;;  %v2730_v63 = vpop.f32.mrb[20].mxu0  ;;  %v681_v46 = vmul.f32 %v2650_v32, %v2548_v40 }
 0x11e   :  { %v2185_v51 = vpop.eup %2184  ;;  %v1186_v1 = vmul.f32 %v2183_v53, %v2589_v5  ;;  %1935 = vst [vmem:[%s3172_s4 + $0x8] sm:$0xff] %v1783_v44   ;;  %2206 = vpow2.f32 %v1623_v7  ;;  %v678_v5 = vmul.f32 %v2548_v40, %v2642_v23  ;;  %v2732_v3 = vpop.f32.mrb[20].mxu1  ;;  %v1629_v7 = vmul.f32 -1.442695, %v2714_v50 }
 0x11f   :  { %v2187_v62 = vpop.eup %2186  ;;  %v1778_v8 = vpack.c.bf16 %v1154_v22, %v1153_v0  ;;  %1951 = vst [vmem:[%s3172_s4 + $0x88] sm:$0xff] %v1863_v60   ;;  %2208 = vpow2.f32 %v1594_v13  ;;  %v2740_v56 = vpop.f32.mrb[21].mxu0  ;;  %v2748_v23 = vadd.f32 %v2553_v42, %v646_v41  ;;  %v1159_v34 = vmul.f32 %v2185_v51, %v2600_v20 }
 0x120   :  { %v2189_v6 = vpop.eup %2188  ;;  %v1858_v4 = vpack.c.bf16 %v1186_v1, %v1185_v57  ;;  %2210 = vpow2.f32 %v1626_v16  ;;  %v2742_v13 = vpop.f32.mrb[21].mxu1  ;;  %v2765_v31 = vadd.f32 %v2553_v42, %v678_v5  ;;  %v2768_v51 = vadd.f32 %v2553_v42, %v649_v14 }
 0x121   :  { %v2734_v9 = vpop.eup %2190  ;;  %1779 = vst [vmem:[%s3172_s4] sm:$0xff] %v1778_v8   ;;  %2212 = vpow2.f32 %v1592_v15  ;;  %v2752_v29 = vpop.f32.mrb[22].mxu0  ;;  %v2774_v1 = vmul.f32 -1.442695, %v2748_v23  ;;  %v2777_v8 = vadd.f32 %v2553_v42, %v681_v46  ;;  %v647_v5 = vmul.f32 %v2548_v40, %v2658_v37 }
 0x122   :  { %v2193_v19 = vpop.eup %2192  ;;  %1950 = vst [vmem:[%s3172_s4 + $0x80] sm:$0xff] %v1858_v4   ;;  %v2754_v16 = vpop.f32.mrb[22].mxu1  ;;  %2214 = vpow2.f32 %v1624_v58  ;;  %v2798_v37 = vmul.f32 %v2189_v6, %v2607_v25 }
 0x123   :  { %v2195_v33 = vpop.eup %2194  ;;  %v1160_v12 = vmul.f32 %v2193_v19, %v2616_v30  ;;  %v2760_v15 = vpop.f32.mrb[23].mxu0  ;;  %2216 = vpow2.f32 %v1597_v59  ;;  %v2780_v59 = vmul.f32 -1.442695, %v2765_v31 }
 0x124   :  { %v2762_v41 = vpop.f32.mrb[23].mxu1  ;;  %v2197_v53 = vpop.eup %2196  ;;  %v1000_v0 = vadd.f32 1.0, %v2195_v33  ;;  %2218 = vpow2.f32 %v1629_v7  ;;  %v2789_v33 = vmul.f32 %v2187_v62, %v2603_v21 }
 0x125   :  { %v2199_v44 = vpop.eup %2198  ;;  %v1793_v22 = vpack.c.bf16 %v1160_v12, %v1159_v34  ;;  %v966_v57 = vadd.f32 1.0, %v2197_v53  ;;  %v2784_v7 = vpop.f32.mrb[24].mxu0  ;;  %v679_v12 = vmul.f32 %v2548_v40, %v2660_v39 }
 0x126   :  { %v2201_v20 = vpop.eup %2200  ;;  %2220 = vrcp.f32 %v1000_v0  ;;  %v998_v30 = vadd.f32 1.0, %v2199_v44  ;;  %v2786_v19 = vpop.f32.mrb[24].mxu1 }
 0x127   :  { %v2203_v32 = vpop.eup %2202  ;;  %1937 = vst [vmem:[%s3172_s4 + $0x18] sm:$0xff] %v1793_v22   ;;  %2222 = vrcp.f32 %v966_v57  ;;  %v971_v60 = vadd.f32 1.0, %v2201_v20  ;;  %v2793_v46 = vpop.f32.mrb[25].mxu0  ;;  %v2801_v22 = vmul.f32 -1.442695, %v2768_v51 }
 0x128   :  { %v2205_v58 = vpop.eup %2204  ;;  %2224 = vrcp.f32 %v998_v30  ;;  %v1003_v4 = vadd.f32 1.0, %v2203_v32  ;;  %v2795_v53 = vpop.f32.mrb[25].mxu1  ;;  %v2808_v20 = vmul.f32 -1.442695, %v2777_v8  ;;  %v652_v30 = vmul.f32 %v2682_v10, %v2548_v40 }
 0x129   :  { %v2207_v14 = vpop.eup %2206  ;;  %2226 = vrcp.f32 %v971_v60  ;;  %v969_v34 = vadd.f32 1.0, %v2205_v58  ;;  %v2803_v21 = vpop.f32.mrb[26].mxu0  ;;  %v2818_v60 = vmul.f32 %v2734_v9, %v2610_v26  ;;  %v684_v10 = vmul.f32 %v2684_v11, %v2548_v40 }
 0x12a   :  { %v2209_v0 = vpop.eup %2208  ;;  %2228 = vrcp.f32 %v1003_v4  ;;  %v1001_v44 = vadd.f32 1.0, %v2207_v14  ;;  %v2805_v62 = vpop.f32.mrb[26].mxu1  ;;  %v2821_v4 = vadd.f32 %v2553_v42, %v647_v5  ;;  %v650_v26 = vmul.f32 %v2548_v40, %v2689_v17 }
 0x12b   :  { %v2211_v57 = vpop.eup %2210  ;;  %2230 = vrcp.f32 %v969_v34  ;;  %v972_v39 = vadd.f32 1.0, %v2209_v0  ;;  %v2812_v25 = vpop.f32.mrb[27].mxu0  ;;  %v2824_v0 = vadd.f32 %v2553_v42, %v679_v12  ;;  %v682_v9 = vmul.f32 %v2548_v40, %v2691_v18 }
 0x12c   :  { %3174 = vst [vmem:[#allocation2_spill] sm:$0xff] %v2812_v25  ;;  %v2814_v6 = vpop.f32.mrb[27].mxu1  ;;  %v2213_v32 = vpop.eup %2212  ;;  %2232 = vrcp.f32 %v1001_v44  ;;  %v1004_v58 = vadd.f32 1.0, %v2211_v57  ;;  %v2833_v57 = vadd.f32 %v2553_v42, %v652_v30  ;;  %v653_v12 = vmul.f32 %v2698_v27, %v2548_v40 }
 0x12d   :  { %3175 = vst [vmem:[#allocation3_spill] sm:$0xff] %v2814_v6  ;;  %v2215_v14 = vpop.eup %2214  ;;  %2234 = vrcp.f32 %v972_v39  ;;  %v970_v34 = vadd.f32 1.0, %v2213_v32  ;;  %v1596_v32 = vmul.f32 -1.442695, %v2821_v4  ;;  %v685_v17 = vmul.f32 %v2700_v61, %v2548_v40  ;;  %v2842_v18 = vpop.f32.mrb[28].mxu1 }
 0x12e   :  { %v2217_v6 = vpop.eup %2216  ;;  %2236 = vrcp.f32 %v1004_v58  ;;  %v1002_v25 = vadd.f32 1.0, %v2215_v14  ;;  %v2840_v58 = vpop.f32.mrb[28].mxu0  ;;  %3176 = vst [vmem:[#allocation4_spill] sm:$0xff] %v2842_v18  ;;  %v2846_v30 = vadd.f32 %v2553_v42, %v684_v10  ;;  %v651_v27 = vmul.f32 %v2548_v40, %v2705_v43 }
 0x12f   :  { %v2219_v5 = vpop.eup %2218  ;;  %2238 = vrcp.f32 %v970_v34  ;;  %v975_v44 = vadd.f32 1.0, %v2217_v6  ;;  %v2852_v34 = vpop.f32.mrb[29].mxu1  ;;  %v2856_v18 = vadd.f32 %v2553_v42, %v650_v26 }
 0x130   :  { %v2221_v39 = vpop.eup %2220  ;;  %2240 = vrcp.f32 %v1002_v25  ;;  %v1007_v11 = vadd.f32 1.0, %v2219_v5  ;;  %v2850_v25 = vpop.f32.mrb[29].mxu0 }
 0x131   :  { %v2223_v14 = vpop.eup %2222  ;;  %v1192_v6 = vmul.f32 %v2221_v39, %v2623_v38  ;;  %2242 = vrcp.f32 %v975_v44  ;;  %3177 = vst [vmem:[#allocation5_spill] sm:$0xff] %v2850_v25  ;;  %v2859_v38 = vadd.f32 %v2553_v42, %v682_v9  ;;  %v2861_v44 = vpop.f32.mrb[30].mxu0 }
 0x132   :  { %v2225_v5 = vpop.eup %2224  ;;  %v1158_v61 = vmul.f32 %v2223_v14, %v2627_v55  ;;  %2244 = vrcp.f32 %v1007_v11  ;;  %3179 = vst [vmem:[#allocation7_spill] sm:$0xff] %v2861_v44  ;;  %v2863_v10 = vpop.f32.mrb[30].mxu1  ;;  %v2869_v55 = vadd.f32 %v2553_v42, %v653_v12  ;;  %v1601_v12 = vmul.f32 -1.442695, %v2833_v57 }
 0x133   :  { %3178 = vst [vmem:[#allocation6_spill] sm:$0xff] %v2859_v38  ;;  %3180 = vst [vmem:[#allocation8_spill] sm:$0xff] %v2863_v10  ;;  %v2227_v39 = vpop.eup %2226  ;;  %v1873_v43 = vpack.c.bf16 %v1192_v6, %v2789_v33  ;;  %v1190_v25 = vmul.f32 %v2225_v5, %v2633_v2  ;;  %2246 = vpow2.f32 %v2774_v1  ;;  %v2871_v11 = vpop.f32.mrb[31].mxu0  ;;  %v1628_v10 = vmul.f32 -1.442695, %v2824_v0 }
 0x134   :  { %3181 = vst [vmem:[#allocation9_spill] sm:$0xff] %v2871_v11  ;;  %v2873_v26 = vpop.f32.mrb[31].mxu1  ;;  %v2229_v9 = vpop.eup %2228  ;;  %v1788_v14 = vpack.c.bf16 %v1158_v61, %v2798_v37  ;;  %2248 = vpow2.f32 %v2780_v59  ;;  %v2879_v33 = vadd.f32 %v2553_v42, %v685_v17  ;;  %v2888_v37 = vadd.f32 %v2553_v42, %v651_v27 }
 0x135   :  { %3182 = vst [vmem:[#allocation10_spill] sm:$0xff] %v2873_v26  ;;  %v2231_v2 = vpop.eup %2230  ;;  %1953 = vst [vmem:[%s3172_s4 + $0x98] sm:$0xff] %v1873_v43   ;;  %v1868_v1 = vpack.c.bf16 %v1190_v25, %v2818_v60  ;;  %2250 = vpow2.f32 %v2801_v22  ;;  %v1633_v17 = vmul.f32 -1.442695, %v2846_v30  ;;  %v1599_v22 = vmul.f32 -1.442695, %v2856_v18 }
 0x136   :  { %v2233_v59 = vpop.eup %2232  ;;  %1936 = vst [vmem:[%s3172_s4 + $0x10] sm:$0xff] %v1788_v14   ;;  %2252 = vpow2.f32 %v2808_v20  ;;  %v1631_v60 = vmul.f32 -1.442695, %v2859_v38  ;;  %v1602_v27 = vmul.f32 -1.442695, %v2869_v55  ;;  %v1163_v5 = vmul.f32 %v2227_v39, %v2645_v28 }
 0x137   :  { %v2235_v6 = vpop.eup %2234  ;;  %1952 = vst [vmem:[%s3172_s4 + $0x90] sm:$0xff] %v1868_v1   ;;  %2254 = vpow2.f32 %v1596_v32  ;;  %v1634_v20 = vmul.f32 -1.442695, %v2879_v33  ;;  %v1195_v14 = vmul.f32 %v2229_v9, %v2653_v35  ;;  %v1600_v32 = vmul.f32 -1.442695, %v2888_v37 }
 0x138   :  { %v2237_v25 = vpop.eup %2236  ;;  %v1164_v61 = vmul.f32 %v2235_v6, %v2667_v48  ;;  %2256 = vpow2.f32 %v1628_v10  ;;  %v1161_v38 = vmul.f32 %v2231_v2, %v2656_v36  ;;  %v1193_v48 = vmul.f32 %v2233_v59, %v2664_v45 }
 0x139   :  { %v2239_v43 = vpop.eup %2238  ;;  %v1196_v1 = vmul.f32 %v2237_v25, %v2670_v49  ;;  %2258 = vpow2.f32 %v1601_v12  ;;  %v683_v36 = vmul.f32 %v2548_v40, %v2707_v52  ;;  %v688_v52 = vmul.f32 %v2732_v3, %v2548_v40 }
 0x13a   :  { %v2241_v26 = vpop.eup %2240  ;;  %v1803_v11 = vpack.c.bf16 %v1164_v61, %v1163_v5  ;;  %v1162_v44 = vmul.f32 %v2239_v43, %v2673_v54  ;;  %2260 = vpow2.f32 %v1633_v17  ;;  %v656_v54 = vmul.f32 %v2730_v63, %v2548_v40 }
 0x13b   :  { %v2909_v28 = vpop.eup %2242  ;;  %v1883_v10 = vpack.c.bf16 %v1196_v1, %v1195_v14  ;;  %v1194_v39 = vmul.f32 %v2241_v26, %v2696_v24  ;;  %2262 = vpow2.f32 %v1599_v22  ;;  %v654_v63 = vmul.f32 %v2548_v40, %v2740_v56 }
 0x13c   :  { %v2913_v35 = vpop.eup %2244  ;;  %1939 = vst [vmem:[%s3172_s4 + $0x28] sm:$0xff] %v1803_v11   ;;  %v1798_v49 = vpack.c.bf16 %v1162_v44, %v1161_v38  ;;  %2264 = vpow2.f32 %v1631_v60  ;;  %v2936_v12 = vadd.f32 %v2553_v42, %v683_v36  ;;  %v2939_v59 = vadd.f32 %v2553_v42, %v656_v54 }
 0x13d   :  { %v2247_v9 = vpop.eup %2246  ;;  %1955 = vst [vmem:[%s3172_s4 + $0xa8] sm:$0xff] %v1883_v10   ;;  %v1878_v45 = vpack.c.bf16 %v1194_v39, %v1193_v48  ;;  %2266 = vpow2.f32 %v1602_v27  ;;  %v686_v56 = vmul.f32 %v2548_v40, %v2742_v13  ;;  %v2944_v60 = vadd.f32 %v2553_v42, %v688_v52 }
 0x13e   :  { %v2249_v24 = vpop.eup %2248  ;;  %1938 = vst [vmem:[%s3172_s4 + $0x20] sm:$0xff] %v1798_v49   ;;  %v973_v38 = vadd.f32 1.0, %v2247_v9  ;;  %2268 = vpow2.f32 %v1634_v20  ;;  %v2947_v27 = vadd.f32 %v2553_v42, %v654_v63  ;;  %v657_v61 = vmul.f32 %v2752_v29, %v2548_v40 }
 0x13f   :  { %v2251_v44 = vpop.eup %2250  ;;  %1954 = vst [vmem:[%s3172_s4 + $0xa0] sm:$0xff] %v1878_v45   ;;  %v1005_v11 = vadd.f32 1.0, %v2249_v24  ;;  %2270 = vpow2.f32 %v1600_v32  ;;  %v689_v20 = vmul.f32 %v2754_v16, %v2548_v40  ;;  %v1632_v14 = vmul.f32 -1.442695, %v2936_v12 }
 0x140   :  { %v2253_v26 = vpop.eup %2252  ;;  %2272 = vrcp.f32 %v973_v38  ;;  %v976_v2 = vadd.f32 1.0, %v2251_v44  ;;  %v1605_v1 = vmul.f32 -1.442695, %v2939_v59  ;;  %v2956_v10 = vadd.f32 %v2553_v42, %v686_v56 }
 0x141   :  { %v2255_v3 = vpop.eup %2254  ;;  %2274 = vrcp.f32 %v1005_v11  ;;  %v1008_v17 = vadd.f32 1.0, %v2253_v26  ;;  %v655_v39 = vmul.f32 %v2548_v40, %v2760_v15  ;;  %v1637_v16 = vmul.f32 -1.442695, %v2944_v60 }
 0x142   :  { %v2257_v6 = vpop.eup %2256  ;;  %2276 = vrcp.f32 %v976_v2  ;;  %v974_v22 = vadd.f32 1.0, %v2255_v3  ;;  %v1603_v36 = vmul.f32 -1.442695, %v2947_v27  ;;  %v2963_v45 = vadd.f32 %v2553_v42, %v657_v61 }
 0x143   :  { %v2259_v25 = vpop.eup %2258  ;;  %2278 = vrcp.f32 %v1008_v17  ;;  %v1006_v5 = vadd.f32 1.0, %v2257_v6  ;;  %v2966_v24 = vadd.f32 %v2553_v42, %v689_v20  ;;  %v687_v15 = vmul.f32 %v2548_v40, %v2762_v41 }
 0x144   :  { %v2261_v43 = vpop.eup %2260  ;;  %2280 = vrcp.f32 %v974_v22  ;;  %v979_v13 = vadd.f32 1.0, %v2259_v25  ;;  %v660_v63 = vmul.f32 %v2784_v7, %v2548_v40  ;;  %v1635_v26 = vmul.f32 -1.442695, %v2956_v10 }
 0x145   :  { %v2263_v32 = vpop.eup %2262  ;;  %2282 = vrcp.f32 %v1006_v5  ;;  %v1011_v48 = vadd.f32 1.0, %v2261_v43  ;;  %v2974_v2 = vadd.f32 %v2553_v42, %v655_v39  ;;  %v692_v56 = vmul.f32 %v2786_v19, %v2548_v40 }
 0x146   :  { %v2265_v29 = vpop.eup %2264  ;;  %2284 = vrcp.f32 %v979_v13  ;;  %v977_v49 = vadd.f32 1.0, %v2263_v32  ;;  %v658_v41 = vmul.f32 %v2548_v40, %v2793_v46  ;;  %v1167_v7 = vmul.f32 %v2909_v28, %v2711_v47 }
 0x147   :  { %v2267_v54 = vpop.eup %2266  ;;  %2286 = vrcp.f32 %v1011_v48  ;;  %v1009_v9 = vadd.f32 1.0, %v2265_v29  ;;  %v1606_v22 = vmul.f32 -1.442695, %v2963_v45  ;;  %v1638_v25 = vmul.f32 -1.442695, %v2966_v24 }
 0x148   :  { %v2269_v38 = vpop.eup %2268  ;;  %2288 = vrcp.f32 %v977_v49  ;;  %v980_v52 = vadd.f32 1.0, %v2267_v54  ;;  %v1199_v61 = vmul.f32 %v2913_v35, %v2714_v50  ;;  %v2987_v20 = vadd.f32 %v2553_v42, %v687_v15 }
 0x149   :  { %v2271_v44 = vpop.eup %2270  ;;  %2290 = vrcp.f32 %v1009_v9  ;;  %v1012_v11 = vadd.f32 1.0, %v2269_v38  ;;  %v2990_v19 = vadd.f32 %v2553_v42, %v660_v63  ;;  %v1604_v47 = vmul.f32 -1.442695, %v2974_v2 }
 0x14a   :  { %v2273_v3 = vpop.eup %2272  ;;  %2292 = vrcp.f32 %v980_v52  ;;  %v978_v17 = vadd.f32 1.0, %v2271_v44  ;;  %v690_v28 = vmul.f32 %v2548_v40, %v2795_v53  ;;  %v2998_v50 = vadd.f32 %v2553_v42, %v692_v56 }
 0x14b   :  { %v2275_v6 = vpop.eup %2274  ;;  %2294 = vrcp.f32 %v1012_v11  ;;  %v3001_v35 = vadd.f32 %v2553_v42, %v658_v41  ;;  %v1165_v39 = vmul.f32 %v2273_v3, %v2748_v23  ;;  %v1636_v23 = vmul.f32 -1.442695, %v2987_v20 }
 0x14c   :  { %v2277_v5 = vpop.eup %2276  ;;  %2296 = vrcp.f32 %v978_v17  ;;  %v1197_v53 = vmul.f32 %v2275_v6, %v2765_v31  ;;  %v3012_v9 = vadd.f32 %v2553_v42, %v690_v28  ;;  %v661_v15 = vmul.f32 %v2803_v21, %v2548_v40 }
 0x14d   :  { %v2279_v46 = vpop.eup %2278  ;;  %v1168_v43 = vmul.f32 %v2277_v5, %v2768_v51  ;;  %2298 = vpow2.f32 %v1632_v14  ;;  %v1607_v52 = vmul.f32 -1.442695, %v3001_v35  ;;  %v693_v63 = vmul.f32 %v2805_v62, %v2548_v40 }
 0x14e   :  { %v2281_v13 = vpop.eup %2280  ;;  %v1200_v32 = vmul.f32 %v2279_v46, %v2777_v8  ;;  %2300 = vpow2.f32 %v1605_v1  ;;  %v1639_v3 = vmul.f32 -1.442695, %v3012_v9 }
 0x14f   :  { %v2283_v48 = vpop.eup %2282  ;;  %v1813_v51 = vpack.c.bf16 %v1168_v43, %v1167_v7  ;;  %v1166_v14 = vmul.f32 %v2281_v13, %v2821_v4  ;;  %2302 = vpow2.f32 %v1637_v16  ;;  %v2398_v43 = vld [vmem:[%s3170_s2] ss:$0 sm:$0xff] }
 0x150   :  { %v2285_v29 = vpop.eup %2284  ;;  %v1893_v49 = vpack.c.bf16 %v1200_v32, %v1199_v61  ;;  %v1198_v8 = vmul.f32 %v2283_v48, %v2824_v0  ;;  %2304 = vpow2.f32 %v1603_v36  ;;  %v1609_v0 = vmul.f32 -1.442695, %v2990_v19 }
 0x151   :  { %v2287_v1 = vpop.eup %2286  ;;  %1941 = vst [vmem:[%s3172_s4 + $0x38] sm:$0xff] %v1813_v51   ;;  %v1808_v54 = vpack.c.bf16 %v1166_v14, %v1165_v39  ;;  %2306 = vpow2.f32 %v1635_v26  ;;  %v1641_v36 = vmul.f32 -1.442695, %v2998_v50  ;;  %v1171_v11 = vmul.f32 %v2285_v29, %v2833_v57 }
 0x152   :  { %v2289_v4 = vpop.eup %2288  ;;  %1957 = vst [vmem:[%s3172_s4 + $0xb8] sm:$0xff] %v1893_v49   ;;  %v1888_v31 = vpack.c.bf16 %v1198_v8, %v1197_v53  ;;  %2308 = vpow2.f32 %v1606_v22  ;;  %v1203_v56 = vmul.f32 %v2287_v1, %v2846_v30  ;;  %v3184_v53 = vld [vmem:[#allocation3_spill] sm:$0xff]  ;;  %v664_v8 = vmul.f32 %v2398_v43, %v2840_v58 }
 0x153   :  { %v3018_v16 = vpop.eup %2290  ;;  %1940 = vst [vmem:[%s3172_s4 + $0x30] sm:$0xff] %v1808_v54   ;;  %2310 = vpow2.f32 %v1638_v25  ;;  %v1169_v21 = vmul.f32 %v2289_v4, %v2856_v18  ;;  %v3046_v18 = vadd.f32 %v2553_v42, %v693_v63  ;;  %v691_v49 = vmul.f32 %v2398_v43, %v3184_v53 }
 0x154   :  { %v2293_v38 = vpop.eup %2292  ;;  %1956 = vst [vmem:[%s3172_s4 + $0xb0] sm:$0xff] %v1888_v31   ;;  %2312 = vpow2.f32 %v1604_v47  ;;  %v3185_v31 = vld [vmem:[#allocation4_spill] sm:$0xff]  ;;  %v694_v63 = vmul.f32 %v2398_v43, %v2852_v34  ;;  %v3189_v34 = vld [vmem:[#allocation9_spill] sm:$0xff] }
 0x155   :  { %v2295_v44 = vpop.eup %2294  ;;  %v1172_v26 = vmul.f32 %v2293_v38, %v2869_v55  ;;  %2314 = vpow2.f32 %v1636_v23  ;;  %v3040_v55 = vadd.f32 %v2553_v42, %v661_v15  ;;  %v3183_v42 = vld [vmem:[#allocation2_spill] sm:$0xff]  ;;  %v1642_v51 = vmul.f32 -1.442695, %v3046_v18 }
 0x156   :  { %v2297_v17 = vpop.eup %2296  ;;  %v1204_v41 = vmul.f32 %v2295_v44, %v2879_v33  ;;  %2316 = vpow2.f32 %v1609_v0  ;;  %v659_v47 = vmul.f32 %v2398_v43, %v3183_v42  ;;  %v2399_v23 = vld [vmem:[%s3171_s3] ss:$0 sm:$0xff]  ;;  %v696_v0 = vmul.f32 %v2398_v43, %v3185_v31 }
 0x157   :  { %v2299_v6 = vpop.eup %2298  ;;  %v1823_v7 = vpack.c.bf16 %v1172_v26, %v1171_v11  ;;  %v1170_v40 = vmul.f32 %v2297_v17, %v2888_v37  ;;  %2318 = vpow2.f32 %v1641_v36  ;;  %v1610_v39 = vmul.f32 -1.442695, %v3040_v55  ;;  %v3187_v11 = vld [vmem:[#allocation7_spill] sm:$0xff] }
 0x158   :  { %v2301_v62 = vpop.eup %2300  ;;  %v1903_v57 = vpack.c.bf16 %v1204_v41, %v1203_v56  ;;  %v1010_v22 = vadd.f32 1.0, %v2299_v6  ;;  %2320 = vpow2.f32 %v1607_v52  ;;  %v3065_v4 = vadd.f32 %v2399_v23, %v659_v47  ;;  %v3186_v52 = vld [vmem:[#allocation5_spill] sm:$0xff] }
 0x159   :  { %v2303_v25 = vpop.eup %2302  ;;  %1943 = vst [vmem:[%s3172_s4 + $0x48] sm:$0xff] %v1823_v7   ;;  %v1818_v30 = vpack.c.bf16 %v1170_v40, %v1169_v21  ;;  %v983_v33 = vadd.f32 1.0, %v2301_v62  ;;  %2322 = vpow2.f32 %v1639_v3  ;;  %v662_v15 = vmul.f32 %v2398_v43, %v3186_v52  ;;  %v3188_v3 = vld [vmem:[#allocation8_spill] sm:$0xff] }
 0x15a   :  { %v2305_v37 = vpop.eup %2304  ;;  %1959 = vst [vmem:[%s3172_s4 + $0xc8] sm:$0xff] %v1903_v57   ;;  %2324 = vrcp.f32 %v1010_v22  ;;  %v1015_v5 = vadd.f32 1.0, %v2303_v25  ;;  %v665_v26 = vmul.f32 %v2398_v43, %v3187_v11  ;;  %v697_v17 = vmul.f32 %v2398_v43, %v3188_v3 }
 0x15b   :  { %v2307_v61 = vpop.eup %2306  ;;  %1942 = vst [vmem:[%s3172_s4 + $0x40] sm:$0xff] %v1818_v30   ;;  %2326 = vrcp.f32 %v983_v33  ;;  %v981_v46 = vadd.f32 1.0, %v2305_v37  ;;  %v3072_v6 = vadd.f32 %v2399_v23, %v691_v49  ;;  %v3074_v21 = vadd.f32 %v2399_v23, %v664_v8  ;;  %v3190_v30 = vld [vmem:[#allocation6_spill] sm:$0xff] }
 0x15c   :  { %v2309_v28 = vpop.eup %2308  ;;  %2328 = vrcp.f32 %v1015_v5  ;;  %v1013_v13 = vadd.f32 1.0, %v2307_v61  ;;  %v1608_v62 = vmul.f32 -1.442695, %v3065_v4  ;;  %v3077_v57 = vadd.f32 %v2399_v23, %v696_v0 }
 0x15d   :  { %v2311_v32 = vpop.eup %2310  ;;  %2330 = vrcp.f32 %v981_v46  ;;  %v984_v48 = vadd.f32 1.0, %v2309_v28  ;;  %v663_v22 = vmul.f32 %v2398_v43, %v3189_v34  ;;  %v1201_v33 = vmul.f32 %v3018_v16, %v3190_v30 }
 0x15e   :  { %v2313_v14 = vpop.eup %2312  ;;  %2332 = vrcp.f32 %v1013_v13  ;;  %v1016_v29 = vadd.f32 1.0, %v2311_v32  ;;  %v3082_v37 = vadd.f32 %v2399_v23, %v662_v15  ;;  %v3084_v5 = vadd.f32 %v2399_v23, %v694_v63  ;;  %v3191_v32 = vld [vmem:[#allocation10_spill] sm:$0xff] }
 0x15f   :  { %v2315_v1 = vpop.eup %2314  ;;  %2334 = vrcp.f32 %v984_v48  ;;  %v982_v54 = vadd.f32 1.0, %v2313_v14  ;;  %v3087_v42 = vadd.f32 %v2399_v23, %v665_v26  ;;  %v3089_v47 = vadd.f32 %v2399_v23, %v697_v17 }
 0x160   :  { %v2317_v36 = vpop.eup %2316  ;;  %2336 = vrcp.f32 %v1016_v29  ;;  %v1014_v38 = vadd.f32 1.0, %v2315_v1  ;;  %v1640_v13 = vmul.f32 -1.442695, %v3072_v6  ;;  %v695_v48 = vmul.f32 %v2398_v43, %v3191_v32 }
 0x161   :  { %v2319_v44 = vpop.eup %2318  ;;  %2338 = vrcp.f32 %v982_v54  ;;  %v987_v58 = vadd.f32 1.0, %v2317_v36  ;;  %v1613_v29 = vmul.f32 -1.442695, %v3074_v21  ;;  %v3094_v53 = vadd.f32 %v2399_v23, %v663_v22 }
 0x162   :  { %v2321_v56 = vpop.eup %2320  ;;  %2340 = vrcp.f32 %v1014_v38  ;;  %v1019_v41 = vadd.f32 1.0, %v2319_v44  ;;  %v1611_v8 = vmul.f32 -1.442695, %v3082_v37  ;;  %v1643_v43 = vmul.f32 -1.442695, %v3084_v5 }
 0x163   :  { %v2323_v7 = vpop.eup %2322  ;;  %v985_v40 = vadd.f32 1.0, %v2321_v56  ;;  %2342 = vrcp.f32 %v987_v58  ;;  %v1646_v54 = vmul.f32 -1.442695, %v3089_v47  ;;  %v3106_v36 = vadd.f32 %v2399_v23, %v695_v48 }
 0x164   :  { %v2325_v25 = vpop.eup %2324  ;;  %2344 = vrcp.f32 %v1019_v41  ;;  %v1612_v63 = vmul.f32 -1.442695, %v3094_v53 }
 0x165   :  { %v2327_v61 = vpop.eup %2326  ;;  %v1202_v46 = vmul.f32 %v2325_v25, %v2936_v12  ;;  %2346 = vrcp.f32 %v985_v40  ;;  %v1645_v12 = vmul.f32 -1.442695, %v3077_v57 }
 0x166   :  { %v2329_v28 = vpop.eup %2328  ;;  %2348 = vpow2.f32 %v1610_v39  ;;  %v1614_v39 = vmul.f32 -1.442695, %v3087_v42  ;;  %v1175_v0 = vmul.f32 %v2327_v61, %v2939_v59 }
 0x167   :  { %v2331_v16 = vpop.eup %2330  ;;  %v1898_v14 = vpack.c.bf16 %v1202_v46, %v1201_v33  ;;  %2350 = vpow2.f32 %v1642_v51  ;;  %v1207_v52 = vmul.f32 %v2329_v28, %v2944_v60 }
 0x168   :  { %v2333_v49 = vpop.eup %2332  ;;  %2352 = vpow2.f32 %v1608_v62  ;;  %v1173_v58 = vmul.f32 %v2331_v16, %v2947_v27 }
 0x169   :  { %v2335_v1 = vpop.eup %2334  ;;  %1958 = vst [vmem:[%s3172_s4 + $0xc0] sm:$0xff] %v1898_v14   ;;  %2354 = vpow2.f32 %v1640_v13  ;;  %v1205_v59 = vmul.f32 %v2333_v49, %v2956_v10  ;;  %v1017_v10 = vadd.f32 1.0, %v2323_v7 }
 0x16a   :  { %v2337_v31 = vpop.eup %2336  ;;  %v1176_v51 = vmul.f32 %v2335_v1, %v2963_v45  ;;  %2356 = vpow2.f32 %v1613_v29 }
 0x16b   :  { %v2339_v38 = vpop.eup %2338  ;;  %v1208_v15 = vmul.f32 %v2337_v31, %v2966_v24  ;;  %2358 = vpow2.f32 %v1645_v12  ;;  %v1644_v24 = vmul.f32 -1.442695, %v3106_v36 }
 0x16c   :  { %v2341_v44 = vpop.eup %2340  ;;  %v1833_v11 = vpack.c.bf16 %v1176_v51, %v1175_v0  ;;  %v1174_v26 = vmul.f32 %v2339_v38, %v2974_v2  ;;  %2360 = vpow2.f32 %v1611_v8 }
 0x16d   :  { %v1913_v45 = vpack.c.bf16 %v1208_v15, %v1207_v52  ;;  %v1206_v23 = vmul.f32 %v2341_v44, %v2987_v20  ;;  %v2343_v3 = vpop.eup %2342  ;;  %2362 = vpow2.f32 %v1643_v43 }
 0x16e   :  { %1945 = vst [vmem:[%s3172_s4 + $0x58] sm:$0xff] %v1833_v11   ;;  %v1828_v60 = vpack.c.bf16 %v1174_v26, %v1173_v58  ;;  %v2345_v27 = vpop.eup %2344  ;;  %2364 = vpow2.f32 %v1614_v39  ;;  %v1179_v31 = vmul.f32 %v2343_v3, %v2990_v19 }
 0x16f   :  { %1961 = vst [vmem:[%s3172_s4 + $0xd8] sm:$0xff] %v1913_v45   ;;  %v1908_v2 = vpack.c.bf16 %v1206_v23, %v1205_v59  ;;  %v2347_v17 = vpop.eup %2346  ;;  %2366 = vpow2.f32 %v1646_v54  ;;  %v1211_v38 = vmul.f32 %v2345_v27, %v2998_v50 }
 0x170   :  { %1944 = vst [vmem:[%s3172_s4 + $0x50] sm:$0xff] %v1828_v60   ;;  %v2349_v20 = vpop.eup %2348  ;;  %2368 = vpow2.f32 %v1612_v63  ;;  %v1177_v63 = vmul.f32 %v2347_v17, %v3001_v35 }
 0x171   :  { %1960 = vst [vmem:[%s3172_s4 + $0xd0] sm:$0xff] %v1908_v2   ;;  %v2351_v56 = vpop.eup %2350  ;;  %v988_v41 = vadd.f32 1.0, %v2349_v20  ;;  %2370 = vpow2.f32 %v1644_v24 }
 0x172   :  { %v2353_v40 = vpop.eup %2352  ;;  %2372 = vrcp.f32 %v1017_v10  ;;  %v1020_v62 = vadd.f32 1.0, %v2351_v56 }
 0x173   :  { %v2355_v7 = vpop.eup %2354  ;;  %2374 = vrcp.f32 %v988_v41  ;;  %v986_v34 = vadd.f32 1.0, %v2353_v40 }
 0x174   :  { %v2357_v22 = vpop.eup %2356  ;;  %2376 = vrcp.f32 %v1020_v62  ;;  %v1018_v25 = vadd.f32 1.0, %v2355_v7 }
 0x175   :  { %v2359_v30 = vpop.eup %2358  ;;  %2378 = vrcp.f32 %v986_v34  ;;  %v991_v33 = vadd.f32 1.0, %v2357_v22 }
 0x176   :  { %v2361_v61 = vpop.eup %2360  ;;  %2380 = vrcp.f32 %v1018_v25  ;;  %v1023_v46 = vadd.f32 1.0, %v2359_v30 }
 0x177   :  { %v2363_v28 = vpop.eup %2362  ;;  %2382 = vrcp.f32 %v991_v33  ;;  %v989_v13 = vadd.f32 1.0, %v2361_v61 }
 0x178   :  { %v2365_v32 = vpop.eup %2364  ;;  %2384 = vrcp.f32 %v1023_v46  ;;  %v1021_v48 = vadd.f32 1.0, %v2363_v28 }
 0x179   :  { %v2367_v16 = vpop.eup %2366  ;;  %2386 = vrcp.f32 %v989_v13  ;;  %v992_v14 = vadd.f32 1.0, %v2365_v32 }
 0x17a   :  { %v2369_v29 = vpop.eup %2368  ;;  %2388 = vrcp.f32 %v1021_v48  ;;  %v1024_v49 = vadd.f32 1.0, %v2367_v16 }
 0x17b   :  { %v2371_v12 = vpop.eup %2370  ;;  %2390 = vrcp.f32 %v992_v14  ;;  %v990_v8 = vadd.f32 1.0, %v2369_v29 }
 0x17c   :  { %v2373_v1 = vpop.eup %2372  ;;  %2392 = vrcp.f32 %v1024_v49  ;;  %v1022_v43 = vadd.f32 1.0, %v2371_v12 }
 0x17d   :  { %v2375_v39 = vpop.eup %2374  ;;  %2394 = vrcp.f32 %v990_v8  ;;  %v1209_v26 = vmul.f32 %v2373_v1, %v3012_v9 }
 0x17e   :  { %v2377_v54 = vpop.eup %2376  ;;  %v1180_v0 = vmul.f32 %v2375_v39, %v3040_v55  ;;  %2396 = vrcp.f32 %v1022_v43 }
 0x17f   :  { %v2379_v51 = vpop.eup %2378  ;;  %v1212_v52 = vmul.f32 %v2377_v54, %v3046_v18 }
 0x180   :  { %v2381_v15 = vpop.eup %2380  ;;  %v1843_v44 = vpack.c.bf16 %v1180_v0, %v1179_v31  ;;  %v1178_v58 = vmul.f32 %v2379_v51, %v3065_v4 }
 0x181   :  { %v2383_v11 = vpop.eup %2382  ;;  %v1923_v59 = vpack.c.bf16 %v1212_v52, %v1211_v38  ;;  %v1210_v19 = vmul.f32 %v2381_v15, %v3072_v6 }
 0x182   :  { %v2385_v45 = vpop.eup %2384  ;;  %1947 = vst [vmem:[%s3172_s4 + $0x68] sm:$0xff] %v1843_v44   ;;  %v1838_v50 = vpack.c.bf16 %v1178_v58, %v1177_v63  ;;  %v1183_v6 = vmul.f32 %v2383_v11, %v3074_v21 }
 0x183   :  { %v2387_v55 = vpop.eup %2386  ;;  %1963 = vst [vmem:[%s3172_s4 + $0xe8] sm:$0xff] %v1923_v59   ;;  %v1918_v35 = vpack.c.bf16 %v1210_v19, %v1209_v26  ;;  %v1215_v60 = vmul.f32 %v2385_v45, %v3077_v57 }
 0x184   :  { %v2389_v18 = vpop.eup %2388  ;;  %1946 = vst [vmem:[%s3172_s4 + $0x60] sm:$0xff] %v1838_v50   ;;  %v1181_v2 = vmul.f32 %v2387_v55, %v3082_v37 }
 0x185   :  { %v2391_v9 = vpop.eup %2390  ;;  %1962 = vst [vmem:[%s3172_s4 + $0xe0] sm:$0xff] %v1918_v35   ;;  %v1213_v20 = vmul.f32 %v2389_v18, %v3084_v5 }
 0x186   :  { %v2393_v4 = vpop.eup %2392  ;;  %v1184_v23 = vmul.f32 %v2391_v9, %v3087_v42 }
 0x187   :  { %v2395_v3 = vpop.eup %2394  ;;  %v1216_v24 = vmul.f32 %v2393_v4, %v3089_v47 }
 0x188   :  { %v2397_v27 = vpop.eup %2396  ;;  %v1853_v10 = vpack.c.bf16 %v1184_v23, %v1183_v6  ;;  %v1182_v17 = vmul.f32 %v2395_v3, %v3094_v53 }
 0x189   :  { %v1933_v56 = vpack.c.bf16 %v1216_v24, %v1215_v60  ;;  %v1214_v41 = vmul.f32 %v2397_v27, %v3106_v36 }
 0x18a   :  { %1949 = vst [vmem:[%s3172_s4 + $0x78] sm:$0xff] %v1853_v10   ;;  %v1848_v21 = vpack.c.bf16 %v1182_v17, %v1181_v2 }
 0x18b   :  { %1965 = vst [vmem:[%s3172_s4 + $0xf8] sm:$0xff] %v1933_v56   ;;  %v1928_v57 = vpack.c.bf16 %v1214_v41, %v1213_v20 }
 0x18c   :  { %1948 = vst [vmem:[%s3172_s4 + $0x70] sm:$0xff] %v1848_v21  }
 0x18d   :  { %1964 = vst [vmem:[%s3172_s4 + $0xf0] sm:$0xff] %v1928_v57  }

// kernel: _lambda_.19
= control target key start
LH: loop header
LB: loop body
LE: loop exit
PB: predicated region body
PF: predicated region fallthrough
CT: control target
= control target key end

     0   :  { %s1153_s18 = smov 0   ;;  %s1439_s0 = inlined_call_operand.vmem [shape: bf16[2,36,9,128], index: 0, kind: input, shape index: {}]   ;;  %s1440_s1 = inlined_call_operand.vmem [shape: f32[9,1,128], index: 1, kind: input, shape index: {}]   ;;  %s1441_s2 = inlined_call_operand.vmem [shape: f32[1,128], index: 2, kind: input, shape index: {}]   ;;  %s1442_s3 = inlined_call_operand.vmem [shape: f32[1,128], index: 3, kind: input, shape index: {}]   ;;  %s1443_s4 = inlined_call_operand.vmem [shape: bf16[2,8,8,128], index: 4, kind: output, shape index: {0}]   ;;  %s1444_s5 = inlined_call_operand.vmem [shape: f32[2,1,128], index: 5, kind: output, shape index: {1}]  }
   0x1 LB: > { %s957_s19 = sadd.s32 4294967295, %s1121_s18   ;;  %p961_p0 = scmp.ge.s32.totalorder %s1121_s18, 1  ;;  %s1121_s18 = sphi %s1153_s18, %s16_s18  }
   0x2   : > { %p190_p1 = scmp.lt.s32.totalorder %s1121_s18, 3 }
   0x4   : > { %p191_p2 = pnand %p961_p0, %p190_p1 }
   0x5   : > { %p221_p3 = scmp.lt.s32.totalorder (!%p191_p2), %s957_s19, 1  ;;  %v965_v0 = vld [vmem:[%s1440_s1] ss:$0 sm:$0xff] (!%p191_p2)  ;;  %v975_v25 = vld [vmem:[%s1440_s1 + $0x1] ss:$0 sm:$0xff] (!%p191_p2)  ;;  %vm362_vm0 = vcmask (!%p191_p2), 1046528  }
   0x6   : > { %194 = sbr.rel (%p191_p2) target bundleno = 155 (0x9b), region = 36  ;;  %v977_v58 = vld [vmem:[%s1440_s1 + $0x2] ss:$0 sm:$0xff] (!%p191_p2) }
   0xd   : > { %s1446_s19 = smov (!%p221_p3, %s957_s19), 1 }
   0xe   : > { %s1074_s20 = smul.u32 288, %s1446_s19  ;;  %s233_s29 = scalar_lea.vmem %s1444_s5, %s1446_s19 }
  0x10   : > { %s1167_s23 = scalar_lea.vmem %s1439_s0, %s1074_s20 }
  0x11   : > { %v1173_v1 = vld [vmem:[%s1167_s23] ss:$8 sps:$4 sm:$0xff]   ;;  %v1176_v2 = vld [vmem:[%s1167_s23 + $0x10] ss:$8 sps:$4 sm:$0xff]   ;;  %v306_v38 = vld [vmem:[%s1167_s23 + $0x4] sm:$0x1] }
  0x12   : > { %v1179_v3 = vld [vmem:[%s1167_s23 + $0x20] ss:$8 sps:$4 sm:$0xff]   ;;  %v1182_v4 = vld [vmem:[%s1167_s23 + $0x30] ss:$8 sps:$4 sm:$0xff]   ;;  %v243_v5 = vunpack.c.l.bf16 %v1173_v1  ;;  %v244_v6 = vunpack.c.h.bf16 %v1173_v1  ;;  %v245_v7 = vunpack.c.l.bf16 %v1176_v2  ;;  %v246_v8 = vunpack.c.h.bf16 %v1176_v2  ;;  %v307_v39 = vld [vmem:[%s1167_s23 + $0xc] sm:$0x1] }
  0x13   : > { %v247_v9 = vunpack.c.l.bf16 %v1179_v3  ;;  %v248_v10 = vunpack.c.h.bf16 %v1179_v3  ;;  %v249_v11 = vunpack.c.l.bf16 %v1182_v4  ;;  %v250_v12 = vunpack.c.h.bf16 %v1182_v4  ;;  %v966_v13 = vld [vmem:[%s1167_s23 + $0x48] ss:$8 sps:$4 sm:$0xff]   ;;  %v968_v14 = vld [vmem:[%s1167_s23 + $0x58] ss:$8 sps:$4 sm:$0xff]   ;;  %v308_v44 = vld [vmem:[%s1167_s23 + $0x14] sm:$0x1] }
  0x14   : > { %v257_v15 = vmul.f32 %v965_v0, %v243_v5  ;;  %v258_v16 = vmul.f32 %v965_v0, %v244_v6  ;;  %v259_v17 = vmul.f32 %v965_v0, %v245_v7  ;;  %v260_v18 = vmul.f32 %v965_v0, %v246_v8  ;;  %v970_v19 = vld [vmem:[%s1167_s23 + $0x68] ss:$8 sps:$4 sm:$0xff]   ;;  %v972_v20 = vld [vmem:[%s1167_s23 + $0x78] ss:$8 sps:$4 sm:$0xff]   ;;  %v309_v45 = vld [vmem:[%s1167_s23 + $0x1c] sm:$0x1] }
  0x15   : > { %v261_v21 = vmul.f32 %v965_v0, %v247_v9  ;;  %v262_v22 = vmul.f32 %v965_v0, %v248_v10  ;;  %v263_v23 = vmul.f32 %v965_v0, %v249_v11  ;;  %v264_v24 = vmul.f32 %v965_v0, %v250_v12  ;;  %v310_v46 = vld [vmem:[%s1167_s23 + $0x24] sm:$0x1]  ;;  %v311_v51 = vld [vmem:[%s1167_s23 + $0x2c] sm:$0x1]  ;;  %v312_v52 = vld [vmem:[%s1167_s23 + $0x34] sm:$0x1] }
  0x16   : > { %v276_v26 = vunpack.c.l.bf16 %v966_v13  ;;  %v277_v27 = vunpack.c.h.bf16 %v966_v13  ;;  %v278_v28 = vunpack.c.l.bf16 %v968_v14  ;;  %v279_v29 = vunpack.c.h.bf16 %v968_v14  ;;  %v313_v53 = vld [vmem:[%s1167_s23 + $0x3c] sm:$0x1] }
  0x17   : > { %v280_v30 = vunpack.c.l.bf16 %v970_v19  ;;  %v281_v31 = vunpack.c.h.bf16 %v970_v19  ;;  %v282_v32 = vunpack.c.l.bf16 %v972_v20  ;;  %v283_v33 = vunpack.c.h.bf16 %v972_v20 }
  0x18   : > { %v290_v34 = vmul.f32 %v975_v25, %v276_v26  ;;  %v291_v35 = vmul.f32 %v975_v25, %v277_v27  ;;  %v292_v36 = vmul.f32 %v975_v25, %v278_v28  ;;  %v293_v37 = vmul.f32 %v975_v25, %v279_v29 }
  0x19   : > { %v294_v40 = vmul.f32 %v975_v25, %v280_v30  ;;  %v295_v41 = vmul.f32 %v975_v25, %v281_v31  ;;  %v296_v42 = vmul.f32 %v975_v25, %v282_v32  ;;  %v297_v43 = vmul.f32 %v975_v25, %v283_v33 }
  0x1a   : > { %v298_v47 = vadd.f32 %v290_v34, %v257_v15  ;;  %v299_v48 = vadd.f32 %v291_v35, %v258_v16  ;;  %v300_v49 = vadd.f32 %v292_v36, %v259_v17  ;;  %v301_v50 = vadd.f32 %v293_v37, %v260_v18 }
  0x1b   : > { %v302_v54 = vadd.f32 %v294_v40, %v261_v21  ;;  %v303_v55 = vadd.f32 %v295_v41, %v262_v22  ;;  %v304_v56 = vadd.f32 %v296_v42, %v263_v23  ;;  %v1223_v57 = vadd.f32 %v297_v43, %v264_v24 }
  0x1c   : > { %v316_v59 = vunpack.c.l.bf16 %v306_v38  ;;  %v317_v60 = vunpack.c.l.bf16 %v307_v39  ;;  %v318_v61 = vunpack.c.l.bf16 %v308_v44  ;;  %v319_v62 = vunpack.c.l.bf16 %v309_v45  ;;  %v1250_v39 = vld [vmem:[%s1167_s23 + $0x90] ss:$8 sps:$4 sm:$0xff]   ;;  %v1254_v44 = vld [vmem:[%s1167_s23 + $0xa0] ss:$8 sps:$4 sm:$0xff]  }
  0x1d   : > { %v320_v63 = vunpack.c.l.bf16 %v310_v46  ;;  %v321_v0 = vunpack.c.l.bf16 %v311_v51  ;;  %v322_v13 = vunpack.c.l.bf16 %v312_v52  ;;  %v323_v14 = vunpack.c.l.bf16 %v313_v53  ;;  %v1258_v53 = vld [vmem:[%s1167_s23 + $0xb0] ss:$8 sps:$4 sm:$0xff]  }
  0x1e   : > { %v330_v15 = vmul.f32 %v977_v58, %v243_v5  ;;  %v331_v16 = vmul.f32 %v977_v58, %v316_v59  ;;  %v332_v17 = vmul.f32 %v977_v58, %v244_v6  ;;  %v333_v18 = vmul.f32 %v977_v58, %v317_v60 }
  0x1f   : > { %v334_v19 = vmul.f32 %v977_v58, %v245_v7  ;;  %v335_v20 = vmul.f32 %v977_v58, %v318_v61  ;;  %v336_v21 = vmul.f32 %v977_v58, %v246_v8  ;;  %v337_v22 = vmul.f32 %v977_v58, %v319_v62 }
  0x20   : > { %v338_v23 = vmul.f32 %v977_v58, %v247_v9  ;;  %v339_v24 = vmul.f32 %v977_v58, %v320_v63  ;;  %v340_v5 = vmul.f32 %v977_v58, %v248_v10  ;;  %v341_v25 = vmul.f32 %v977_v58, %v321_v0 }
  0x21   : > { %v342_v1 = vmul.f32 %v977_v58, %v249_v11  ;;  %v343_v6 = vmul.f32 %v977_v58, %v322_v13  ;;  %v344_v7 = vmul.f32 %v977_v58, %v250_v12  ;;  %v345_v26 = vmul.f32 %v977_v58, %v323_v14  ;;  %v1261_v58 = vld [vmem:[%s1167_s23 + $0xc0] ss:$8 sps:$4 sm:$0xff]  }
  0x22   : > { %v363_v27 = vrot.slane %v330_v15, 1  ;;  %v364_v2 = vrot.slane %v331_v16, 1  ;;  %v366_v8 = vrot.slane %v332_v17, 1  ;;  %v367_v28 = vrot.slane %v333_v18, 1 }
  0x23   : > { %v369_v29 = vrot.slane %v334_v19, 1  ;;  %v370_v9 = vrot.slane %v335_v20, 1  ;;  %v372_v30 = vrot.slane %v336_v21, 1  ;;  %v373_v31 = vrot.slane %v337_v22, 1  ;;  %v988_v20 = vld [vmem:[%s1167_s23 + $0xd8] ss:$8 sps:$4 sm:$0xff]  }
  0x24   : > { %v365_v3 = vsel %vm362_vm0, %v363_v27, %v364_v2  ;;  %v368_v10 = vsel %vm362_vm0, %v366_v8, %v367_v28  ;;  %v375_v11 = vrot.slane %v338_v23, 1  ;;  %v376_v32 = vrot.slane %v339_v24, 1  ;;  %v990_v21 = vld [vmem:[%s1167_s23 + $0xe8] ss:$8 sps:$4 sm:$0xff]   ;;  %v997_v2 = vld [vmem:[%s1440_s1 + $0x4] ss:$0 sm:$0xff] }
  0x25   : > { %v371_v4 = vsel %vm362_vm0, %v369_v29, %v370_v9  ;;  %v374_v12 = vsel %vm362_vm0, %v372_v30, %v373_v31  ;;  %v378_v33 = vrot.slane %v340_v5, 1  ;;  %v379_v34 = vrot.slane %v341_v25, 1  ;;  %v992_v25 = vld [vmem:[%s1167_s23 + $0xf8] ss:$8 sps:$4 sm:$0xff]  }
  0x26   : > { %v377_v35 = vsel %vm362_vm0, %v375_v11, %v376_v32  ;;  %v381_v36 = vrot.slane %v342_v1, 1  ;;  %v382_v37 = vrot.slane %v343_v6, 1  ;;  %v384_v38 = vrot.slane %v344_v7, 1  ;;  %v994_v1 = vld [vmem:[%s1167_s23 + $0x108] ss:$8 sps:$4 sm:$0xff]  }
  0x27   : > { %v380_v40 = vsel %vm362_vm0, %v378_v33, %v379_v34  ;;  %v385_v41 = vrot.slane %v345_v26, 1  ;;  %v395_v42 = vadd.f32 %v365_v3, %v298_v47  ;;  %v396_v43 = vadd.f32 %v368_v10, %v299_v48  ;;  %v987_v47 = vld [vmem:[%s1440_s1 + $0x3] ss:$0 sm:$0xff]  ;;  %v998_v33 = vld [vmem:[%s1167_s23 + $0x94] sm:$0x1] }
  0x28   : > { %v383_v45 = vsel %vm362_vm0, %v381_v36, %v382_v37  ;;  %v397_v46 = vadd.f32 %v371_v4, %v300_v49  ;;  %v398_v51 = vadd.f32 %v374_v12, %v301_v50  ;;  %v399_v52 = vadd.f32 %v377_v35, %v302_v54  ;;  %v999_v34 = vld [vmem:[%s1167_s23 + $0x9c] sm:$0x1] }
  0x29   : > { %v386_v59 = vsel %vm362_vm0, %v384_v38, %v385_v41  ;;  %v400_v60 = vadd.f32 %v380_v40, %v303_v55  ;;  %v401_v61 = vadd.f32 %v383_v45, %v304_v56  ;;  %v414_v48 = vunpack.c.l.bf16 %v1250_v39  ;;  %v1000_v40 = vld [vmem:[%s1167_s23 + $0xa4] sm:$0x1]  ;;  %v1001_v41 = vld [vmem:[%s1167_s23 + $0xac] sm:$0x1] }
  0x2a   : > { %v402_v62 = vadd.f32 %v386_v59, %v1223_v57  ;;  %v415_v49 = vunpack.c.h.bf16 %v1250_v39  ;;  %v416_v50 = vunpack.c.l.bf16 %v1254_v44  ;;  %v417_v54 = vunpack.c.h.bf16 %v1254_v44  ;;  %v1004_v59 = vld [vmem:[%s1167_s23 + $0xc4] sm:$0x1] }
  0x2b   : > { %v418_v63 = vunpack.c.l.bf16 %v1258_v53  ;;  %v419_v55 = vunpack.c.h.bf16 %v1258_v53  ;;  %v420_v56 = vunpack.c.l.bf16 %v1261_v58  ;;  %v421_v0 = vunpack.c.h.bf16 %v1261_v58 }
  0x2c   : > { %v428_v57 = vmul.f32 %v987_v47, %v414_v48  ;;  %v429_v13 = vmul.f32 %v987_v47, %v415_v49  ;;  %v430_v14 = vmul.f32 %v987_v47, %v416_v50  ;;  %v431_v15 = vmul.f32 %v987_v47, %v417_v54 }
  0x2d   : > { %v432_v16 = vmul.f32 %v987_v47, %v418_v63  ;;  %v433_v17 = vmul.f32 %v987_v47, %v419_v55  ;;  %v434_v18 = vmul.f32 %v987_v47, %v420_v56  ;;  %v435_v19 = vmul.f32 %v987_v47, %v421_v0 }
  0x2e   : > { %v436_v22 = vadd.f32 %v428_v57, %v395_v42  ;;  %v437_v23 = vadd.f32 %v429_v13, %v396_v43  ;;  %v438_v24 = vadd.f32 %v430_v14, %v397_v46  ;;  %v439_v5 = vadd.f32 %v431_v15, %v398_v51  ;;  %v1002_v42 = vld [vmem:[%s1167_s23 + $0xb4] sm:$0x1]  ;;  %v1007_v13 = vld [vmem:[%s1440_s1 + $0x5] ss:$0 sm:$0xff] }
  0x2f   : > { %v440_v6 = vadd.f32 %v432_v16, %v399_v52  ;;  %v441_v7 = vadd.f32 %v433_v17, %v400_v60  ;;  %v442_v26 = vadd.f32 %v434_v18, %v401_v61  ;;  %v443_v27 = vadd.f32 %v435_v19, %v402_v62  ;;  %v1003_v52 = vld [vmem:[%s1167_s23 + $0xbc] sm:$0x1]  ;;  %v1005_v60 = vld [vmem:[%s1167_s23 + $0xcc] sm:$0x1] }
  0x30   : > { %v455_v8 = vunpack.c.l.bf16 %v988_v20  ;;  %v456_v28 = vunpack.c.h.bf16 %v988_v20  ;;  %v457_v29 = vunpack.c.l.bf16 %v990_v21  ;;  %v458_v9 = vunpack.c.h.bf16 %v990_v21 }
  0x31   : > { %v459_v30 = vunpack.c.l.bf16 %v992_v25  ;;  %v460_v31 = vunpack.c.h.bf16 %v992_v25  ;;  %v461_v3 = vunpack.c.l.bf16 %v994_v1  ;;  %v462_v10 = vunpack.c.h.bf16 %v994_v1 }
  0x32   : > { %v469_v11 = vmul.f32 %v997_v2, %v455_v8  ;;  %v470_v32 = vmul.f32 %v997_v2, %v456_v28  ;;  %v471_v4 = vmul.f32 %v997_v2, %v457_v29  ;;  %v472_v12 = vmul.f32 %v997_v2, %v458_v9 }
  0x33   : > { %v473_v35 = vmul.f32 %v997_v2, %v459_v30  ;;  %v474_v36 = vmul.f32 %v997_v2, %v460_v31  ;;  %v475_v37 = vmul.f32 %v997_v2, %v461_v3  ;;  %v476_v38 = vmul.f32 %v997_v2, %v462_v10 }
  0x34   : > { %v477_v43 = vadd.f32 %v469_v11, %v436_v22  ;;  %v478_v45 = vadd.f32 %v470_v32, %v437_v23  ;;  %v479_v46 = vadd.f32 %v471_v4, %v438_v24  ;;  %v480_v51 = vadd.f32 %v472_v12, %v439_v5 }
  0x35   : > { %v481_v61 = vadd.f32 %v473_v35, %v440_v6  ;;  %v482_v47 = vadd.f32 %v474_v36, %v441_v7  ;;  %v483_v62 = vadd.f32 %v475_v37, %v442_v26  ;;  %v1307_v57 = vadd.f32 %v476_v38, %v443_v27 }
  0x36   : > { %v495_v14 = vunpack.c.l.bf16 %v998_v33  ;;  %v496_v15 = vunpack.c.l.bf16 %v999_v34  ;;  %v497_v16 = vunpack.c.l.bf16 %v1000_v40  ;;  %v498_v17 = vunpack.c.l.bf16 %v1001_v41  ;;  %v1334_v34 = vld [vmem:[%s1167_s23 + $0x8] ss:$8 sps:$4 sm:$0xff]   ;;  %v1338_v40 = vld [vmem:[%s1167_s23 + $0x18] ss:$8 sps:$4 sm:$0xff]  }
  0x37   : > { %v499_v18 = vunpack.c.l.bf16 %v1002_v42  ;;  %v500_v19 = vunpack.c.l.bf16 %v1003_v52  ;;  %v501_v20 = vunpack.c.l.bf16 %v1004_v59  ;;  %v502_v21 = vunpack.c.l.bf16 %v1005_v60  ;;  %v1342_v60 = vld [vmem:[%s1167_s23 + $0x28] ss:$8 sps:$4 sm:$0xff]  }
  0x38   : > { %v509_v22 = vmul.f32 %v1007_v13, %v414_v48  ;;  %v510_v23 = vmul.f32 %v1007_v13, %v495_v14  ;;  %v511_v24 = vmul.f32 %v1007_v13, %v415_v49  ;;  %v512_v5 = vmul.f32 %v1007_v13, %v496_v15 }
  0x39   : > { %v513_v25 = vmul.f32 %v1007_v13, %v416_v50  ;;  %v514_v1 = vmul.f32 %v1007_v13, %v497_v16  ;;  %v515_v6 = vmul.f32 %v1007_v13, %v417_v54  ;;  %v516_v7 = vmul.f32 %v1007_v13, %v498_v17 }
  0x3a   : > { %v517_v26 = vmul.f32 %v1007_v13, %v418_v63  ;;  %v518_v27 = vmul.f32 %v1007_v13, %v499_v18  ;;  %v519_v48 = vmul.f32 %v1007_v13, %v419_v55  ;;  %v520_v2 = vmul.f32 %v1007_v13, %v500_v19 }
  0x3b   : > { %v521_v39 = vmul.f32 %v1007_v13, %v420_v56  ;;  %v522_v49 = vmul.f32 %v1007_v13, %v501_v20  ;;  %v523_v50 = vmul.f32 %v1007_v13, %v421_v0  ;;  %v524_v8 = vmul.f32 %v1007_v13, %v502_v21  ;;  %v1345_v13 = vld [vmem:[%s1167_s23 + $0x38] ss:$8 sps:$4 sm:$0xff]  }
  0x3c   : > { %v541_v28 = vrot.slane %v509_v22, 1  ;;  %v542_v44 = vrot.slane %v510_v23, 1  ;;  %v544_v54 = vrot.slane %v511_v24, 1  ;;  %v545_v29 = vrot.slane %v512_v5, 1 }
  0x3d   : > { %v547_v9 = vrot.slane %v513_v25, 1  ;;  %v548_v63 = vrot.slane %v514_v1, 1  ;;  %v550_v30 = vrot.slane %v515_v6, 1  ;;  %v551_v31 = vrot.slane %v516_v7, 1  ;;  %v1018_v1 = vld [vmem:[%s1167_s23 + $0x50] ss:$8 sps:$4 sm:$0xff]  }
  0x3e   : > { %v543_v53 = vsel %vm362_vm0, %v541_v28, %v542_v44  ;;  %v546_v55 = vsel %vm362_vm0, %v544_v54, %v545_v29  ;;  %v553_v56 = vrot.slane %v517_v26, 1  ;;  %v554_v3 = vrot.slane %v518_v27, 1  ;;  %v1020_v6 = vld [vmem:[%s1167_s23 + $0x60] ss:$8 sps:$4 sm:$0xff]   ;;  %v1027_v44 = vld [vmem:[%s1440_s1 + $0x7] ss:$0 sm:$0xff] }
  0x3f   : > { %v549_v58 = vsel %vm362_vm0, %v547_v9, %v548_v63  ;;  %v552_v0 = vsel %vm362_vm0, %v550_v30, %v551_v31  ;;  %v556_v10 = vrot.slane %v519_v48, 1  ;;  %v557_v11 = vrot.slane %v520_v2, 1  ;;  %v1022_v2 = vld [vmem:[%s1167_s23 + $0x70] ss:$8 sps:$4 sm:$0xff]  }
  0x40   : > { %v555_v32 = vsel %vm362_vm0, %v553_v56, %v554_v3  ;;  %v559_v4 = vrot.slane %v521_v39, 1  ;;  %v560_v12 = vrot.slane %v522_v49, 1  ;;  %v562_v33 = vrot.slane %v523_v50, 1  ;;  %v1024_v39 = vld [vmem:[%s1167_s23 + $0x80] ss:$8 sps:$4 sm:$0xff]  }
  0x41   : > { %v558_v35 = vsel %vm362_vm0, %v556_v10, %v557_v11  ;;  %v563_v36 = vrot.slane %v524_v8, 1  ;;  %v573_v37 = vadd.f32 %v543_v53, %v477_v43  ;;  %v574_v38 = vadd.f32 %v546_v55, %v478_v45  ;;  %v1017_v43 = vld [vmem:[%s1440_s1 + $0x6] ss:$0 sm:$0xff]  ;;  %v1028_v10 = vld [vmem:[%s1167_s23 + $0xc] sm:$0x1] }
  0x42   : > { %v561_v41 = vsel %vm362_vm0, %v559_v4, %v560_v12  ;;  %v575_v42 = vadd.f32 %v549_v58, %v479_v46  ;;  %v576_v52 = vadd.f32 %v552_v0, %v480_v51  ;;  %v577_v59 = vadd.f32 %v555_v32, %v481_v61  ;;  %v1029_v11 = vld [vmem:[%s1167_s23 + $0x14] sm:$0x1] }
  0x43   : > { %v564_v14 = vsel %vm362_vm0, %v562_v33, %v563_v36  ;;  %v578_v15 = vadd.f32 %v558_v35, %v482_v47  ;;  %v579_v16 = vadd.f32 %v561_v41, %v483_v62  ;;  %v592_v45 = vunpack.c.l.bf16 %v1334_v34  ;;  %v1030_v35 = vld [vmem:[%s1167_s23 + $0x1c] sm:$0x1]  ;;  %v1031_v36 = vld [vmem:[%s1167_s23 + $0x24] sm:$0x1] }
  0x44   : > { %v580_v17 = vadd.f32 %v564_v14, %v1307_v57  ;;  %v593_v46 = vunpack.c.h.bf16 %v1334_v34  ;;  %v594_v51 = vunpack.c.l.bf16 %v1338_v40  ;;  %v595_v61 = vunpack.c.h.bf16 %v1338_v40  ;;  %v1034_v14 = vld [vmem:[%s1167_s23 + $0x3c] sm:$0x1] }
  0x45   : > { %v596_v18 = vunpack.c.l.bf16 %v1342_v60  ;;  %v597_v47 = vunpack.c.h.bf16 %v1342_v60  ;;  %v598_v62 = vunpack.c.l.bf16 %v1345_v13  ;;  %v599_v19 = vunpack.c.h.bf16 %v1345_v13 }
  0x46   : > { %v606_v57 = vmul.f32 %v1017_v43, %v592_v45  ;;  %v607_v20 = vmul.f32 %v1017_v43, %v593_v46  ;;  %v608_v21 = vmul.f32 %v1017_v43, %v594_v51  ;;  %v609_v22 = vmul.f32 %v1017_v43, %v595_v61 }
  0x47   : > { %v610_v23 = vmul.f32 %v1017_v43, %v596_v18  ;;  %v611_v24 = vmul.f32 %v1017_v43, %v597_v47  ;;  %v612_v5 = vmul.f32 %v1017_v43, %v598_v62  ;;  %v613_v25 = vmul.f32 %v1017_v43, %v599_v19 }
  0x48   : > { %v614_v7 = vadd.f32 %v606_v57, %v573_v37  ;;  %v615_v26 = vadd.f32 %v607_v20, %v574_v38  ;;  %v616_v27 = vadd.f32 %v608_v21, %v575_v42  ;;  %v617_v48 = vadd.f32 %v609_v22, %v576_v52  ;;  %v1032_v37 = vld [vmem:[%s1167_s23 + $0x2c] sm:$0x1]  ;;  %v1037_v20 = vld [vmem:[%s1440_s1 + $0x8] ss:$0 sm:$0xff] }
  0x49   : > { %v618_v49 = vadd.f32 %v610_v23, %v577_v59  ;;  %v619_v50 = vadd.f32 %v611_v24, %v578_v15  ;;  %v620_v8 = vadd.f32 %v612_v5, %v579_v16  ;;  %v621_v28 = vadd.f32 %v613_v25, %v580_v17  ;;  %v1033_v59 = vld [vmem:[%s1167_s23 + $0x34] sm:$0x1]  ;;  %v1035_v15 = vld [vmem:[%s1167_s23 + $0x44] sm:$0x1]  ;;  %s1050_s23 = sshll.u32 %s1446_s19, 5 }
  0x4a   : > { %v633_v54 = vunpack.c.l.bf16 %v1018_v1  ;;  %v634_v29 = vunpack.c.h.bf16 %v1018_v1  ;;  %v635_v9 = vunpack.c.l.bf16 %v1020_v6  ;;  %v636_v63 = vunpack.c.h.bf16 %v1020_v6  ;;  %s230_s26 = scalar_lea.vmem %s1443_s4, %s1050_s23 }
  0x4b   : > { %v637_v30 = vunpack.c.l.bf16 %v1022_v2  ;;  %v638_v31 = vunpack.c.h.bf16 %v1022_v2  ;;  %v639_v53 = vunpack.c.l.bf16 %v1024_v39  ;;  %v640_v55 = vunpack.c.h.bf16 %v1024_v39 }
  0x4c   : > { %v647_v56 = vmul.f32 %v1027_v44, %v633_v54  ;;  %v648_v3 = vmul.f32 %v1027_v44, %v634_v29  ;;  %v649_v58 = vmul.f32 %v1027_v44, %v635_v9  ;;  %v650_v0 = vmul.f32 %v1027_v44, %v636_v63 }
  0x4d   : > { %v651_v32 = vmul.f32 %v1027_v44, %v637_v30  ;;  %v652_v4 = vmul.f32 %v1027_v44, %v638_v31  ;;  %v653_v12 = vmul.f32 %v1027_v44, %v639_v53  ;;  %v654_v33 = vmul.f32 %v1027_v44, %v640_v55 }
  0x4e   : > { %v655_v38 = vadd.f32 %v647_v56, %v614_v7  ;;  %v656_v41 = vadd.f32 %v648_v3, %v615_v26  ;;  %v657_v42 = vadd.f32 %v649_v58, %v616_v27  ;;  %v658_v52 = vadd.f32 %v650_v0, %v617_v48 }
  0x4f   : > { %v659_v16 = vadd.f32 %v651_v32, %v618_v49  ;;  %v660_v43 = vadd.f32 %v652_v4, %v619_v50  ;;  %v661_v17 = vadd.f32 %v653_v12, %v620_v8  ;;  %v662_v57 = vadd.f32 %v654_v33, %v621_v28 }
  0x50   : > { %v673_v21 = vunpack.c.l.bf16 %v1028_v10  ;;  %v674_v22 = vunpack.c.l.bf16 %v1029_v11  ;;  %v675_v23 = vunpack.c.l.bf16 %v1030_v35  ;;  %v676_v24 = vunpack.c.l.bf16 %v1031_v36  ;;  %v1038_v11 = vld [vmem:[%s1441_s2] ss:$0 sm:$0xff] }
  0x51   : > { %v677_v5 = vunpack.c.l.bf16 %v1032_v37  ;;  %v678_v25 = vunpack.c.l.bf16 %v1033_v59  ;;  %v679_v1 = vunpack.c.l.bf16 %v1034_v14  ;;  %v680_v6 = vunpack.c.l.bf16 %v1035_v15  ;;  %v1039_v14 = vld [vmem:[%s1442_s3] ss:$0 sm:$0xff] }
  0x52   : > { %v687_v7 = vmul.f32 %v1037_v20, %v592_v45  ;;  %v688_v26 = vmul.f32 %v1037_v20, %v673_v21  ;;  %v689_v27 = vmul.f32 %v1037_v20, %v593_v46  ;;  %v690_v48 = vmul.f32 %v1037_v20, %v674_v22 }
  0x53   : > { %v691_v2 = vmul.f32 %v1037_v20, %v594_v51  ;;  %v692_v39 = vmul.f32 %v1037_v20, %v675_v23  ;;  %v693_v49 = vmul.f32 %v1037_v20, %v595_v61  ;;  %v694_v50 = vmul.f32 %v1037_v20, %v676_v24 }
  0x54   : > { %v695_v8 = vmul.f32 %v1037_v20, %v596_v18  ;;  %v696_v28 = vmul.f32 %v1037_v20, %v677_v5  ;;  %v697_v45 = vmul.f32 %v1037_v20, %v597_v47  ;;  %v698_v44 = vmul.f32 %v1037_v20, %v678_v25 }
  0x55   : > { %v699_v34 = vmul.f32 %v1037_v20, %v598_v62  ;;  %v700_v46 = vmul.f32 %v1037_v20, %v679_v1  ;;  %v701_v51 = vmul.f32 %v1037_v20, %v599_v19  ;;  %v702_v54 = vmul.f32 %v1037_v20, %v680_v6 }
  0x56   : > { %v719_v29 = vrot.slane %v687_v7, 1  ;;  %v720_v40 = vrot.slane %v688_v26, 1  ;;  %v722_v61 = vrot.slane %v689_v27, 1  ;;  %v723_v9 = vrot.slane %v690_v48, 1 }
  0x57   : > { %v725_v63 = vrot.slane %v691_v2, 1  ;;  %v726_v30 = vrot.slane %v692_v39, 1  ;;  %v728_v18 = vrot.slane %v693_v49, 1  ;;  %v729_v31 = vrot.slane %v694_v50, 1 }
  0x58   : > { %v721_v60 = vsel %vm362_vm0, %v719_v29, %v720_v40  ;;  %v724_v47 = vsel %vm362_vm0, %v722_v61, %v723_v9  ;;  %v731_v53 = vrot.slane %v695_v8, 1  ;;  %v732_v55 = vrot.slane %v696_v28, 1 }
  0x59   : > { %v727_v62 = vsel %vm362_vm0, %v725_v63, %v726_v30  ;;  %v730_v13 = vsel %vm362_vm0, %v728_v18, %v729_v31  ;;  %v734_v19 = vrot.slane %v697_v45, 1  ;;  %v735_v56 = vrot.slane %v698_v44, 1 }
  0x5a   : > { %v733_v3 = vsel %vm362_vm0, %v731_v53, %v732_v55  ;;  %v737_v58 = vrot.slane %v699_v34, 1  ;;  %v738_v0 = vrot.slane %v700_v46, 1  ;;  %v740_v10 = vrot.slane %v701_v51, 1 }
  0x5b   : > { %v736_v32 = vsel %vm362_vm0, %v734_v19, %v735_v56  ;;  %v741_v4 = vrot.slane %v702_v54, 1  ;;  %v751_v12 = vadd.f32 %v721_v60, %v655_v38  ;;  %v752_v33 = vadd.f32 %v724_v47, %v656_v41 }
  0x5c   : > { %v739_v35 = vsel %vm362_vm0, %v737_v58, %v738_v0  ;;  %v753_v36 = vadd.f32 %v727_v62, %v657_v42  ;;  %v754_v37 = vadd.f32 %v730_v13, %v658_v52  ;;  %v755_v59 = vadd.f32 %v733_v3, %v659_v16 }
  0x5d   : > { %v742_v15 = vsel %vm362_vm0, %v740_v10, %v741_v4  ;;  %v756_v20 = vadd.f32 %v736_v32, %v660_v43  ;;  %v757_v21 = vadd.f32 %v739_v35, %v661_v17  ;;  %v766_v22 = vmul.f32 %v1038_v11, %v751_v12 }
  0x5e   : > { %v758_v23 = vadd.f32 %v742_v15, %v662_v57  ;;  %v767_v24 = vmul.f32 %v1038_v11, %v752_v33  ;;  %v768_v5 = vmul.f32 %v1038_v11, %v753_v36  ;;  %v769_v25 = vmul.f32 %v1038_v11, %v754_v37 }
  0x5f   : > { %v770_v38 = vmul.f32 %v1038_v11, %v755_v59  ;;  %v771_v41 = vmul.f32 %v1038_v11, %v756_v20  ;;  %v772_v1 = vmul.f32 %v1038_v11, %v757_v21  ;;  %v781_v6 = vadd.f32 %v1039_v14, %v766_v22 }
  0x60   : > { %v773_v42 = vmul.f32 %v1038_v11, %v758_v23  ;;  %v782_v52 = vadd.f32 %v1039_v14, %v767_v24  ;;  %v783_v16 = vadd.f32 %v1039_v14, %v768_v5  ;;  %v784_v7 = vadd.f32 %v1039_v14, %v769_v25 }
  0x61   : > { %v785_v26 = vadd.f32 %v1039_v14, %v770_v38  ;;  %v786_v27 = vadd.f32 %v1039_v14, %v771_v41  ;;  %v1424_v48 = vadd.f32 %v1039_v14, %v772_v1  ;;  %v1040_v2 = vmul.f32 -1.442695, %v781_v6 }
  0x62   : > { %v788_v43 = vadd.f32 %v1039_v14, %v773_v42  ;;  %v1041_v17 = vmul.f32 -1.442695, %v782_v52  ;;  %v1042_v39 = vmul.f32 -1.442695, %v783_v16  ;;  %v1043_v57 = vmul.f32 -1.442695, %v784_v7 }
  0x63   : > { %1083 = vpow2.f32 %v1040_v2  ;;  %v1044_v49 = vmul.f32 -1.442695, %v785_v26  ;;  %v1045_v50 = vmul.f32 -1.442695, %v786_v27  ;;  %v1046_v8 = vmul.f32 -1.442695, %v1424_v48 }
  0x64   : > { %1085 = vpow2.f32 %v1041_v17  ;;  %v1047_v28 = vmul.f32 -1.442695, %v788_v43 }
  0x65   : > { %1087 = vpow2.f32 %v1042_v39 }
  0x66   : > { %1089 = vpow2.f32 %v1043_v57 }
  0x67   : > { %1091 = vpow2.f32 %v1044_v49 }
  0x68   : > { %1093 = vpow2.f32 %v1045_v50 }
  0x69   : > { %1095 = vpow2.f32 %v1046_v8 }
  0x6a   : > { %1097 = vpow2.f32 %v1047_v28 }
  0x6d   : > { %v1084_v45 = vpop.eup %1083 }
  0x6e   : > { %v1086_v44 = vpop.eup %1085  ;;  %v813_v34 = vadd.f32 1.0, %v1084_v45 }
  0x6f   : > { %v1088_v46 = vpop.eup %1087  ;;  %v814_v51 = vadd.f32 1.0, %v1086_v44 }
  0x70   : > { %v1090_v54 = vpop.eup %1089  ;;  %v815_v29 = vadd.f32 1.0, %v1088_v46  ;;  %1099 = vrcp.f32 %v813_v34 }
  0x71   : > { %v1092_v40 = vpop.eup %1091  ;;  %v816_v61 = vadd.f32 1.0, %v1090_v54  ;;  %1101 = vrcp.f32 %v814_v51 }
  0x72   : > { %v1094_v9 = vpop.eup %1093  ;;  %v817_v63 = vadd.f32 1.0, %v1092_v40  ;;  %1103 = vrcp.f32 %v815_v29 }
  0x73   : > { %v1096_v30 = vpop.eup %1095  ;;  %v818_v18 = vadd.f32 1.0, %v1094_v9  ;;  %1105 = vrcp.f32 %v816_v61 }
  0x74   : > { %v1098_v31 = vpop.eup %1097  ;;  %v819_v60 = vadd.f32 1.0, %v1096_v30  ;;  %1107 = vrcp.f32 %v817_v63 }
  0x75   : > { %v820_v47 = vadd.f32 1.0, %v1098_v31  ;;  %1109 = vrcp.f32 %v818_v18 }
  0x76   : > { %1111 = vrcp.f32 %v819_v60 }
  0x77   : > { %1113 = vrcp.f32 %v820_v47 }
  0x7a   : > { %v1100_v53 = vpop.eup %1099 }
  0x7b   : > { %v1102_v55 = vpop.eup %1101  ;;  %v837_v62 = vmul.f32 %v1100_v53, %v781_v6 }
  0x7c   : > { %v1104_v13 = vpop.eup %1103  ;;  %v838_v19 = vmul.f32 %v1102_v55, %v782_v52 }
  0x7d   : > { %v1106_v56 = vpop.eup %1105  ;;  %v839_v3 = vmul.f32 %v1104_v13, %v783_v16 }
  0x7e   : > { %v1108_v58 = vpop.eup %1107  ;;  %v840_v0 = vmul.f32 %v1106_v56, %v784_v7  ;;  %v1054_v10 = vpack.c.bf16 %v838_v19, %v837_v62  ;;  %v861_v11 = vadd.f32 %v838_v19, %v837_v62 }
  0x7f   : > { %v1110_v32 = vpop.eup %1109  ;;  %v841_v12 = vmul.f32 %v1108_v58, %v785_v26 }
  0x80   : > { %v1112_v4 = vpop.eup %1111  ;;  %v842_v33 = vmul.f32 %v1110_v32, %v786_v27  ;;  %1055 = vst [vmem:[%s230_s26] sm:$0xff] %v1054_v10   ;;  %v1059_v35 = vpack.c.bf16 %v840_v0, %v839_v3  ;;  %v862_v36 = vadd.f32 %v861_v11, %v839_v3 }
  0x81   : > { %v1114_v37 = vpop.eup %1113  ;;  %v843_v59 = vmul.f32 %v1112_v4, %v1424_v48 }
  0x82   : > { %v844_v14 = vmul.f32 %v1114_v37, %v788_v43  ;;  %1071 = vst [vmem:[%s230_s26 + $0x8] sm:$0xff] %v1059_v35   ;;  %v1064_v15 = vpack.c.bf16 %v842_v33, %v841_v12  ;;  %v863_v20 = vadd.f32 %v862_v36, %v840_v0 }
  0x84   : > { %1072 = vst [vmem:[%s230_s26 + $0x10] sm:$0xff] %v1064_v15   ;;  %v1069_v21 = vpack.c.bf16 %v844_v14, %v843_v59  ;;  %v864_v22 = vadd.f32 %v863_v20, %v841_v12 }
  0x86   : > { %1073 = vst [vmem:[%s230_s26 + $0x18] sm:$0xff] %v1069_v21   ;;  %v865_v23 = vadd.f32 %v864_v22, %v842_v33 }
  0x88   : > { %v866_v24 = vadd.f32 %v865_v23, %v843_v59 }
  0x8a   : > { %v867_v5 = vadd.f32 %v866_v24, %v844_v14 }
  0x8c   : > { %v868_v25 = vrot.slane %v867_v5, 4 }
  0x8e   : > { %v869_v38 = vadd.f32 %v868_v25, %v867_v5 }
  0x90   : > { %v870_v41 = vrot.slane %v869_v38, 2 }
  0x92   : > { %v871_v1 = vadd.f32 %v870_v41, %v869_v38 }
  0x94   : > { %v872_v6 = vrot.slane %v871_v1, 1 }
  0x96   : > { %v873_v42 = vadd.f32 %v872_v6, %v871_v1 }
  0x98   : > { %v875_v52 = vmul.f32 0.015625, %v873_v42 }
  0x9a   : > { %876 = vst [vmem:[%s233_s29] sm:$0x1] %v875_v52 }
  0x9b PF: > { %s16_s18 = sadd.s32 1, %s1121_s18  }
  0x9c   : > { %p13_p4 = scmp.ge.s32.totalorder %s16_s18, 4  }
  0x9e   :  { %15 = sbr.rel (!%p13_p4) target bundleno = 1 (0x1), region = 91 }

// kernel: _lambda_.21
= control target key start
LH: loop header
LB: loop body
LE: loop exit
PB: predicated region body
PF: predicated region fallthrough
CT: control target
= control target key end

     0   :  { %s829_s18 = smov 0   ;;  %s831_s19 = smov 0   ;;  %s909_s0 = inlined_call_operand.vmem [shape: bf16[2,64,128], index: 0, kind: input, shape index: {}]   ;;  %s910_s1 = inlined_call_operand.vmem [shape: f32[2,1,128], index: 1, kind: input, shape index: {}]   ;;  %s911_s2 = inlined_call_operand.vmem [shape: bf16[128,128], index: 2, kind: input, shape index: {}]   ;;  %s912_s3 = inlined_call_operand.vmem [shape: f32[1,128], index: 3, kind: input, shape index: {}]   ;;  %s913_s4 = inlined_call_operand.vmem [shape: f32[1,128], index: 4, kind: input, shape index: {}]   ;;  %s914_s5 = inlined_call_operand.vmem [shape: bf16[2,64,128], index: 5, kind: output, shape index: {}]  }
   0x1   :  { %s833_s20 = smov 0  }
   0x2 LB: > { %s27_s21 = sadd.s32 1, %s793_s19  ;;  %p613_p0 = scmp.ge.s32.totalorder %s797_s20, 1  ;;  %s797_s20 = sphi %s833_s20, %s15_s20   ;;  %s793_s19 = sphi %s831_s19, %s916_s19   ;;  %s789_s18 = sphi %s829_s18, %s915_s18  }
   0x3   : > { %p29_p1 = scmp.ge.s32.totalorder %s27_s21, 2  ;;  %p216_p2 = scmp.lt.s32.totalorder %s797_s20, 3 }
   0x5   : > { %s918_s21 = smov (%p29_p1, %s27_s21), 0  ;;  %p217_p3 = pnand %p613_p0, %p216_p2 }
   0x6   : > { %v767_v0 = vld [vmem:[%s911_s2] sm:$0xff] (!%p217_p3)   ;;  %p256_p4 = scmp.lt.s32.totalorder (!%p217_p3), %s789_s18, 1  ;;  %v768_v1 = vld [vmem:[%s911_s2 + $0x8] sm:$0xff] (!%p217_p3)   ;;  %v769_v2 = vld [vmem:[%s911_s2 + $0x10] sm:$0xff] (!%p217_p3)  }
   0x7   : > { %220 = sbr.rel (%p217_p3) target bundleno = 262 (0x106), region = 40  ;;  %703 = vmatprep.subr.bf16.mxu0 (!%p217_p3), %v767_v0  ;;  %727 = vmatprep.subr.bf16.mxu1 (!%p217_p3), %v767_v0  ;;  %v770_v3 = vld [vmem:[%s911_s2 + $0x18] sm:$0xff] (!%p217_p3)   ;;  %v771_v14 = vld [vmem:[%s911_s2 + $0x20] sm:$0xff] (!%p217_p3)   ;;  %v772_v18 = vld [vmem:[%s911_s2 + $0x28] sm:$0xff] (!%p217_p3)  }
   0x8   : > { %704 = vmatpush3.bf16.msra.mxu0 (!%p217_p3), %v767_v0  ;;  %735 = vmatpush3.bf16.msra.mxu1 (!%p217_p3), %v767_v0  ;;  %v773_v21 = vld [vmem:[%s911_s2 + $0x30] sm:$0xff] (!%p217_p3)   ;;  %v774_v26 = vld [vmem:[%s911_s2 + $0x38] sm:$0xff] (!%p217_p3)   ;;  %v627_v33 = vld [vmem:[%s912_s3] ss:$0 sm:$0xff] (!%p217_p3) }
   0x9   : > { %705 = vmatprep.subr.bf16.mxu0 (!%p217_p3), %v768_v1  ;;  %728 = vmatprep.subr.bf16.mxu1 (!%p217_p3), %v768_v1  ;;  %v628_v40 = vld [vmem:[%s913_s4] ss:$0 sm:$0xff] (!%p217_p3) }
   0xc   : > { %706 = vmatpush3.bf16.msra.mxu0 (!%p217_p3), %v768_v1  ;;  %736 = vmatpush3.bf16.msra.mxu1 (!%p217_p3), %v768_v1 }
   0xd   : > { %707 = vmatprep.subr.bf16.mxu0 (!%p217_p3), %v769_v2  ;;  %729 = vmatprep.subr.bf16.mxu1 (!%p217_p3), %v769_v2 }
   0xe   : > { %s920_s18 = smov (!%p256_p4, %s789_s18), 1 }
   0xf   : > { %s639_s28 = sshll.u32 %s920_s18, 5  ;;  %s267_s9 = scalar_lea.vmem %s910_s1, %s920_s18 }
  0x10   : > { %s864_s6 = scalar_lea.vmem %s909_s0, %s639_s28  ;;  %v618_v5 = vld [vmem:[%s267_s9] ss:$0 sm:$0xff]  ;;  %708 = vmatpush3.bf16.msra.mxu0 %v769_v2  ;;  %737 = vmatpush3.bf16.msra.mxu1 %v769_v2 }
  0x11   : > { %v650_v4 = vld [vmem:[%s864_s6] sm:$0xff]   ;;  %v686_v6 = vld [vmem:[%s864_s6 + $0x10] sm:$0xff]   ;;  %709 = vmatprep.subr.bf16.mxu0 %v770_v3  ;;  %730 = vmatprep.subr.bf16.mxu1 %v770_v3  ;;  %v685_v19 = vld [vmem:[%s864_s6 + $0x8] sm:$0xff]  }
  0x12   : > { %v651_v7 = vunpack.c.l.bf16 %v650_v4  ;;  %v652_v8 = vunpack.c.h.bf16 %v650_v4  ;;  %v659_v9 = vunpack.c.l.bf16 %v686_v6  ;;  %v660_v10 = vunpack.c.h.bf16 %v686_v6  ;;  %v687_v20 = vld [vmem:[%s864_s6 + $0x18] sm:$0xff]   ;;  %s276_s6 = scalar_lea.vmem %s914_s5, %s639_s28 }
  0x13   : > { %v655_v22 = vunpack.c.l.bf16 %v685_v19  ;;  %v656_v23 = vunpack.c.h.bf16 %v685_v19  ;;  %v663_v24 = vunpack.c.l.bf16 %v687_v20  ;;  %v664_v25 = vunpack.c.h.bf16 %v687_v20 }
  0x14   : > { %v302_v11 = vmul.f32 %v651_v7, %v618_v5  ;;  %v303_v12 = vmul.f32 %v652_v8, %v618_v5  ;;  %v306_v13 = vmul.f32 %v659_v9, %v618_v5  ;;  %v307_v15 = vmul.f32 %v660_v10, %v618_v5  ;;  %710 = vmatpush3.bf16.msra.mxu0 %v770_v3 }
  0x15   : > { %738 = vmatpush3.bf16.msra.mxu1 %v770_v3  ;;  %711 = vmatprep.subr.bf16.mxu0 %v771_v14  ;;  %v304_v27 = vmul.f32 %v655_v22, %v618_v5  ;;  %v305_v28 = vmul.f32 %v656_v23, %v618_v5  ;;  %v308_v29 = vmul.f32 %v663_v24, %v618_v5 }
  0x16   : > { %v310_v16 = vpack.c.bf16 %v303_v12, %v302_v11  ;;  %v312_v17 = vpack.c.bf16 %v307_v15, %v306_v13  ;;  %731 = vmatprep.subr.bf16.mxu1 %v771_v14  ;;  %v309_v30 = vmul.f32 %v664_v25, %v618_v5 }
  0x17   : > { %v311_v31 = vpack.c.bf16 %v305_v28, %v304_v27 }
  0x18   : > { %719 = vmatprep.mubr.bf16.mxu0 %v310_v16  ;;  %723 = vmatprep.mubr.bf16.mxu1 %v312_v17  ;;  %v313_v32 = vpack.c.bf16 %v309_v30, %v308_v29 }
  0x19   : > { %712 = vmatpush3.bf16.msra.mxu0 %v771_v14  ;;  %739 = vmatpush3.bf16.msra.mxu1 %v771_v14 }
  0x1a   : > { %713 = vmatprep.subr.bf16.mxu0 %v772_v18  ;;  %732 = vmatprep.subr.bf16.mxu1 %v772_v18 }
  0x1d   : > { %714 = vmatpush3.bf16.msra.mxu0 %v772_v18  ;;  %740 = vmatpush3.bf16.msra.mxu1 %v772_v18 }
  0x1e   : > { %715 = vmatprep.subr.bf16.mxu0 %v773_v21  ;;  %733 = vmatprep.subr.bf16.mxu1 %v773_v21 }
  0x21   : > { %716 = vmatpush3.bf16.msra.mxu0 %v773_v21  ;;  %741 = vmatpush3.bf16.msra.mxu1 %v773_v21 }
  0x22   : > { %717 = vmatprep.subr.bf16.mxu0 %v774_v26  ;;  %734 = vmatprep.subr.bf16.mxu1 %v774_v26 }
  0x25   : > { %718 = vmatpush3.bf16.msra.mxu0 %v774_v26  ;;  %742 = vmatpush3.bf16.msra.mxu1 %v774_v26 }
  0x28   : > { %720 = vmatmul.mubr.bf16.vlgmr.msra.gmra.mrb[0].mxu0 %v311_v31  ;;  %724 = vmatmul.mubr.bf16.vlgmr.msra.gmra.mrb[0].mxu1 %v313_v32 }
  0xfb   : > { %v721_v34 = vpop.f32.mrb[0].mxu0  ;;  %v725_v35 = vpop.f32.mrb[0].mxu1 }
  0xfc   : > { %v452_v36 = vmul.f32 %v721_v34, %v627_v33  ;;  %v456_v37 = vmul.f32 %v725_v35, %v627_v33  ;;  %v412_v38 = vpop.f32.mrb[1].mxu0  ;;  %v428_v39 = vpop.f32.mrb[1].mxu1 }
  0xfd   : > { %v450_v41 = vmul.f32 %v627_v33, %v412_v38  ;;  %v454_v42 = vmul.f32 %v627_v33, %v428_v39  ;;  %v722_v43 = vpop.f32.mrb[2].mxu0  ;;  %v726_v44 = vpop.f32.mrb[2].mxu1 }
  0xfe   : > { %v453_v45 = vmul.f32 %v722_v43, %v627_v33  ;;  %v457_v46 = vmul.f32 %v726_v44, %v627_v33  ;;  %v415_v47 = vpop.f32.mrb[3].mxu0  ;;  %v431_v48 = vpop.f32.mrb[3].mxu1  ;;  %v467_v51 = vadd.f32 %v628_v40, %v452_v36  ;;  %v471_v52 = vadd.f32 %v628_v40, %v456_v37 }
  0xff   : > { %v451_v49 = vmul.f32 %v627_v33, %v415_v47  ;;  %v455_v50 = vmul.f32 %v627_v33, %v431_v48  ;;  %v465_v55 = vadd.f32 %v628_v40, %v450_v41  ;;  %v469_v56 = vadd.f32 %v628_v40, %v454_v42 }
 0x100   : > { %v468_v53 = vadd.f32 %v628_v40, %v453_v45  ;;  %v472_v54 = vadd.f32 %v628_v40, %v457_v46 }
 0x101   : > { %v466_v57 = vadd.f32 %v628_v40, %v451_v49  ;;  %v470_v58 = vadd.f32 %v628_v40, %v455_v50 }
 0x102   : > { %v673_v59 = vpack.c.bf16 %v468_v53, %v467_v51  ;;  %v683_v60 = vpack.c.bf16 %v472_v54, %v471_v52 }
 0x103   : > { %v668_v61 = vpack.c.bf16 %v466_v57, %v465_v55  ;;  %v678_v62 = vpack.c.bf16 %v470_v58, %v469_v56 }
 0x104   : > { %688 = vst [vmem:[%s276_s6 + $0x8] sm:$0xff] %v673_v59   ;;  %690 = vst [vmem:[%s276_s6 + $0x18] sm:$0xff] %v683_v60  }
 0x105   : > { %669 = vst [vmem:[%s276_s6] sm:$0xff] %v668_v61   ;;  %689 = vst [vmem:[%s276_s6 + $0x10] sm:$0xff] %v678_v62  }
 0x106 PF: > { %s15_s20 = sadd.s32 1, %s797_s20   ;;  %s915_s18 = smov %s793_s19 }
 0x107   : > { %p12_p5 = scmp.ge.s32.totalorder %s15_s20, 4   ;;  %s916_s19 = smov %s918_s21 }
 0x109   :  { %14 = sbr.rel (!%p12_p5) target bundleno = 2 (0x2), region = 73 }

// kernel: _lambda_.22
= control target key start
LH: loop header
LB: loop body
LE: loop exit
PB: predicated region body
PF: predicated region fallthrough
CT: control target
= control target key end

     0   :  { %s945_s1 = inlined_call_operand.vmem [shape: bf16[128,128], index: 1, kind: input, shape index: {}]   ;;  %s946_s0 = inlined_call_operand.vmem [shape: bf16[128,128], index: 0, kind: input, shape index: {}]   ;;  %s947_s2 = inlined_call_operand.vmem [shape: f32[1,128], index: 2, kind: input, shape index: {}]   ;;  %s948_s3 = inlined_call_operand.vmem [shape: f32[1,128], index: 3, kind: input, shape index: {}]   ;;  %s949_s4 = inlined_call_operand.vmem [shape: bf16[128,128], index: 4, kind: output, shape index: {}]  }
   0x1   :  { %v662_v0 = vld [vmem:[%s945_s1] sm:$0xff]   ;;  %v663_v1 = vld [vmem:[%s945_s1 + $0x8] sm:$0xff]   ;;  %v664_v2 = vld [vmem:[%s945_s1 + $0x10] sm:$0xff]  }
   0x2   :  { %614 = vmatprep.subr.bf16.mxu0 %v662_v0  ;;  %646 = vmatprep.subr.bf16.mxu1 %v662_v0  ;;  %v665_v3 = vld [vmem:[%s945_s1 + $0x18] sm:$0xff]   ;;  %v670_v4 = vld [vmem:[%s946_s0] sm:$0xff]   ;;  %v667_v7 = vld [vmem:[%s945_s1 + $0x28] sm:$0xff]  }
   0x3   :  { %615 = vmatpush3.bf16.msra.mxu0 %v662_v0  ;;  %654 = vmatpush3.bf16.msra.mxu1 %v662_v0  ;;  %v671_v5 = vld [vmem:[%s946_s0 + $0x20] sm:$0xff]   ;;  %v668_v8 = vld [vmem:[%s945_s1 + $0x30] sm:$0xff]   ;;  %v669_v9 = vld [vmem:[%s945_s1 + $0x38] sm:$0xff]  }
   0x4   :  { %616 = vmatprep.subr.bf16.mxu0 %v663_v1  ;;  %647 = vmatprep.subr.bf16.mxu1 %v663_v1  ;;  %v666_v6 = vld [vmem:[%s945_s1 + $0x20] sm:$0xff]   ;;  %v672_v10 = vld [vmem:[%s946_s0 + $0x8] sm:$0xff]   ;;  %v674_v12 = vld [vmem:[%s946_s0 + $0x10] sm:$0xff]  }
   0x5   :  { %630 = vmatprep.mubr.bf16.mxu0 %v670_v4  ;;  %638 = vmatprep.mubr.bf16.mxu1 %v671_v5  ;;  %v673_v11 = vld [vmem:[%s946_s0 + $0x28] sm:$0xff]   ;;  %v675_v13 = vld [vmem:[%s946_s0 + $0x30] sm:$0xff]   ;;  %v676_v14 = vld [vmem:[%s946_s0 + $0x18] sm:$0xff]  }
   0x6   :  { %v677_v15 = vld [vmem:[%s946_s0 + $0x38] sm:$0xff]   ;;  %v818_v16 = vld [vmem:[%s947_s2] ss:$0 sm:$0xff] }
   0x7   :  { %617 = vmatpush3.bf16.msra.mxu0 %v663_v1  ;;  %655 = vmatpush3.bf16.msra.mxu1 %v663_v1  ;;  %v823_v18 = vld [vmem:[%s948_s3] ss:$0 sm:$0xff] }
   0x8   :  { %618 = vmatprep.subr.bf16.mxu0 %v664_v2  ;;  %648 = vmatprep.subr.bf16.mxu1 %v664_v2 }
   0xb   :  { %619 = vmatpush3.bf16.msra.mxu0 %v664_v2  ;;  %656 = vmatpush3.bf16.msra.mxu1 %v664_v2 }
   0xc   :  { %620 = vmatprep.subr.bf16.mxu0 %v665_v3  ;;  %649 = vmatprep.subr.bf16.mxu1 %v665_v3 }
   0xf   :  { %621 = vmatpush3.bf16.msra.mxu0 %v665_v3  ;;  %657 = vmatpush3.bf16.msra.mxu1 %v665_v3 }
  0x10   :  { %622 = vmatprep.subr.bf16.mxu0 %v666_v6  ;;  %650 = vmatprep.subr.bf16.mxu1 %v666_v6 }
  0x13   :  { %623 = vmatpush3.bf16.msra.mxu0 %v666_v6  ;;  %658 = vmatpush3.bf16.msra.mxu1 %v666_v6 }
  0x14   :  { %624 = vmatprep.subr.bf16.mxu0 %v667_v7  ;;  %651 = vmatprep.subr.bf16.mxu1 %v667_v7 }
  0x17   :  { %625 = vmatpush3.bf16.msra.mxu0 %v667_v7  ;;  %659 = vmatpush3.bf16.msra.mxu1 %v667_v7 }
  0x18   :  { %626 = vmatprep.subr.bf16.mxu0 %v668_v8  ;;  %652 = vmatprep.subr.bf16.mxu1 %v668_v8 }
  0x1b   :  { %627 = vmatpush3.bf16.msra.mxu0 %v668_v8  ;;  %660 = vmatpush3.bf16.msra.mxu1 %v668_v8 }
  0x1c   :  { %628 = vmatprep.subr.bf16.mxu0 %v669_v9  ;;  %653 = vmatprep.subr.bf16.mxu1 %v669_v9 }
  0x1f   :  { %629 = vmatpush3.bf16.msra.mxu0 %v669_v9  ;;  %661 = vmatpush3.bf16.msra.mxu1 %v669_v9 }
  0x22   :  { %631 = vmatmul.mubr.bf16.vlgmr.msra.gmra.mrb[0].mxu0 %v672_v10  ;;  %639 = vmatmul.mubr.bf16.vlgmr.msra.gmra.mrb[0].mxu1 %v673_v11 }
  0x23   :  { %634 = vmatprep.mubr.bf16.mxu0 %v674_v12  ;;  %642 = vmatprep.mubr.bf16.mxu1 %v675_v13 }
  0x2a   :  { %635 = vmatmul.mubr.bf16.gmra.mrb[4].mxu0 %v676_v14  ;;  %643 = vmatmul.mubr.bf16.gmra.mrb[4].mxu1 %v677_v15 }
  0xf5   :  { %v632_v17 = vpop.f32.mrb[0].mxu0  ;;  %v640_v19 = vpop.f32.mrb[0].mxu1 }
  0xf6   :  { %v252_v20 = vmul.f32 %v632_v17, %v818_v16  ;;  %v260_v21 = vmul.f32 %v640_v19, %v818_v16  ;;  %v180_v22 = vpop.f32.mrb[1].mxu0  ;;  %v212_v23 = vpop.f32.mrb[1].mxu1 }
  0xf7   :  { %v250_v24 = vmul.f32 %v818_v16, %v180_v22  ;;  %v258_v25 = vmul.f32 %v818_v16, %v212_v23  ;;  %v633_v26 = vpop.f32.mrb[2].mxu0  ;;  %v641_v27 = vpop.f32.mrb[2].mxu1 }
  0xf8   :  { %v830_v28 = vadd.f32 %v823_v18, %v252_v20  ;;  %v833_v29 = vadd.f32 %v823_v18, %v260_v21  ;;  %v253_v30 = vmul.f32 %v633_v26, %v818_v16  ;;  %v261_v31 = vmul.f32 %v641_v27, %v818_v16  ;;  %v183_v32 = vpop.f32.mrb[3].mxu0  ;;  %v215_v33 = vpop.f32.mrb[3].mxu1 }
  0xf9   :  { %v838_v34 = vadd.f32 %v823_v18, %v250_v24  ;;  %v841_v35 = vadd.f32 %v823_v18, %v258_v25  ;;  %v251_v36 = vmul.f32 %v818_v16, %v183_v32  ;;  %v259_v37 = vmul.f32 %v818_v16, %v215_v33 }
  0xfa   :  { %v505_v38 = vmul.f32 -1.442695, %v830_v28  ;;  %v513_v39 = vmul.f32 -1.442695, %v833_v29  ;;  %v848_v40 = vadd.f32 %v823_v18, %v253_v30  ;;  %v851_v41 = vadd.f32 %v823_v18, %v261_v31 }
  0xfb   :  { %v503_v42 = vmul.f32 -1.442695, %v838_v34  ;;  %v511_v43 = vmul.f32 -1.442695, %v841_v35  ;;  %v856_v44 = vadd.f32 %v823_v18, %v251_v36  ;;  %v859_v45 = vadd.f32 %v823_v18, %v259_v37 }
  0xfc   :  { %678 = vpow2.f32 %v505_v38  ;;  %v506_v46 = vmul.f32 -1.442695, %v848_v40  ;;  %v514_v47 = vmul.f32 -1.442695, %v851_v41 }
  0xfd   :  { %680 = vpow2.f32 %v513_v39  ;;  %v636_v48 = vpop.f32.mrb[4].mxu0  ;;  %v644_v49 = vpop.f32.mrb[4].mxu1  ;;  %v504_v50 = vmul.f32 -1.442695, %v856_v44  ;;  %v512_v55 = vmul.f32 -1.442695, %v859_v45 }
  0xfe   :  { %682 = vpow2.f32 %v503_v42  ;;  %v256_v51 = vmul.f32 %v636_v48, %v818_v16  ;;  %v264_v52 = vmul.f32 %v644_v49, %v818_v16  ;;  %v196_v53 = vpop.f32.mrb[5].mxu0  ;;  %v228_v54 = vpop.f32.mrb[5].mxu1 }
  0xff   :  { %684 = vpow2.f32 %v511_v43  ;;  %v254_v56 = vmul.f32 %v818_v16, %v196_v53  ;;  %v637_v57 = vpop.f32.mrb[6].mxu0  ;;  %v645_v58 = vpop.f32.mrb[6].mxu1  ;;  %v262_v6 = vmul.f32 %v818_v16, %v228_v54 }
 0x100   :  { %686 = vpow2.f32 %v506_v46  ;;  %v869_v59 = vadd.f32 %v823_v18, %v256_v51  ;;  %v872_v60 = vadd.f32 %v823_v18, %v264_v52  ;;  %v257_v61 = vmul.f32 %v637_v57, %v818_v16  ;;  %v199_v62 = vpop.f32.mrb[7].mxu0  ;;  %v231_v63 = vpop.f32.mrb[7].mxu1 }
 0x101   :  { %688 = vpow2.f32 %v514_v47  ;;  %v876_v0 = vadd.f32 %v823_v18, %v254_v56  ;;  %v887_v14 = vadd.f32 %v823_v18, %v262_v6  ;;  %v265_v19 = vmul.f32 %v645_v58, %v818_v16 }
 0x102   :  { %690 = vpow2.f32 %v504_v50  ;;  %v509_v1 = vmul.f32 -1.442695, %v869_v59  ;;  %v517_v2 = vmul.f32 -1.442695, %v872_v60  ;;  %v881_v3 = vadd.f32 %v823_v18, %v257_v61 }
 0x103   :  { %692 = vpow2.f32 %v512_v55  ;;  %v507_v4 = vmul.f32 -1.442695, %v876_v0  ;;  %v255_v22 = vmul.f32 %v818_v16, %v199_v62  ;;  %v263_v25 = vmul.f32 %v818_v16, %v231_v63 }
 0x104   :  { %694 = vpow2.f32 %v509_v1  ;;  %v510_v5 = vmul.f32 -1.442695, %v881_v3  ;;  %v515_v30 = vmul.f32 -1.442695, %v887_v14  ;;  %v894_v33 = vadd.f32 %v823_v18, %v265_v19 }
 0x105   :  { %696 = vpow2.f32 %v517_v2  ;;  %v897_v37 = vadd.f32 %v823_v18, %v255_v22  ;;  %v900_v16 = vadd.f32 %v823_v18, %v263_v25 }
 0x106   :  { %v679_v7 = vpop.eup %678  ;;  %698 = vpow2.f32 %v507_v4  ;;  %v518_v43 = vmul.f32 -1.442695, %v894_v33 }
 0x107   :  { %v681_v8 = vpop.eup %680  ;;  %v339_v9 = vadd.f32 1.0, %v679_v7  ;;  %700 = vpow2.f32 %v510_v5  ;;  %v508_v48 = vmul.f32 -1.442695, %v897_v37  ;;  %v516_v50 = vmul.f32 -1.442695, %v900_v16 }
 0x108   :  { %v683_v10 = vpop.eup %682  ;;  %v347_v11 = vadd.f32 1.0, %v681_v8 }
 0x109   :  { %v685_v12 = vpop.eup %684  ;;  %702 = vrcp.f32 %v339_v9  ;;  %v337_v13 = vadd.f32 1.0, %v683_v10 }
 0x10a   :  { %v687_v15 = vpop.eup %686  ;;  %704 = vrcp.f32 %v347_v11  ;;  %v345_v17 = vadd.f32 1.0, %v685_v12 }
 0x10b   :  { %v689_v20 = vpop.eup %688  ;;  %706 = vrcp.f32 %v337_v13  ;;  %v340_v21 = vadd.f32 1.0, %v687_v15 }
 0x10c   :  { %v691_v23 = vpop.eup %690  ;;  %708 = vrcp.f32 %v345_v17  ;;  %v348_v24 = vadd.f32 1.0, %v689_v20 }
 0x10d   :  { %v693_v26 = vpop.eup %692  ;;  %710 = vrcp.f32 %v340_v21  ;;  %v338_v27 = vadd.f32 1.0, %v691_v23 }
 0x10e   :  { %v695_v31 = vpop.eup %694  ;;  %712 = vrcp.f32 %v348_v24  ;;  %v346_v32 = vadd.f32 1.0, %v693_v26 }
 0x10f   :  { %714 = vrcp.f32 %v338_v27  ;;  %v343_v36 = vadd.f32 1.0, %v695_v31  ;;  %v697_v38 = vpop.eup %696 }
 0x110   :  { %716 = vrcp.f32 %v346_v32  ;;  %v699_v39 = vpop.eup %698 }
 0x111   :  { %718 = vpow2.f32 %v515_v30  ;;  %v701_v42 = vpop.eup %700 }
 0x112   :  { %720 = vrcp.f32 %v343_v36  ;;  %v344_v47 = vadd.f32 1.0, %v701_v42 }
 0x113   :  { %v703_v46 = vpop.eup %702 }
 0x114   :  { %v705_v49 = vpop.eup %704  ;;  %722 = vrcp.f32 %v344_v47  ;;  %v387_v54 = vmul.f32 %v703_v46, %v830_v28 }
 0x115   :  { %v707_v51 = vpop.eup %706  ;;  %724 = vpow2.f32 %v518_v43  ;;  %v395_v57 = vmul.f32 %v705_v49, %v833_v29  ;;  %v351_v29 = vadd.f32 1.0, %v697_v38 }
 0x116   :  { %v709_v52 = vpop.eup %708  ;;  %726 = vpow2.f32 %v508_v48  ;;  %v385_v62 = vmul.f32 %v707_v51, %v838_v34 }
 0x117   :  { %v711_v53 = vpop.eup %710  ;;  %728 = vpow2.f32 %v516_v50  ;;  %v393_v4 = vmul.f32 %v709_v52, %v841_v35 }
 0x118   :  { %v713_v18 = vpop.eup %712  ;;  %v388_v55 = vmul.f32 %v711_v53, %v848_v40  ;;  %730 = vrcp.f32 %v351_v29 }
 0x119   :  { %v715_v56 = vpop.eup %714  ;;  %v396_v58 = vmul.f32 %v713_v18, %v851_v41  ;;  %v341_v41 = vadd.f32 1.0, %v699_v39 }
 0x11a   :  { %v717_v61 = vpop.eup %716  ;;  %v559_v63 = vpack.c.bf16 %v388_v55, %v387_v54  ;;  %v386_v1 = vmul.f32 %v715_v56, %v856_v44 }
 0x11b   :  { %v719_v2 = vpop.eup %718  ;;  %v579_v5 = vpack.c.bf16 %v396_v58, %v395_v57  ;;  %v394_v28 = vmul.f32 %v717_v61, %v859_v45  ;;  %732 = vrcp.f32 %v341_v41 }
 0x11c   :  { %591 = vst [vmem:[%s949_s4 + $0x8] sm:$0xff] %v559_v63   ;;  %v554_v40 = vpack.c.bf16 %v386_v1, %v385_v62  ;;  %v721_v6 = vpop.eup %720  ;;  %v349_v35 = vadd.f32 1.0, %v719_v2 }
 0x11d   :  { %595 = vst [vmem:[%s949_s4 + $0x28] sm:$0xff] %v579_v5   ;;  %v574_v34 = vpack.c.bf16 %v394_v28, %v393_v4  ;;  %v391_v7 = vmul.f32 %v721_v6, %v869_v59 }
 0x11e   :  { %555 = vst [vmem:[%s949_s4] sm:$0xff] %v554_v40   ;;  %v723_v44 = vpop.eup %722  ;;  %734 = vrcp.f32 %v349_v35 }
 0x11f   :  { %594 = vst [vmem:[%s949_s4 + $0x20] sm:$0xff] %v574_v34   ;;  %v725_v45 = vpop.eup %724  ;;  %v392_v8 = vmul.f32 %v723_v44, %v881_v3 }
 0x120   :  { %v727_v9 = vpop.eup %726  ;;  %v352_v10 = vadd.f32 1.0, %v725_v45 }
 0x121   :  { %v729_v11 = vpop.eup %728  ;;  %v569_v12 = vpack.c.bf16 %v392_v8, %v391_v7  ;;  %v342_v13 = vadd.f32 1.0, %v727_v9 }
 0x122   :  { %736 = vrcp.f32 %v352_v10  ;;  %v350_v15 = vadd.f32 1.0, %v729_v11  ;;  %v731_v17 = vpop.eup %730 }
 0x123   :  { %593 = vst [vmem:[%s949_s4 + $0x18] sm:$0xff] %v569_v12   ;;  %738 = vrcp.f32 %v342_v13  ;;  %v399_v21 = vmul.f32 %v731_v17, %v872_v60 }
 0x124   :  { %740 = vrcp.f32 %v350_v15 }
 0x125   :  { %v733_v59 = vpop.eup %732 }
 0x126   :  { %v389_v24 = vmul.f32 %v733_v59, %v876_v0 }
 0x128   :  { %v735_v19 = vpop.eup %734 }
 0x129   :  { %v397_v26 = vmul.f32 %v735_v19, %v887_v14 }
 0x12c   :  { %v737_v20 = vpop.eup %736 }
 0x12d   :  { %v739_v3 = vpop.eup %738  ;;  %v400_v22 = vmul.f32 %v737_v20, %v894_v33 }
 0x12e   :  { %v741_v23 = vpop.eup %740  ;;  %v390_v25 = vmul.f32 %v739_v3, %v897_v37 }
 0x12f   :  { %v589_v27 = vpack.c.bf16 %v400_v22, %v399_v21  ;;  %v398_v30 = vmul.f32 %v741_v23, %v900_v16 }
 0x130   :  { %v564_v31 = vpack.c.bf16 %v390_v25, %v389_v24 }
 0x131   :  { %597 = vst [vmem:[%s949_s4 + $0x38] sm:$0xff] %v589_v27   ;;  %v584_v32 = vpack.c.bf16 %v398_v30, %v397_v26 }
 0x132   :  { %592 = vst [vmem:[%s949_s4 + $0x10] sm:$0xff] %v564_v31  }
 0x133   :  { %596 = vst [vmem:[%s949_s4 + $0x30] sm:$0xff] %v584_v32  }

// kernel: _lambda_.20
= control target key start
LH: loop header
LB: loop body
LE: loop exit
PB: predicated region body
PF: predicated region fallthrough
CT: control target
= control target key end

     0   :  { %v392_v0 = vmov 0.0|0.0   ;;  %vm393_vm0 = vmmov 0   ;;  %v394_v4 = vmov 0.0   ;;  %s549_s1 = inlined_call_operand.vmem [shape: f32[128,128], index: 1, kind: input, shape index: {}]   ;;  %s550_s0 = inlined_call_operand.vmem [shape: f32[2,128], index: 0, kind: input, shape index: {}]   ;;  %s551_s3 = inlined_call_operand.vmem [shape: f32[128,128], index: 3, kind: input, shape index: {}]   ;;  %s552_s2 = inlined_call_operand.vmem [shape: f32[1,128], index: 2, kind: input, shape index: {}]   ;;  %s553_s4 = inlined_call_operand.vmem [shape: f32[1,128], index: 4, kind: input, shape index: {}]   ;;  %s554_s5 = inlined_call_operand.vmem [shape: f32[2,128], index: 5, kind: output, shape index: {}]  }
   0x1   :  { %333 = vmatprep.subr.bf16.mxu0 %v392_v0  ;;  %v21_v1 = vld [vmem:[%s549_s1] sm:$0xff]  ;;  %v22_v2 = vld [vmem:[%s549_s1 + $0x8] sm:$0xff]  ;;  %v23_v3 = vld [vmem:[%s549_s1 + $0x10] sm:$0xff]  ;;  %295 = vmatprep.mubr.msk.f32.mxu0 %vm393_vm0, %v394_v4 }
   0x2   :  { %v334_v5 = vpack.c.bf16 %v22_v2, %v21_v1  ;;  %v24_v6 = vld [vmem:[%s549_s1 + $0x18] sm:$0xff]  ;;  %357 = vmatprep.subr.bf16.mxu1 %v392_v0  ;;  %330 = vmatprep.mubr.msk.f32.mxu1 %vm393_vm0, %v394_v4  ;;  %v25_v8 = vld [vmem:[%s549_s1 + $0x20] sm:$0xff]  ;;  %v26_v9 = vld [vmem:[%s549_s1 + $0x28] sm:$0xff] }
   0x3   :  { %v337_v7 = vpack.c.bf16 %v24_v6, %v23_v3  ;;  %v340_v10 = vpack.c.bf16 %v26_v9, %v25_v8  ;;  %v27_v11 = vld [vmem:[%s549_s1 + $0x30] sm:$0xff]  ;;  %v28_v12 = vld [vmem:[%s549_s1 + $0x38] sm:$0xff]  ;;  %v29_v14 = vld [vmem:[%s549_s1 + $0x40] sm:$0xff] }
   0x4   :  { %335 = vmatpush3.bf16.msra.mxu0 %v334_v5  ;;  %v343_v13 = vpack.c.bf16 %v28_v12, %v27_v11  ;;  %v30_v15 = vld [vmem:[%s549_s1 + $0x48] sm:$0xff]  ;;  %v31_v17 = vld [vmem:[%s549_s1 + $0x50] sm:$0xff]  ;;  %v32_v18 = vld [vmem:[%s549_s1 + $0x58] sm:$0xff] }
   0x5   :  { %336 = vmatprep.subr.bf16.mxu0 %v392_v0  ;;  %v346_v16 = vpack.c.bf16 %v30_v15, %v29_v14  ;;  %v349_v19 = vpack.c.bf16 %v32_v18, %v31_v17  ;;  %v33_v20 = vld [vmem:[%s549_s1 + $0x60] sm:$0xff]  ;;  %v34_v21 = vld [vmem:[%s549_s1 + $0x68] sm:$0xff]  ;;  %v35_v23 = vld [vmem:[%s549_s1 + $0x70] sm:$0xff] }
   0x6   :  { %v352_v22 = vpack.c.bf16 %v34_v21, %v33_v20  ;;  %v36_v24 = vld [vmem:[%s549_s1 + $0x78] sm:$0xff]  ;;  %v20_v26 = vld [vmem:[%s550_s0] sm:$0x3]  ;;  %v122_v28 = vld [vmem:[%s551_s3 + $0x8] sm:$0xff] }
   0x7   :  { %v355_v25 = vpack.c.bf16 %v36_v24, %v35_v23  ;;  %v121_v27 = vld [vmem:[%s551_s3] sm:$0xff]  ;;  %v123_v30 = vld [vmem:[%s551_s3 + $0x10] sm:$0xff]  ;;  %v124_v31 = vld [vmem:[%s551_s3 + $0x18] sm:$0xff] }
   0x8   :  { %338 = vmatpush3.bf16.msra.mxu0 %v337_v7  ;;  %v358_v29 = vpack.c.bf16 %v122_v28, %v121_v27  ;;  %v361_v32 = vpack.c.bf16 %v124_v31, %v123_v30  ;;  %v125_v33 = vld [vmem:[%s551_s3 + $0x20] sm:$0xff]  ;;  %v126_v34 = vld [vmem:[%s551_s3 + $0x28] sm:$0xff]  ;;  %v127_v36 = vld [vmem:[%s551_s3 + $0x30] sm:$0xff] }
   0x9   :  { %339 = vmatprep.subr.bf16.mxu0 %v392_v0  ;;  %v364_v35 = vpack.c.bf16 %v126_v34, %v125_v33  ;;  %v128_v37 = vld [vmem:[%s551_s3 + $0x38] sm:$0xff]  ;;  %v129_v39 = vld [vmem:[%s551_s3 + $0x40] sm:$0xff]  ;;  %v130_v40 = vld [vmem:[%s551_s3 + $0x48] sm:$0xff] }
   0xa   :  { %359 = vmatpush3.bf16.msra.mxu1 %v358_v29  ;;  %v367_v38 = vpack.c.bf16 %v128_v37, %v127_v36  ;;  %v370_v41 = vpack.c.bf16 %v130_v40, %v129_v39  ;;  %v131_v42 = vld [vmem:[%s551_s3 + $0x50] sm:$0xff]  ;;  %v132_v43 = vld [vmem:[%s551_s3 + $0x58] sm:$0xff]  ;;  %v133_v45 = vld [vmem:[%s551_s3 + $0x60] sm:$0xff] }
   0xb   :  { %360 = vmatprep.subr.bf16.mxu1 %v392_v0  ;;  %v373_v44 = vpack.c.bf16 %v132_v43, %v131_v42  ;;  %v134_v46 = vld [vmem:[%s551_s3 + $0x68] sm:$0xff]  ;;  %v135_v48 = vld [vmem:[%s551_s3 + $0x70] sm:$0xff]  ;;  %v136_v49 = vld [vmem:[%s551_s3 + $0x78] sm:$0xff] }
   0xc   :  { %341 = vmatpush3.bf16.msra.mxu0 %v340_v10  ;;  %v376_v47 = vpack.c.bf16 %v134_v46, %v133_v45  ;;  %v379_v50 = vpack.c.bf16 %v136_v49, %v135_v48  ;;  %v225_v51 = vld [vmem:[%s552_s2] ss:$0 sm:$0xff] }
   0xd   :  { %342 = vmatprep.subr.bf16.mxu0 %v392_v0  ;;  %v227_v60 = vld [vmem:[%s553_s4] ss:$0 sm:$0xff] }
   0xe   :  { %362 = vmatpush3.bf16.msra.mxu1 %v361_v32 }
   0xf   :  { %363 = vmatprep.subr.bf16.mxu1 %v392_v0 }
  0x10   :  { %344 = vmatpush3.bf16.msra.mxu0 %v343_v13 }
  0x11   :  { %345 = vmatprep.subr.bf16.mxu0 %v392_v0 }
  0x12   :  { %365 = vmatpush3.bf16.msra.mxu1 %v364_v35 }
  0x13   :  { %366 = vmatprep.subr.bf16.mxu1 %v392_v0 }
  0x14   :  { %347 = vmatpush3.bf16.msra.mxu0 %v346_v16 }
  0x15   :  { %348 = vmatprep.subr.bf16.mxu0 %v392_v0 }
  0x16   :  { %368 = vmatpush3.bf16.msra.mxu1 %v367_v38 }
  0x17   :  { %369 = vmatprep.subr.bf16.mxu1 %v392_v0 }
  0x18   :  { %350 = vmatpush3.bf16.msra.mxu0 %v349_v19 }
  0x19   :  { %351 = vmatprep.subr.bf16.mxu0 %v392_v0 }
  0x1a   :  { %371 = vmatpush3.bf16.msra.mxu1 %v370_v41 }
  0x1b   :  { %372 = vmatprep.subr.bf16.mxu1 %v392_v0 }
  0x1c   :  { %353 = vmatpush3.bf16.msra.mxu0 %v352_v22 }
  0x1d   :  { %354 = vmatprep.subr.bf16.mxu0 %v392_v0 }
  0x1e   :  { %374 = vmatpush3.bf16.msra.mxu1 %v373_v44 }
  0x1f   :  { %375 = vmatprep.subr.bf16.mxu1 %v392_v0 }
  0x20   :  { %356 = vmatpush3.bf16.msra.mxu0 %v355_v25 }
  0x22   :  { %377 = vmatpush3.bf16.msra.mxu1 %v376_v47 }
  0x23   :  { %296 = vmatmul.mubr.f32.vlgmr.msra.gmra.mrb[0].mxu0 %v20_v26  ;;  %378 = vmatprep.subr.bf16.mxu1 %v392_v0 }
  0x26   :  { %380 = vmatpush3.bf16.msra.mxu1 %v379_v50 }
  0xf6   :  { %v110_v52 = vpop.f32.mrb[0].mxu0 }
  0xf7   :  { %v111_v53 = vadd.f32 %v225_v51, %v110_v52  ;;  %v297_v54 = vpop.f32.mrb[1].mxu0 }
  0xf9   :  { %v226_v55 = vmul.f32 -1.442695, %v111_v53 }
  0xfb   :  { %384 = vpow2.f32 %v226_v55 }
 0x105   :  { %v385_v56 = vpop.eup %384 }
 0x106   :  { %v117_v57 = vadd.f32 1.0, %v385_v56 }
 0x108   :  { %386 = vrcp.f32 %v117_v57 }
 0x112   :  { %v387_v58 = vpop.eup %386 }
 0x113   :  { %v120_v59 = vmul.f32 %v387_v58, %v111_v53 }
 0x115   :  { %331 = vmatmul.mubr.f32.vlgmr.msra.gmra.mrb[0].mxu1 %v120_v59 }
 0x1e8   :  { %v210_v61 = vpop.f32.mrb[0].mxu1 }
 0x1e9   :  { %v211_v62 = vadd.f32 %v227_v60, %v210_v61  ;;  %v332_v63 = vpop.f32.mrb[1].mxu1 }
 0x1eb   :  { %v228_v0 = vmul.f32 -1.442695, %v211_v62 }
 0x1ed   :  { %388 = vpow2.f32 %v228_v0 }
 0x1f7   :  { %v389_v1 = vpop.eup %388 }
 0x1f8   :  { %v217_v2 = vadd.f32 1.0, %v389_v1 }
 0x1fa   :  { %390 = vrcp.f32 %v217_v2 }
 0x204   :  { %v391_v3 = vpop.eup %390 }
 0x205   :  { %220 = vst [vmem:[%s554_s5] sm:$0x3] %v391_v3 }

// kernel: _lambda_.29
= control target key start
LH: loop header
LB: loop body
LE: loop exit
PB: predicated region body
PF: predicated region fallthrough
CT: control target
= control target key end

     0   :  { %s961_s21 = smov 0   ;;  %s963_s22 = smov 0   ;;  %s1041_s0 = inlined_call_operand.vmem [shape: bf16[2,64,128], index: 0, kind: input, shape index: {}]   ;;  %s1042_s1 = inlined_call_operand.vmem [shape: f32[2,1,128], index: 1, kind: input, shape index: {}]   ;;  %s1043_s2 = inlined_call_operand.vmem [shape: bf16[128,128], index: 2, kind: input, shape index: {}]   ;;  %s1044_s3 = inlined_call_operand.vmem [shape: f32[1,128], index: 3, kind: input, shape index: {}]   ;;  %s1045_s4 = inlined_call_operand.vmem [shape: f32[1,128], index: 4, kind: input, shape index: {}]   ;;  %s1046_s5 = inlined_call_operand.vmem [shape: bf16[2,64,128], index: 5, kind: input, shape index: {}]   ;;  %s1047_s6 = inlined_call_operand.vmem [shape: bf16[2,64,128], index: 6, kind: output, shape index: {}]  }
   0x1   :  { %s965_s23 = smov 0  }
   0x2 LB: > { %s28_s24 = sadd.s32 1, %s920_s22  ;;  %p718_p0 = scmp.ge.s32.totalorder %s924_s23, 1  ;;  %s924_s23 = sphi %s965_s23, %s16_s23   ;;  %s920_s22 = sphi %s963_s22, %s1049_s22   ;;  %s916_s21 = sphi %s961_s21, %s1048_s21  }
   0x3   : > { %p30_p1 = scmp.ge.s32.totalorder %s28_s24, 2  ;;  %p258_p2 = scmp.lt.s32.totalorder %s924_s23, 3 }
   0x5   : > { %s1051_s24 = smov (%p30_p1, %s28_s24), 0  ;;  %p259_p3 = pnand %p718_p0, %p258_p2 }
   0x6   : > { %v894_v0 = vld [vmem:[%s1043_s2] sm:$0xff] (!%p259_p3)   ;;  %p309_p4 = scmp.lt.s32.totalorder (!%p259_p3), %s916_s21, 1  ;;  %v895_v1 = vld [vmem:[%s1043_s2 + $0x8] sm:$0xff] (!%p259_p3)   ;;  %v896_v2 = vld [vmem:[%s1043_s2 + $0x10] sm:$0xff] (!%p259_p3)  }
   0x7   : > { %262 = sbr.rel (%p259_p3) target bundleno = 264 (0x108), region = 44  ;;  %830 = vmatprep.subr.bf16.mxu0 (!%p259_p3), %v894_v0  ;;  %854 = vmatprep.subr.bf16.mxu1 (!%p259_p3), %v894_v0  ;;  %v897_v3 = vld [vmem:[%s1043_s2 + $0x18] sm:$0xff] (!%p259_p3)   ;;  %v898_v14 = vld [vmem:[%s1043_s2 + $0x20] sm:$0xff] (!%p259_p3)   ;;  %v899_v18 = vld [vmem:[%s1043_s2 + $0x28] sm:$0xff] (!%p259_p3)  }
   0x8   : > { %831 = vmatpush3.bf16.msra.mxu0 (!%p259_p3), %v894_v0  ;;  %862 = vmatpush3.bf16.msra.mxu1 (!%p259_p3), %v894_v0  ;;  %v900_v21 = vld [vmem:[%s1043_s2 + $0x30] sm:$0xff] (!%p259_p3)   ;;  %v901_v26 = vld [vmem:[%s1043_s2 + $0x38] sm:$0xff] (!%p259_p3)   ;;  %v734_v37 = vld [vmem:[%s1044_s3] ss:$0 sm:$0xff] (!%p259_p3) }
   0x9   : > { %832 = vmatprep.subr.bf16.mxu0 (!%p259_p3), %v895_v1  ;;  %855 = vmatprep.subr.bf16.mxu1 (!%p259_p3), %v895_v1  ;;  %v735_v39 = vld [vmem:[%s1045_s4] ss:$0 sm:$0xff] (!%p259_p3) }
   0xc   : > { %833 = vmatpush3.bf16.msra.mxu0 (!%p259_p3), %v895_v1  ;;  %863 = vmatpush3.bf16.msra.mxu1 (!%p259_p3), %v895_v1 }
   0xd   : > { %834 = vmatprep.subr.bf16.mxu0 (!%p259_p3), %v896_v2  ;;  %856 = vmatprep.subr.bf16.mxu1 (!%p259_p3), %v896_v2 }
   0xe   : > { %s1053_s21 = smov (!%p309_p4, %s916_s21), 1 }
   0xf   : > { %s988_s7 = sshll.u32 %s1053_s21, 5  ;;  %s320_s13 = scalar_lea.vmem %s1042_s1, %s1053_s21 }
  0x10   : > { %s994_s10 = scalar_lea.vmem %s1041_s0, %s988_s7  ;;  %v725_v5 = vld [vmem:[%s320_s13] ss:$0 sm:$0xff]  ;;  %835 = vmatpush3.bf16.msra.mxu0 %v896_v2  ;;  %864 = vmatpush3.bf16.msra.mxu1 %v896_v2  ;;  %s329_s29 = scalar_lea.vmem %s1046_s5, %s988_s7 }
  0x11   : > { %v758_v4 = vld [vmem:[%s994_s10] sm:$0xff]   ;;  %v810_v6 = vld [vmem:[%s994_s10 + $0x10] sm:$0xff]   ;;  %836 = vmatprep.subr.bf16.mxu0 %v897_v3  ;;  %857 = vmatprep.subr.bf16.mxu1 %v897_v3  ;;  %v809_v19 = vld [vmem:[%s994_s10 + $0x8] sm:$0xff]   ;;  %s339_s13 = scalar_lea.vmem %s1047_s6, %s988_s7 }
  0x12   : > { %v759_v7 = vunpack.c.l.bf16 %v758_v4  ;;  %v760_v8 = vunpack.c.h.bf16 %v758_v4  ;;  %v767_v9 = vunpack.c.l.bf16 %v810_v6  ;;  %v768_v10 = vunpack.c.h.bf16 %v810_v6  ;;  %v811_v20 = vld [vmem:[%s994_s10 + $0x18] sm:$0xff]   ;;  %v812_v33 = vld [vmem:[%s329_s29 + $0x8] sm:$0xff]   ;;  %v774_v35 = vld [vmem:[%s329_s29] sm:$0xff]  }
  0x13   : > { %v763_v22 = vunpack.c.l.bf16 %v809_v19  ;;  %v764_v23 = vunpack.c.h.bf16 %v809_v19  ;;  %v771_v24 = vunpack.c.l.bf16 %v811_v20  ;;  %v772_v25 = vunpack.c.h.bf16 %v811_v20  ;;  %v814_v34 = vld [vmem:[%s329_s29 + $0x18] sm:$0xff]   ;;  %v813_v36 = vld [vmem:[%s329_s29 + $0x10] sm:$0xff]  }
  0x14   : > { %v365_v11 = vmul.f32 %v759_v7, %v725_v5  ;;  %v366_v12 = vmul.f32 %v760_v8, %v725_v5  ;;  %v369_v13 = vmul.f32 %v767_v9, %v725_v5  ;;  %v370_v15 = vmul.f32 %v768_v10, %v725_v5  ;;  %837 = vmatpush3.bf16.msra.mxu0 %v897_v3 }
  0x15   : > { %865 = vmatpush3.bf16.msra.mxu1 %v897_v3  ;;  %838 = vmatprep.subr.bf16.mxu0 %v898_v14  ;;  %v367_v27 = vmul.f32 %v763_v22, %v725_v5  ;;  %v368_v28 = vmul.f32 %v764_v23, %v725_v5  ;;  %v371_v29 = vmul.f32 %v771_v24, %v725_v5  ;;  %v779_v40 = vunpack.c.l.bf16 %v812_v33 }
  0x16   : > { %v373_v16 = vpack.c.bf16 %v366_v12, %v365_v11  ;;  %v375_v17 = vpack.c.bf16 %v370_v15, %v369_v13  ;;  %858 = vmatprep.subr.bf16.mxu1 %v898_v14  ;;  %v372_v30 = vmul.f32 %v772_v25, %v725_v5  ;;  %v787_v42 = vunpack.c.l.bf16 %v814_v34 }
  0x17   : > { %v374_v31 = vpack.c.bf16 %v368_v28, %v367_v27  ;;  %v775_v43 = vunpack.c.l.bf16 %v774_v35  ;;  %v783_v44 = vunpack.c.l.bf16 %v813_v36  ;;  %v780_v49 = vunpack.c.h.bf16 %v812_v33 }
  0x18   : > { %846 = vmatprep.mubr.bf16.mxu0 %v373_v16  ;;  %850 = vmatprep.mubr.bf16.mxu1 %v375_v17  ;;  %v376_v32 = vpack.c.bf16 %v372_v30, %v371_v29  ;;  %v788_v50 = vunpack.c.h.bf16 %v814_v34  ;;  %v776_v55 = vunpack.c.h.bf16 %v774_v35  ;;  %v784_v56 = vunpack.c.h.bf16 %v813_v36 }
  0x19   : > { %839 = vmatpush3.bf16.msra.mxu0 %v898_v14  ;;  %866 = vmatpush3.bf16.msra.mxu1 %v898_v14 }
  0x1a   : > { %840 = vmatprep.subr.bf16.mxu0 %v899_v18  ;;  %859 = vmatprep.subr.bf16.mxu1 %v899_v18 }
  0x1d   : > { %841 = vmatpush3.bf16.msra.mxu0 %v899_v18  ;;  %867 = vmatpush3.bf16.msra.mxu1 %v899_v18 }
  0x1e   : > { %842 = vmatprep.subr.bf16.mxu0 %v900_v21  ;;  %860 = vmatprep.subr.bf16.mxu1 %v900_v21 }
  0x21   : > { %843 = vmatpush3.bf16.msra.mxu0 %v900_v21  ;;  %868 = vmatpush3.bf16.msra.mxu1 %v900_v21 }
  0x22   : > { %844 = vmatprep.subr.bf16.mxu0 %v901_v26  ;;  %861 = vmatprep.subr.bf16.mxu1 %v901_v26 }
  0x25   : > { %845 = vmatpush3.bf16.msra.mxu0 %v901_v26  ;;  %869 = vmatpush3.bf16.msra.mxu1 %v901_v26 }
  0x28   : > { %847 = vmatmul.mubr.bf16.vlgmr.msra.gmra.mrb[0].mxu0 %v374_v31  ;;  %851 = vmatmul.mubr.bf16.vlgmr.msra.gmra.mrb[0].mxu1 %v376_v32 }
  0xfb   : > { %v848_v38 = vpop.f32.mrb[0].mxu0  ;;  %v852_v41 = vpop.f32.mrb[0].mxu1 }
  0xfc   : > { %v515_v45 = vmul.f32 %v848_v38, %v734_v37  ;;  %v519_v46 = vmul.f32 %v852_v41, %v734_v37  ;;  %v475_v47 = vpop.f32.mrb[1].mxu0  ;;  %v491_v48 = vpop.f32.mrb[1].mxu1 }
  0xfd   : > { %v513_v51 = vmul.f32 %v734_v37, %v475_v47  ;;  %v517_v52 = vmul.f32 %v734_v37, %v491_v48  ;;  %v849_v53 = vpop.f32.mrb[2].mxu0  ;;  %v853_v54 = vpop.f32.mrb[2].mxu1 }
  0xfe   : > { %v530_v57 = vadd.f32 %v735_v39, %v515_v45  ;;  %v534_v58 = vadd.f32 %v735_v39, %v519_v46  ;;  %v516_v59 = vmul.f32 %v849_v53, %v734_v37  ;;  %v520_v60 = vmul.f32 %v853_v54, %v734_v37  ;;  %v478_v61 = vpop.f32.mrb[3].mxu0  ;;  %v494_v62 = vpop.f32.mrb[3].mxu1 }
  0xff   : > { %v528_v63 = vadd.f32 %v735_v39, %v513_v51  ;;  %v532_v0 = vadd.f32 %v735_v39, %v517_v52  ;;  %v514_v1 = vmul.f32 %v734_v37, %v478_v61  ;;  %v518_v2 = vmul.f32 %v734_v37, %v494_v62 }
 0x100   : > { %v531_v3 = vadd.f32 %v735_v39, %v516_v59  ;;  %v535_v4 = vadd.f32 %v735_v39, %v520_v60  ;;  %v554_v7 = vadd.f32 %v779_v40, %v530_v57  ;;  %v558_v8 = vadd.f32 %v787_v42, %v534_v58 }
 0x101   : > { %v529_v5 = vadd.f32 %v735_v39, %v514_v1  ;;  %v533_v6 = vadd.f32 %v735_v39, %v518_v2  ;;  %v552_v11 = vadd.f32 %v775_v43, %v528_v63  ;;  %v556_v12 = vadd.f32 %v783_v44, %v532_v0 }
 0x102   : > { %v555_v9 = vadd.f32 %v780_v49, %v531_v3  ;;  %v559_v10 = vadd.f32 %v788_v50, %v535_v4 }
 0x103   : > { %v553_v13 = vadd.f32 %v776_v55, %v529_v5  ;;  %v557_v14 = vadd.f32 %v784_v56, %v533_v6 }
 0x104   : > { %v797_v15 = vpack.c.bf16 %v555_v9, %v554_v7  ;;  %v807_v16 = vpack.c.bf16 %v559_v10, %v558_v8 }
 0x105   : > { %v792_v17 = vpack.c.bf16 %v553_v13, %v552_v11  ;;  %v802_v18 = vpack.c.bf16 %v557_v14, %v556_v12 }
 0x106   : > { %815 = vst [vmem:[%s339_s13 + $0x8] sm:$0xff] %v797_v15   ;;  %817 = vst [vmem:[%s339_s13 + $0x18] sm:$0xff] %v807_v16  }
 0x107   : > { %793 = vst [vmem:[%s339_s13] sm:$0xff] %v792_v17   ;;  %816 = vst [vmem:[%s339_s13 + $0x10] sm:$0xff] %v802_v18  }
 0x108 PF: > { %s16_s23 = sadd.s32 1, %s924_s23   ;;  %s1048_s21 = smov %s920_s22 }
 0x109   : > { %p13_p5 = scmp.ge.s32.totalorder %s16_s23, 4   ;;  %s1049_s22 = smov %s1051_s24 }
 0x10b   :  { %15 = sbr.rel (!%p13_p5) target bundleno = 2 (0x2), region = 80 }

// kernel: _lambda_.23
= control target key start
LH: loop header
LB: loop body
LE: loop exit
PB: predicated region body
PF: predicated region fallthrough
CT: control target
= control target key end

     0   :  { %s1311_s18 = smov 0   ;;  %s1720_s0 = inlined_call_operand.vmem [shape: bf16[2,10,10,128], index: 0, kind: input, shape index: {}]   ;;  %s1721_s1 = inlined_call_operand.vmem [shape: f32[9,1,128], index: 1, kind: input, shape index: {}]   ;;  %s1722_s2 = inlined_call_operand.vmem [shape: f32[1,128], index: 2, kind: input, shape index: {}]   ;;  %s1723_s3 = inlined_call_operand.vmem [shape: f32[1,128], index: 3, kind: input, shape index: {}]   ;;  %s1724_s4 = inlined_call_operand.vmem [shape: bf16[2,8,8,128], index: 4, kind: output, shape index: {0}]   ;;  %s1725_s5 = inlined_call_operand.vmem [shape: f32[2,1,128], index: 5, kind: output, shape index: {1}]  }
   0x1 LB: > { %s1123_s19 = sadd.s32 4294967295, %s1279_s18   ;;  %p1127_p0 = scmp.ge.s32.totalorder %s1279_s18, 1  ;;  %s1279_s18 = sphi %s1311_s18, %s16_s18  }
   0x2   : > { %p190_p1 = scmp.lt.s32.totalorder %s1279_s18, 3 }
   0x4   : > { %p191_p2 = pnand %p1127_p0, %p190_p1 }
   0x5   : > { %p221_p3 = scmp.lt.s32.totalorder (!%p191_p2), %s1123_s19, 1  ;;  %v1131_v0 = vld [vmem:[%s1721_s1] ss:$0 sm:$0xff] (!%p191_p2)  ;;  %vm321_vm0 = vcmask (!%p191_p2), 1046528   ;;  %v1133_v29 = vld [vmem:[%s1721_s1 + $0x1] ss:$0 sm:$0xff] (!%p191_p2) }
   0x6   : > { %194 = sbr.rel (%p191_p2) target bundleno = 179 (0xb3), region = 36  ;;  %vm418_vm1 = vcmask (!%p191_p2), 1045504  }
   0xd   : > { %s1727_s19 = smov (!%p221_p3, %s1123_s19), 1 }
   0xe   : > { %s1232_s20 = smul.u32 80, %s1727_s19  ;;  %s233_s29 = scalar_lea.vmem %s1725_s5, %s1727_s19 }
  0x10   : > { %s1325_s23 = scalar_lea.vmem %s1720_s0, %s1232_s20 }
  0x11   : > { %v234_v1 = vld [vmem:[%s1325_s23] ss:$8 sps:$4 sm:$0xff]   ;;  %v236_v2 = vld [vmem:[%s1325_s23 + $0x10] ss:$8 sps:$4 sm:$0xff]   ;;  %v1335_v9 = vld [vmem:[%s1325_s23 + $0x4] sm:$0x1] }
  0x12   : > { %v238_v3 = vld [vmem:[%s1325_s23 + $0x20] ss:$8 sps:$4 sm:$0xff]   ;;  %v240_v4 = vld [vmem:[%s1325_s23 + $0x30] ss:$8 sps:$4 sm:$0xff]   ;;  %v243_v5 = vunpack.c.l.bf16 %v234_v1  ;;  %v244_v6 = vunpack.c.h.bf16 %v234_v1  ;;  %v245_v7 = vunpack.c.l.bf16 %v236_v2  ;;  %v246_v8 = vunpack.c.h.bf16 %v236_v2  ;;  %v1338_v10 = vld [vmem:[%s1325_s23 + $0xc] sm:$0x1] }
  0x13   : > { %v247_v11 = vunpack.c.l.bf16 %v238_v3  ;;  %v248_v12 = vunpack.c.h.bf16 %v238_v3  ;;  %v249_v13 = vunpack.c.l.bf16 %v240_v4  ;;  %v250_v14 = vunpack.c.h.bf16 %v240_v4  ;;  %v1341_v15 = vld [vmem:[%s1325_s23 + $0x14] sm:$0x1]  ;;  %v1344_v16 = vld [vmem:[%s1325_s23 + $0x1c] sm:$0x1]  ;;  %v1347_v17 = vld [vmem:[%s1325_s23 + $0x24] sm:$0x1] }
  0x14   : > { %v257_v18 = vmul.f32 %v1131_v0, %v243_v5  ;;  %v258_v19 = vmul.f32 %v1131_v0, %v244_v6  ;;  %v1349_v20 = vmul.f32 %v1131_v0, %v245_v7  ;;  %v1351_v21 = vmul.f32 %v1131_v0, %v246_v8  ;;  %v1354_v22 = vld [vmem:[%s1325_s23 + $0x2c] sm:$0x1]  ;;  %v1357_v23 = vld [vmem:[%s1325_s23 + $0x34] sm:$0x1]  ;;  %v1360_v24 = vld [vmem:[%s1325_s23 + $0x3c] sm:$0x1] }
  0x15   : > { %v261_v25 = vmul.f32 %v1131_v0, %v247_v11  ;;  %v1362_v26 = vmul.f32 %v1131_v0, %v248_v12  ;;  %v1364_v27 = vmul.f32 %v1131_v0, %v249_v13  ;;  %v1366_v28 = vmul.f32 %v1131_v0, %v250_v14 }
  0x16   : > { %v275_v30 = vunpack.c.l.bf16 %v1335_v9  ;;  %v276_v31 = vunpack.c.l.bf16 %v1338_v10  ;;  %v277_v32 = vunpack.c.l.bf16 %v1341_v15  ;;  %v278_v33 = vunpack.c.l.bf16 %v1344_v16 }
  0x17   : > { %v279_v34 = vunpack.c.l.bf16 %v1347_v17  ;;  %v280_v35 = vunpack.c.l.bf16 %v1354_v22  ;;  %v281_v36 = vunpack.c.l.bf16 %v1357_v23  ;;  %v282_v37 = vunpack.c.l.bf16 %v1360_v24 }
  0x18   : > { %v289_v38 = vmul.f32 %v1133_v29, %v243_v5  ;;  %v290_v39 = vmul.f32 %v1133_v29, %v275_v30  ;;  %v291_v40 = vmul.f32 %v1133_v29, %v244_v6  ;;  %v292_v41 = vmul.f32 %v1133_v29, %v276_v31  ;;  %v362_v6 = vld [vmem:[%s1325_s23] sm:$0xe] }
  0x19   : > { %v293_v42 = vmul.f32 %v1133_v29, %v245_v7  ;;  %v294_v43 = vmul.f32 %v1133_v29, %v277_v32  ;;  %v295_v44 = vmul.f32 %v1133_v29, %v246_v8  ;;  %v296_v45 = vmul.f32 %v1133_v29, %v278_v33  ;;  %v363_v7 = vld [vmem:[%s1325_s23 + $0x8] sm:$0xe] }
  0x1a   : > { %v297_v46 = vmul.f32 %v1133_v29, %v247_v11  ;;  %v298_v47 = vmul.f32 %v1133_v29, %v279_v34  ;;  %v299_v48 = vmul.f32 %v1133_v29, %v248_v12  ;;  %v300_v49 = vmul.f32 %v1133_v29, %v280_v35 }
  0x1b   : > { %v301_v50 = vmul.f32 %v1133_v29, %v249_v13  ;;  %v302_v51 = vmul.f32 %v1133_v29, %v281_v36  ;;  %v303_v52 = vmul.f32 %v1133_v29, %v250_v14  ;;  %v304_v53 = vmul.f32 %v1133_v29, %v282_v37  ;;  %v364_v14 = vld [vmem:[%s1325_s23 + $0x10] sm:$0xe] }
  0x1c   : > { %v322_v54 = vrot.slane %v289_v38, 1  ;;  %v323_v55 = vrot.slane %v290_v39, 1  ;;  %v325_v56 = vrot.slane %v291_v40, 1  ;;  %v326_v57 = vrot.slane %v292_v41, 1  ;;  %v365_v41 = vld [vmem:[%s1325_s23 + $0x18] sm:$0xe] }
  0x1d   : > { %v328_v58 = vrot.slane %v293_v42, 1  ;;  %v329_v59 = vrot.slane %v294_v43, 1  ;;  %v331_v60 = vrot.slane %v295_v44, 1  ;;  %v332_v61 = vrot.slane %v296_v45, 1  ;;  %v366_v42 = vld [vmem:[%s1325_s23 + $0x20] sm:$0xe] }
  0x1e   : > { %v324_v62 = vsel %vm321_vm0, %v322_v54, %v323_v55  ;;  %v327_v63 = vsel %vm321_vm0, %v325_v56, %v326_v57  ;;  %v334_v0 = vrot.slane %v297_v46, 1  ;;  %v335_v1 = vrot.slane %v298_v47, 1  ;;  %v367_v47 = vld [vmem:[%s1325_s23 + $0x28] sm:$0xe] }
  0x1f   : > { %v330_v2 = vsel %vm321_vm0, %v328_v58, %v329_v59  ;;  %v333_v3 = vsel %vm321_vm0, %v331_v60, %v332_v61  ;;  %v337_v4 = vrot.slane %v299_v48, 1  ;;  %v338_v5 = vrot.slane %v300_v49, 1  ;;  %v368_v48 = vld [vmem:[%s1325_s23 + $0x30] sm:$0xe]  ;;  %v369_v49 = vld [vmem:[%s1325_s23 + $0x38] sm:$0xe] }
  0x20   : > { %v336_v8 = vsel %vm321_vm0, %v334_v0, %v335_v1  ;;  %v340_v11 = vrot.slane %v301_v50, 1  ;;  %v341_v12 = vrot.slane %v302_v51, 1  ;;  %v343_v13 = vrot.slane %v303_v52, 1  ;;  %v1135_v51 = vld [vmem:[%s1721_s1 + $0x2] ss:$0 sm:$0xff] }
  0x21   : > { %v339_v29 = vsel %vm321_vm0, %v337_v4, %v338_v5  ;;  %v344_v38 = vrot.slane %v304_v53, 1  ;;  %v1404_v39 = vadd.f32 %v324_v62, %v257_v18  ;;  %v1406_v40 = vadd.f32 %v327_v63, %v258_v19 }
  0x22   : > { %v342_v43 = vsel %vm321_vm0, %v340_v11, %v341_v12  ;;  %v1412_v44 = vadd.f32 %v330_v2, %v1349_v20  ;;  %v357_v45 = vadd.f32 %v333_v3, %v1351_v21  ;;  %v358_v46 = vadd.f32 %v336_v8, %v261_v25 }
  0x23   : > { %v345_v50 = vsel %vm321_vm0, %v343_v13, %v344_v38  ;;  %v359_v18 = vadd.f32 %v339_v29, %v1362_v26  ;;  %v360_v19 = vadd.f32 %v342_v43, %v1364_v27  ;;  %v372_v52 = vunpack.c.l.bf16 %v362_v6  ;;  %v1136_v13 = vld [vmem:[%s1325_s23 + $0x8] ss:$8 sps:$4 sm:$0xff]  }
  0x24   : > { %v361_v20 = vadd.f32 %v345_v50, %v1366_v28  ;;  %v373_v53 = vunpack.c.l.bf16 %v363_v7  ;;  %v374_v54 = vunpack.c.l.bf16 %v364_v14  ;;  %v375_v21 = vunpack.c.l.bf16 %v365_v41  ;;  %v1140_v50 = vld [vmem:[%s1325_s23 + $0x28] ss:$8 sps:$4 sm:$0xff]  }
  0x25   : > { %v376_v25 = vunpack.c.l.bf16 %v366_v42  ;;  %v377_v55 = vunpack.c.l.bf16 %v367_v47  ;;  %v378_v56 = vunpack.c.l.bf16 %v368_v48  ;;  %v379_v57 = vunpack.c.l.bf16 %v369_v49  ;;  %v1138_v42 = vld [vmem:[%s1325_s23 + $0x18] ss:$8 sps:$4 sm:$0xff]  }
  0x26   : > { %v386_v58 = vmul.f32 %v1135_v51, %v372_v52  ;;  %v387_v26 = vmul.f32 %v1135_v51, %v275_v30  ;;  %v388_v59 = vmul.f32 %v1135_v51, %v373_v53  ;;  %v389_v27 = vmul.f32 %v1135_v51, %v276_v31 }
  0x27   : > { %v390_v60 = vmul.f32 %v1135_v51, %v374_v54  ;;  %v391_v61 = vmul.f32 %v1135_v51, %v277_v32  ;;  %v392_v28 = vmul.f32 %v1135_v51, %v375_v21  ;;  %v393_v62 = vmul.f32 %v1135_v51, %v278_v33 }
  0x28   : > { %v394_v63 = vmul.f32 %v1135_v51, %v376_v25  ;;  %v395_v0 = vmul.f32 %v1135_v51, %v279_v34  ;;  %v396_v1 = vmul.f32 %v1135_v51, %v377_v55  ;;  %v397_v9 = vmul.f32 %v1135_v51, %v280_v35 }
  0x29   : > { %v398_v30 = vmul.f32 %v1135_v51, %v378_v56  ;;  %v399_v10 = vmul.f32 %v1135_v51, %v281_v36  ;;  %v400_v31 = vmul.f32 %v1135_v51, %v379_v57  ;;  %v401_v15 = vmul.f32 %v1135_v51, %v282_v37  ;;  %v1142_v51 = vld [vmem:[%s1325_s23 + $0x38] ss:$8 sps:$4 sm:$0xff]  }
  0x2a   : > { %v419_v32 = vrot.slane %v386_v58, 2  ;;  %v420_v2 = vrot.slane %v387_v26, 2  ;;  %v422_v16 = vrot.slane %v388_v59, 2  ;;  %v423_v33 = vrot.slane %v389_v27, 2  ;;  %v1460_v59 = vld [vmem:[%s1325_s23 + $0xc] sm:$0x1] }
  0x2b   : > { %v425_v3 = vrot.slane %v390_v60, 2  ;;  %v426_v17 = vrot.slane %v391_v61, 2  ;;  %v428_v34 = vrot.slane %v392_v28, 2  ;;  %v429_v4 = vrot.slane %v393_v62, 2  ;;  %v1466_v62 = vld [vmem:[%s1325_s23 + $0x1c] sm:$0x1] }
  0x2c   : > { %v421_v22 = vsel %vm418_vm1, %v419_v32, %v420_v2  ;;  %v424_v35 = vsel %vm418_vm1, %v422_v16, %v423_v33  ;;  %v431_v23 = vrot.slane %v394_v63, 2  ;;  %v432_v36 = vrot.slane %v395_v0, 2  ;;  %v1469_v63 = vld [vmem:[%s1325_s23 + $0x24] sm:$0x1]  ;;  %v1472_v0 = vld [vmem:[%s1325_s23 + $0x2c] sm:$0x1] }
  0x2d   : > { %v427_v5 = vsel %vm418_vm1, %v425_v3, %v426_v17  ;;  %v430_v24 = vsel %vm418_vm1, %v428_v34, %v429_v4  ;;  %v434_v37 = vrot.slane %v396_v1, 2  ;;  %v435_v6 = vrot.slane %v397_v9, 2  ;;  %v1485_v32 = vld [vmem:[%s1325_s23 + $0x44] sm:$0x1] }
  0x2e   : > { %v433_v7 = vsel %vm418_vm1, %v431_v23, %v432_v36  ;;  %v437_v8 = vrot.slane %v398_v30, 2  ;;  %v438_v11 = vrot.slane %v399_v10, 2  ;;  %v440_v12 = vrot.slane %v400_v31, 2  ;;  %v1479_v31 = vld [vmem:[%s1325_s23 + $0x34] sm:$0x1] }
  0x2f   : > { %v436_v14 = vsel %vm418_vm1, %v434_v37, %v435_v6  ;;  %v441_v29 = vrot.slane %v401_v15, 2  ;;  %v451_v38 = vadd.f32 %v421_v22, %v1404_v39  ;;  %v452_v41 = vadd.f32 %v424_v35, %v1406_v40  ;;  %v1145_v39 = vld [vmem:[%s1721_s1 + $0x3] ss:$0 sm:$0xff]  ;;  %v1482_v15 = vld [vmem:[%s1325_s23 + $0x3c] sm:$0x1] }
  0x30   : > { %v439_v43 = vsel %vm418_vm1, %v437_v8, %v438_v11  ;;  %v453_v47 = vadd.f32 %v427_v5, %v1412_v44  ;;  %v454_v48 = vadd.f32 %v430_v24, %v357_v45  ;;  %v455_v49 = vadd.f32 %v433_v7, %v358_v46  ;;  %v1155_v17 = vld [vmem:[%s1721_s1 + $0x4] ss:$0 sm:$0xff] }
  0x31   : > { %v442_v52 = vsel %vm418_vm1, %v440_v12, %v441_v29  ;;  %v456_v53 = vadd.f32 %v436_v14, %v359_v18  ;;  %v457_v54 = vadd.f32 %v439_v43, %v360_v19  ;;  %v470_v40 = vunpack.c.l.bf16 %v1136_v13 }
  0x32   : > { %v458_v21 = vadd.f32 %v442_v52, %v361_v20  ;;  %v471_v25 = vunpack.c.h.bf16 %v1136_v13  ;;  %v472_v55 = vunpack.c.l.bf16 %v1138_v42  ;;  %v473_v44 = vunpack.c.h.bf16 %v1138_v42  ;;  %v1463_v20 = vld [vmem:[%s1325_s23 + $0x14] sm:$0x1] }
  0x33   : > { %v474_v45 = vunpack.c.l.bf16 %v1140_v50  ;;  %v475_v46 = vunpack.c.h.bf16 %v1140_v50  ;;  %v476_v56 = vunpack.c.l.bf16 %v1142_v51  ;;  %v477_v57 = vunpack.c.h.bf16 %v1142_v51 }
  0x34   : > { %v484_v18 = vmul.f32 %v1145_v39, %v470_v40  ;;  %v485_v58 = vmul.f32 %v1145_v39, %v471_v25  ;;  %v486_v19 = vmul.f32 %v1145_v39, %v472_v55  ;;  %v487_v26 = vmul.f32 %v1145_v39, %v473_v44 }
  0x35   : > { %v488_v27 = vmul.f32 %v1145_v39, %v474_v45  ;;  %v489_v60 = vmul.f32 %v1145_v39, %v475_v46  ;;  %v490_v61 = vmul.f32 %v1145_v39, %v476_v56  ;;  %v491_v28 = vmul.f32 %v1145_v39, %v477_v57 }
  0x36   : > { %v492_v1 = vadd.f32 %v484_v18, %v451_v38  ;;  %v493_v9 = vadd.f32 %v485_v58, %v452_v41  ;;  %v1474_v30 = vadd.f32 %v486_v19, %v453_v47  ;;  %v1476_v10 = vadd.f32 %v487_v26, %v454_v48  ;;  %v1156_v58 = vld [vmem:[%s1325_s23 + $0x8] sm:$0xe]  ;;  %v1157_v19 = vld [vmem:[%s1325_s23 + $0x10] sm:$0xe] }
  0x37   : > { %v496_v2 = vadd.f32 %v488_v27, %v455_v49  ;;  %v1487_v16 = vadd.f32 %v489_v60, %v456_v53  ;;  %v1489_v33 = vadd.f32 %v490_v61, %v457_v54  ;;  %v1491_v3 = vadd.f32 %v491_v28, %v458_v21  ;;  %v1158_v28 = vld [vmem:[%s1325_s23 + $0x18] sm:$0xe] }
  0x38   : > { %v510_v34 = vunpack.c.l.bf16 %v1460_v59  ;;  %v511_v4 = vunpack.c.l.bf16 %v1463_v20  ;;  %v512_v22 = vunpack.c.l.bf16 %v1466_v62  ;;  %v513_v35 = vunpack.c.l.bf16 %v1469_v63 }
  0x39   : > { %v514_v23 = vunpack.c.l.bf16 %v1472_v0  ;;  %v515_v36 = vunpack.c.l.bf16 %v1479_v31  ;;  %v516_v5 = vunpack.c.l.bf16 %v1482_v15  ;;  %v517_v24 = vunpack.c.l.bf16 %v1485_v32 }
  0x3a   : > { %v524_v37 = vmul.f32 %v1155_v17, %v470_v40  ;;  %v525_v6 = vmul.f32 %v1155_v17, %v510_v34  ;;  %v526_v7 = vmul.f32 %v1155_v17, %v471_v25  ;;  %v527_v8 = vmul.f32 %v1155_v17, %v511_v4 }
  0x3b   : > { %v528_v11 = vmul.f32 %v1155_v17, %v472_v55  ;;  %v529_v12 = vmul.f32 %v1155_v17, %v512_v22  ;;  %v530_v13 = vmul.f32 %v1155_v17, %v473_v44  ;;  %v531_v14 = vmul.f32 %v1155_v17, %v513_v35 }
  0x3c   : > { %v532_v29 = vmul.f32 %v1155_v17, %v474_v45  ;;  %v533_v38 = vmul.f32 %v1155_v17, %v514_v23  ;;  %v534_v41 = vmul.f32 %v1155_v17, %v475_v46  ;;  %v535_v42 = vmul.f32 %v1155_v17, %v515_v36 }
  0x3d   : > { %v536_v43 = vmul.f32 %v1155_v17, %v476_v56  ;;  %v537_v47 = vmul.f32 %v1155_v17, %v516_v5  ;;  %v538_v48 = vmul.f32 %v1155_v17, %v477_v57  ;;  %v539_v49 = vmul.f32 %v1155_v17, %v517_v24 }
  0x3e   : > { %v556_v50 = vrot.slane %v524_v37, 1  ;;  %v557_v51 = vrot.slane %v525_v6, 1  ;;  %v559_v52 = vrot.slane %v526_v7, 1  ;;  %v560_v53 = vrot.slane %v527_v8, 1  ;;  %v1159_v8 = vld [vmem:[%s1325_s23 + $0x20] sm:$0xe] }
  0x3f   : > { %v562_v54 = vrot.slane %v528_v11, 1  ;;  %v563_v39 = vrot.slane %v529_v12, 1  ;;  %v565_v40 = vrot.slane %v530_v13, 1  ;;  %v566_v21 = vrot.slane %v531_v14, 1  ;;  %v1160_v11 = vld [vmem:[%s1325_s23 + $0x28] sm:$0xe] }
  0x40   : > { %v558_v25 = vsel %vm321_vm0, %v556_v50, %v557_v51  ;;  %v561_v55 = vsel %vm321_vm0, %v559_v52, %v560_v53  ;;  %v568_v44 = vrot.slane %v532_v29, 1  ;;  %v569_v45 = vrot.slane %v533_v38, 1  ;;  %v1161_v38 = vld [vmem:[%s1325_s23 + $0x30] sm:$0xe] }
  0x41   : > { %v564_v46 = vsel %vm321_vm0, %v562_v54, %v563_v39  ;;  %v567_v56 = vsel %vm321_vm0, %v565_v40, %v566_v21  ;;  %v571_v57 = vrot.slane %v534_v41, 1  ;;  %v572_v18 = vrot.slane %v535_v42, 1  ;;  %v1162_v41 = vld [vmem:[%s1325_s23 + $0x38] sm:$0xe]  ;;  %v1163_v42 = vld [vmem:[%s1325_s23 + $0x40] sm:$0xe] }
  0x42   : > { %v570_v26 = vsel %vm321_vm0, %v568_v44, %v569_v45  ;;  %v574_v27 = vrot.slane %v536_v43, 1  ;;  %v575_v60 = vrot.slane %v537_v47, 1  ;;  %v577_v61 = vrot.slane %v538_v48, 1  ;;  %v1165_v47 = vld [vmem:[%s1721_s1 + $0x5] ss:$0 sm:$0xff] }
  0x43   : > { %v573_v17 = vsel %vm321_vm0, %v571_v57, %v572_v18  ;;  %v578_v37 = vrot.slane %v539_v49, 1  ;;  %v1529_v6 = vadd.f32 %v558_v25, %v492_v1  ;;  %v1531_v7 = vadd.f32 %v561_v55, %v493_v9 }
  0x44   : > { %v576_v12 = vsel %vm321_vm0, %v574_v27, %v575_v60  ;;  %v1537_v13 = vadd.f32 %v564_v46, %v1474_v30  ;;  %v591_v14 = vadd.f32 %v567_v56, %v1476_v10  ;;  %v592_v29 = vadd.f32 %v570_v26, %v496_v2 }
  0x45   : > { %v579_v43 = vsel %vm321_vm0, %v577_v61, %v578_v37  ;;  %v593_v1 = vadd.f32 %v573_v17, %v1487_v16  ;;  %v594_v9 = vadd.f32 %v576_v12, %v1489_v33  ;;  %v606_v48 = vunpack.c.l.bf16 %v1156_v58  ;;  %v1166_v61 = vld [vmem:[%s1325_s23 + $0x10] ss:$8 sps:$4 sm:$0xff]  }
  0x46   : > { %v595_v30 = vadd.f32 %v579_v43, %v1491_v3  ;;  %v607_v49 = vunpack.c.l.bf16 %v1157_v19  ;;  %v608_v50 = vunpack.c.l.bf16 %v1158_v28  ;;  %v609_v10 = vunpack.c.l.bf16 %v1159_v8  ;;  %v1170_v43 = vld [vmem:[%s1325_s23 + $0x30] ss:$8 sps:$4 sm:$0xff]  }
  0x47   : > { %v610_v2 = vunpack.c.l.bf16 %v1160_v11  ;;  %v611_v51 = vunpack.c.l.bf16 %v1161_v38  ;;  %v612_v52 = vunpack.c.l.bf16 %v1162_v41  ;;  %v613_v53 = vunpack.c.l.bf16 %v1163_v42  ;;  %v1168_v11 = vld [vmem:[%s1325_s23 + $0x20] ss:$8 sps:$4 sm:$0xff]  }
  0x48   : > { %v620_v54 = vmul.f32 %v1165_v47, %v606_v48  ;;  %v621_v16 = vmul.f32 %v1165_v47, %v510_v34  ;;  %v622_v39 = vmul.f32 %v1165_v47, %v607_v49  ;;  %v623_v33 = vmul.f32 %v1165_v47, %v511_v4 }
  0x49   : > { %v624_v40 = vmul.f32 %v1165_v47, %v608_v50  ;;  %v625_v21 = vmul.f32 %v1165_v47, %v512_v22  ;;  %v626_v3 = vmul.f32 %v1165_v47, %v609_v10  ;;  %v627_v25 = vmul.f32 %v1165_v47, %v513_v35 }
  0x4a   : > { %v628_v55 = vmul.f32 %v1165_v47, %v610_v2  ;;  %v629_v44 = vmul.f32 %v1165_v47, %v514_v23  ;;  %v630_v45 = vmul.f32 %v1165_v47, %v611_v51  ;;  %v631_v59 = vmul.f32 %v1165_v47, %v515_v36 }
  0x4b   : > { %v632_v34 = vmul.f32 %v1165_v47, %v612_v52  ;;  %v633_v20 = vmul.f32 %v1165_v47, %v516_v5  ;;  %v634_v4 = vmul.f32 %v1165_v47, %v613_v53  ;;  %v635_v62 = vmul.f32 %v1165_v47, %v517_v24  ;;  %v1172_v47 = vld [vmem:[%s1325_s23 + $0x40] ss:$8 sps:$4 sm:$0xff]  }
  0x4c   : > { %v652_v22 = vrot.slane %v620_v54, 2  ;;  %v653_v46 = vrot.slane %v621_v16, 2  ;;  %v655_v63 = vrot.slane %v622_v39, 2  ;;  %v656_v35 = vrot.slane %v623_v33, 2  ;;  %v1585_v39 = vld [vmem:[%s1325_s23 + $0x14] sm:$0x1] }
  0x4d   : > { %v658_v56 = vrot.slane %v624_v40, 2  ;;  %v659_v0 = vrot.slane %v625_v21, 2  ;;  %v661_v23 = vrot.slane %v626_v3, 2  ;;  %v662_v57 = vrot.slane %v627_v25, 2  ;;  %v1591_v25 = vld [vmem:[%s1325_s23 + $0x24] sm:$0x1] }
  0x4e   : > { %v654_v31 = vsel %vm418_vm1, %v652_v22, %v653_v46  ;;  %v657_v36 = vsel %vm418_vm1, %v655_v63, %v656_v35  ;;  %v664_v15 = vrot.slane %v628_v55, 2  ;;  %v665_v5 = vrot.slane %v629_v44, 2  ;;  %v1594_v55 = vld [vmem:[%s1325_s23 + $0x2c] sm:$0x1]  ;;  %v1597_v44 = vld [vmem:[%s1325_s23 + $0x34] sm:$0x1] }
  0x4f   : > { %v660_v18 = vsel %vm418_vm1, %v658_v56, %v659_v0  ;;  %v663_v32 = vsel %vm418_vm1, %v661_v23, %v662_v57  ;;  %v667_v24 = vrot.slane %v630_v45, 2  ;;  %v668_v58 = vrot.slane %v631_v59, 2  ;;  %v1610_v22 = vld [vmem:[%s1325_s23 + $0x4c] sm:$0x1]  ;;  %v1185_v0 = vld [vmem:[%s1721_s1 + $0x7] ss:$0 sm:$0xff] }
  0x50   : > { %v666_v19 = vsel %vm418_vm1, %v664_v15, %v665_v5  ;;  %v670_v26 = vrot.slane %v632_v34, 2  ;;  %v671_v27 = vrot.slane %v633_v20, 2  ;;  %v673_v60 = vrot.slane %v634_v4, 2  ;;  %v1604_v4 = vld [vmem:[%s1325_s23 + $0x3c] sm:$0x1] }
  0x51   : > { %v669_v28 = vsel %vm418_vm1, %v667_v24, %v668_v58  ;;  %v674_v17 = vrot.slane %v635_v62, 2  ;;  %v684_v37 = vadd.f32 %v654_v31, %v1529_v6  ;;  %v685_v8 = vadd.f32 %v657_v36, %v1531_v7  ;;  %v1175_v6 = vld [vmem:[%s1721_s1 + $0x6] ss:$0 sm:$0xff]  ;;  %v1607_v62 = vld [vmem:[%s1325_s23 + $0x44] sm:$0x1] }
  0x52   : > { %v672_v12 = vsel %vm418_vm1, %v670_v26, %v671_v27  ;;  %v686_v38 = vadd.f32 %v660_v18, %v1537_v13  ;;  %v687_v41 = vadd.f32 %v663_v32, %v591_v14  ;;  %v688_v42 = vadd.f32 %v666_v19, %v592_v29 }
  0x53   : > { %v675_v48 = vsel %vm418_vm1, %v673_v60, %v674_v17  ;;  %v689_v49 = vadd.f32 %v669_v28, %v593_v1  ;;  %v690_v50 = vadd.f32 %v672_v12, %v594_v9  ;;  %v703_v7 = vunpack.c.l.bf16 %v1166_v61 }
  0x54   : > { %v691_v10 = vadd.f32 %v675_v48, %v595_v30  ;;  %v704_v2 = vunpack.c.h.bf16 %v1166_v61  ;;  %v705_v51 = vunpack.c.l.bf16 %v1168_v11  ;;  %v706_v13 = vunpack.c.h.bf16 %v1168_v11  ;;  %v1588_v30 = vld [vmem:[%s1325_s23 + $0x1c] sm:$0x1] }
  0x55   : > { %v707_v14 = vunpack.c.l.bf16 %v1170_v43  ;;  %v708_v29 = vunpack.c.h.bf16 %v1170_v43  ;;  %v709_v52 = vunpack.c.l.bf16 %v1172_v47  ;;  %v710_v53 = vunpack.c.h.bf16 %v1172_v47 }
  0x56   : > { %v717_v1 = vmul.f32 %v1175_v6, %v703_v7  ;;  %v718_v54 = vmul.f32 %v1175_v6, %v704_v2  ;;  %v719_v9 = vmul.f32 %v1175_v6, %v705_v51  ;;  %v720_v16 = vmul.f32 %v1175_v6, %v706_v13 }
  0x57   : > { %v721_v33 = vmul.f32 %v1175_v6, %v707_v14  ;;  %v722_v40 = vmul.f32 %v1175_v6, %v708_v29  ;;  %v723_v21 = vmul.f32 %v1175_v6, %v709_v52  ;;  %v724_v3 = vmul.f32 %v1175_v6, %v710_v53 }
  0x58   : > { %v725_v45 = vadd.f32 %v717_v1, %v684_v37  ;;  %v726_v59 = vadd.f32 %v718_v54, %v685_v8  ;;  %v1599_v34 = vadd.f32 %v719_v9, %v686_v38  ;;  %v1601_v20 = vadd.f32 %v720_v16, %v687_v41  ;;  %v1186_v54 = vld [vmem:[%s1325_s23 + $0x10] sm:$0xe]  ;;  %v1187_v9 = vld [vmem:[%s1325_s23 + $0x18] sm:$0xe] }
  0x59   : > { %v729_v46 = vadd.f32 %v721_v33, %v688_v42  ;;  %v1612_v63 = vadd.f32 %v722_v40, %v689_v49  ;;  %v1614_v35 = vadd.f32 %v723_v21, %v690_v50  ;;  %v1616_v56 = vadd.f32 %v724_v3, %v691_v10  ;;  %v1188_v3 = vld [vmem:[%s1325_s23 + $0x20] sm:$0xe] }
  0x5a   : > { %v743_v23 = vunpack.c.l.bf16 %v1585_v39  ;;  %v744_v57 = vunpack.c.l.bf16 %v1588_v30  ;;  %v745_v31 = vunpack.c.l.bf16 %v1591_v25  ;;  %v746_v36 = vunpack.c.l.bf16 %v1594_v55 }
  0x5b   : > { %v747_v15 = vunpack.c.l.bf16 %v1597_v44  ;;  %v748_v5 = vunpack.c.l.bf16 %v1604_v4  ;;  %v749_v18 = vunpack.c.l.bf16 %v1607_v62  ;;  %v750_v32 = vunpack.c.l.bf16 %v1610_v22 }
  0x5c   : > { %v757_v24 = vmul.f32 %v1185_v0, %v703_v7  ;;  %v758_v58 = vmul.f32 %v1185_v0, %v743_v23  ;;  %v759_v19 = vmul.f32 %v1185_v0, %v704_v2  ;;  %v760_v26 = vmul.f32 %v1185_v0, %v744_v57 }
  0x5d   : > { %v761_v27 = vmul.f32 %v1185_v0, %v705_v51  ;;  %v762_v60 = vmul.f32 %v1185_v0, %v745_v31  ;;  %v763_v61 = vmul.f32 %v1185_v0, %v706_v13  ;;  %v764_v28 = vmul.f32 %v1185_v0, %v746_v36 }
  0x5e   : > { %v765_v17 = vmul.f32 %v1185_v0, %v707_v14  ;;  %v766_v37 = vmul.f32 %v1185_v0, %v747_v15  ;;  %v767_v8 = vmul.f32 %v1185_v0, %v708_v29  ;;  %v768_v11 = vmul.f32 %v1185_v0, %v748_v5 }
  0x5f   : > { %v769_v12 = vmul.f32 %v1185_v0, %v709_v52  ;;  %v770_v38 = vmul.f32 %v1185_v0, %v749_v18  ;;  %v771_v41 = vmul.f32 %v1185_v0, %v710_v53  ;;  %v772_v42 = vmul.f32 %v1185_v0, %v750_v32 }
  0x60   : > { %v789_v43 = vrot.slane %v757_v24, 1  ;;  %v790_v47 = vrot.slane %v758_v58, 1  ;;  %v792_v48 = vrot.slane %v759_v19, 1  ;;  %v793_v49 = vrot.slane %v760_v26, 1  ;;  %v1189_v26 = vld [vmem:[%s1325_s23 + $0x28] sm:$0xe] }
  0x61   : > { %v795_v50 = vrot.slane %v761_v27, 1  ;;  %v796_v6 = vrot.slane %v762_v60, 1  ;;  %v798_v7 = vrot.slane %v763_v61, 1  ;;  %v799_v10 = vrot.slane %v764_v28, 1  ;;  %v1190_v27 = vld [vmem:[%s1325_s23 + $0x30] sm:$0xe] }
  0x62   : > { %v791_v2 = vsel %vm321_vm0, %v789_v43, %v790_v47  ;;  %v794_v51 = vsel %vm321_vm0, %v792_v48, %v793_v49  ;;  %v801_v13 = vrot.slane %v765_v17, 1  ;;  %v802_v14 = vrot.slane %v766_v37, 1  ;;  %v1191_v37 = vld [vmem:[%s1325_s23 + $0x38] sm:$0xe] }
  0x63   : > { %v797_v29 = vsel %vm321_vm0, %v795_v50, %v796_v6  ;;  %v800_v52 = vsel %vm321_vm0, %v798_v7, %v799_v10  ;;  %v804_v53 = vrot.slane %v767_v8, 1  ;;  %v805_v1 = vrot.slane %v768_v11, 1  ;;  %v1192_v8 = vld [vmem:[%s1325_s23 + $0x40] sm:$0xe]  ;;  %v1193_v11 = vld [vmem:[%s1325_s23 + $0x48] sm:$0xe] }
  0x64   : > { %v803_v16 = vsel %vm321_vm0, %v801_v13, %v802_v14  ;;  %v807_v33 = vrot.slane %v769_v12, 1  ;;  %v808_v40 = vrot.slane %v770_v38, 1  ;;  %v810_v21 = vrot.slane %v771_v41, 1  ;;  %s1208_s23 = sshll.u32 %s1727_s19, 5 }
  0x65   : > { %v806_v0 = vsel %vm321_vm0, %v804_v53, %v805_v1  ;;  %v811_v24 = vrot.slane %v772_v42, 1  ;;  %v1654_v58 = vadd.f32 %v791_v2, %v725_v45  ;;  %v1656_v19 = vadd.f32 %v794_v51, %v726_v59  ;;  %v1195_v59 = vld [vmem:[%s1721_s1 + $0x8] ss:$0 sm:$0xff]  ;;  %s230_s26 = scalar_lea.vmem %s1724_s4, %s1208_s23 }
  0x66   : > { %v809_v60 = vsel %vm321_vm0, %v807_v33, %v808_v40  ;;  %v823_v61 = vadd.f32 %v797_v29, %v1599_v34  ;;  %v824_v28 = vadd.f32 %v800_v52, %v1601_v20  ;;  %v825_v17 = vadd.f32 %v803_v16, %v729_v46 }
  0x67   : > { %v812_v12 = vsel %vm321_vm0, %v810_v21, %v811_v24  ;;  %v826_v38 = vadd.f32 %v806_v0, %v1612_v63  ;;  %v827_v45 = vadd.f32 %v809_v60, %v1614_v35  ;;  %v839_v41 = vunpack.c.l.bf16 %v1186_v54  ;;  %v1196_v21 = vld [vmem:[%s1722_s2] ss:$0 sm:$0xff] }
  0x68   : > { %v828_v42 = vadd.f32 %v812_v12, %v1616_v56  ;;  %v840_v34 = vunpack.c.l.bf16 %v1187_v9  ;;  %v841_v43 = vunpack.c.l.bf16 %v1188_v3  ;;  %v842_v20 = vunpack.c.l.bf16 %v1189_v26 }
  0x69   : > { %v843_v46 = vunpack.c.l.bf16 %v1190_v27  ;;  %v844_v47 = vunpack.c.l.bf16 %v1191_v37  ;;  %v845_v48 = vunpack.c.l.bf16 %v1192_v8  ;;  %v846_v49 = vunpack.c.l.bf16 %v1193_v11  ;;  %v1197_v11 = vld [vmem:[%s1723_s3] ss:$0 sm:$0xff] }
  0x6a   : > { %v853_v50 = vmul.f32 %v1195_v59, %v839_v41  ;;  %v854_v63 = vmul.f32 %v1195_v59, %v743_v23  ;;  %v855_v6 = vmul.f32 %v1195_v59, %v840_v34  ;;  %v856_v35 = vmul.f32 %v1195_v59, %v744_v57 }
  0x6b   : > { %v857_v7 = vmul.f32 %v1195_v59, %v841_v43  ;;  %v858_v10 = vmul.f32 %v1195_v59, %v745_v31  ;;  %v859_v56 = vmul.f32 %v1195_v59, %v842_v20  ;;  %v860_v2 = vmul.f32 %v1195_v59, %v746_v36 }
  0x6c   : > { %v861_v51 = vmul.f32 %v1195_v59, %v843_v46  ;;  %v862_v13 = vmul.f32 %v1195_v59, %v747_v15  ;;  %v863_v14 = vmul.f32 %v1195_v59, %v844_v47  ;;  %v864_v39 = vmul.f32 %v1195_v59, %v748_v5 }
  0x6d   : > { %v865_v23 = vmul.f32 %v1195_v59, %v845_v48  ;;  %v866_v30 = vmul.f32 %v1195_v59, %v749_v18  ;;  %v867_v57 = vmul.f32 %v1195_v59, %v846_v49  ;;  %v868_v25 = vmul.f32 %v1195_v59, %v750_v32 }
  0x6e   : > { %v885_v31 = vrot.slane %v853_v50, 2  ;;  %v886_v29 = vrot.slane %v854_v63, 2  ;;  %v888_v55 = vrot.slane %v855_v6, 2  ;;  %v889_v36 = vrot.slane %v856_v35, 2 }
  0x6f   : > { %v891_v52 = vrot.slane %v857_v7, 2  ;;  %v892_v53 = vrot.slane %v858_v10, 2  ;;  %v894_v44 = vrot.slane %v859_v56, 2  ;;  %v895_v15 = vrot.slane %v860_v2, 2 }
  0x70   : > { %v887_v1 = vsel %vm418_vm1, %v885_v31, %v886_v29  ;;  %v890_v4 = vsel %vm418_vm1, %v888_v55, %v889_v36  ;;  %v897_v5 = vrot.slane %v861_v51, 2  ;;  %v898_v54 = vrot.slane %v862_v13, 2 }
  0x71   : > { %v893_v62 = vsel %vm418_vm1, %v891_v52, %v892_v53  ;;  %v896_v18 = vsel %vm418_vm1, %v894_v44, %v895_v15  ;;  %v900_v22 = vrot.slane %v863_v14, 2  ;;  %v901_v32 = vrot.slane %v864_v39, 2 }
  0x72   : > { %v899_v9 = vsel %vm418_vm1, %v897_v5, %v898_v54  ;;  %v903_v16 = vrot.slane %v865_v23, 2  ;;  %v904_v33 = vrot.slane %v866_v30, 2  ;;  %v906_v40 = vrot.slane %v867_v57, 2 }
  0x73   : > { %v902_v3 = vsel %vm418_vm1, %v900_v22, %v901_v32  ;;  %v907_v0 = vrot.slane %v868_v25, 2  ;;  %v917_v24 = vadd.f32 %v887_v1, %v1654_v58  ;;  %v918_v26 = vadd.f32 %v890_v4, %v1656_v19 }
  0x74   : > { %v905_v27 = vsel %vm418_vm1, %v903_v16, %v904_v33  ;;  %v919_v60 = vadd.f32 %v893_v62, %v823_v61  ;;  %v920_v37 = vadd.f32 %v896_v18, %v824_v28  ;;  %v921_v8 = vadd.f32 %v899_v9, %v825_v17 }
  0x75   : > { %v908_v12 = vsel %vm418_vm1, %v906_v40, %v907_v0  ;;  %v922_v59 = vadd.f32 %v902_v3, %v826_v38  ;;  %v923_v41 = vadd.f32 %v905_v27, %v827_v45  ;;  %v932_v34 = vmul.f32 %v1196_v21, %v917_v24 }
  0x76   : > { %v924_v43 = vadd.f32 %v908_v12, %v828_v42  ;;  %v933_v20 = vmul.f32 %v1196_v21, %v918_v26  ;;  %v934_v46 = vmul.f32 %v1196_v21, %v919_v60  ;;  %v935_v58 = vmul.f32 %v1196_v21, %v920_v37 }
  0x77   : > { %v936_v47 = vmul.f32 %v1196_v21, %v921_v8  ;;  %v937_v19 = vmul.f32 %v1196_v21, %v922_v59  ;;  %v938_v48 = vmul.f32 %v1196_v21, %v923_v41  ;;  %v947_v49 = vadd.f32 %v1197_v11, %v932_v34 }
  0x78   : > { %v939_v61 = vmul.f32 %v1196_v21, %v924_v43  ;;  %v948_v28 = vadd.f32 %v1197_v11, %v933_v20  ;;  %v949_v17 = vadd.f32 %v1197_v11, %v934_v46  ;;  %v950_v50 = vadd.f32 %v1197_v11, %v935_v58 }
  0x79   : > { %v951_v63 = vadd.f32 %v1197_v11, %v936_v47  ;;  %v952_v6 = vadd.f32 %v1197_v11, %v937_v19  ;;  %v1705_v35 = vadd.f32 %v1197_v11, %v938_v48  ;;  %v1198_v7 = vmul.f32 -1.442695, %v947_v49 }
  0x7a   : > { %v954_v38 = vadd.f32 %v1197_v11, %v939_v61  ;;  %v1199_v45 = vmul.f32 -1.442695, %v948_v28  ;;  %v1200_v10 = vmul.f32 -1.442695, %v949_v17  ;;  %v1201_v42 = vmul.f32 -1.442695, %v950_v50 }
  0x7b   : > { %1241 = vpow2.f32 %v1198_v7  ;;  %v1202_v56 = vmul.f32 -1.442695, %v951_v63  ;;  %v1203_v2 = vmul.f32 -1.442695, %v952_v6  ;;  %v1204_v51 = vmul.f32 -1.442695, %v1705_v35 }
  0x7c   : > { %1243 = vpow2.f32 %v1199_v45  ;;  %v1205_v13 = vmul.f32 -1.442695, %v954_v38 }
  0x7d   : > { %1245 = vpow2.f32 %v1200_v10 }
  0x7e   : > { %1247 = vpow2.f32 %v1201_v42 }
  0x7f   : > { %1249 = vpow2.f32 %v1202_v56 }
  0x80   : > { %1251 = vpow2.f32 %v1203_v2 }
  0x81   : > { %1253 = vpow2.f32 %v1204_v51 }
  0x82   : > { %1255 = vpow2.f32 %v1205_v13 }
  0x85   : > { %v1242_v14 = vpop.eup %1241 }
  0x86   : > { %v1244_v39 = vpop.eup %1243  ;;  %v979_v23 = vadd.f32 1.0, %v1242_v14 }
  0x87   : > { %v1246_v30 = vpop.eup %1245  ;;  %v980_v57 = vadd.f32 1.0, %v1244_v39 }
  0x88   : > { %v1248_v25 = vpop.eup %1247  ;;  %v981_v31 = vadd.f32 1.0, %v1246_v30  ;;  %1257 = vrcp.f32 %v979_v23 }
  0x89   : > { %v1250_v29 = vpop.eup %1249  ;;  %v982_v55 = vadd.f32 1.0, %v1248_v25  ;;  %1259 = vrcp.f32 %v980_v57 }
  0x8a   : > { %v1252_v36 = vpop.eup %1251  ;;  %v983_v52 = vadd.f32 1.0, %v1250_v29  ;;  %1261 = vrcp.f32 %v981_v31 }
  0x8b   : > { %v1254_v53 = vpop.eup %1253  ;;  %v984_v44 = vadd.f32 1.0, %v1252_v36  ;;  %1263 = vrcp.f32 %v982_v55 }
  0x8c   : > { %v1256_v15 = vpop.eup %1255  ;;  %v985_v1 = vadd.f32 1.0, %v1254_v53  ;;  %1265 = vrcp.f32 %v983_v52 }
  0x8d   : > { %v986_v4 = vadd.f32 1.0, %v1256_v15  ;;  %1267 = vrcp.f32 %v984_v44 }
  0x8e   : > { %1269 = vrcp.f32 %v985_v1 }
  0x8f   : > { %1271 = vrcp.f32 %v986_v4 }
  0x92   : > { %v1258_v5 = vpop.eup %1257 }
  0x93   : > { %v1260_v54 = vpop.eup %1259  ;;  %v1003_v62 = vmul.f32 %v1258_v5, %v947_v49 }
  0x94   : > { %v1262_v18 = vpop.eup %1261  ;;  %v1004_v22 = vmul.f32 %v1260_v54, %v948_v28 }
  0x95   : > { %v1264_v32 = vpop.eup %1263  ;;  %v1005_v9 = vmul.f32 %v1262_v18, %v949_v17 }
  0x96   : > { %v1266_v16 = vpop.eup %1265  ;;  %v1006_v33 = vmul.f32 %v1264_v32, %v950_v50  ;;  %v1212_v40 = vpack.c.bf16 %v1004_v22, %v1003_v62  ;;  %v1027_v21 = vadd.f32 %v1004_v22, %v1003_v62 }
  0x97   : > { %v1268_v3 = vpop.eup %1267  ;;  %v1007_v24 = vmul.f32 %v1266_v16, %v951_v63 }
  0x98   : > { %v1270_v0 = vpop.eup %1269  ;;  %v1008_v26 = vmul.f32 %v1268_v3, %v952_v6  ;;  %1213 = vst [vmem:[%s230_s26] sm:$0xff] %v1212_v40   ;;  %v1217_v27 = vpack.c.bf16 %v1006_v33, %v1005_v9  ;;  %v1028_v60 = vadd.f32 %v1027_v21, %v1005_v9 }
  0x99   : > { %v1272_v37 = vpop.eup %1271  ;;  %v1009_v8 = vmul.f32 %v1270_v0, %v1705_v35 }
  0x9a   : > { %v1010_v11 = vmul.f32 %v1272_v37, %v954_v38  ;;  %1229 = vst [vmem:[%s230_s26 + $0x8] sm:$0xff] %v1217_v27   ;;  %v1222_v12 = vpack.c.bf16 %v1008_v26, %v1007_v24  ;;  %v1029_v59 = vadd.f32 %v1028_v60, %v1006_v33 }
  0x9c   : > { %1230 = vst [vmem:[%s230_s26 + $0x10] sm:$0xff] %v1222_v12   ;;  %v1227_v41 = vpack.c.bf16 %v1010_v11, %v1009_v8  ;;  %v1030_v34 = vadd.f32 %v1029_v59, %v1007_v24 }
  0x9e   : > { %1231 = vst [vmem:[%s230_s26 + $0x18] sm:$0xff] %v1227_v41   ;;  %v1031_v43 = vadd.f32 %v1030_v34, %v1008_v26 }
  0xa0   : > { %v1032_v20 = vadd.f32 %v1031_v43, %v1009_v8 }
  0xa2   : > { %v1033_v46 = vadd.f32 %v1032_v20, %v1010_v11 }
  0xa4   : > { %v1034_v58 = vrot.slane %v1033_v46, 4 }
  0xa6   : > { %v1035_v47 = vadd.f32 %v1034_v58, %v1033_v46 }
  0xa8   : > { %v1036_v19 = vrot.slane %v1035_v47, 2 }
  0xaa   : > { %v1037_v48 = vadd.f32 %v1036_v19, %v1035_v47 }
  0xac   : > { %v1038_v49 = vrot.slane %v1037_v48, 1 }
  0xae   : > { %v1039_v61 = vadd.f32 %v1038_v49, %v1037_v48 }
  0xb0   : > { %v1041_v28 = vmul.f32 0.015625, %v1039_v61 }
  0xb2   : > { %1042 = vst [vmem:[%s233_s29] sm:$0x1] %v1041_v28 }
  0xb3 PF: > { %s16_s18 = sadd.s32 1, %s1279_s18  }
  0xb4   : > { %p13_p4 = scmp.ge.s32.totalorder %s16_s18, 4  }
  0xb6   :  { %15 = sbr.rel (!%p13_p4) target bundleno = 1 (0x1), region = 88 }

// kernel: _lambda_.31
= control target key start
LH: loop header
LB: loop body
LE: loop exit
PB: predicated region body
PF: predicated region fallthrough
CT: control target
= control target key end

     0   :  { %s766_s18 = smov 0   ;;  %s931_s0 = inlined_call_operand.vmem [shape: bf16[2,20,5,128], index: 0, kind: input, shape index: {}]   ;;  %s932_s1 = inlined_call_operand.vmem [shape: f32[9,1,128], index: 1, kind: input, shape index: {}]   ;;  %s933_s2 = inlined_call_operand.vmem [shape: f32[1,128], index: 2, kind: input, shape index: {}]   ;;  %s934_s3 = inlined_call_operand.vmem [shape: f32[1,128], index: 3, kind: input, shape index: {}]   ;;  %s935_s4 = inlined_call_operand.vmem [shape: bf16[2,4,4,128], index: 4, kind: output, shape index: {0}]   ;;  %s936_s5 = inlined_call_operand.vmem [shape: f32[2,1,128], index: 5, kind: output, shape index: {1}]  }
   0x1 LB: > { %s641_s19 = sadd.s32 4294967295, %s734_s18   ;;  %p645_p0 = scmp.ge.s32.totalorder %s734_s18, 1  ;;  %s734_s18 = sphi %s766_s18, %s16_s18  }
   0x2   : > { %p190_p1 = scmp.lt.s32.totalorder %s734_s18, 3 }
   0x4   : > { %p191_p2 = pnand %p645_p0, %p190_p1 }
   0x5   : > { %p221_p3 = scmp.lt.s32.totalorder (!%p191_p2), %s641_s19, 1  ;;  %v780_v0 = vld [vmem:[%s932_s1] ss:$0 sm:$0xff] (!%p191_p2)  ;;  %v790_v1 = vld [vmem:[%s932_s1 + $0x1] ss:$0 sm:$0xff] (!%p191_p2)  ;;  %vm544_vm0 = vcmask (!%p191_p2), 1043456  }
   0x6   : > { %194 = sbr.rel (%p191_p2) target bundleno = 108 (0x6c), region = 36  ;;  %v795_v2 = vld [vmem:[%s932_s1 + $0x2] ss:$0 sm:$0xff] (!%p191_p2)  ;;  %v800_v3 = vld [vmem:[%s932_s1 + $0x3] ss:$0 sm:$0xff] (!%p191_p2) }
   0x7   : > { %v810_v12 = vld [vmem:[%s932_s1 + $0x4] ss:$0 sm:$0xff] (!%p191_p2)  ;;  %v816_v16 = vld [vmem:[%s932_s1 + $0x5] ss:$0 sm:$0xff] (!%p191_p2)  ;;  %v830_v28 = vld [vmem:[%s932_s1 + $0x8] ss:$0 sm:$0xff] (!%p191_p2) }
   0x8   : > { %v841_v38 = vld [vmem:[%s932_s1 + $0x6] ss:$0 sm:$0xff] (!%p191_p2)  ;;  %v846_v43 = vld [vmem:[%s932_s1 + $0x7] ss:$0 sm:$0xff] (!%p191_p2) }
   0xd   : > { %s938_s19 = smov (!%p221_p3, %s641_s19), 1 }
   0xe   : > { %s703_s20 = smul.u32 80, %s938_s19  ;;  %s702_s23 = sshll.u32 %s938_s19, 3 }
   0xf   : > { %s230_s26 = scalar_lea.vmem %s935_s4, %s702_s23  ;;  %s233_s29 = scalar_lea.vmem %s936_s5, %s938_s19 }
  0x10   : > { %s785_s25 = scalar_lea.vmem %s931_s0, %s703_s20 }
  0x11   : > { %v234_v4 = vld [vmem:[%s785_s25] sm:$0x3]  ;;  %v650_v5 = vld [vmem:[%s785_s25 + $0x14] sm:$0x3]  ;;  %v658_v10 = vld [vmem:[%s785_s25 + $0x28] sm:$0x3] }
  0x12   : > { %v278_v6 = vld [vmem:[%s785_s25] sm:$0x7]  ;;  %v239_v7 = vunpack.c.l.bf16 %v234_v4  ;;  %v260_v8 = vunpack.c.l.bf16 %v650_v5  ;;  %v664_v11 = vld [vmem:[%s785_s25 + $0x3c] sm:$0x3]  ;;  %v670_v13 = vld [vmem:[%s785_s25 + $0x28] sm:$0x7]  ;;  %v321_v14 = vunpack.c.l.bf16 %v658_v10 }
  0x13   : > { %v284_v9 = vunpack.c.l.bf16 %v278_v6  ;;  %v346_v15 = vunpack.c.l.bf16 %v664_v11  ;;  %v370_v17 = vunpack.c.l.bf16 %v670_v13  ;;  %v676_v18 = vld [vmem:[%s785_s25 + $0x4] sm:$0x3]  ;;  %v682_v23 = vld [vmem:[%s785_s25 + $0x18] sm:$0x3]  ;;  %v659_v30 = vld [vmem:[%s785_s25 + $0x2c] sm:$0x3] }
  0x14   : > { %v688_v19 = vld [vmem:[%s785_s25 + $0x4] sm:$0x7]  ;;  %v249_v20 = vmul.f32 %v780_v0, %v239_v7  ;;  %v270_v21 = vmul.f32 %v790_v1, %v260_v8  ;;  %v651_v25 = vld [vmem:[%s785_s25 + $0x18] sm:$0x3]  ;;  %v331_v26 = vmul.f32 %v800_v3, %v321_v14  ;;  %v407_v27 = vunpack.c.l.bf16 %v676_v18  ;;  %v665_v35 = vld [vmem:[%s785_s25 + $0x40] sm:$0x3] }
  0x15   : > { %v294_v22 = vmul.f32 %v795_v2, %v284_v9  ;;  %v235_v24 = vld [vmem:[%s785_s25 + $0x4] sm:$0x3]  ;;  %v380_v33 = vmul.f32 %v816_v16, %v370_v17  ;;  %v456_v34 = vunpack.c.l.bf16 %v688_v19  ;;  %v671_v36 = vld [vmem:[%s785_s25 + $0x2c] sm:$0x7]  ;;  %v356_v37 = vmul.f32 %v810_v12, %v346_v15  ;;  %v677_v51 = vld [vmem:[%s785_s25 + $0x8] sm:$0x3] }
  0x16   : > { %v279_v29 = vld [vmem:[%s785_s25 + $0x4] sm:$0x7]  ;;  %v274_v31 = vadd.f32 %v270_v21, %v249_v20  ;;  %v432_v39 = vunpack.c.l.bf16 %v682_v23  ;;  %v240_v40 = vunpack.c.l.bf16 %v235_v24  ;;  %v261_v41 = vunpack.c.l.bf16 %v651_v25  ;;  %v689_v52 = vld [vmem:[%s785_s25 + $0x8] sm:$0x7]  ;;  %v652_v58 = vld [vmem:[%s785_s25 + $0x1c] sm:$0x3] }
  0x17   : > { %v302_v32 = vrot.slane %v294_v22, 1  ;;  %v849_v44 = vmul.f32 %v830_v28, %v456_v34  ;;  %v285_v45 = vunpack.c.l.bf16 %v279_v29  ;;  %v322_v46 = vunpack.c.l.bf16 %v659_v30  ;;  %v236_v57 = vld [vmem:[%s785_s25 + $0x8] sm:$0x3]  ;;  %v683_v63 = vld [vmem:[%s785_s25 + $0x1c] sm:$0x3] }
  0x18   : > { %v250_v47 = vmul.f32 %v780_v0, %v240_v40  ;;  %v271_v48 = vmul.f32 %v790_v1, %v261_v41  ;;  %v347_v49 = vunpack.c.l.bf16 %v665_v35  ;;  %v371_v50 = vunpack.c.l.bf16 %v671_v36  ;;  %v280_v8 = vld [vmem:[%s785_s25 + $0x8] sm:$0x7]  ;;  %v660_v9 = vld [vmem:[%s785_s25 + $0x30] sm:$0x3]  ;;  %v666_v15 = vld [vmem:[%s785_s25 + $0x44] sm:$0x3] }
  0x19   : > { %v310_v42 = vadd.f32 %v302_v32, %v274_v31  ;;  %v388_v54 = vrot.slane %v380_v33, 1  ;;  %v417_v55 = vmul.f32 %v841_v38, %v407_v27  ;;  %v295_v56 = vmul.f32 %v795_v2, %v285_v45  ;;  %v672_v21 = vld [vmem:[%s785_s25 + $0x30] sm:$0x7]  ;;  %v690_v31 = vld [vmem:[%s785_s25 + $0xc] sm:$0x7] }
  0x1a   : > { %v442_v59 = vmul.f32 %v846_v43, %v432_v39  ;;  %v474_v60 = vrot.slane %v849_v44, 1  ;;  %v275_v61 = vadd.f32 %v271_v48, %v250_v47  ;;  %v332_v62 = vmul.f32 %v800_v3, %v322_v46  ;;  %v237_v36 = vld [vmem:[%s785_s25 + $0xc] sm:$0x3]  ;;  %v684_v44 = vld [vmem:[%s785_s25 + $0x20] sm:$0x3] }
  0x1b   : > { %v335_v53 = vadd.f32 %v331_v26, %v310_v42  ;;  %v303_v5 = vrot.slane %v295_v56, 1  ;;  %v381_v6 = vmul.f32 %v816_v16, %v371_v50  ;;  %v457_v7 = vunpack.c.l.bf16 %v689_v52  ;;  %v678_v42 = vld [vmem:[%s785_s25 + $0xc] sm:$0x3]  ;;  %v882_v45 = vld [vmem:[%s933_s2] ss:$0 sm:$0xff] }
  0x1c   : > { %v357_v10 = vmul.f32 %v810_v12, %v347_v49  ;;  %v408_v11 = vunpack.c.l.bf16 %v677_v51  ;;  %v241_v13 = vunpack.c.l.bf16 %v236_v57  ;;  %v262_v14 = vunpack.c.l.bf16 %v652_v58  ;;  %v653_v50 = vld [vmem:[%s785_s25 + $0x20] sm:$0x3]  ;;  %v661_v56 = vld [vmem:[%s785_s25 + $0x34] sm:$0x3] }
  0x1d   : > { %v360_v4 = vadd.f32 %v356_v37, %v335_v53  ;;  %v311_v18 = vadd.f32 %v303_v5, %v275_v61  ;;  %v433_v19 = vunpack.c.l.bf16 %v683_v63  ;;  %v467_v20 = vmul.f32 %v830_v28, %v457_v7  ;;  %v893_v57 = vld [vmem:[%s934_s3] ss:$0 sm:$0xff]  ;;  %v667_v63 = vld [vmem:[%s785_s25 + $0x48] sm:$0x3]  ;;  %v673_v7 = vld [vmem:[%s785_s25 + $0x34] sm:$0x7] }
  0x1e   : > { %v251_v22 = vmul.f32 %v780_v0, %v241_v13  ;;  %v272_v23 = vmul.f32 %v790_v1, %v262_v14  ;;  %v286_v24 = vunpack.c.l.bf16 %v280_v8  ;;  %v323_v25 = vunpack.c.l.bf16 %v660_v9 }
  0x1f   : > { %v396_v17 = vadd.f32 %v388_v54, %v360_v4  ;;  %v336_v27 = vadd.f32 %v332_v62, %v311_v18  ;;  %v389_v29 = vrot.slane %v381_v6, 1  ;;  %v348_v30 = vunpack.c.l.bf16 %v666_v15 }
  0x20   : > { %v418_v32 = vmul.f32 %v841_v38, %v408_v11  ;;  %v276_v33 = vadd.f32 %v272_v23, %v251_v22  ;;  %v296_v34 = vmul.f32 %v795_v2, %v286_v24  ;;  %v372_v35 = vunpack.c.l.bf16 %v672_v21 }
  0x21   : > { %v421_v26 = vadd.f32 %v417_v55, %v396_v17  ;;  %v361_v39 = vadd.f32 %v357_v10, %v336_v27  ;;  %v443_v40 = vmul.f32 %v846_v43, %v433_v19  ;;  %v475_v41 = vrot.slane %v467_v20, 1  ;;  %v281_v55 = vld [vmem:[%s785_s25 + $0xc] sm:$0x7] }
  0x22   : > { %v304_v46 = vrot.slane %v296_v34, 1  ;;  %v333_v47 = vmul.f32 %v800_v3, %v323_v25  ;;  %v382_v48 = vmul.f32 %v816_v16, %v372_v35  ;;  %v458_v49 = vunpack.c.l.bf16 %v690_v31  ;;  %v679_v25 = vld [vmem:[%s785_s25 + $0x10] sm:$0x3] }
  0x23   : > { %v446_v37 = vadd.f32 %v442_v59, %v421_v26  ;;  %v397_v52 = vadd.f32 %v389_v29, %v361_v39  ;;  %v358_v53 = vmul.f32 %v810_v12, %v348_v30  ;;  %v242_v54 = vunpack.c.l.bf16 %v237_v36  ;;  %v691_v26 = vld [vmem:[%s785_s25 + $0x10] sm:$0x7] }
  0x24   : > { %v312_v58 = vadd.f32 %v304_v46, %v276_v33  ;;  %v390_v59 = vrot.slane %v382_v48, 1  ;;  %v409_v61 = vunpack.c.l.bf16 %v678_v42  ;;  %v434_v62 = vunpack.c.l.bf16 %v684_v44  ;;  %v685_v33 = vld [vmem:[%s785_s25 + $0x24] sm:$0x3] }
  0x25   : > { %v482_v51 = vadd.f32 %v474_v60, %v446_v37  ;;  %v422_v60 = vadd.f32 %v418_v32, %v397_v52  ;;  %v252_v5 = vmul.f32 %v780_v0, %v242_v54  ;;  %v263_v6 = vunpack.c.l.bf16 %v653_v50 }
  0x26   : > { %v337_v8 = vadd.f32 %v333_v47, %v312_v58  ;;  %v468_v9 = vmul.f32 %v830_v28, %v458_v49  ;;  %v287_v10 = vunpack.c.l.bf16 %v281_v55  ;;  %v324_v11 = vunpack.c.l.bf16 %v661_v56 }
  0x27   : > { %v493_v4 = vmul.f32 %v882_v45, %v482_v51  ;;  %v447_v14 = vadd.f32 %v443_v40, %v422_v60  ;;  %v273_v15 = vmul.f32 %v790_v1, %v263_v6  ;;  %v349_v17 = vunpack.c.l.bf16 %v667_v63 }
  0x28   : > { %v362_v18 = vadd.f32 %v358_v53, %v337_v8  ;;  %v419_v19 = vmul.f32 %v841_v38, %v409_v61  ;;  %v297_v0 = vmul.f32 %v795_v2, %v287_v10  ;;  %v373_v20 = vunpack.c.l.bf16 %v673_v7 }
  0x29   : > { %v504_v13 = vadd.f32 %v893_v57, %v493_v4  ;;  %v483_v22 = vadd.f32 %v475_v41, %v447_v14  ;;  %v444_v23 = vmul.f32 %v846_v43, %v434_v62  ;;  %v277_v24 = vadd.f32 %v273_v15, %v252_v5 }
  0x2a   : > { %v398_v27 = vadd.f32 %v390_v59, %v362_v18  ;;  %v305_v29 = vrot.slane %v297_v0, 1  ;;  %v334_v30 = vmul.f32 %v800_v3, %v324_v11  ;;  %v383_v1 = vmul.f32 %v816_v16, %v373_v20 }
  0x2b   : > { %v696_v21 = vmul.f32 -1.442695, %v504_v13  ;;  %v494_v31 = vmul.f32 %v882_v45, %v483_v22  ;;  %v476_v32 = vrot.slane %v468_v9, 1  ;;  %v359_v2 = vmul.f32 %v810_v12, %v349_v17 }
  0x2c   : > { %v423_v34 = vadd.f32 %v419_v19, %v398_v27  ;;  %v313_v35 = vadd.f32 %v305_v29, %v277_v24  ;;  %v410_v36 = vunpack.c.l.bf16 %v679_v25  ;;  %v459_v37 = vunpack.c.l.bf16 %v691_v26 }
  0x2d   : > { %712 = vpow2.f32 %v696_v21  ;;  %v505_v39 = vadd.f32 %v893_v57, %v494_v31  ;;  %v391_v42 = vrot.slane %v383_v1, 1  ;;  %v435_v44 = vunpack.c.l.bf16 %v685_v33 }
  0x2e   : > { %v448_v40 = vadd.f32 %v444_v23, %v423_v34  ;;  %v338_v41 = vadd.f32 %v334_v30, %v313_v35  ;;  %v420_v47 = vmul.f32 %v841_v38, %v410_v36  ;;  %v469_v48 = vmul.f32 %v830_v28, %v459_v37 }
  0x2f   : > { %v697_v3 = vmul.f32 -1.442695, %v505_v39  ;;  %v445_v50 = vmul.f32 %v846_v43, %v435_v44 }
  0x30   : > { %v484_v46 = vadd.f32 %v476_v32, %v448_v40  ;;  %v363_v16 = vadd.f32 %v359_v2, %v338_v41  ;;  %v477_v53 = vrot.slane %v469_v48, 1 }
  0x31   : > { %714 = vpow2.f32 %v697_v3 }
  0x32   : > { %v495_v12 = vmul.f32 %v882_v45, %v484_v46  ;;  %v399_v49 = vadd.f32 %v391_v42, %v363_v16 }
  0x34   : > { %v506_v51 = vadd.f32 %v893_v57, %v495_v12  ;;  %v424_v52 = vadd.f32 %v420_v47, %v399_v49 }
  0x36   : > { %v698_v56 = vmul.f32 -1.442695, %v506_v51  ;;  %v449_v58 = vadd.f32 %v445_v50, %v424_v52 }
  0x37   : > { %v713_v54 = vpop.eup %712 }
  0x38   : > { %v520_v55 = vadd.f32 1.0, %v713_v54  ;;  %v485_v59 = vadd.f32 %v477_v53, %v449_v58 }
  0x3a   : > { %716 = vrcp.f32 %v520_v55  ;;  %v496_v28 = vmul.f32 %v882_v45, %v485_v59 }
  0x3b   : > { %718 = vpow2.f32 %v698_v56  ;;  %v715_v38 = vpop.eup %714 }
  0x3c   : > { %v521_v61 = vadd.f32 1.0, %v715_v38  ;;  %v507_v62 = vadd.f32 %v893_v57, %v496_v28 }
  0x3e   : > { %720 = vrcp.f32 %v521_v61  ;;  %v699_v43 = vmul.f32 -1.442695, %v507_v62 }
  0x40   : > { %722 = vpow2.f32 %v699_v43 }
  0x44   : > { %v717_v63 = vpop.eup %716 }
  0x45   : > { %v719_v4 = vpop.eup %718  ;;  %v532_v60 = vmul.f32 %v717_v63, %v504_v13 }
  0x46   : > { %v522_v5 = vadd.f32 1.0, %v719_v4 }
  0x47   : > { %v536_v6 = vpack.c.bf16 %v532_v60, %v532_v60  ;;  %v545_v11 = vsel %vm544_vm0, %v532_v60, 0.0 }
  0x48   : > { %724 = vrcp.f32 %v522_v5  ;;  %v721_v45 = vpop.eup %720 }
  0x49   : > { %540 = vst [vmem:[%s230_s26] sm:$0x3] %v536_v6  ;;  %v533_v7 = vmul.f32 %v721_v45, %v505_v39 }
  0x4a   : > { %v723_v8 = vpop.eup %722 }
  0x4b   : > { %v537_v9 = vpack.c.bf16 %v533_v7, %v533_v7  ;;  %v523_v57 = vadd.f32 1.0, %v723_v8  ;;  %v546_v14 = vsel %vm544_vm0, %v533_v7, 0.0 }
  0x4c   : > { %v547_v15 = vadd.f32 %v546_v14, %v545_v11 }
  0x4d   : > { %541 = vst [vmem:[%s230_s26 + $0x2] sm:$0x3] %v537_v9  ;;  %726 = vrcp.f32 %v523_v57 }
  0x52   : > { %v725_v10 = vpop.eup %724 }
  0x53   : > { %v534_v13 = vmul.f32 %v725_v10, %v506_v51 }
  0x55   : > { %v538_v17 = vpack.c.bf16 %v534_v13, %v534_v13  ;;  %v548_v18 = vsel %vm544_vm0, %v534_v13, 0.0 }
  0x56   : > { %v549_v0 = vadd.f32 %v548_v18, %v547_v15 }
  0x57   : > { %542 = vst [vmem:[%s230_s26 + $0x4] sm:$0x3] %v538_v17  ;;  %v727_v19 = vpop.eup %726 }
  0x58   : > { %v535_v20 = vmul.f32 %v727_v19, %v507_v62 }
  0x5a   : > { %v539_v21 = vpack.c.bf16 %v535_v20, %v535_v20  ;;  %v550_v22 = vsel %vm544_vm0, %v535_v20, 0.0 }
  0x5b   : > { %v551_v23 = vadd.f32 %v550_v22, %v549_v0 }
  0x5c   : > { %543 = vst [vmem:[%s230_s26 + $0x6] sm:$0x3] %v539_v21 }
  0x5d   : > { %v552_v24 = vrot.slane %v551_v23, 4 }
  0x5f   : > { %v553_v25 = vadd.f32 %v552_v24, %v551_v23 }
  0x61   : > { %v554_v26 = vrot.slane %v553_v25, 2 }
  0x63   : > { %v555_v27 = vadd.f32 %v554_v26, %v553_v25 }
  0x65   : > { %v556_v29 = vrot.slane %v555_v27, 1 }
  0x67   : > { %v557_v30 = vadd.f32 %v556_v29, %v555_v27 }
  0x69   : > { %v559_v1 = vmul.f32 0.0625, %v557_v30 }
  0x6b   : > { %560 = vst [vmem:[%s233_s29] sm:$0x1] %v559_v1 }
  0x6c PF: > { %s16_s18 = sadd.s32 1, %s734_s18  }
  0x6d   : > { %p13_p4 = scmp.ge.s32.totalorder %s16_s18, 4  }
  0x6f   :  { %15 = sbr.rel (!%p13_p4) target bundleno = 1 (0x1), region = 91 }

// kernel: _lambda_.33
= control target key start
LH: loop header
LB: loop body
LE: loop exit
PB: predicated region body
PF: predicated region fallthrough
CT: control target
= control target key end

     0   :  { %s678_s18 = smov 0   ;;  %s680_s19 = smov 0   ;;  %s752_s0 = inlined_call_operand.vmem [shape: bf16[2,16,128], index: 0, kind: input, shape index: {}]   ;;  %s753_s1 = inlined_call_operand.vmem [shape: f32[2,1,128], index: 1, kind: input, shape index: {}]   ;;  %s754_s2 = inlined_call_operand.vmem [shape: bf16[128,128], index: 2, kind: input, shape index: {}]   ;;  %s755_s3 = inlined_call_operand.vmem [shape: f32[1,128], index: 3, kind: input, shape index: {}]   ;;  %s756_s4 = inlined_call_operand.vmem [shape: f32[1,128], index: 4, kind: input, shape index: {}]   ;;  %s757_s5 = inlined_call_operand.vmem [shape: bf16[2,16,128], index: 5, kind: output, shape index: {}]  }
   0x1   :  { %s682_s20 = smov 0  }
   0x2 LB: > { %s27_s21 = sadd.s32 1, %s640_s19  ;;  %p526_p0 = scmp.ge.s32.totalorder %s644_s20, 1  ;;  %s644_s20 = sphi %s682_s20, %s15_s20   ;;  %s640_s19 = sphi %s680_s19, %s759_s19   ;;  %s636_s18 = sphi %s678_s18, %s758_s18  }
   0x3   : > { %p29_p1 = scmp.ge.s32.totalorder %s27_s21, 2  ;;  %p216_p2 = scmp.lt.s32.totalorder %s644_s20, 3 }
   0x5   : > { %s761_s21 = smov (%p29_p1, %s27_s21), 0  ;;  %p217_p3 = pnand %p526_p0, %p216_p2 }
   0x6   : > { %v614_v0 = vld [vmem:[%s754_s2] sm:$0xff] (!%p217_p3)   ;;  %v646_v1 = vmov (!%p217_p3), 0.0   ;;  %v615_v2 = vld [vmem:[%s754_s2 + $0x8] sm:$0xff] (!%p217_p3)   ;;  %vm647_vm0 = vmmov (!%p217_p3), 0   ;;  %p256_p4 = scmp.lt.s32.totalorder (!%p217_p3), %s636_s18, 1  ;;  %v616_v3 = vld [vmem:[%s754_s2 + $0x10] sm:$0xff] (!%p217_p3)  }
   0x7   : > { %220 = sbr.rel (%p217_p3) target bundleno = 260 (0x104), region = 40  ;;  %568 = vmatprep.subr.bf16.mxu0 (!%p217_p3), %v646_v1  ;;  %584 = vmatprep.mubr.msk.bf16.mxu0 (!%p217_p3), %vm647_vm0, %v646_v1  ;;  %v617_v4 = vld [vmem:[%s754_s2 + $0x18] sm:$0xff] (!%p217_p3)   ;;  %v618_v5 = vld [vmem:[%s754_s2 + $0x20] sm:$0xff] (!%p217_p3)   ;;  %v619_v6 = vld [vmem:[%s754_s2 + $0x28] sm:$0xff] (!%p217_p3)  }
   0x8   : > { %569 = vmatpush3.bf16.msra.mxu0 (!%p217_p3), %v614_v0  ;;  %v620_v10 = vld [vmem:[%s754_s2 + $0x30] sm:$0xff] (!%p217_p3)   ;;  %v621_v14 = vld [vmem:[%s754_s2 + $0x38] sm:$0xff] (!%p217_p3)   ;;  %v540_v16 = vld [vmem:[%s755_s3] ss:$0 sm:$0xff] (!%p217_p3) }
   0x9   : > { %570 = vmatprep.subr.bf16.mxu0 (!%p217_p3), %v646_v1  ;;  %v541_v20 = vld [vmem:[%s756_s4] ss:$0 sm:$0xff] (!%p217_p3) }
   0xc   : > { %571 = vmatpush3.bf16.msra.mxu0 (!%p217_p3), %v615_v2 }
   0xd   : > { %572 = vmatprep.subr.bf16.mxu0 (!%p217_p3), %v646_v1 }
   0xe   : > { %s763_s18 = smov (!%p256_p4, %s636_s18), 1 }
   0xf   : > { %s546_s30 = sshll.u32 %s763_s18, 3  ;;  %s267_s15 = scalar_lea.vmem %s753_s1, %s763_s18 }
  0x10   : > { %573 = vmatpush3.bf16.msra.mxu0 %v616_v3  ;;  %s263_s10 = scalar_lea.vmem %s752_s0, %s546_s30  ;;  %v531_v11 = vld [vmem:[%s267_s15] ss:$0 sm:$0xff]  ;;  %s276_s6 = scalar_lea.vmem %s757_s5, %s546_s30 }
  0x11   : > { %574 = vmatprep.subr.bf16.mxu0 %v646_v1  ;;  %v551_v7 = vld [vmem:[%s263_s10] sm:$0xff]  }
  0x12   : > { %v552_v8 = vunpack.c.l.bf16 %v551_v7  ;;  %v553_v9 = vunpack.c.h.bf16 %v551_v7 }
  0x14   : > { %575 = vmatpush3.bf16.msra.mxu0 %v617_v4  ;;  %v290_v12 = vmul.f32 %v552_v8, %v531_v11  ;;  %v291_v13 = vmul.f32 %v553_v9, %v531_v11 }
  0x15   : > { %576 = vmatprep.subr.bf16.mxu0 %v646_v1 }
  0x16   : > { %v292_v15 = vpack.c.bf16 %v291_v13, %v290_v12 }
  0x18   : > { %577 = vmatpush3.bf16.msra.mxu0 %v618_v5 }
  0x19   : > { %578 = vmatprep.subr.bf16.mxu0 %v646_v1 }
  0x1c   : > { %579 = vmatpush3.bf16.msra.mxu0 %v619_v6 }
  0x1d   : > { %580 = vmatprep.subr.bf16.mxu0 %v646_v1 }
  0x20   : > { %581 = vmatpush3.bf16.msra.mxu0 %v620_v10 }
  0x21   : > { %582 = vmatprep.subr.bf16.mxu0 %v646_v1 }
  0x24   : > { %583 = vmatpush3.bf16.msra.mxu0 %v621_v14 }
  0x27   : > { %585 = vmatmul.mubr.bf16.vlgmr.msra.gmra.mrb[0].mxu0 %v292_v15 }
  0xfa   : > { %v391_v17 = vpop.f32.mrb[0].mxu0 }
  0xfb   : > { %v405_v18 = vmul.f32 %v540_v16, %v391_v17  ;;  %v586_v19 = vpop.f32.mrb[1].mxu0 }
  0xfc   : > { %v394_v21 = vpop.f32.mrb[2].mxu0 }
  0xfd   : > { %v406_v22 = vmul.f32 %v540_v16, %v394_v21  ;;  %v587_v23 = vpop.f32.mrb[3].mxu0  ;;  %v414_v24 = vadd.f32 %v541_v20, %v405_v18 }
  0xff   : > { %v415_v25 = vadd.f32 %v541_v20, %v406_v22 }
 0x101   : > { %v557_v26 = vpack.c.bf16 %v415_v25, %v414_v24 }
 0x103   : > { %558 = vst [vmem:[%s276_s6] sm:$0xff] %v557_v26  }
 0x104 PF: > { %s15_s20 = sadd.s32 1, %s644_s20   ;;  %s758_s18 = smov %s640_s19 }
 0x105   : > { %p12_p5 = scmp.ge.s32.totalorder %s15_s20, 4   ;;  %s759_s19 = smov %s761_s21 }
 0x107   :  { %14 = sbr.rel (!%p12_p5) target bundleno = 2 (0x2), region = 73 }

</bundles_post_ra>
